<compile_context>
chip_gen: v6e
topology: v6e:2x2x1
jax: 0.10.0
libtpu: 0.0.40
codegen_flags: <defaults>
</compile_context>

<pallas_src>
import functools

import jax
import jax.numpy as jnp
from jax import lax
from jax.experimental import pallas as pl
from jax.experimental.pallas import tpu as pltpu


# ----------------------------------------------------------------------------
# Shared chunk recurrence (traced inside the kernels; Tc static -> unrolled)
# ----------------------------------------------------------------------------
def _run_chunk(x_ref, wih_ref, whh_ref, b_ref, xg_sc, h_sc, c_sc, ych_sc):
    """Run Tc LSTM steps for one (batch_block, time_chunk) grid cell.

    x_ref  : (Bb, Tc, D)   input chunk (pipelined block)
    wih_ref: (D, 4H)       VMEM-resident input weights (pre-transposed)
    whh_ref: (H, 4H)       VMEM-resident recurrent weights (pre-transposed)
    b_ref  : (1, 4H)       b_ih + b_hh
    xg_sc  : (Bb, Tc, 4H)  VMEM scratch for the hoisted input projection
    h_sc,c_sc: (Bb, H)     f32 scratch carrying the recurrence across chunks
    ych_sc : (Bb, Tc, H) VMEM scratch for per-step hidden states, or None.
    Returns (h, c) at the end of the chunk (also written back to h_sc/c_sc).
    """
    Bb, Tc, D = x_ref.shape
    H = h_sc.shape[-1]

    # Hoisted, bias-folded input projection for the whole chunk: one
    # (Bb*Tc, D) x (D, 4H) MXU matmul, staged into VMEM scratch so the serial
    # per-timestep path only re-reads one slice at a time (no live (B,Tc,4H) value).
    xg_sc[...] = (jnp.dot(x_ref[...].reshape(Bb * Tc, D), wih_ref[...],
                          preferred_element_type=jnp.float32)
                  + b_ref[...]).reshape(Bb, Tc, 4 * H)

    h = h_sc[...]
    c = c_sc[...]
    for tt in range(Tc):                                   # static unroll; only (h, c) live
        xg_t = xg_sc[:, tt:tt + 1, :].reshape(Bb, 4 * H)   # one vld per step from scratch
        g = xg_t + jnp.dot(h, whh_ref[...], preferred_element_type=jnp.float32)
        # PyTorch gate order: i, f, g, o
        i_g = jax.nn.sigmoid(g[:, 0 * H:1 * H])
        f_g = jax.nn.sigmoid(g[:, 1 * H:2 * H])
        g_g = jnp.tanh(g[:, 2 * H:3 * H])
        o_g = jax.nn.sigmoid(g[:, 3 * H:4 * H])
        c = f_g * c + i_g * g_g
        h = o_g * jnp.tanh(c)
        if ych_sc is not None:
            ych_sc[:, tt:tt + 1, :] = h[:, None, :]        # to scratch, not to output

    h_sc[...] = h
    c_sc[...] = c
    return h, c


# ----------------------------------------------------------------------------
# Pallas kernels
# ----------------------------------------------------------------------------
def lstm_chunk_kernel(x_ref, wih_ref, whh_ref, b_ref,
                      yseq_ref, h_out_ref, c_out_ref,
                      xg_sc, ych_sc, h_sc, c_sc):
    """Intermediate LSTM layer.  Grid = (Bp//Bb, T//Tc): batch parallel, time sequential."""
    t_idx = pl.program_id(1)

    @pl.when(t_idx == 0)
    def _init():
        h_sc[...] = jnp.zeros_like(h_sc)
        c_sc[...] = jnp.zeros_like(c_sc)

    h, c = _run_chunk(x_ref, wih_ref, whh_ref, b_ref, xg_sc, h_sc, c_sc, ych_sc)

    # Single full-chunk writeback (one big store/DMA) instead of Tc sublane-1 stores.
    yseq_ref[...] = ych_sc[...].astype(yseq_ref.dtype)

    @pl.when(t_idx == pl.num_programs(1) - 1)
    def _finalize():
        h_out_ref[...] = h.astype(h_out_ref.dtype)
        c_out_ref[...] = c.astype(c_out_ref.dtype)


def lstm_last_chunk_kernel(x_ref, wih_ref, whh_ref, b_ref, fcw_ref, fcb_ref,
                           logits_ref, h_out_ref, c_out_ref,
                           xg_sc, h_sc, c_sc):
    """Last LSTM layer with the FC head fused in.  No yseq HBM writeback."""
    t_idx = pl.program_id(1)

    @pl.when(t_idx == 0)
    def _init():
        h_sc[...] = jnp.zeros_like(h_sc)
        c_sc[...] = jnp.zeros_like(c_sc)

    h, c = _run_chunk(x_ref, wih_ref, whh_ref, b_ref, xg_sc, h_sc, c_sc, None)

    @pl.when(t_idx == pl.num_programs(1) - 1)
    def _finalize():
        h_out_ref[...] = h.astype(h_out_ref.dtype)
        c_out_ref[...] = c.astype(c_out_ref.dtype)
        logits_ref[...] = (jnp.dot(h, fcw_ref[...],
                                   preferred_element_type=jnp.float32)
                           + fcb_ref[...]).astype(logits_ref.dtype)


# ----------------------------------------------------------------------------
# Wrappers (pallas_call builders)
# ----------------------------------------------------------------------------
_VMEM_SPEC = pl.BlockSpec(memory_space=pltpu.MemorySpace.VMEM)   # whole-array, resident


def _vmem_limit_bytes():
    """Generation-aware scoped VMEM limit: ~3/4 of physical (96 MiB v5e/v6e, 48 MiB v7x)."""
    try:
        info = pltpu.get_tpu_info()
        for attr in ("vmem_capacity_bytes", "vmem_size_bytes", "vmem_bytes"):
            cap = getattr(info, attr, None)
            if cap:
                return int(min(cap * 3 // 4, 100 * 1024 * 1024))
    except Exception:
        pass
    return 32 * 1024 * 1024


def _pick_time_chunk(T, B, D, H, vmem_limit):
    """Largest time chunk whose per-step VMEM footprint fits the scoped budget."""
    candidates = [tc for tc in (32, 16, 8) if T % tc == 0]
    if not candidates:
        return T                                            # single chunk (= full dim)
    for tc in candidates:                                   # largest first
        need = 4 * (2 * B * tc * D                          # x chunk, double-buffered
                    + 2 * B * tc * H                        # yseq chunk, double-buffered
                    + B * tc * 4 * H                        # xg scratch
                    + B * tc * H                            # ych scratch
                    + (D + H + 1) * 4 * H                   # resident weights + bias
                    + 4 * B * H)                            # h/c scratch + final states
        if need <= int(vmem_limit * 0.6):
            return tc
    return candidates[-1]


def _pick_batch_block(Bp):
    """Two batch blocks enable megacore 'parallel' sharding on v7x; else one block."""
    if Bp >= 16 and (Bp // 2) % 8 == 0:
        return Bp // 2
    return Bp


def _compiler_params(vmem_limit):
    return pltpu.CompilerParams(
        dimension_semantics=("parallel", "arbitrary"),      # batch parallel, time sequential
        vmem_limit_bytes=int(vmem_limit),
    )


def run_lstm_layer(x_btd, wih_t, whh_t, bias, hidden_size, time_chunk, batch_block,
                   vmem_limit):
    """Intermediate layer.  x_btd: (Bp, T, D) batch-first.  Returns (yseq, h_f, c_f)."""
    Bp, T, D = x_btd.shape
    H, Tc, Bb = hidden_size, time_chunk, batch_block
    assert T % Tc == 0 and Bp % Bb == 0
    assert Tc == T or Tc % 8 == 0
    return pl.pallas_call(
        lstm_chunk_kernel,
        out_shape=(jax.ShapeDtypeStruct((Bp, T, H), jnp.float32),
                   jax.ShapeDtypeStruct((Bp, H), jnp.float32),
                   jax.ShapeDtypeStruct((Bp, H), jnp.float32)),
        grid_spec=pltpu.PrefetchScalarGridSpec(
            num_scalar_prefetch=0,
            grid=(Bp // Bb, T // Tc),
            in_specs=[
                pl.BlockSpec((Bb, Tc, D), lambda b, i: (b, i, 0)),
                _VMEM_SPEC,      # wih (D, 4H)
                _VMEM_SPEC,      # whh (H, 4H)
                _VMEM_SPEC,      # bias (1, 4H)
            ],
            out_specs=[
                pl.BlockSpec((Bb, Tc, H), lambda b, i: (b, i, 0)),
                pl.BlockSpec((Bb, H), lambda b, i: (b, 0)),
                pl.BlockSpec((Bb, H), lambda b, i: (b, 0)),
            ],
            scratch_shapes=[pltpu.VMEM((Bb, Tc, 4 * H), jnp.float32),   # xg_sc
                            pltpu.VMEM((Bb, Tc, H), jnp.float32),       # ych_sc
                            pltpu.VMEM((Bb, H), jnp.float32),           # h_sc
                            pltpu.VMEM((Bb, H), jnp.float32)],          # c_sc
        ),
        compiler_params=_compiler_params(vmem_limit),
    )(x_btd, wih_t, whh_t, bias)


def run_lstm_last_layer(x_btd, wih_t, whh_t, bias, fc_wt, fc_b,
                        hidden_size, time_chunk, batch_block, vmem_limit):
    """Last layer with fused FC head.  Returns (logits, h_f, c_f)."""
    Bp, T, D = x_btd.shape
    H, Tc, Bb = hidden_size, time_chunk, batch_block
    C = fc_wt.shape[1]
    assert T % Tc == 0 and Bp % Bb == 0
    assert Tc == T or Tc % 8 == 0
    return pl.pallas_call(
        lstm_last_chunk_kernel,
        out_shape=(jax.ShapeDtypeStruct((Bp, C), jnp.float32),
                   jax.ShapeDtypeStruct((Bp, H), jnp.float32),
                   jax.ShapeDtypeStruct((Bp, H), jnp.float32)),
        grid_spec=pltpu.PrefetchScalarGridSpec(
            num_scalar_prefetch=0,
            grid=(Bp // Bb, T // Tc),
            in_specs=[
                pl.BlockSpec((Bb, Tc, D), lambda b, i: (b, i, 0)),
                _VMEM_SPEC,      # wih (D, 4H)
                _VMEM_SPEC,      # whh (H, 4H)
                _VMEM_SPEC,      # bias (1, 4H)
                _VMEM_SPEC,      # fc_w (H, C)
                _VMEM_SPEC,      # fc_b (1, C)
            ],
            out_specs=[
                pl.BlockSpec((Bb, C), lambda b, i: (b, 0)),
                pl.BlockSpec((Bb, H), lambda b, i: (b, 0)),
                pl.BlockSpec((Bb, H), lambda b, i: (b, 0)),
            ],
            scratch_shapes=[pltpu.VMEM((Bb, Tc, 4 * H), jnp.float32),   # xg_sc
                            pltpu.VMEM((Bb, H), jnp.float32),           # h_sc
                            pltpu.VMEM((Bb, H), jnp.float32)],          # c_sc
        ),
        compiler_params=_compiler_params(vmem_limit),
    )(x_btd, wih_t, whh_t, bias, fc_wt, fc_b)


def rnnp_forward(x, params, num_layers, hidden_size, time_chunk=None, batch_block=None):
    """x: (B, T, input_size) batch-first.  params: dict of per-layer LSTM + fc params."""
    assert num_layers >= 1
    B0, T, D0 = x.shape
    H = hidden_size

    # Pad batch to a multiple of 8 (sublane) so (B, H) tiles use full vregs; sliced
    # back below.  Padded rows are zero inputs and fully independent of real rows.
    Bp = max(8, ((B0 + 7) // 8) * 8)
    if Bp != B0:
        x = jnp.concatenate([x, jnp.zeros((Bp - B0, T, D0), x.dtype)], axis=0)

    vmem_limit = _vmem_limit_bytes()
    Tc = (time_chunk if time_chunk is not None
          else _pick_time_chunk(T, Bp, max(D0, H), H, vmem_limit))
    Bb = batch_block if batch_block is not None else _pick_batch_block(Bp)

    # TODO(synk): fuse adjacent layers (layer x time-chunk wavefront) to remove the
    # per-intermediate-layer yseq HBM round trip; or emit yseq in bf16 on v6e/v7x.
    xin = x                                        # batch-first throughout, no transposes
    h_list, c_list = [], []
    logits = None
    for l in range(num_layers):
        wih_t, whh_t, bias = params["lstm"][l]
        if l < num_layers - 1:
            yseq, h_f, c_f = run_lstm_layer(xin, wih_t, whh_t, bias,
                                            H, Tc, Bb, vmem_limit)
            xin = yseq
        else:
            fc_wt, fc_b = params["fc"]
            logits, h_f, c_f = run_lstm_last_layer(xin, wih_t, whh_t, bias,
                                                   fc_wt, fc_b, H, Tc, Bb, vmem_limit)
        h_list.append(h_f)
        c_list.append(c_f)

    h_n = jnp.stack(h_list, axis=0)[:, :B0]        # (num_layers, B, H)
    c_n = jnp.stack(c_list, axis=0)[:, :B0]
    return logits[:B0], (h_n, c_n)


# ----------------------------------------------------------------------------
# Deterministic parameter init (PyTorch-style uniform(-1/sqrt(H), 1/sqrt(H)))
# ----------------------------------------------------------------------------
def init_params(key, input_size, hidden_size, num_layers, num_classes):
    H = hidden_size
    k = 1.0 / jnp.sqrt(jnp.float32(H))
    raw_layers = []
    kernel_layers = []
    for l in range(num_layers):
        D = input_size if l == 0 else H
        key, k1, k2, k3, k4 = jax.random.split(key, 5)
        w_ih = jax.random.uniform(k1, (4 * H, D), jnp.float32, -k, k)
        w_hh = jax.random.uniform(k2, (4 * H, H), jnp.float32, -k, k)
        b_ih = jax.random.uniform(k3, (4 * H,), jnp.float32, -k, k)
        b_hh = jax.random.uniform(k4, (4 * H,), jnp.float32, -k, k)
        raw_layers.append((w_ih, w_hh, b_ih, b_hh))
        # Pre-transposed + bias pre-summed for the kernel; keep f32 to match PyTorch.
        kernel_layers.append((w_ih.T, w_hh.T, (b_ih + b_hh).reshape(1, 4 * H)))
    key, k5, k6 = jax.random.split(key, 3)
    fc_w = jax.random.uniform(k5, (num_classes, H), jnp.float32, -k, k)
    fc_b = jax.random.uniform(k6, (num_classes,), jnp.float32, -k, k)
    raw = {"lstm": raw_layers, "fc": (fc_w, fc_b)}
    kernel = {"lstm": kernel_layers, "fc": (fc_w.T, fc_b.reshape(1, -1))}
    return raw, kernel


# ----------------------------------------------------------------------------
# Pure-JAX reference (mirrors torch.nn.LSTM forward) for a correctness check
# ----------------------------------------------------------------------------
def rnnp_reference(x, raw_params, num_layers, hidden_size):
    B = x.shape[0]
    H = hidden_size
    xin = x
    h_list, c_list = [], []
    for l in range(num_layers):
        w_ih, w_hh, b_ih, b_hh = raw_params["lstm"][l]

        def step(carry, xt):
            h_prev, c_prev = carry
            gates = xt @ w_ih.T + b_ih + h_prev @ w_hh.T + b_hh
            i_g = jax.nn.sigmoid(gates[:, 0 * H:1 * H])
            f_g = jax.nn.sigmoid(gates[:, 1 * H:2 * H])
            g_g = jnp.tanh(gates[:, 2 * H:3 * H])
            o_g = jax.nn.sigmoid(gates[:, 3 * H:4 * H])
            c_new = f_g * c_prev + i_g * g_g
            h_new = o_g * jnp.tanh(c_new)
            return (h_new, c_new), h_new

        init = (jnp.zeros((B, H), jnp.float32), jnp.zeros((B, H), jnp.float32))
        (h_f, c_f), ys = lax.scan(step, init, jnp.transpose(xin, (1, 0, 2)))
        xin = jnp.transpose(ys, (1, 0, 2))
        h_list.append(h_f)
        c_list.append(c_f)

    fc_w, fc_b = raw_params["fc"]
    logits = xin[:, -1, :] @ fc_w.T + fc_b
    return logits, (jnp.stack(h_list), jnp.stack(c_list))


# ----------------------------------------------------------------------------
if __name__ == "__main__":
    B, T = 2, 16
    input_size, hidden_size, num_layers, num_classes = 16, 32, 2, 10
    time_chunk = 8                                  # 2 chunks -> exercises the carry

    key = jax.random.PRNGKey(0)
    key, xkey = jax.random.split(key)
    x = jax.random.normal(xkey, (B, T, input_size), jnp.float32)

    raw_params, kernel_params = init_params(
        key, input_size, hidden_size, num_layers, num_classes)

    fwd = jax.jit(functools.partial(rnnp_forward,
                                    num_layers=num_layers,
                                    hidden_size=hidden_size,
                                    time_chunk=time_chunk))
    logits, (h_n, c_n) = fwd(x, kernel_params)
    jax.block_until_ready((logits, h_n, c_n))

    ref_logits, (ref_h, ref_c) = rnnp_reference(
        x, raw_params, num_layers, hidden_size)

    assert logits.shape == (B, num_classes)
    assert h_n.shape == (num_layers, B, hidden_size)
    assert c_n.shape == (num_layers, B, hidden_size)
    assert jnp.allclose(logits, ref_logits, atol=5e-4, rtol=5e-4)
    assert jnp.allclose(h_n, ref_h, atol=5e-4, rtol=5e-4)
    assert jnp.allclose(c_n, ref_c, atol=5e-4, rtol=5e-4)

    print("KERNEL_OK")
</pallas_src>

<mosaic_0001>
module attributes {stable_mosaic.version = 11 : i64} {
  func.func @lstm_last_chunk_kernel(%arg0: i32, %arg1: i32, %arg2: memref<8x8x32xf32, #tpu.memory_space<vmem>>, %arg3: memref<32x128xf32, #tpu.memory_space<vmem>>, %arg4: memref<32x128xf32, #tpu.memory_space<vmem>>, %arg5: memref<1x128xf32, #tpu.memory_space<vmem>>, %arg6: memref<32x10xf32, #tpu.memory_space<vmem>>, %arg7: memref<1x10xf32, #tpu.memory_space<vmem>>, %arg8: memref<8x10xf32, #tpu.memory_space<vmem>>, %arg9: memref<8x32xf32, #tpu.memory_space<vmem>>, %arg10: memref<8x32xf32, #tpu.memory_space<vmem>>, %arg11: memref<8x8x128xf32, #tpu.memory_space<vmem>>, %arg12: memref<8x32xf32, #tpu.memory_space<vmem>>, %arg13: memref<8x32xf32, #tpu.memory_space<vmem>>) attributes {dimension_semantics = [#tpu.dimension_semantics<parallel>, #tpu.dimension_semantics<arbitrary>], iteration_bounds = array<i64: 1, 2>, scalar_prefetch = 0 : i64, scratch_operands = 3 : i64, tpu.core_type = #tpu.core_type<tc>, window_params = [{transform_indices = @transform_0, window_bounds = array<i64: 8, 8, 32>}, {pipeline_mode = #tpu.pipeline_mode<synchronous>, transform_indices = @transform_1, window_bounds = array<i64: 32, 128>}, {pipeline_mode = #tpu.pipeline_mode<synchronous>, transform_indices = @transform_2, window_bounds = array<i64: 32, 128>}, {pipeline_mode = #tpu.pipeline_mode<synchronous>, transform_indices = @transform_3, window_bounds = array<i64: 1, 128>}, {pipeline_mode = #tpu.pipeline_mode<synchronous>, transform_indices = @transform_4, window_bounds = array<i64: 32, 10>}, {pipeline_mode = #tpu.pipeline_mode<synchronous>, transform_indices = @transform_5, window_bounds = array<i64: 1, 10>}, {transform_indices = @transform_6, window_bounds = array<i64: 8, 10>}, {transform_indices = @transform_7, window_bounds = array<i64: 8, 32>}, {transform_indices = @transform_8, window_bounds = array<i64: 8, 32>}]} {
    %c0_i32 = arith.constant 0 : i32
    %0 = arith.cmpi eq, %arg1, %c0_i32 : i32
    %1 = arith.extui %0 : i1 to i32
    %c0_i32_0 = arith.constant 0 : i32
    %2 = arith.cmpi ne, %1, %c0_i32_0 : i32
    scf.if %2 {
      %cst_84 = arith.constant 0.000000e+00 : f32
      %259 = vector.broadcast %cst_84 : f32 to vector<8x32xf32>
      %c0_85 = arith.constant 0 : index
      %c0_86 = arith.constant 0 : index
      %260 = vector.load %arg12[%c0_85, %c0_86] : memref<8x32xf32, #tpu.memory_space<vmem>>, vector<8x32xf32>
      tpu.vector_store %arg12[%c0_85, %c0_86], %259 {strides = array<i32>} : memref<8x32xf32, #tpu.memory_space<vmem>>, vector<8x32xf32>,
      %cst_87 = arith.constant 0.000000e+00 : f32
      %261 = vector.broadcast %cst_87 : f32 to vector<8x32xf32>
      %c0_88 = arith.constant 0 : index
      %c0_89 = arith.constant 0 : index
      %262 = vector.load %arg13[%c0_88, %c0_89] : memref<8x32xf32, #tpu.memory_space<vmem>>, vector<8x32xf32>
      tpu.vector_store %arg13[%c0_88, %c0_89], %261 {strides = array<i32>} : memref<8x32xf32, #tpu.memory_space<vmem>>, vector<8x32xf32>,
    } else {
    }
    %c0 = arith.constant 0 : index
    %c0_1 = arith.constant 0 : index
    %c0_2 = arith.constant 0 : index
    %3 = vector.load %arg2[%c0, %c0_1, %c0_2] : memref<8x8x32xf32, #tpu.memory_space<vmem>>, vector<8x8x32xf32>
    %4 = vector.shape_cast %3 : vector<8x8x32xf32> to vector<64x32xf32>
    %c0_3 = arith.constant 0 : index
    %c0_4 = arith.constant 0 : index
    %5 = vector.load %arg3[%c0_3, %c0_4] : memref<32x128xf32, #tpu.memory_space<vmem>>, vector<32x128xf32>
    %cst = arith.constant dense<0.000000e+00> : vector<64x128xf32>
    %6 = tpu.matmul %4, %5, %cst {dimension_numbers = #tpu.dot_dimension_numbers<[1], [0], [0], [1], [0, 0, 1, 1], [], []>} : vector<64x32xf32>, vector<32x128xf32>, vector<64x128xf32> -> vector<64x128xf32>
    %c0_5 = arith.constant 0 : index
    %c0_6 = arith.constant 0 : index
    %7 = vector.load %arg5[%c0_5, %c0_6] : memref<1x128xf32, #tpu.memory_space<vmem>>, vector<1x128xf32>
    %8 = vector.broadcast %7 : vector<1x128xf32> to vector<64x128xf32>
    %9 = arith.addf %6, %8 : vector<64x128xf32>
    %10 = vector.shape_cast %9 : vector<64x128xf32> to vector<8x8x128xf32>
    %c0_7 = arith.constant 0 : index
    %c0_8 = arith.constant 0 : index
    %c0_9 = arith.constant 0 : index
    %11 = vector.load %arg11[%c0_7, %c0_8, %c0_9] : memref<8x8x128xf32, #tpu.memory_space<vmem>>, vector<8x8x128xf32>
    tpu.vector_store %arg11[%c0_7, %c0_8, %c0_9], %10 {strides = array<i32>} : memref<8x8x128xf32, #tpu.memory_space<vmem>>, vector<8x8x128xf32>,
    %c0_10 = arith.constant 0 : index
    %c0_11 = arith.constant 0 : index
    %12 = vector.load %arg12[%c0_10, %c0_11] : memref<8x32xf32, #tpu.memory_space<vmem>>, vector<8x32xf32>
    %c0_12 = arith.constant 0 : index
    %c0_13 = arith.constant 0 : index
    %13 = vector.load %arg13[%c0_12, %c0_13] : memref<8x32xf32, #tpu.memory_space<vmem>>, vector<8x32xf32>
    %c0_14 = arith.constant 0 : index
    %c0_15 = arith.constant 0 : index
    %c0_16 = arith.constant 0 : index
    %14 = vector.load %arg11[%c0_14, %c0_15, %c0_16] : memref<8x8x128xf32, #tpu.memory_space<vmem>>, vector<8x1x128xf32>
    %15 = vector.shape_cast %14 : vector<8x1x128xf32> to vector<8x128xf32>
    %c0_17 = arith.constant 0 : index
    %c0_18 = arith.constant 0 : index
    %16 = vector.load %arg4[%c0_17, %c0_18] : memref<32x128xf32, #tpu.memory_space<vmem>>, vector<32x128xf32>
    %cst_19 = arith.constant dense<0.000000e+00> : vector<8x128xf32>
    %17 = tpu.matmul %12, %16, %cst_19 {dimension_numbers = #tpu.dot_dimension_numbers<[1], [0], [0], [1], [0, 0, 1, 1], [], []>} : vector<8x32xf32>, vector<32x128xf32>, vector<8x128xf32> -> vector<8x128xf32>
    %18 = arith.addf %15, %17 : vector<8x128xf32>
    %19 = vector.extract_strided_slice %18 {offsets = [0, 0], sizes = [8, 32], strides = [1, 1]} : vector<8x128xf32> to vector<8x32xf32>
    %20 = arith.negf %19 : vector<8x32xf32>
    %21 = math.exp %20 : vector<8x32xf32>
    %cst_20 = arith.constant 1.000000e+00 : f32
    %22 = vector.broadcast %cst_20 : f32 to vector<8x32xf32>
    %23 = arith.addf %22, %21 : vector<8x32xf32>
    %24 = arith.divf %22, %23 : vector<8x32xf32>
    %25 = vector.extract_strided_slice %18 {offsets = [0, 32], sizes = [8, 32], strides = [1, 1]} : vector<8x128xf32> to vector<8x32xf32>
    %26 = arith.negf %25 : vector<8x32xf32>
    %27 = math.exp %26 : vector<8x32xf32>
    %cst_21 = arith.constant 1.000000e+00 : f32
    %28 = vector.broadcast %cst_21 : f32 to vector<8x32xf32>
    %29 = arith.addf %28, %27 : vector<8x32xf32>
    %30 = arith.divf %28, %29 : vector<8x32xf32>
    %31 = vector.extract_strided_slice %18 {offsets = [0, 64], sizes = [8, 32], strides = [1, 1]} : vector<8x128xf32> to vector<8x32xf32>
    %32 = math.tanh %31 : vector<8x32xf32>
    %33 = vector.extract_strided_slice %18 {offsets = [0, 96], sizes = [8, 32], strides = [1, 1]} : vector<8x128xf32> to vector<8x32xf32>
    %34 = arith.negf %33 : vector<8x32xf32>
    %35 = math.exp %34 : vector<8x32xf32>
    %cst_22 = arith.constant 1.000000e+00 : f32
    %36 = vector.broadcast %cst_22 : f32 to vector<8x32xf32>
    %37 = arith.addf %36, %35 : vector<8x32xf32>
    %38 = arith.divf %36, %37 : vector<8x32xf32>
    %39 = arith.mulf %30, %13 : vector<8x32xf32>
    %40 = arith.mulf %24, %32 : vector<8x32xf32>
    %41 = arith.addf %39, %40 : vector<8x32xf32>
    %42 = math.tanh %41 : vector<8x32xf32>
    %43 = arith.mulf %38, %42 : vector<8x32xf32>
    %c0_23 = arith.constant 0 : index
    %c1 = arith.constant 1 : index
    %c0_24 = arith.constant 0 : index
    %44 = vector.load %arg11[%c0_23, %c1, %c0_24] : memref<8x8x128xf32, #tpu.memory_space<vmem>>, vector<8x1x128xf32>
    %45 = vector.shape_cast %44 : vector<8x1x128xf32> to vector<8x128xf32>
    %c0_25 = arith.constant 0 : index
    %c0_26 = arith.constant 0 : index
    %46 = vector.load %arg4[%c0_25, %c0_26] : memref<32x128xf32, #tpu.memory_space<vmem>>, vector<32x128xf32>
    %cst_27 = arith.constant dense<0.000000e+00> : vector<8x128xf32>
    %47 = tpu.matmul %43, %46, %cst_27 {dimension_numbers = #tpu.dot_dimension_numbers<[1], [0], [0], [1], [0, 0, 1, 1], [], []>} : vector<8x32xf32>, vector<32x128xf32>, vector<8x128xf32> -> vector<8x128xf32>
    %48 = arith.addf %45, %47 : vector<8x128xf32>
    %49 = vector.extract_strided_slice %48 {offsets = [0, 0], sizes = [8, 32], strides = [1, 1]} : vector<8x128xf32> to vector<8x32xf32>
    %50 = arith.negf %49 : vector<8x32xf32>
    %51 = math.exp %50 : vector<8x32xf32>
    %cst_28 = arith.constant 1.000000e+00 : f32
    %52 = vector.broadcast %cst_28 : f32 to vector<8x32xf32>
    %53 = arith.addf %52, %51 : vector<8x32xf32>
    %54 = arith.divf %52, %53 : vector<8x32xf32>
    %55 = vector.extract_strided_slice %48 {offsets = [0, 32], sizes = [8, 32], strides = [1, 1]} : vector<8x128xf32> to vector<8x32xf32>
    %56 = arith.negf %55 : vector<8x32xf32>
    %57 = math.exp %56 : vector<8x32xf32>
    %cst_29 = arith.constant 1.000000e+00 : f32
    %58 = vector.broadcast %cst_29 : f32 to vector<8x32xf32>
    %59 = arith.addf %58, %57 : vector<8x32xf32>
    %60 = arith.divf %58, %59 : vector<8x32xf32>
    %61 = vector.extract_strided_slice %48 {offsets = [0, 64], sizes = [8, 32], strides = [1, 1]} : vector<8x128xf32> to vector<8x32xf32>
    %62 = math.tanh %61 : vector<8x32xf32>
    %63 = vector.extract_strided_slice %48 {offsets = [0, 96], sizes = [8, 32], strides = [1, 1]} : vector<8x128xf32> to vector<8x32xf32>
    %64 = arith.negf %63 : vector<8x32xf32>
    %65 = math.exp %64 : vector<8x32xf32>
    %cst_30 = arith.constant 1.000000e+00 : f32
    %66 = vector.broadcast %cst_30 : f32 to vector<8x32xf32>
    %67 = arith.addf %66, %65 : vector<8x32xf32>
    %68 = arith.divf %66, %67 : vector<8x32xf32>
    %69 = arith.mulf %60, %41 : vector<8x32xf32>
    %70 = arith.mulf %54, %62 : vector<8x32xf32>
    %71 = arith.addf %69, %70 : vector<8x32xf32>
    %72 = math.tanh %71 : vector<8x32xf32>
    %73 = arith.mulf %68, %72 : vector<8x32xf32>
    %c0_31 = arith.constant 0 : index
    %c2 = arith.constant 2 : index
    %c0_32 = arith.constant 0 : index
    %74 = vector.load %arg11[%c0_31, %c2, %c0_32] : memref<8x8x128xf32, #tpu.memory_space<vmem>>, vector<8x1x128xf32>
    %75 = vector.shape_cast %74 : vector<8x1x128xf32> to vector<8x128xf32>
    %c0_33 = arith.constant 0 : index
    %c0_34 = arith.constant 0 : index
    %76 = vector.load %arg4[%c0_33, %c0_34] : memref<32x128xf32, #tpu.memory_space<vmem>>, vector<32x128xf32>
    %cst_35 = arith.constant dense<0.000000e+00> : vector<8x128xf32>
    %77 = tpu.matmul %73, %76, %cst_35 {dimension_numbers = #tpu.dot_dimension_numbers<[1], [0], [0], [1], [0, 0, 1, 1], [], []>} : vector<8x32xf32>, vector<32x128xf32>, vector<8x128xf32> -> vector<8x128xf32>
    %78 = arith.addf %75, %77 : vector<8x128xf32>
    %79 = vector.extract_strided_slice %78 {offsets = [0, 0], sizes = [8, 32], strides = [1, 1]} : vector<8x128xf32> to vector<8x32xf32>
    %80 = arith.negf %79 : vector<8x32xf32>
    %81 = math.exp %80 : vector<8x32xf32>
    %cst_36 = arith.constant 1.000000e+00 : f32
    %82 = vector.broadcast %cst_36 : f32 to vector<8x32xf32>
    %83 = arith.addf %82, %81 : vector<8x32xf32>
    %84 = arith.divf %82, %83 : vector<8x32xf32>
    %85 = vector.extract_strided_slice %78 {offsets = [0, 32], sizes = [8, 32], strides = [1, 1]} : vector<8x128xf32> to vector<8x32xf32>
    %86 = arith.negf %85 : vector<8x32xf32>
    %87 = math.exp %86 : vector<8x32xf32>
    %cst_37 = arith.constant 1.000000e+00 : f32
    %88 = vector.broadcast %cst_37 : f32 to vector<8x32xf32>
    %89 = arith.addf %88, %87 : vector<8x32xf32>
    %90 = arith.divf %88, %89 : vector<8x32xf32>
    %91 = vector.extract_strided_slice %78 {offsets = [0, 64], sizes = [8, 32], strides = [1, 1]} : vector<8x128xf32> to vector<8x32xf32>
    %92 = math.tanh %91 : vector<8x32xf32>
    %93 = vector.extract_strided_slice %78 {offsets = [0, 96], sizes = [8, 32], strides = [1, 1]} : vector<8x128xf32> to vector<8x32xf32>
    %94 = arith.negf %93 : vector<8x32xf32>
    %95 = math.exp %94 : vector<8x32xf32>
    %cst_38 = arith.constant 1.000000e+00 : f32
    %96 = vector.broadcast %cst_38 : f32 to vector<8x32xf32>
    %97 = arith.addf %96, %95 : vector<8x32xf32>
    %98 = arith.divf %96, %97 : vector<8x32xf32>
    %99 = arith.mulf %90, %71 : vector<8x32xf32>
    %100 = arith.mulf %84, %92 : vector<8x32xf32>
    %101 = arith.addf %99, %100 : vector<8x32xf32>
    %102 = math.tanh %101 : vector<8x32xf32>
    %103 = arith.mulf %98, %102 : vector<8x32xf32>
    %c0_39 = arith.constant 0 : index
    %c3 = arith.constant 3 : index
    %c0_40 = arith.constant 0 : index
    %104 = vector.load %arg11[%c0_39, %c3, %c0_40] : memref<8x8x128xf32, #tpu.memory_space<vmem>>, vector<8x1x128xf32>
    %105 = vector.shape_cast %104 : vector<8x1x128xf32> to vector<8x128xf32>
    %c0_41 = arith.constant 0 : index
    %c0_42 = arith.constant 0 : index
    %106 = vector.load %arg4[%c0_41, %c0_42] : memref<32x128xf32, #tpu.memory_space<vmem>>, vector<32x128xf32>
    %cst_43 = arith.constant dense<0.000000e+00> : vector<8x128xf32>
    %107 = tpu.matmul %103, %106, %cst_43 {dimension_numbers = #tpu.dot_dimension_numbers<[1], [0], [0], [1], [0, 0, 1, 1], [], []>} : vector<8x32xf32>, vector<32x128xf32>, vector<8x128xf32> -> vector<8x128xf32>
    %108 = arith.addf %105, %107 : vector<8x128xf32>
    %109 = vector.extract_strided_slice %108 {offsets = [0, 0], sizes = [8, 32], strides = [1, 1]} : vector<8x128xf32> to vector<8x32xf32>
    %110 = arith.negf %109 : vector<8x32xf32>
    %111 = math.exp %110 : vector<8x32xf32>
    %cst_44 = arith.constant 1.000000e+00 : f32
    %112 = vector.broadcast %cst_44 : f32 to vector<8x32xf32>
    %113 = arith.addf %112, %111 : vector<8x32xf32>
    %114 = arith.divf %112, %113 : vector<8x32xf32>
    %115 = vector.extract_strided_slice %108 {offsets = [0, 32], sizes = [8, 32], strides = [1, 1]} : vector<8x128xf32> to vector<8x32xf32>
    %116 = arith.negf %115 : vector<8x32xf32>
    %117 = math.exp %116 : vector<8x32xf32>
    %cst_45 = arith.constant 1.000000e+00 : f32
    %118 = vector.broadcast %cst_45 : f32 to vector<8x32xf32>
    %119 = arith.addf %118, %117 : vector<8x32xf32>
    %120 = arith.divf %118, %119 : vector<8x32xf32>
    %121 = vector.extract_strided_slice %108 {offsets = [0, 64], sizes = [8, 32], strides = [1, 1]} : vector<8x128xf32> to vector<8x32xf32>
    %122 = math.tanh %121 : vector<8x32xf32>
    %123 = vector.extract_strided_slice %108 {offsets = [0, 96], sizes = [8, 32], strides = [1, 1]} : vector<8x128xf32> to vector<8x32xf32>
    %124 = arith.negf %123 : vector<8x32xf32>
    %125 = math.exp %124 : vector<8x32xf32>
    %cst_46 = arith.constant 1.000000e+00 : f32
    %126 = vector.broadcast %cst_46 : f32 to vector<8x32xf32>
    %127 = arith.addf %126, %125 : vector<8x32xf32>
    %128 = arith.divf %126, %127 : vector<8x32xf32>
    %129 = arith.mulf %120, %101 : vector<8x32xf32>
    %130 = arith.mulf %114, %122 : vector<8x32xf32>
    %131 = arith.addf %129, %130 : vector<8x32xf32>
    %132 = math.tanh %131 : vector<8x32xf32>
    %133 = arith.mulf %128, %132 : vector<8x32xf32>
    %c0_47 = arith.constant 0 : index
    %c4 = arith.constant 4 : index
    %c0_48 = arith.constant 0 : index
    %134 = vector.load %arg11[%c0_47, %c4, %c0_48] : memref<8x8x128xf32, #tpu.memory_space<vmem>>, vector<8x1x128xf32>
    %135 = vector.shape_cast %134 : vector<8x1x128xf32> to vector<8x128xf32>
    %c0_49 = arith.constant 0 : index
    %c0_50 = arith.constant 0 : index
    %136 = vector.load %arg4[%c0_49, %c0_50] : memref<32x128xf32, #tpu.memory_space<vmem>>, vector<32x128xf32>
    %cst_51 = arith.constant dense<0.000000e+00> : vector<8x128xf32>
    %137 = tpu.matmul %133, %136, %cst_51 {dimension_numbers = #tpu.dot_dimension_numbers<[1], [0], [0], [1], [0, 0, 1, 1], [], []>} : vector<8x32xf32>, vector<32x128xf32>, vector<8x128xf32> -> vector<8x128xf32>
    %138 = arith.addf %135, %137 : vector<8x128xf32>
    %139 = vector.extract_strided_slice %138 {offsets = [0, 0], sizes = [8, 32], strides = [1, 1]} : vector<8x128xf32> to vector<8x32xf32>
    %140 = arith.negf %139 : vector<8x32xf32>
    %141 = math.exp %140 : vector<8x32xf32>
    %cst_52 = arith.constant 1.000000e+00 : f32
    %142 = vector.broadcast %cst_52 : f32 to vector<8x32xf32>
    %143 = arith.addf %142, %141 : vector<8x32xf32>
    %144 = arith.divf %142, %143 : vector<8x32xf32>
    %145 = vector.extract_strided_slice %138 {offsets = [0, 32], sizes = [8, 32], strides = [1, 1]} : vector<8x128xf32> to vector<8x32xf32>
    %146 = arith.negf %145 : vector<8x32xf32>
    %147 = math.exp %146 : vector<8x32xf32>
    %cst_53 = arith.constant 1.000000e+00 : f32
    %148 = vector.broadcast %cst_53 : f32 to vector<8x32xf32>
    %149 = arith.addf %148, %147 : vector<8x32xf32>
    %150 = arith.divf %148, %149 : vector<8x32xf32>
    %151 = vector.extract_strided_slice %138 {offsets = [0, 64], sizes = [8, 32], strides = [1, 1]} : vector<8x128xf32> to vector<8x32xf32>
    %152 = math.tanh %151 : vector<8x32xf32>
    %153 = vector.extract_strided_slice %138 {offsets = [0, 96], sizes = [8, 32], strides = [1, 1]} : vector<8x128xf32> to vector<8x32xf32>
    %154 = arith.negf %153 : vector<8x32xf32>
    %155 = math.exp %154 : vector<8x32xf32>
    %cst_54 = arith.constant 1.000000e+00 : f32
    %156 = vector.broadcast %cst_54 : f32 to vector<8x32xf32>
    %157 = arith.addf %156, %155 : vector<8x32xf32>
    %158 = arith.divf %156, %157 : vector<8x32xf32>
    %159 = arith.mulf %150, %131 : vector<8x32xf32>
    %160 = arith.mulf %144, %152 : vector<8x32xf32>
    %161 = arith.addf %159, %160 : vector<8x32xf32>
    %162 = math.tanh %161 : vector<8x32xf32>
    %163 = arith.mulf %158, %162 : vector<8x32xf32>
    %c0_55 = arith.constant 0 : index
    %c5 = arith.constant 5 : index
    %c0_56 = arith.constant 0 : index
    %164 = vector.load %arg11[%c0_55, %c5, %c0_56] : memref<8x8x128xf32, #tpu.memory_space<vmem>>, vector<8x1x128xf32>
    %165 = vector.shape_cast %164 : vector<8x1x128xf32> to vector<8x128xf32>
    %c0_57 = arith.constant 0 : index
    %c0_58 = arith.constant 0 : index
    %166 = vector.load %arg4[%c0_57, %c0_58] : memref<32x128xf32, #tpu.memory_space<vmem>>, vector<32x128xf32>
    %cst_59 = arith.constant dense<0.000000e+00> : vector<8x128xf32>
    %167 = tpu.matmul %163, %166, %cst_59 {dimension_numbers = #tpu.dot_dimension_numbers<[1], [0], [0], [1], [0, 0, 1, 1], [], []>} : vector<8x32xf32>, vector<32x128xf32>, vector<8x128xf32> -> vector<8x128xf32>
    %168 = arith.addf %165, %167 : vector<8x128xf32>
    %169 = vector.extract_strided_slice %168 {offsets = [0, 0], sizes = [8, 32], strides = [1, 1]} : vector<8x128xf32> to vector<8x32xf32>
    %170 = arith.negf %169 : vector<8x32xf32>
    %171 = math.exp %170 : vector<8x32xf32>
    %cst_60 = arith.constant 1.000000e+00 : f32
    %172 = vector.broadcast %cst_60 : f32 to vector<8x32xf32>
    %173 = arith.addf %172, %171 : vector<8x32xf32>
    %174 = arith.divf %172, %173 : vector<8x32xf32>
    %175 = vector.extract_strided_slice %168 {offsets = [0, 32], sizes = [8, 32], strides = [1, 1]} : vector<8x128xf32> to vector<8x32xf32>
    %176 = arith.negf %175 : vector<8x32xf32>
    %177 = math.exp %176 : vector<8x32xf32>
    %cst_61 = arith.constant 1.000000e+00 : f32
    %178 = vector.broadcast %cst_61 : f32 to vector<8x32xf32>
    %179 = arith.addf %178, %177 : vector<8x32xf32>
    %180 = arith.divf %178, %179 : vector<8x32xf32>
    %181 = vector.extract_strided_slice %168 {offsets = [0, 64], sizes = [8, 32], strides = [1, 1]} : vector<8x128xf32> to vector<8x32xf32>
    %182 = math.tanh %181 : vector<8x32xf32>
    %183 = vector.extract_strided_slice %168 {offsets = [0, 96], sizes = [8, 32], strides = [1, 1]} : vector<8x128xf32> to vector<8x32xf32>
    %184 = arith.negf %183 : vector<8x32xf32>
    %185 = math.exp %184 : vector<8x32xf32>
    %cst_62 = arith.constant 1.000000e+00 : f32
    %186 = vector.broadcast %cst_62 : f32 to vector<8x32xf32>
    %187 = arith.addf %186, %185 : vector<8x32xf32>
    %188 = arith.divf %186, %187 : vector<8x32xf32>
    %189 = arith.mulf %180, %161 : vector<8x32xf32>
    %190 = arith.mulf %174, %182 : vector<8x32xf32>
    %191 = arith.addf %189, %190 : vector<8x32xf32>
    %192 = math.tanh %191 : vector<8x32xf32>
    %193 = arith.mulf %188, %192 : vector<8x32xf32>
    %c0_63 = arith.constant 0 : index
    %c6 = arith.constant 6 : index
    %c0_64 = arith.constant 0 : index
    %194 = vector.load %arg11[%c0_63, %c6, %c0_64] : memref<8x8x128xf32, #tpu.memory_space<vmem>>, vector<8x1x128xf32>
    %195 = vector.shape_cast %194 : vector<8x1x128xf32> to vector<8x128xf32>
    %c0_65 = arith.constant 0 : index
    %c0_66 = arith.constant 0 : index
    %196 = vector.load %arg4[%c0_65, %c0_66] : memref<32x128xf32, #tpu.memory_space<vmem>>, vector<32x128xf32>
    %cst_67 = arith.constant dense<0.000000e+00> : vector<8x128xf32>
    %197 = tpu.matmul %193, %196, %cst_67 {dimension_numbers = #tpu.dot_dimension_numbers<[1], [0], [0], [1], [0, 0, 1, 1], [], []>} : vector<8x32xf32>, vector<32x128xf32>, vector<8x128xf32> -> vector<8x128xf32>
    %198 = arith.addf %195, %197 : vector<8x128xf32>
    %199 = vector.extract_strided_slice %198 {offsets = [0, 0], sizes = [8, 32], strides = [1, 1]} : vector<8x128xf32> to vector<8x32xf32>
    %200 = arith.negf %199 : vector<8x32xf32>
    %201 = math.exp %200 : vector<8x32xf32>
    %cst_68 = arith.constant 1.000000e+00 : f32
    %202 = vector.broadcast %cst_68 : f32 to vector<8x32xf32>
    %203 = arith.addf %202, %201 : vector<8x32xf32>
    %204 = arith.divf %202, %203 : vector<8x32xf32>
    %205 = vector.extract_strided_slice %198 {offsets = [0, 32], sizes = [8, 32], strides = [1, 1]} : vector<8x128xf32> to vector<8x32xf32>
    %206 = arith.negf %205 : vector<8x32xf32>
    %207 = math.exp %206 : vector<8x32xf32>
    %cst_69 = arith.constant 1.000000e+00 : f32
    %208 = vector.broadcast %cst_69 : f32 to vector<8x32xf32>
    %209 = arith.addf %208, %207 : vector<8x32xf32>
    %210 = arith.divf %208, %209 : vector<8x32xf32>
    %211 = vector.extract_strided_slice %198 {offsets = [0, 64], sizes = [8, 32], strides = [1, 1]} : vector<8x128xf32> to vector<8x32xf32>
    %212 = math.tanh %211 : vector<8x32xf32>
    %213 = vector.extract_strided_slice %198 {offsets = [0, 96], sizes = [8, 32], strides = [1, 1]} : vector<8x128xf32> to vector<8x32xf32>
    %214 = arith.negf %213 : vector<8x32xf32>
    %215 = math.exp %214 : vector<8x32xf32>
    %cst_70 = arith.constant 1.000000e+00 : f32
    %216 = vector.broadcast %cst_70 : f32 to vector<8x32xf32>
    %217 = arith.addf %216, %215 : vector<8x32xf32>
    %218 = arith.divf %216, %217 : vector<8x32xf32>
    %219 = arith.mulf %210, %191 : vector<8x32xf32>
    %220 = arith.mulf %204, %212 : vector<8x32xf32>
    %221 = arith.addf %219, %220 : vector<8x32xf32>
    %222 = math.tanh %221 : vector<8x32xf32>
    %223 = arith.mulf %218, %222 : vector<8x32xf32>
    %c0_71 = arith.constant 0 : index
    %c7 = arith.constant 7 : index
    %c0_72 = arith.constant 0 : index
    %224 = vector.load %arg11[%c0_71, %c7, %c0_72] : memref<8x8x128xf32, #tpu.memory_space<vmem>>, vector<8x1x128xf32>
    %225 = vector.shape_cast %224 : vector<8x1x128xf32> to vector<8x128xf32>
    %c0_73 = arith.constant 0 : index
    %c0_74 = arith.constant 0 : index
    %226 = vector.load %arg4[%c0_73, %c0_74] : memref<32x128xf32, #tpu.memory_space<vmem>>, vector<32x128xf32>
    %cst_75 = arith.constant dense<0.000000e+00> : vector<8x128xf32>
    %227 = tpu.matmul %223, %226, %cst_75 {dimension_numbers = #tpu.dot_dimension_numbers<[1], [0], [0], [1], [0, 0, 1, 1], [], []>} : vector<8x32xf32>, vector<32x128xf32>, vector<8x128xf32> -> vector<8x128xf32>
    %228 = arith.addf %225, %227 : vector<8x128xf32>
    %229 = vector.extract_strided_slice %228 {offsets = [0, 0], sizes = [8, 32], strides = [1, 1]} : vector<8x128xf32> to vector<8x32xf32>
    %230 = arith.negf %229 : vector<8x32xf32>
    %231 = math.exp %230 : vector<8x32xf32>
    %cst_76 = arith.constant 1.000000e+00 : f32
    %232 = vector.broadcast %cst_76 : f32 to vector<8x32xf32>
    %233 = arith.addf %232, %231 : vector<8x32xf32>
    %234 = arith.divf %232, %233 : vector<8x32xf32>
    %235 = vector.extract_strided_slice %228 {offsets = [0, 32], sizes = [8, 32], strides = [1, 1]} : vector<8x128xf32> to vector<8x32xf32>
    %236 = arith.negf %235 : vector<8x32xf32>
    %237 = math.exp %236 : vector<8x32xf32>
    %cst_77 = arith.constant 1.000000e+00 : f32
    %238 = vector.broadcast %cst_77 : f32 to vector<8x32xf32>
    %239 = arith.addf %238, %237 : vector<8x32xf32>
    %240 = arith.divf %238, %239 : vector<8x32xf32>
    %241 = vector.extract_strided_slice %228 {offsets = [0, 64], sizes = [8, 32], strides = [1, 1]} : vector<8x128xf32> to vector<8x32xf32>
    %242 = math.tanh %241 : vector<8x32xf32>
    %243 = vector.extract_strided_slice %228 {offsets = [0, 96], sizes = [8, 32], strides = [1, 1]} : vector<8x128xf32> to vector<8x32xf32>
    %244 = arith.negf %243 : vector<8x32xf32>
    %245 = math.exp %244 : vector<8x32xf32>
    %cst_78 = arith.constant 1.000000e+00 : f32
    %246 = vector.broadcast %cst_78 : f32 to vector<8x32xf32>
    %247 = arith.addf %246, %245 : vector<8x32xf32>
    %248 = arith.divf %246, %247 : vector<8x32xf32>
    %249 = arith.mulf %240, %221 : vector<8x32xf32>
    %250 = arith.mulf %234, %242 : vector<8x32xf32>
    %251 = arith.addf %249, %250 : vector<8x32xf32>
    %252 = math.tanh %251 : vector<8x32xf32>
    %253 = arith.mulf %248, %252 : vector<8x32xf32>
    %c0_79 = arith.constant 0 : index
    %c0_80 = arith.constant 0 : index
    %254 = vector.load %arg12[%c0_79, %c0_80] : memref<8x32xf32, #tpu.memory_space<vmem>>, vector<8x32xf32>
    tpu.vector_store %arg12[%c0_79, %c0_80], %253 {strides = array<i32>} : memref<8x32xf32, #tpu.memory_space<vmem>>, vector<8x32xf32>,
    %c0_81 = arith.constant 0 : index
    %c0_82 = arith.constant 0 : index
    %255 = vector.load %arg13[%c0_81, %c0_82] : memref<8x32xf32, #tpu.memory_space<vmem>>, vector<8x32xf32>
    tpu.vector_store %arg13[%c0_81, %c0_82], %251 {strides = array<i32>} : memref<8x32xf32, #tpu.memory_space<vmem>>, vector<8x32xf32>,
    %c1_i32 = arith.constant 1 : i32
    %256 = arith.cmpi eq, %arg1, %c1_i32 : i32
    %257 = arith.extui %256 : i1 to i32
    %c0_i32_83 = arith.constant 0 : i32
    %258 = arith.cmpi ne, %257, %c0_i32_83 : i32
    scf.if %258 {
      %c0_84 = arith.constant 0 : index
      %c0_85 = arith.constant 0 : index
      %259 = vector.load %arg9[%c0_84, %c0_85] : memref<8x32xf32, #tpu.memory_space<vmem>>, vector<8x32xf32>
      tpu.vector_store %arg9[%c0_84, %c0_85], %253 {strides = array<i32>} : memref<8x32xf32, #tpu.memory_space<vmem>>, vector<8x32xf32>,
      %c0_86 = arith.constant 0 : index
      %c0_87 = arith.constant 0 : index
      %260 = vector.load %arg10[%c0_86, %c0_87] : memref<8x32xf32, #tpu.memory_space<vmem>>, vector<8x32xf32>
      tpu.vector_store %arg10[%c0_86, %c0_87], %251 {strides = array<i32>} : memref<8x32xf32, #tpu.memory_space<vmem>>, vector<8x32xf32>,
      %c0_88 = arith.constant 0 : index
      %c0_89 = arith.constant 0 : index
      %261 = vector.load %arg6[%c0_88, %c0_89] : memref<32x10xf32, #tpu.memory_space<vmem>>, vector<32x10xf32>
      %cst_90 = arith.constant dense<0.000000e+00> : vector<8x10xf32>
      %262 = tpu.matmul %253, %261, %cst_90 {dimension_numbers = #tpu.dot_dimension_numbers<[1], [0], [0], [1], [0, 0, 1, 1], [], []>} : vector<8x32xf32>, vector<32x10xf32>, vector<8x10xf32> -> vector<8x10xf32>
      %c0_91 = arith.constant 0 : index
      %c0_92 = arith.constant 0 : index
      %263 = vector.load %arg7[%c0_91, %c0_92] : memref<1x10xf32, #tpu.memory_space<vmem>>, vector<1x10xf32>
      %264 = vector.broadcast %263 : vector<1x10xf32> to vector<8x10xf32>
      %265 = arith.addf %262, %264 : vector<8x10xf32>
      %c0_93 = arith.constant 0 : index
      %c0_94 = arith.constant 0 : index
      %266 = vector.load %arg8[%c0_93, %c0_94] : memref<8x10xf32, #tpu.memory_space<vmem>>, vector<8x10xf32>
      tpu.vector_store %arg8[%c0_93, %c0_94], %265 {strides = array<i32>} : memref<8x10xf32, #tpu.memory_space<vmem>>, vector<8x10xf32>,
    } else {
    }
    return
  }
  func.func @transform_0(%arg0: i32, %arg1: i32) -> (i32, i32, i32) {
    %c0_i32 = arith.constant 0 : i32
    %c0_i32_0 = arith.constant 0 : i32
    return %arg0, %arg1, %c0_i32 : i32, i32, i32
  }
  func.func @transform_1(%arg0: i32, %arg1: i32) -> (i32, i32) {
    %c0_i32 = arith.constant 0 : i32
    %c0_i32_0 = arith.constant 0 : i32
    %c0_i32_1 = arith.constant 0 : i32
    return %c0_i32, %c0_i32_0 : i32, i32
  }
  func.func @transform_2(%arg0: i32, %arg1: i32) -> (i32, i32) {
    %c0_i32 = arith.constant 0 : i32
    %c0_i32_0 = arith.constant 0 : i32
    %c0_i32_1 = arith.constant 0 : i32
    return %c0_i32, %c0_i32_0 : i32, i32
  }
  func.func @transform_3(%arg0: i32, %arg1: i32) -> (i32, i32) {
    %c0_i32 = arith.constant 0 : i32
    %c0_i32_0 = arith.constant 0 : i32
    %c0_i32_1 = arith.constant 0 : i32
    return %c0_i32, %c0_i32_0 : i32, i32
  }
  func.func @transform_4(%arg0: i32, %arg1: i32) -> (i32, i32) {
    %c0_i32 = arith.constant 0 : i32
    %c0_i32_0 = arith.constant 0 : i32
    %c0_i32_1 = arith.constant 0 : i32
    return %c0_i32, %c0_i32_0 : i32, i32
  }
  func.func @transform_5(%arg0: i32, %arg1: i32) -> (i32, i32) {
    %c0_i32 = arith.constant 0 : i32
    %c0_i32_0 = arith.constant 0 : i32
    %c0_i32_1 = arith.constant 0 : i32
    return %c0_i32, %c0_i32_0 : i32, i32
  }
  func.func @transform_6(%arg0: i32, %arg1: i32) -> (i32, i32) {
    %c0_i32 = arith.constant 0 : i32
    %c0_i32_0 = arith.constant 0 : i32
    return %arg0, %c0_i32 : i32, i32
  }
  func.func @transform_7(%arg0: i32, %arg1: i32) -> (i32, i32) {
    %c0_i32 = arith.constant 0 : i32
    %c0_i32_0 = arith.constant 0 : i32
    return %arg0, %c0_i32 : i32, i32
  }
  func.func @transform_8(%arg0: i32, %arg1: i32) -> (i32, i32) {
    %c0_i32 = arith.constant 0 : i32
    %c0_i32_0 = arith.constant 0 : i32
    return %arg0, %c0_i32 : i32, i32
  }
}

module attributes {stable_mosaic.version = 11 : i64} {
  func.func @lstm_chunk_kernel(%arg0: i32, %arg1: i32, %arg2: memref<8x8x16xf32, #tpu.memory_space<vmem>>, %arg3: memref<16x128xf32, #tpu.memory_space<vmem>>, %arg4: memref<32x128xf32, #tpu.memory_space<vmem>>, %arg5: memref<1x128xf32, #tpu.memory_space<vmem>>, %arg6: memref<8x8x32xf32, #tpu.memory_space<vmem>>, %arg7: memref<8x32xf32, #tpu.memory_space<vmem>>, %arg8: memref<8x32xf32, #tpu.memory_space<vmem>>, %arg9: memref<8x8x128xf32, #tpu.memory_space<vmem>>, %arg10: memref<8x8x32xf32, #tpu.memory_space<vmem>>, %arg11: memref<8x32xf32, #tpu.memory_space<vmem>>, %arg12: memref<8x32xf32, #tpu.memory_space<vmem>>) attributes {dimension_semantics = [#tpu.dimension_semantics<parallel>, #tpu.dimension_semantics<arbitrary>], iteration_bounds = array<i64: 1, 2>, scalar_prefetch = 0 : i64, scratch_operands = 4 : i64, tpu.core_type = #tpu.core_type<tc>, window_params = [{transform_indices = @transform_0, window_bounds = array<i64: 8, 8, 16>}, {pipeline_mode = #tpu.pipeline_mode<synchronous>, transform_indices = @transform_1, window_bounds = array<i64: 16, 128>}, {pipeline_mode = #tpu.pipeline_mode<synchronous>, transform_indices = @transform_2, window_bounds = array<i64: 32, 128>}, {pipeline_mode = #tpu.pipeline_mode<synchronous>, transform_indices = @transform_3, window_bounds = array<i64: 1, 128>}, {transform_indices = @transform_4, window_bounds = array<i64: 8, 8, 32>}, {transform_indices = @transform_5, window_bounds = array<i64: 8, 32>}, {transform_indices = @transform_6, window_bounds = array<i64: 8, 32>}]} {
    %c0_i32 = arith.constant 0 : i32
    %0 = arith.cmpi eq, %arg1, %c0_i32 : i32
    %1 = arith.extui %0 : i1 to i32
    %c0_i32_0 = arith.constant 0 : i32
    %2 = arith.cmpi ne, %1, %c0_i32_0 : i32
    scf.if %2 {
      %cst_114 = arith.constant 0.000000e+00 : f32
      %277 = vector.broadcast %cst_114 : f32 to vector<8x32xf32>
      %c0_115 = arith.constant 0 : index
      %c0_116 = arith.constant 0 : index
      %278 = vector.load %arg11[%c0_115, %c0_116] : memref<8x32xf32, #tpu.memory_space<vmem>>, vector<8x32xf32>
      tpu.vector_store %arg11[%c0_115, %c0_116], %277 {strides = array<i32>} : memref<8x32xf32, #tpu.memory_space<vmem>>, vector<8x32xf32>,
      %cst_117 = arith.constant 0.000000e+00 : f32
      %279 = vector.broadcast %cst_117 : f32 to vector<8x32xf32>
      %c0_118 = arith.constant 0 : index
      %c0_119 = arith.constant 0 : index
      %280 = vector.load %arg12[%c0_118, %c0_119] : memref<8x32xf32, #tpu.memory_space<vmem>>, vector<8x32xf32>
      tpu.vector_store %arg12[%c0_118, %c0_119], %279 {strides = array<i32>} : memref<8x32xf32, #tpu.memory_space<vmem>>, vector<8x32xf32>,
    } else {
    }
    %c0 = arith.constant 0 : index
    %c0_1 = arith.constant 0 : index
    %c0_2 = arith.constant 0 : index
    %3 = vector.load %arg2[%c0, %c0_1, %c0_2] : memref<8x8x16xf32, #tpu.memory_space<vmem>>, vector<8x8x16xf32>
    %4 = vector.shape_cast %3 : vector<8x8x16xf32> to vector<64x16xf32>
    %c0_3 = arith.constant 0 : index
    %c0_4 = arith.constant 0 : index
    %5 = vector.load %arg3[%c0_3, %c0_4] : memref<16x128xf32, #tpu.memory_space<vmem>>, vector<16x128xf32>
    %cst = arith.constant dense<0.000000e+00> : vector<64x128xf32>
    %6 = tpu.matmul %4, %5, %cst {dimension_numbers = #tpu.dot_dimension_numbers<[1], [0], [0], [1], [0, 0, 1, 1], [], []>} : vector<64x16xf32>, vector<16x128xf32>, vector<64x128xf32> -> vector<64x128xf32>
    %c0_5 = arith.constant 0 : index
    %c0_6 = arith.constant 0 : index
    %7 = vector.load %arg5[%c0_5, %c0_6] : memref<1x128xf32, #tpu.memory_space<vmem>>, vector<1x128xf32>
    %8 = vector.broadcast %7 : vector<1x128xf32> to vector<64x128xf32>
    %9 = arith.addf %6, %8 : vector<64x128xf32>
    %10 = vector.shape_cast %9 : vector<64x128xf32> to vector<8x8x128xf32>
    %c0_7 = arith.constant 0 : index
    %c0_8 = arith.constant 0 : index
    %c0_9 = arith.constant 0 : index
    %11 = vector.load %arg9[%c0_7, %c0_8, %c0_9] : memref<8x8x128xf32, #tpu.memory_space<vmem>>, vector<8x8x128xf32>
    tpu.vector_store %arg9[%c0_7, %c0_8, %c0_9], %10 {strides = array<i32>} : memref<8x8x128xf32, #tpu.memory_space<vmem>>, vector<8x8x128xf32>,
    %c0_10 = arith.constant 0 : index
    %c0_11 = arith.constant 0 : index
    %12 = vector.load %arg11[%c0_10, %c0_11] : memref<8x32xf32, #tpu.memory_space<vmem>>, vector<8x32xf32>
    %c0_12 = arith.constant 0 : index
    %c0_13 = arith.constant 0 : index
    %13 = vector.load %arg12[%c0_12, %c0_13] : memref<8x32xf32, #tpu.memory_space<vmem>>, vector<8x32xf32>
    %c0_14 = arith.constant 0 : index
    %c0_15 = arith.constant 0 : index
    %c0_16 = arith.constant 0 : index
    %14 = vector.load %arg9[%c0_14, %c0_15, %c0_16] : memref<8x8x128xf32, #tpu.memory_space<vmem>>, vector<8x1x128xf32>
    %15 = vector.shape_cast %14 : vector<8x1x128xf32> to vector<8x128xf32>
    %c0_17 = arith.constant 0 : index
    %c0_18 = arith.constant 0 : index
    %16 = vector.load %arg4[%c0_17, %c0_18] : memref<32x128xf32, #tpu.memory_space<vmem>>, vector<32x128xf32>
    %cst_19 = arith.constant dense<0.000000e+00> : vector<8x128xf32>
    %17 = tpu.matmul %12, %16, %cst_19 {dimension_numbers = #tpu.dot_dimension_numbers<[1], [0], [0], [1], [0, 0, 1, 1], [], []>} : vector<8x32xf32>, vector<32x128xf32>, vector<8x128xf32> -> vector<8x128xf32>
    %18 = arith.addf %15, %17 : vector<8x128xf32>
    %19 = vector.extract_strided_slice %18 {offsets = [0, 0], sizes = [8, 32], strides = [1, 1]} : vector<8x128xf32> to vector<8x32xf32>
    %20 = arith.negf %19 : vector<8x32xf32>
    %21 = math.exp %20 : vector<8x32xf32>
    %cst_20 = arith.constant 1.000000e+00 : f32
    %22 = vector.broadcast %cst_20 : f32 to vector<8x32xf32>
    %23 = arith.addf %22, %21 : vector<8x32xf32>
    %24 = arith.divf %22, %23 : vector<8x32xf32>
    %25 = vector.extract_strided_slice %18 {offsets = [0, 32], sizes = [8, 32], strides = [1, 1]} : vector<8x128xf32> to vector<8x32xf32>
    %26 = arith.negf %25 : vector<8x32xf32>
    %27 = math.exp %26 : vector<8x32xf32>
    %cst_21 = arith.constant 1.000000e+00 : f32
    %28 = vector.broadcast %cst_21 : f32 to vector<8x32xf32>
    %29 = arith.addf %28, %27 : vector<8x32xf32>
    %30 = arith.divf %28, %29 : vector<8x32xf32>
    %31 = vector.extract_strided_slice %18 {offsets = [0, 64], sizes = [8, 32], strides = [1, 1]} : vector<8x128xf32> to vector<8x32xf32>
    %32 = math.tanh %31 : vector<8x32xf32>
    %33 = vector.extract_strided_slice %18 {offsets = [0, 96], sizes = [8, 32], strides = [1, 1]} : vector<8x128xf32> to vector<8x32xf32>
    %34 = arith.negf %33 : vector<8x32xf32>
    %35 = math.exp %34 : vector<8x32xf32>
    %cst_22 = arith.constant 1.000000e+00 : f32
    %36 = vector.broadcast %cst_22 : f32 to vector<8x32xf32>
    %37 = arith.addf %36, %35 : vector<8x32xf32>
    %38 = arith.divf %36, %37 : vector<8x32xf32>
    %39 = arith.mulf %30, %13 : vector<8x32xf32>
    %40 = arith.mulf %24, %32 : vector<8x32xf32>
    %41 = arith.addf %39, %40 : vector<8x32xf32>
    %42 = math.tanh %41 : vector<8x32xf32>
    %43 = arith.mulf %38, %42 : vector<8x32xf32>
    %44 = vector.shape_cast %43 : vector<8x32xf32> to vector<8x1x32xf32>
    %c0_23 = arith.constant 0 : index
    %c0_24 = arith.constant 0 : index
    %c0_25 = arith.constant 0 : index
    %45 = vector.load %arg10[%c0_23, %c0_24, %c0_25] : memref<8x8x32xf32, #tpu.memory_space<vmem>>, vector<8x1x32xf32>
    tpu.vector_store %arg10[%c0_23, %c0_24, %c0_25], %44 {strides = array<i32>} : memref<8x8x32xf32, #tpu.memory_space<vmem>>, vector<8x1x32xf32>,
    %c0_26 = arith.constant 0 : index
    %c1 = arith.constant 1 : index
    %c0_27 = arith.constant 0 : index
    %46 = vector.load %arg9[%c0_26, %c1, %c0_27] : memref<8x8x128xf32, #tpu.memory_space<vmem>>, vector<8x1x128xf32>
    %47 = vector.shape_cast %46 : vector<8x1x128xf32> to vector<8x128xf32>
    %c0_28 = arith.constant 0 : index
    %c0_29 = arith.constant 0 : index
    %48 = vector.load %arg4[%c0_28, %c0_29] : memref<32x128xf32, #tpu.memory_space<vmem>>, vector<32x128xf32>
    %cst_30 = arith.constant dense<0.000000e+00> : vector<8x128xf32>
    %49 = tpu.matmul %43, %48, %cst_30 {dimension_numbers = #tpu.dot_dimension_numbers<[1], [0], [0], [1], [0, 0, 1, 1], [], []>} : vector<8x32xf32>, vector<32x128xf32>, vector<8x128xf32> -> vector<8x128xf32>
    %50 = arith.addf %47, %49 : vector<8x128xf32>
    %51 = vector.extract_strided_slice %50 {offsets = [0, 0], sizes = [8, 32], strides = [1, 1]} : vector<8x128xf32> to vector<8x32xf32>
    %52 = arith.negf %51 : vector<8x32xf32>
    %53 = math.exp %52 : vector<8x32xf32>
    %cst_31 = arith.constant 1.000000e+00 : f32
    %54 = vector.broadcast %cst_31 : f32 to vector<8x32xf32>
    %55 = arith.addf %54, %53 : vector<8x32xf32>
    %56 = arith.divf %54, %55 : vector<8x32xf32>
    %57 = vector.extract_strided_slice %50 {offsets = [0, 32], sizes = [8, 32], strides = [1, 1]} : vector<8x128xf32> to vector<8x32xf32>
    %58 = arith.negf %57 : vector<8x32xf32>
    %59 = math.exp %58 : vector<8x32xf32>
    %cst_32 = arith.constant 1.000000e+00 : f32
    %60 = vector.broadcast %cst_32 : f32 to vector<8x32xf32>
    %61 = arith.addf %60, %59 : vector<8x32xf32>
    %62 = arith.divf %60, %61 : vector<8x32xf32>
    %63 = vector.extract_strided_slice %50 {offsets = [0, 64], sizes = [8, 32], strides = [1, 1]} : vector<8x128xf32> to vector<8x32xf32>
    %64 = math.tanh %63 : vector<8x32xf32>
    %65 = vector.extract_strided_slice %50 {offsets = [0, 96], sizes = [8, 32], strides = [1, 1]} : vector<8x128xf32> to vector<8x32xf32>
    %66 = arith.negf %65 : vector<8x32xf32>
    %67 = math.exp %66 : vector<8x32xf32>
    %cst_33 = arith.constant 1.000000e+00 : f32
    %68 = vector.broadcast %cst_33 : f32 to vector<8x32xf32>
    %69 = arith.addf %68, %67 : vector<8x32xf32>
    %70 = arith.divf %68, %69 : vector<8x32xf32>
    %71 = arith.mulf %62, %41 : vector<8x32xf32>
    %72 = arith.mulf %56, %64 : vector<8x32xf32>
    %73 = arith.addf %71, %72 : vector<8x32xf32>
    %74 = math.tanh %73 : vector<8x32xf32>
    %75 = arith.mulf %70, %74 : vector<8x32xf32>
    %76 = vector.shape_cast %75 : vector<8x32xf32> to vector<8x1x32xf32>
    %c0_34 = arith.constant 0 : index
    %c1_35 = arith.constant 1 : index
    %c0_36 = arith.constant 0 : index
    %77 = vector.load %arg10[%c0_34, %c1_35, %c0_36] : memref<8x8x32xf32, #tpu.memory_space<vmem>>, vector<8x1x32xf32>
    tpu.vector_store %arg10[%c0_34, %c1_35, %c0_36], %76 {strides = array<i32>} : memref<8x8x32xf32, #tpu.memory_space<vmem>>, vector<8x1x32xf32>,
    %c0_37 = arith.constant 0 : index
    %c2 = arith.constant 2 : index
    %c0_38 = arith.constant 0 : index
    %78 = vector.load %arg9[%c0_37, %c2, %c0_38] : memref<8x8x128xf32, #tpu.memory_space<vmem>>, vector<8x1x128xf32>
    %79 = vector.shape_cast %78 : vector<8x1x128xf32> to vector<8x128xf32>
    %c0_39 = arith.constant 0 : index
    %c0_40 = arith.constant 0 : index
    %80 = vector.load %arg4[%c0_39, %c0_40] : memref<32x128xf32, #tpu.memory_space<vmem>>, vector<32x128xf32>
    %cst_41 = arith.constant dense<0.000000e+00> : vector<8x128xf32>
    %81 = tpu.matmul %75, %80, %cst_41 {dimension_numbers = #tpu.dot_dimension_numbers<[1], [0], [0], [1], [0, 0, 1, 1], [], []>} : vector<8x32xf32>, vector<32x128xf32>, vector<8x128xf32> -> vector<8x128xf32>
    %82 = arith.addf %79, %81 : vector<8x128xf32>
    %83 = vector.extract_strided_slice %82 {offsets = [0, 0], sizes = [8, 32], strides = [1, 1]} : vector<8x128xf32> to vector<8x32xf32>
    %84 = arith.negf %83 : vector<8x32xf32>
    %85 = math.exp %84 : vector<8x32xf32>
    %cst_42 = arith.constant 1.000000e+00 : f32
    %86 = vector.broadcast %cst_42 : f32 to vector<8x32xf32>
    %87 = arith.addf %86, %85 : vector<8x32xf32>
    %88 = arith.divf %86, %87 : vector<8x32xf32>
    %89 = vector.extract_strided_slice %82 {offsets = [0, 32], sizes = [8, 32], strides = [1, 1]} : vector<8x128xf32> to vector<8x32xf32>
    %90 = arith.negf %89 : vector<8x32xf32>
    %91 = math.exp %90 : vector<8x32xf32>
    %cst_43 = arith.constant 1.000000e+00 : f32
    %92 = vector.broadcast %cst_43 : f32 to vector<8x32xf32>
    %93 = arith.addf %92, %91 : vector<8x32xf32>
    %94 = arith.divf %92, %93 : vector<8x32xf32>
    %95 = vector.extract_strided_slice %82 {offsets = [0, 64], sizes = [8, 32], strides = [1, 1]} : vector<8x128xf32> to vector<8x32xf32>
    %96 = math.tanh %95 : vector<8x32xf32>
    %97 = vector.extract_strided_slice %82 {offsets = [0, 96], sizes = [8, 32], strides = [1, 1]} : vector<8x128xf32> to vector<8x32xf32>
    %98 = arith.negf %97 : vector<8x32xf32>
    %99 = math.exp %98 : vector<8x32xf32>
    %cst_44 = arith.constant 1.000000e+00 : f32
    %100 = vector.broadcast %cst_44 : f32 to vector<8x32xf32>
    %101 = arith.addf %100, %99 : vector<8x32xf32>
    %102 = arith.divf %100, %101 : vector<8x32xf32>
    %103 = arith.mulf %94, %73 : vector<8x32xf32>
    %104 = arith.mulf %88, %96 : vector<8x32xf32>
    %105 = arith.addf %103, %104 : vector<8x32xf32>
    %106 = math.tanh %105 : vector<8x32xf32>
    %107 = arith.mulf %102, %106 : vector<8x32xf32>
    %108 = vector.shape_cast %107 : vector<8x32xf32> to vector<8x1x32xf32>
    %c0_45 = arith.constant 0 : index
    %c2_46 = arith.constant 2 : index
    %c0_47 = arith.constant 0 : index
    %109 = vector.load %arg10[%c0_45, %c2_46, %c0_47] : memref<8x8x32xf32, #tpu.memory_space<vmem>>, vector<8x1x32xf32>
    tpu.vector_store %arg10[%c0_45, %c2_46, %c0_47], %108 {strides = array<i32>} : memref<8x8x32xf32, #tpu.memory_space<vmem>>, vector<8x1x32xf32>,
    %c0_48 = arith.constant 0 : index
    %c3 = arith.constant 3 : index
    %c0_49 = arith.constant 0 : index
    %110 = vector.load %arg9[%c0_48, %c3, %c0_49] : memref<8x8x128xf32, #tpu.memory_space<vmem>>, vector<8x1x128xf32>
    %111 = vector.shape_cast %110 : vector<8x1x128xf32> to vector<8x128xf32>
    %c0_50 = arith.constant 0 : index
    %c0_51 = arith.constant 0 : index
    %112 = vector.load %arg4[%c0_50, %c0_51] : memref<32x128xf32, #tpu.memory_space<vmem>>, vector<32x128xf32>
    %cst_52 = arith.constant dense<0.000000e+00> : vector<8x128xf32>
    %113 = tpu.matmul %107, %112, %cst_52 {dimension_numbers = #tpu.dot_dimension_numbers<[1], [0], [0], [1], [0, 0, 1, 1], [], []>} : vector<8x32xf32>, vector<32x128xf32>, vector<8x128xf32> -> vector<8x128xf32>
    %114 = arith.addf %111, %113 : vector<8x128xf32>
    %115 = vector.extract_strided_slice %114 {offsets = [0, 0], sizes = [8, 32], strides = [1, 1]} : vector<8x128xf32> to vector<8x32xf32>
    %116 = arith.negf %115 : vector<8x32xf32>
    %117 = math.exp %116 : vector<8x32xf32>
    %cst_53 = arith.constant 1.000000e+00 : f32
    %118 = vector.broadcast %cst_53 : f32 to vector<8x32xf32>
    %119 = arith.addf %118, %117 : vector<8x32xf32>
    %120 = arith.divf %118, %119 : vector<8x32xf32>
    %121 = vector.extract_strided_slice %114 {offsets = [0, 32], sizes = [8, 32], strides = [1, 1]} : vector<8x128xf32> to vector<8x32xf32>
    %122 = arith.negf %121 : vector<8x32xf32>
    %123 = math.exp %122 : vector<8x32xf32>
    %cst_54 = arith.constant 1.000000e+00 : f32
    %124 = vector.broadcast %cst_54 : f32 to vector<8x32xf32>
    %125 = arith.addf %124, %123 : vector<8x32xf32>
    %126 = arith.divf %124, %125 : vector<8x32xf32>
    %127 = vector.extract_strided_slice %114 {offsets = [0, 64], sizes = [8, 32], strides = [1, 1]} : vector<8x128xf32> to vector<8x32xf32>
    %128 = math.tanh %127 : vector<8x32xf32>
    %129 = vector.extract_strided_slice %114 {offsets = [0, 96], sizes = [8, 32], strides = [1, 1]} : vector<8x128xf32> to vector<8x32xf32>
    %130 = arith.negf %129 : vector<8x32xf32>
    %131 = math.exp %130 : vector<8x32xf32>
    %cst_55 = arith.constant 1.000000e+00 : f32
    %132 = vector.broadcast %cst_55 : f32 to vector<8x32xf32>
    %133 = arith.addf %132, %131 : vector<8x32xf32>
    %134 = arith.divf %132, %133 : vector<8x32xf32>
    %135 = arith.mulf %126, %105 : vector<8x32xf32>
    %136 = arith.mulf %120, %128 : vector<8x32xf32>
    %137 = arith.addf %135, %136 : vector<8x32xf32>
    %138 = math.tanh %137 : vector<8x32xf32>
    %139 = arith.mulf %134, %138 : vector<8x32xf32>
    %140 = vector.shape_cast %139 : vector<8x32xf32> to vector<8x1x32xf32>
    %c0_56 = arith.constant 0 : index
    %c3_57 = arith.constant 3 : index
    %c0_58 = arith.constant 0 : index
    %141 = vector.load %arg10[%c0_56, %c3_57, %c0_58] : memref<8x8x32xf32, #tpu.memory_space<vmem>>, vector<8x1x32xf32>
    tpu.vector_store %arg10[%c0_56, %c3_57, %c0_58], %140 {strides = array<i32>} : memref<8x8x32xf32, #tpu.memory_space<vmem>>, vector<8x1x32xf32>,
    %c0_59 = arith.constant 0 : index
    %c4 = arith.constant 4 : index
    %c0_60 = arith.constant 0 : index
    %142 = vector.load %arg9[%c0_59, %c4, %c0_60] : memref<8x8x128xf32, #tpu.memory_space<vmem>>, vector<8x1x128xf32>
    %143 = vector.shape_cast %142 : vector<8x1x128xf32> to vector<8x128xf32>
    %c0_61 = arith.constant 0 : index
    %c0_62 = arith.constant 0 : index
    %144 = vector.load %arg4[%c0_61, %c0_62] : memref<32x128xf32, #tpu.memory_space<vmem>>, vector<32x128xf32>
    %cst_63 = arith.constant dense<0.000000e+00> : vector<8x128xf32>
    %145 = tpu.matmul %139, %144, %cst_63 {dimension_numbers = #tpu.dot_dimension_numbers<[1], [0], [0], [1], [0, 0, 1, 1], [], []>} : vector<8x32xf32>, vector<32x128xf32>, vector<8x128xf32> -> vector<8x128xf32>
    %146 = arith.addf %143, %145 : vector<8x128xf32>
    %147 = vector.extract_strided_slice %146 {offsets = [0, 0], sizes = [8, 32], strides = [1, 1]} : vector<8x128xf32> to vector<8x32xf32>
    %148 = arith.negf %147 : vector<8x32xf32>
    %149 = math.exp %148 : vector<8x32xf32>
    %cst_64 = arith.constant 1.000000e+00 : f32
    %150 = vector.broadcast %cst_64 : f32 to vector<8x32xf32>
    %151 = arith.addf %150, %149 : vector<8x32xf32>
    %152 = arith.divf %150, %151 : vector<8x32xf32>
    %153 = vector.extract_strided_slice %146 {offsets = [0, 32], sizes = [8, 32], strides = [1, 1]} : vector<8x128xf32> to vector<8x32xf32>
    %154 = arith.negf %153 : vector<8x32xf32>
    %155 = math.exp %154 : vector<8x32xf32>
    %cst_65 = arith.constant 1.000000e+00 : f32
    %156 = vector.broadcast %cst_65 : f32 to vector<8x32xf32>
    %157 = arith.addf %156, %155 : vector<8x32xf32>
    %158 = arith.divf %156, %157 : vector<8x32xf32>
    %159 = vector.extract_strided_slice %146 {offsets = [0, 64], sizes = [8, 32], strides = [1, 1]} : vector<8x128xf32> to vector<8x32xf32>
    %160 = math.tanh %159 : vector<8x32xf32>
    %161 = vector.extract_strided_slice %146 {offsets = [0, 96], sizes = [8, 32], strides = [1, 1]} : vector<8x128xf32> to vector<8x32xf32>
    %162 = arith.negf %161 : vector<8x32xf32>
    %163 = math.exp %162 : vector<8x32xf32>
    %cst_66 = arith.constant 1.000000e+00 : f32
    %164 = vector.broadcast %cst_66 : f32 to vector<8x32xf32>
    %165 = arith.addf %164, %163 : vector<8x32xf32>
    %166 = arith.divf %164, %165 : vector<8x32xf32>
    %167 = arith.mulf %158, %137 : vector<8x32xf32>
    %168 = arith.mulf %152, %160 : vector<8x32xf32>
    %169 = arith.addf %167, %168 : vector<8x32xf32>
    %170 = math.tanh %169 : vector<8x32xf32>
    %171 = arith.mulf %166, %170 : vector<8x32xf32>
    %172 = vector.shape_cast %171 : vector<8x32xf32> to vector<8x1x32xf32>
    %c0_67 = arith.constant 0 : index
    %c4_68 = arith.constant 4 : index
    %c0_69 = arith.constant 0 : index
    %173 = vector.load %arg10[%c0_67, %c4_68, %c0_69] : memref<8x8x32xf32, #tpu.memory_space<vmem>>, vector<8x1x32xf32>
    tpu.vector_store %arg10[%c0_67, %c4_68, %c0_69], %172 {strides = array<i32>} : memref<8x8x32xf32, #tpu.memory_space<vmem>>, vector<8x1x32xf32>,
    %c0_70 = arith.constant 0 : index
    %c5 = arith.constant 5 : index
    %c0_71 = arith.constant 0 : index
    %174 = vector.load %arg9[%c0_70, %c5, %c0_71] : memref<8x8x128xf32, #tpu.memory_space<vmem>>, vector<8x1x128xf32>
    %175 = vector.shape_cast %174 : vector<8x1x128xf32> to vector<8x128xf32>
    %c0_72 = arith.constant 0 : index
    %c0_73 = arith.constant 0 : index
    %176 = vector.load %arg4[%c0_72, %c0_73] : memref<32x128xf32, #tpu.memory_space<vmem>>, vector<32x128xf32>
    %cst_74 = arith.constant dense<0.000000e+00> : vector<8x128xf32>
    %177 = tpu.matmul %171, %176, %cst_74 {dimension_numbers = #tpu.dot_dimension_numbers<[1], [0], [0], [1], [0, 0, 1, 1], [], []>} : vector<8x32xf32>, vector<32x128xf32>, vector<8x128xf32> -> vector<8x128xf32>
    %178 = arith.addf %175, %177 : vector<8x128xf32>
    %179 = vector.extract_strided_slice %178 {offsets = [0, 0], sizes = [8, 32], strides = [1, 1]} : vector<8x128xf32> to vector<8x32xf32>
    %180 = arith.negf %179 : vector<8x32xf32>
    %181 = math.exp %180 : vector<8x32xf32>
    %cst_75 = arith.constant 1.000000e+00 : f32
    %182 = vector.broadcast %cst_75 : f32 to vector<8x32xf32>
    %183 = arith.addf %182, %181 : vector<8x32xf32>
    %184 = arith.divf %182, %183 : vector<8x32xf32>
    %185 = vector.extract_strided_slice %178 {offsets = [0, 32], sizes = [8, 32], strides = [1, 1]} : vector<8x128xf32> to vector<8x32xf32>
    %186 = arith.negf %185 : vector<8x32xf32>
    %187 = math.exp %186 : vector<8x32xf32>
    %cst_76 = arith.constant 1.000000e+00 : f32
    %188 = vector.broadcast %cst_76 : f32 to vector<8x32xf32>
    %189 = arith.addf %188, %187 : vector<8x32xf32>
    %190 = arith.divf %188, %189 : vector<8x32xf32>
    %191 = vector.extract_strided_slice %178 {offsets = [0, 64], sizes = [8, 32], strides = [1, 1]} : vector<8x128xf32> to vector<8x32xf32>
    %192 = math.tanh %191 : vector<8x32xf32>
    %193 = vector.extract_strided_slice %178 {offsets = [0, 96], sizes = [8, 32], strides = [1, 1]} : vector<8x128xf32> to vector<8x32xf32>
    %194 = arith.negf %193 : vector<8x32xf32>
    %195 = math.exp %194 : vector<8x32xf32>
    %cst_77 = arith.constant 1.000000e+00 : f32
    %196 = vector.broadcast %cst_77 : f32 to vector<8x32xf32>
    %197 = arith.addf %196, %195 : vector<8x32xf32>
    %198 = arith.divf %196, %197 : vector<8x32xf32>
    %199 = arith.mulf %190, %169 : vector<8x32xf32>
    %200 = arith.mulf %184, %192 : vector<8x32xf32>
    %201 = arith.addf %199, %200 : vector<8x32xf32>
    %202 = math.tanh %201 : vector<8x32xf32>
    %203 = arith.mulf %198, %202 : vector<8x32xf32>
    %204 = vector.shape_cast %203 : vector<8x32xf32> to vector<8x1x32xf32>
    %c0_78 = arith.constant 0 : index
    %c5_79 = arith.constant 5 : index
    %c0_80 = arith.constant 0 : index
    %205 = vector.load %arg10[%c0_78, %c5_79, %c0_80] : memref<8x8x32xf32, #tpu.memory_space<vmem>>, vector<8x1x32xf32>
    tpu.vector_store %arg10[%c0_78, %c5_79, %c0_80], %204 {strides = array<i32>} : memref<8x8x32xf32, #tpu.memory_space<vmem>>, vector<8x1x32xf32>,
    %c0_81 = arith.constant 0 : index
    %c6 = arith.constant 6 : index
    %c0_82 = arith.constant 0 : index
    %206 = vector.load %arg9[%c0_81, %c6, %c0_82] : memref<8x8x128xf32, #tpu.memory_space<vmem>>, vector<8x1x128xf32>
    %207 = vector.shape_cast %206 : vector<8x1x128xf32> to vector<8x128xf32>
    %c0_83 = arith.constant 0 : index
    %c0_84 = arith.constant 0 : index
    %208 = vector.load %arg4[%c0_83, %c0_84] : memref<32x128xf32, #tpu.memory_space<vmem>>, vector<32x128xf32>
    %cst_85 = arith.constant dense<0.000000e+00> : vector<8x128xf32>
    %209 = tpu.matmul %203, %208, %cst_85 {dimension_numbers = #tpu.dot_dimension_numbers<[1], [0], [0], [1], [0, 0, 1, 1], [], []>} : vector<8x32xf32>, vector<32x128xf32>, vector<8x128xf32> -> vector<8x128xf32>
    %210 = arith.addf %207, %209 : vector<8x128xf32>
    %211 = vector.extract_strided_slice %210 {offsets = [0, 0], sizes = [8, 32], strides = [1, 1]} : vector<8x128xf32> to vector<8x32xf32>
    %212 = arith.negf %211 : vector<8x32xf32>
    %213 = math.exp %212 : vector<8x32xf32>
    %cst_86 = arith.constant 1.000000e+00 : f32
    %214 = vector.broadcast %cst_86 : f32 to vector<8x32xf32>
    %215 = arith.addf %214, %213 : vector<8x32xf32>
    %216 = arith.divf %214, %215 : vector<8x32xf32>
    %217 = vector.extract_strided_slice %210 {offsets = [0, 32], sizes = [8, 32], strides = [1, 1]} : vector<8x128xf32> to vector<8x32xf32>
    %218 = arith.negf %217 : vector<8x32xf32>
    %219 = math.exp %218 : vector<8x32xf32>
    %cst_87 = arith.constant 1.000000e+00 : f32
    %220 = vector.broadcast %cst_87 : f32 to vector<8x32xf32>
    %221 = arith.addf %220, %219 : vector<8x32xf32>
    %222 = arith.divf %220, %221 : vector<8x32xf32>
    %223 = vector.extract_strided_slice %210 {offsets = [0, 64], sizes = [8, 32], strides = [1, 1]} : vector<8x128xf32> to vector<8x32xf32>
    %224 = math.tanh %223 : vector<8x32xf32>
    %225 = vector.extract_strided_slice %210 {offsets = [0, 96], sizes = [8, 32], strides = [1, 1]} : vector<8x128xf32> to vector<8x32xf32>
    %226 = arith.negf %225 : vector<8x32xf32>
    %227 = math.exp %226 : vector<8x32xf32>
    %cst_88 = arith.constant 1.000000e+00 : f32
    %228 = vector.broadcast %cst_88 : f32 to vector<8x32xf32>
    %229 = arith.addf %228, %227 : vector<8x32xf32>
    %230 = arith.divf %228, %229 : vector<8x32xf32>
    %231 = arith.mulf %222, %201 : vector<8x32xf32>
    %232 = arith.mulf %216, %224 : vector<8x32xf32>
    %233 = arith.addf %231, %232 : vector<8x32xf32>
    %234 = math.tanh %233 : vector<8x32xf32>
    %235 = arith.mulf %230, %234 : vector<8x32xf32>
    %236 = vector.shape_cast %235 : vector<8x32xf32> to vector<8x1x32xf32>
    %c0_89 = arith.constant 0 : index
    %c6_90 = arith.constant 6 : index
    %c0_91 = arith.constant 0 : index
    %237 = vector.load %arg10[%c0_89, %c6_90, %c0_91] : memref<8x8x32xf32, #tpu.memory_space<vmem>>, vector<8x1x32xf32>
    tpu.vector_store %arg10[%c0_89, %c6_90, %c0_91], %236 {strides = array<i32>} : memref<8x8x32xf32, #tpu.memory_space<vmem>>, vector<8x1x32xf32>,
    %c0_92 = arith.constant 0 : index
    %c7 = arith.constant 7 : index
    %c0_93 = arith.constant 0 : index
    %238 = vector.load %arg9[%c0_92, %c7, %c0_93] : memref<8x8x128xf32, #tpu.memory_space<vmem>>, vector<8x1x128xf32>
    %239 = vector.shape_cast %238 : vector<8x1x128xf32> to vector<8x128xf32>
    %c0_94 = arith.constant 0 : index
    %c0_95 = arith.constant 0 : index
    %240 = vector.load %arg4[%c0_94, %c0_95] : memref<32x128xf32, #tpu.memory_space<vmem>>, vector<32x128xf32>
    %cst_96 = arith.constant dense<0.000000e+00> : vector<8x128xf32>
    %241 = tpu.matmul %235, %240, %cst_96 {dimension_numbers = #tpu.dot_dimension_numbers<[1], [0], [0], [1], [0, 0, 1, 1], [], []>} : vector<8x32xf32>, vector<32x128xf32>, vector<8x128xf32> -> vector<8x128xf32>
    %242 = arith.addf %239, %241 : vector<8x128xf32>
    %243 = vector.extract_strided_slice %242 {offsets = [0, 0], sizes = [8, 32], strides = [1, 1]} : vector<8x128xf32> to vector<8x32xf32>
    %244 = arith.negf %243 : vector<8x32xf32>
    %245 = math.exp %244 : vector<8x32xf32>
    %cst_97 = arith.constant 1.000000e+00 : f32
    %246 = vector.broadcast %cst_97 : f32 to vector<8x32xf32>
    %247 = arith.addf %246, %245 : vector<8x32xf32>
    %248 = arith.divf %246, %247 : vector<8x32xf32>
    %249 = vector.extract_strided_slice %242 {offsets = [0, 32], sizes = [8, 32], strides = [1, 1]} : vector<8x128xf32> to vector<8x32xf32>
    %250 = arith.negf %249 : vector<8x32xf32>
    %251 = math.exp %250 : vector<8x32xf32>
    %cst_98 = arith.constant 1.000000e+00 : f32
    %252 = vector.broadcast %cst_98 : f32 to vector<8x32xf32>
    %253 = arith.addf %252, %251 : vector<8x32xf32>
    %254 = arith.divf %252, %253 : vector<8x32xf32>
    %255 = vector.extract_strided_slice %242 {offsets = [0, 64], sizes = [8, 32], strides = [1, 1]} : vector<8x128xf32> to vector<8x32xf32>
    %256 = math.tanh %255 : vector<8x32xf32>
    %257 = vector.extract_strided_slice %242 {offsets = [0, 96], sizes = [8, 32], strides = [1, 1]} : vector<8x128xf32> to vector<8x32xf32>
    %258 = arith.negf %257 : vector<8x32xf32>
    %259 = math.exp %258 : vector<8x32xf32>
    %cst_99 = arith.constant 1.000000e+00 : f32
    %260 = vector.broadcast %cst_99 : f32 to vector<8x32xf32>
    %261 = arith.addf %260, %259 : vector<8x32xf32>
    %262 = arith.divf %260, %261 : vector<8x32xf32>
    %263 = arith.mulf %254, %233 : vector<8x32xf32>
    %264 = arith.mulf %248, %256 : vector<8x32xf32>
    %265 = arith.addf %263, %264 : vector<8x32xf32>
    %266 = math.tanh %265 : vector<8x32xf32>
    %267 = arith.mulf %262, %266 : vector<8x32xf32>
    %268 = vector.shape_cast %267 : vector<8x32xf32> to vector<8x1x32xf32>
    %c0_100 = arith.constant 0 : index
    %c7_101 = arith.constant 7 : index
    %c0_102 = arith.constant 0 : index
    %269 = vector.load %arg10[%c0_100, %c7_101, %c0_102] : memref<8x8x32xf32, #tpu.memory_space<vmem>>, vector<8x1x32xf32>
    tpu.vector_store %arg10[%c0_100, %c7_101, %c0_102], %268 {strides = array<i32>} : memref<8x8x32xf32, #tpu.memory_space<vmem>>, vector<8x1x32xf32>,
    %c0_103 = arith.constant 0 : index
    %c0_104 = arith.constant 0 : index
    %270 = vector.load %arg11[%c0_103, %c0_104] : memref<8x32xf32, #tpu.memory_space<vmem>>, vector<8x32xf32>
    tpu.vector_store %arg11[%c0_103, %c0_104], %267 {strides = array<i32>} : memref<8x32xf32, #tpu.memory_space<vmem>>, vector<8x32xf32>,
    %c0_105 = arith.constant 0 : index
    %c0_106 = arith.constant 0 : index
    %271 = vector.load %arg12[%c0_105, %c0_106] : memref<8x32xf32, #tpu.memory_space<vmem>>, vector<8x32xf32>
    tpu.vector_store %arg12[%c0_105, %c0_106], %265 {strides = array<i32>} : memref<8x32xf32, #tpu.memory_space<vmem>>, vector<8x32xf32>,
    %c0_107 = arith.constant 0 : index
    %c0_108 = arith.constant 0 : index
    %c0_109 = arith.constant 0 : index
    %272 = vector.load %arg10[%c0_107, %c0_108, %c0_109] : memref<8x8x32xf32, #tpu.memory_space<vmem>>, vector<8x8x32xf32>
    %c0_110 = arith.constant 0 : index
    %c0_111 = arith.constant 0 : index
    %c0_112 = arith.constant 0 : index
    %273 = vector.load %arg6[%c0_110, %c0_111, %c0_112] : memref<8x8x32xf32, #tpu.memory_space<vmem>>, vector<8x8x32xf32>
    tpu.vector_store %arg6[%c0_110, %c0_111, %c0_112], %272 {strides = array<i32>} : memref<8x8x32xf32, #tpu.memory_space<vmem>>, vector<8x8x32xf32>,
    %c1_i32 = arith.constant 1 : i32
    %274 = arith.cmpi eq, %arg1, %c1_i32 : i32
    %275 = arith.extui %274 : i1 to i32
    %c0_i32_113 = arith.constant 0 : i32
    %276 = arith.cmpi ne, %275, %c0_i32_113 : i32
    scf.if %276 {
      %c0_114 = arith.constant 0 : index
      %c0_115 = arith.constant 0 : index
      %277 = vector.load %arg7[%c0_114, %c0_115] : memref<8x32xf32, #tpu.memory_space<vmem>>, vector<8x32xf32>
      tpu.vector_store %arg7[%c0_114, %c0_115], %267 {strides = array<i32>} : memref<8x32xf32, #tpu.memory_space<vmem>>, vector<8x32xf32>,
      %c0_116 = arith.constant 0 : index
      %c0_117 = arith.constant 0 : index
      %278 = vector.load %arg8[%c0_116, %c0_117] : memref<8x32xf32, #tpu.memory_space<vmem>>, vector<8x32xf32>
      tpu.vector_store %arg8[%c0_116, %c0_117], %265 {strides = array<i32>} : memref<8x32xf32, #tpu.memory_space<vmem>>, vector<8x32xf32>,
    } else {
    }
    return
  }
  func.func @transform_0(%arg0: i32, %arg1: i32) -> (i32, i32, i32) {
    %c0_i32 = arith.constant 0 : i32
    %c0_i32_0 = arith.constant 0 : i32
    return %arg0, %arg1, %c0_i32 : i32, i32, i32
  }
  func.func @transform_1(%arg0: i32, %arg1: i32) -> (i32, i32) {
    %c0_i32 = arith.constant 0 : i32
    %c0_i32_0 = arith.constant 0 : i32
    %c0_i32_1 = arith.constant 0 : i32
    return %c0_i32, %c0_i32_0 : i32, i32
  }
  func.func @transform_2(%arg0: i32, %arg1: i32) -> (i32, i32) {
    %c0_i32 = arith.constant 0 : i32
    %c0_i32_0 = arith.constant 0 : i32
    %c0_i32_1 = arith.constant 0 : i32
    return %c0_i32, %c0_i32_0 : i32, i32
  }
  func.func @transform_3(%arg0: i32, %arg1: i32) -> (i32, i32) {
    %c0_i32 = arith.constant 0 : i32
    %c0_i32_0 = arith.constant 0 : i32
    %c0_i32_1 = arith.constant 0 : i32
    return %c0_i32, %c0_i32_0 : i32, i32
  }
  func.func @transform_4(%arg0: i32, %arg1: i32) -> (i32, i32, i32) {
    %c0_i32 = arith.constant 0 : i32
    %c0_i32_0 = arith.constant 0 : i32
    return %arg0, %arg1, %c0_i32 : i32, i32, i32
  }
  func.func @transform_5(%arg0: i32, %arg1: i32) -> (i32, i32) {
    %c0_i32 = arith.constant 0 : i32
    %c0_i32_0 = arith.constant 0 : i32
    return %arg0, %c0_i32 : i32, i32
  }
  func.func @transform_6(%arg0: i32, %arg1: i32) -> (i32, i32) {
    %c0_i32 = arith.constant 0 : i32
    %c0_i32_0 = arith.constant 0 : i32
    return %arg0, %c0_i32 : i32, i32
  }
}

</mosaic_0001>

<bundles_post_ra>
// kernel: rnnp_forward.3
= control target key start
LH: loop header
LB: loop body
LE: loop exit
PB: predicated region body
PF: predicated region fallthrough
CT: control target
= control target key end

     0   :  { %s4352_s27 = smov 0   ;;  %s4354_s28 = smov 0   ;;  %s5436_s0 = inlined_call_operand.vmem [shape: f32[8,16,32], index: 0, kind: input, shape index: {}]   ;;  %s5437_s1 = inlined_call_operand.vmem [shape: f32[32,128], index: 1, kind: input, shape index: {}]   ;;  %s5438_s2 = inlined_call_operand.vmem [shape: f32[32,128], index: 2, kind: input, shape index: {}]   ;;  %s5439_s3 = inlined_call_operand.vmem [shape: f32[1,128], index: 3, kind: input, shape index: {}]   ;;  %s5440_s4 = inlined_call_operand.vmem [shape: f32[32,10], index: 4, kind: input, shape index: {}]   ;;  %s5441_s5 = inlined_call_operand.vmem [shape: f32[1,10], index: 5, kind: input, shape index: {}]   ;;  %s5442_s6 = inlined_call_operand.vmem [shape: f32[8,10], index: 6, kind: output, shape index: {0}]   ;;  %s5443_s7 = inlined_call_operand.vmem [shape: f32[8,32], index: 7, kind: output, shape index: {1}]   ;;  %s5444_s8 = inlined_call_operand.vmem [shape: f32[8,32], index: 8, kind: output, shape index: {2}]  }
   0x1   :  { %s4356_s29 = smov 0   ;;  %s4358_s30 = smov 0  }
   0x2   :  { %s4360_s9 = smov 0  }
   0x3 LB: > { %s28_s10 = sadd.s32 1, %s4293_s30  ;;  %p47_p1 = scmp.ne.s32.totalorder %s4285_s28, %s4281_s27  ;;  %s4297_s9 = sphi %s4360_s9, %s19_s9   ;;  %s4293_s30 = sphi %s4358_s30, %s5448_s30   ;;  %s4289_s29 = sphi %s4356_s29, %s5447_s29   ;;  %s4285_s28 = sphi %s4354_s28, %s5446_s28   ;;  %s4281_s27 = sphi %s4352_s27, %s5445_s27  }
   0x4   : > { %p29_p0 = scmp.ge.s32.totalorder %s28_s10, 2  ;;  %p48_p2 = scmp.eq.s32.totalorder %s4297_s9, 0 }
   0x5   : > { %s40_s12 = sadd.s32 1, %s4285_s28  ;;  %p3420_p5 = scmp.ge.s32.totalorder %s4297_s9, 2 }
   0x6   : > { %s5450_s10 = smov (%p29_p0, %s28_s10), 0  ;;  %p49_p3 = por %p48_p2, %p47_p1 }
   0x7   : > { %s36_s11 = ssub.s32 %s4293_s30, %s5450_s10  ;;  %271 = sbr.rel (%p3420_p5) target bundleno = 20 (0x14), region = 36 }
   0x8   : > { %p38_p4 = scmp.eq.s32.totalorder %s36_s11, 0 }
   0xa   : > { %s4387_s13 = scalar_select %p38_p4, %s4285_s28, %s40_s12  }
   0xc   : > { %274 = sbr.rel (!%p49_p3) target bundleno = 20 (0x14), region = 40  ;;  %s276_s14 = sand.u32 (%p49_p3), 1, %s4285_s28  }
   0xd   : > { %s3422_s15 = sshll.u32 (%p49_p3), %s4293_s30, 3  ;;  %s3421_s16 = sshll.u32 (%p49_p3), %s276_s14, 6 }
   0xe   : > { %s283_s19 = scalar_lea.vmem (%p49_p3), %s5436_s0, %s3422_s15  ;;  %s278_s20 = scalar_lea.vmem (%p49_p3), [#allocation5], %s3421_s16 }
   0xf   : > { %v326_v0 = vld [vmem:[%s283_s19] sm:$0xff] (%p49_p3)  ;;  %v328_v1 = vld [vmem:[%s283_s19 + $0x10] sm:$0xff] (%p49_p3) }
  0x10   : > { %v330_v2 = vld [vmem:[%s283_s19 + $0x20] sm:$0xff] (%p49_p3)  ;;  %327 = vst [vmem:[%s278_s20] sm:$0xff] (%p49_p3), %v326_v0  ;;  %329 = vst [vmem:[%s278_s20 + $0x8] sm:$0xff] (%p49_p3), %v328_v1  ;;  %v332_v3 = vld [vmem:[%s283_s19 + $0x30] sm:$0xff] (%p49_p3) }
  0x11   : > { %331 = vst [vmem:[%s278_s20 + $0x10] sm:$0xff] %v330_v2  ;;  %v334_v4 = vld [vmem:[%s283_s19 + $0x40] sm:$0xff]  ;;  %v336_v5 = vld [vmem:[%s283_s19 + $0x50] sm:$0xff]  ;;  %333 = vst [vmem:[%s278_s20 + $0x18] sm:$0xff] %v332_v3 }
  0x12   : > { %335 = vst [vmem:[%s278_s20 + $0x20] sm:$0xff] %v334_v4  ;;  %337 = vst [vmem:[%s278_s20 + $0x28] sm:$0xff] %v336_v5  ;;  %v338_v6 = vld [vmem:[%s283_s19 + $0x60] sm:$0xff]  ;;  %v340_v7 = vld [vmem:[%s283_s19 + $0x70] sm:$0xff] }
  0x13   : > { %339 = vst [vmem:[%s278_s20 + $0x30] sm:$0xff] %v338_v6  ;;  %341 = vst [vmem:[%s278_s20 + $0x38] sm:$0xff] %v340_v7 }
  0x14 PF: > { %p3423_p6 = scmp.ge.s32.totalorder %s4297_s9, 1  ;;  %p346_p7 = scmp.lt.s32.totalorder %s4297_s9, 3 }
  0x16   : > { %p347_p8 = pnand %p3423_p6, %p346_p7 }
  0x17   : > { %s353_s21 = sand.u32 (!%p347_p8), 1, %s4281_s27   ;;  %p3425_p9 = scmp.ne.s32.totalorder (!%p347_p8), %s4289_s29, 0 }
  0x18   : > { %350 = sbr.rel (%p347_p8) target bundleno = 5935 (0x172f), region = 78  ;;  %s3424_s22 = sshll.u32 (!%p347_p8), %s353_s21, 6 }
  0x19   : > { %s4398_s23 = scalar_lea.vmem (!%p347_p8), [#allocation5], %s3424_s22 }
  0x1d   : > { %409 = sbr.rel (%p3425_p9) target bundleno = 36 (0x24), region = 86 }
  0x22   : > { %vm410_vm0 = vcmask 261120   ;;  %v4299_v8 = vmov 0.0  }
  0x23   : > { %411 = vst.msk [vmem:[#allocation3] sm:$0xff] %vm410_vm0, %v4299_v8  ;;  %412 = vst.msk [vmem:[#allocation4] sm:$0xff] %vm410_vm0, %v4299_v8 }
  0x24 PF: > { %v424_v9 = vld [vmem:[%s5437_s1 + $0x18] sm:$0xff]  ;;  %v423_v10 = vld [vmem:[%s5437_s1 + $0x10] sm:$0xff]  ;;  %vm432_vm1 = vcmask 261120   ;;  %v4300_v12 = vmov 0.0   ;;  %v422_v13 = vld [vmem:[%s5437_s1 + $0x8] sm:$0xff]  ;;  %vm4301_vm2 = vmmov 0  }
  0x25   : > { %3572 = vmatprep.subr.mxu0 %v424_v9  ;;  %v413_v11 = vld [vmem:[%s4398_s23] sm:$0xff]  ;;  %3592 = vmatprep.subr.mxu1 %v4300_v12  ;;  %v4416_v14 = vld [vmem:[%s5438_s2 + $0x18] sm:$0xff]  ;;  %v421_v16 = vld [vmem:[%s5437_s1] sm:$0xff]  ;;  %s4302_s26 = smov 64   ;;  %s4303_s11 = smov 32   ;;  %vm922_vm3 = vcmask 1041409  }
  0x26   : > { %3573 = vmatpush3.msra.mxu0 %v424_v9  ;;  %3580 = vmatprep.mubr.msk.f32.mxu0 %vm432_vm1, %v413_v11  ;;  %v4421_v15 = vld [vmem:[%s5438_s2 + $0x10] sm:$0xff]  ;;  %v4431_v17 = vld [vmem:[%s5438_s2 + $0x8] sm:$0xff]  ;;  %v414_v18 = vld [vmem:[%s4398_s23 + $0x8] sm:$0xff]  ;;  %vm925_vm4 = vcmask 1042434   ;;  %vm928_vm5 = vcmask 1043459   ;;  %vm931_vm6 = vcmask 1044484  }
  0x27   : > { %3574 = vmatprep.subr.mxu0 %v423_v10  ;;  %3593 = vmatpush3.msra.mxu1 %v4416_v14  ;;  %v4439_v19 = vld [vmem:[%s5438_s2] sm:$0xff]  ;;  %v416_v22 = vld [vmem:[%s4398_s23 + $0x18] sm:$0xff]  ;;  %v417_v23 = vld [vmem:[%s4398_s23 + $0x20] sm:$0xff]  ;;  %vm934_vm7 = vcmask 1045509   ;;  %vm937_vm8 = vcmask 1046534   ;;  %vm940_vm9 = vcmask 1047559  }
  0x28   : > { %3575 = vmatpush3.msra.mxu0 %v423_v10  ;;  %3594 = vmatprep.subr.mxu1 %v4300_v12  ;;  %v415_v20 = vld [vmem:[%s4398_s23 + $0x10] sm:$0xff]  ;;  %v418_v24 = vld [vmem:[%s4398_s23 + $0x28] sm:$0xff]  ;;  %v420_v26 = vld [vmem:[%s4398_s23 + $0x38] sm:$0xff]  ;;  %s4304_s14 = smov 96   ;;  %p3507_p10 = scmp.ne.s32.totalorder %s4289_s29, 1 }
  0x29   : > { %3576 = vmatprep.subr.mxu0 %v422_v13  ;;  %3595 = vmatpush3.msra.mxu1 %v4421_v15  ;;  %v419_v25 = vld [vmem:[%s4398_s23 + $0x30] sm:$0xff] }
  0x2a   : > { %3577 = vmatpush3.msra.mxu0 %v422_v13  ;;  %3596 = vmatprep.subr.mxu1 %v4300_v12  ;;  %v570_v21 = vld [vmem:[#allocation3] sm:$0xff]  ;;  %v571_v11 = vld [vmem:[#allocation4] sm:$0xff] }
  0x2b   : > { %3578 = vmatprep.subr.mxu0 %v421_v16  ;;  %3597 = vmatpush3.msra.mxu1 %v4431_v17  ;;  %v3426_v27 = vld [vmem:[%s5439_s3] ss:$0 sm:$0xff] }
  0x2c   : > { %3579 = vmatpush3.msra.mxu0 %v421_v16  ;;  %3598 = vmatprep.subr.mxu1 %v4300_v12 }
  0x2d   : > { %3581 = vmatmul.mubr.msk.f32.vlgmr.msra.gmra.mxu0 %vm432_vm1, %v414_v18  ;;  %3599 = vmatpush3.msra.mxu1 %v4439_v19  ;;  %v738_v18 = vrot.slane %v571_v11, 1 }
  0x2e   : > { %3583 = vmatprep.mubr.msk.f32.mxu0 %vm432_vm1, %v415_v20  ;;  %3600 = vmatprep.mubr.msk.f32.mxu1 %vm4301_vm2, %v4300_v12  ;;  %v739_v20 = vrot.slane %v571_v11, 2 }
  0x2f   : > { %3601 = vmatmul.mubr.msk.f32.vlgmr.msra.gmra.mxu1 %vm432_vm1, %v570_v21  ;;  %3603 = vmatprep.subr.mxu1 %v4300_v12  ;;  %v740_v21 = vrot.slane %v571_v11, 3 }
  0x30   : > { %3604 = vmatpush3.msra.mxu1 %v4416_v14  ;;  %3611 = vmatprep.mubr.msk.f32.mxu1 %vm4301_vm2, %v4300_v12 }
  0x31   : > { %3584 = vmatmul.mubr.msk.f32.gmra.mxu0 %vm432_vm1, %v416_v22  ;;  %3605 = vmatprep.subr.mxu1 %v4300_v12  ;;  %v743_v22 = vrot.slane %v571_v11, 6 }
  0x32   : > { %3586 = vmatprep.mubr.msk.f32.mxu0 %vm432_vm1, %v417_v23  ;;  %3606 = vmatpush3.msra.mxu1 %v4421_v15  ;;  %v741_v23 = vrot.slane %v571_v11, 4 }
  0x33   : > { %3607 = vmatprep.subr.mxu1 %v4300_v12  ;;  %3614 = vmatprep.subr.mxu0 %v4300_v12 }
  0x34   : > { %3608 = vmatpush3.msra.mxu1 %v4431_v17  ;;  %3615 = vmatpush3.msra.mxu0 %v4416_v14 }
  0x35   : > { %3587 = vmatmul.mubr.msk.f32.gmra.mxu0 %vm432_vm1, %v418_v24  ;;  %3609 = vmatprep.subr.mxu1 %v4300_v12  ;;  %v744_v24 = vrot.slane %v571_v11, 7 }
  0x36   : > { %3589 = vmatprep.mubr.msk.f32.mxu0 %vm432_vm1, %v419_v25  ;;  %3610 = vmatpush3.msra.mxu1 %v4439_v19  ;;  %v742_v25 = vrot.slane %v571_v11, 5 }
  0x37   : > { %3616 = vmatprep.subr.mxu0 %v4300_v12  ;;  %3625 = vmatprep.subr.mxu1 %v4300_v12 }
  0x38   : > { %3617 = vmatpush3.msra.mxu0 %v4421_v15 }
  0x39   : > { %3590 = vmatmul.mubr.msk.f32.gmra.mxu0 %vm432_vm1, %v420_v26  ;;  %3618 = vmatprep.subr.mxu0 %v4300_v12 }
  0x3a   : > { %3619 = vmatpush3.msra.mxu0 %v4431_v17  ;;  %3622 = vmatprep.mubr.msk.f32.mxu0 %vm4301_vm2, %v4300_v12 }
  0x3b   : > { %3620 = vmatprep.subr.mxu0 %v4300_v12 }
  0x3c   : > { %3621 = vmatpush3.msra.mxu0 %v4439_v19 }
  0x3d   : > { %3636 = vmatprep.subr.mxu0 %v4300_v12 }
  0xed   : > { %v3582_v28 = vpop.f32.mrf.mxu0 }
  0xee   : > { %v529_v29 = vadd.f32 %v3582_v28, %v3426_v27 }
  0xef   : > { %v523_v30 = vpop.f32.mrf.mxu0  ;;  %v653_v31 = vpop.f32.mrf.mxu1 }
  0xf0   : > { %563 = vst [vmem:[#allocation2 + $0x8] sm:$0xff] %v529_v29  ;;  %v524_v32 = vadd.f32 %v3426_v27, %v523_v30  ;;  %v658_v38 = vrot.slane %v653_v31, 1  ;;  %v660_v43 = vrot.slane %v653_v31, 3  ;;  %v659_v52 = vrot.slane %v653_v31, 2 }
  0xf1   : > { %v3585_v33 = vpop.f32.mrf.mxu0  ;;  %v3602_v34 = vpop.f32.mrf.mxu1  ;;  %v662_v56 = vrot.slane %v653_v31, 5  ;;  %v661_v59 = vrot.slane %v653_v31, 4  ;;  %v664_v63 = vrot.slane %v653_v31, 7  ;;  %v663_v1 = vrot.slane %v653_v31, 6 }
  0xf2   : > { %562 = vst [vmem:[#allocation2] sm:$0xff] %v524_v32  ;;  %v539_v35 = vadd.f32 %v3585_v33, %v3426_v27 }
  0xf3   : > { %v533_v36 = vpop.f32.mrf.mxu0 }
  0xf4   : > { %565 = vst [vmem:[#allocation2 + $0x18] sm:$0xff] %v539_v35  ;;  %v534_v37 = vadd.f32 %v3426_v27, %v533_v36 }
  0xf5   : > { %v3588_v39 = vpop.f32.mrf.mxu0 }
  0xf6   : > { %564 = vst [vmem:[#allocation2 + $0x10] sm:$0xff] %v534_v37  ;;  %v549_v40 = vadd.f32 %v3588_v39, %v3426_v27 }
  0xf7   : > { %v543_v41 = vpop.f32.mrf.mxu0  ;;  %v573_v42 = vld [vmem:[#allocation2 + $0x8] sm:$0x1] }
  0xf8   : > { %567 = vst [vmem:[#allocation2 + $0x28] sm:$0xff] %v549_v40  ;;  %v544_v44 = vadd.f32 %v3426_v27, %v543_v41  ;;  %v4485_v45 = vadd.f32 %v658_v38, %v573_v42 }
  0xf9   : > { %v3591_v46 = vpop.f32.mrf.mxu0  ;;  %v572_v47 = vld [vmem:[#allocation2] sm:$0x1] }
  0xfa   : > { %566 = vst [vmem:[#allocation2 + $0x20] sm:$0xff] %v544_v44  ;;  %v559_v48 = vadd.f32 %v3591_v46, %v3426_v27  ;;  %3739 = vtanh.f32 %v4485_v45  ;;  %v4488_v49 = vadd.f32 %v653_v31, %v572_v47  ;;  %v3437_v26 = vmul.f32 -1.442695, %v4485_v45 }
  0xfb   : > { %v575_v50 = vld [vmem:[#allocation2 + $0x18] sm:$0x1]  ;;  %v553_v51 = vpop.f32.mrf.mxu0 }
  0xfc   : > { %v676_v53 = vadd.f32 %v660_v43, %v575_v50  ;;  %569 = vst [vmem:[#allocation2 + $0x38] sm:$0xff] %v559_v48  ;;  %v554_v54 = vadd.f32 %v3426_v27, %v553_v51  ;;  %3741 = vtanh.f32 %v4488_v49  ;;  %v3436_v27 = vmul.f32 -1.442695, %v4488_v49 }
  0xfd   : > { %v574_v55 = vld [vmem:[#allocation2 + $0x10] sm:$0x1] }
  0xfe   : > { %v675_v57 = vadd.f32 %v659_v52, %v574_v55  ;;  %568 = vst [vmem:[#allocation2 + $0x30] sm:$0xff] %v554_v54  ;;  %3743 = vtanh.f32 %v676_v53  ;;  %v3439_v28 = vmul.f32 -1.442695, %v676_v53 }
  0xff   : > { %v577_v58 = vld [vmem:[#allocation2 + $0x28] sm:$0x1] }
 0x100   : > { %v678_v60 = vadd.f32 %v662_v56, %v577_v58  ;;  %3745 = vtanh.f32 %v675_v57  ;;  %v3438_v29 = vmul.f32 -1.442695, %v675_v57 }
 0x101   : > { %v576_v61 = vld [vmem:[#allocation2 + $0x20] sm:$0x1] }
 0x102   : > { %v677_v62 = vadd.f32 %v661_v59, %v576_v61  ;;  %3747 = vtanh.f32 %v678_v60  ;;  %v3441_v30 = vmul.f32 -1.442695, %v678_v60 }
 0x103   : > { %v579_v0 = vld [vmem:[#allocation2 + $0x38] sm:$0x1] }
 0x104   : > { %3749 = vtanh.f32 %v677_v62  ;;  %v680_v3 = vadd.f32 %v664_v63, %v579_v0  ;;  %v3440_v31 = vmul.f32 -1.442695, %v677_v62 }
 0x105   : > { %v578_v2 = vld [vmem:[#allocation2 + $0x30] sm:$0x1] }
 0x106   : > { %v679_v4 = vadd.f32 %v663_v1, %v578_v2  ;;  %v3443_v34 = vmul.f32 -1.442695, %v680_v3 }
 0x107   : > { %v3740_v5 = vpop.eup %3739 }
 0x108   : > { %787 = vrot.lane.b32.xlu0 %v3740_v5, %s4302_s26  ;;  %3751 = vtanh.f32 %v679_v4  ;;  %v3442_v32 = vmul.f32 -1.442695, %v679_v4 }
 0x109   : > { %3753 = vtanh.f32 %v680_v3  ;;  %v3742_v6 = vpop.eup %3741 }
 0x10a   : > { %785 = vrot.lane.b32.xlu1 %v3742_v6, %s4302_s26  ;;  %3755 = vpow2.f32 %v3437_v26 }
 0x10b   : > { %v3744_v7 = vpop.eup %3743  ;;  %3757 = vpow2.f32 %v3436_v27 }
 0x10c   : > { %3759 = vpow2.f32 %v3439_v28 }
 0x10d   : > { %v3746_v8 = vpop.eup %3745  ;;  %3761 = vpow2.f32 %v3438_v29 }
 0x10e   : > { %789 = vrot.lane.b32.xlu0 %v3746_v8, %s4302_s26  ;;  %791 = vrot.lane.b32.xlu1 %v3744_v7, %s4302_s26  ;;  %3763 = vpow2.f32 %v3441_v30 }
 0x10f   : > { %v3748_v9 = vpop.eup %3747  ;;  %3765 = vpow2.f32 %v3440_v31 }
 0x110   : > { %3767 = vpow2.f32 %v3442_v32 }
 0x111   : > { %v3750_v10 = vpop.eup %3749  ;;  %3769 = vpow2.f32 %v3443_v34 }
 0x112   : > { %793 = vrot.lane.b32.xlu0 %v3750_v10, %s4302_s26  ;;  %795 = vrot.lane.b32.xlu1 %v3748_v9, %s4302_s26 }
 0x115   : > { %v3752_v13 = vpop.eup %3751 }
 0x116   : > { %v3754_v16 = vpop.eup %3753  ;;  %797 = vrot.lane.b32.xlu0 %v3752_v13, %s4302_s26 }
 0x117   : > { %799 = vrot.lane.b32.xlu1 %v3754_v16, %s4302_s26  ;;  %v3756_v33 = vpop.eup %3755 }
 0x118   : > { %v706_v35 = vadd.f32 1.0, %v3756_v33  ;;  %v3758_v36 = vpop.eup %3757 }
 0x119   : > { %v3760_v37 = vpop.eup %3759  ;;  %v705_v38 = vadd.f32 1.0, %v3758_v36 }
 0x11a   : > { %747 = vrot.lane.b32.xlu0 %v738_v18, %s4303_s11  ;;  %3771 = vrcp.f32 %v706_v35  ;;  %v3762_v39 = vpop.eup %3761  ;;  %v708_v40 = vadd.f32 1.0, %v3760_v37 }
 0x11b   : > { %749 = vrot.lane.b32.xlu1 %v739_v20, %s4303_s11  ;;  %v3764_v41 = vpop.eup %3763  ;;  %v707_v42 = vadd.f32 1.0, %v3762_v39  ;;  %3773 = vrcp.f32 %v705_v38 }
 0x11c   : > { %v3766_v43 = vpop.eup %3765  ;;  %v710_v44 = vadd.f32 1.0, %v3764_v41  ;;  %3775 = vrcp.f32 %v708_v40 }
 0x11d   : > { %v3768_v45 = vpop.eup %3767  ;;  %3777 = vrcp.f32 %v707_v42  ;;  %v709_v46 = vadd.f32 1.0, %v3766_v43 }
 0x11e   : > { %745 = vrot.lane.b32.xlu0 %v571_v11, %s4303_s11  ;;  %3779 = vrcp.f32 %v710_v44  ;;  %v711_v47 = vadd.f32 1.0, %v3768_v45  ;;  %v3770_v48 = vpop.eup %3769 }
 0x11f   : > { %751 = vrot.lane.b32.xlu1 %v740_v21, %s4303_s11  ;;  %3781 = vrcp.f32 %v709_v46  ;;  %v712_v52 = vadd.f32 1.0, %v3770_v48 }
 0x120   : > { %3783 = vrcp.f32 %v711_v47 }
 0x121   : > { %3785 = vrcp.f32 %v712_v52 }
 0x122   : > { %757 = vrot.lane.b32.xlu0 %v743_v22, %s4303_s11 }
 0x123   : > { %753 = vrot.lane.b32.xlu1 %v741_v23, %s4303_s11 }
 0x126   : > { %759 = vrot.lane.b32.xlu0 %v744_v24, %s4303_s11 }
 0x127   : > { %755 = vrot.lane.b32.xlu1 %v742_v25, %s4303_s11  ;;  %v4509_v49 = vpop.eup %3771 }
 0x128   : > { %v4513_v54 = vpop.eup %3773 }
 0x129   : > { %v4516_v56 = vpop.eup %3775 }
 0x12a   : > { %v4519_v59 = vpop.eup %3777 }
 0x12b   : > { %v4524_v62 = vpop.eup %3779 }
 0x12c   : > { %v4528_v2 = vpop.eup %3781 }
 0x12d   : > { %v4531_v3 = vpop.eup %3783 }
 0x12e   : > { %v4537_v8 = vpop.eup %3785 }
 0x17a   : > { %v788_v50 = vpop.permute.xlu0 %787 }
 0x17b   : > { %v810_v51 = vmul.f32 %v4509_v49, %v788_v50 }
 0x17c   : > { %v786_v53 = vpop.permute.xlu1 %785 }
 0x17d   : > { %827 = vrot.lane.b32.xlu0 %v810_v51, %s4303_s11  ;;  %v809_v55 = vmul.f32 %v4513_v54, %v786_v53 }
 0x180   : > { %v790_v57 = vpop.permute.xlu0 %789  ;;  %v792_v58 = vpop.permute.xlu1 %791 }
 0x181   : > { %825 = vrot.lane.b32.xlu0 %v809_v55, %s4303_s11  ;;  %v812_v60 = vmul.f32 %v4516_v56, %v792_v58  ;;  %v811_v61 = vmul.f32 %v4519_v59, %v790_v57 }
 0x183   : > { %831 = vrot.lane.b32.xlu1 %v812_v60, %s4303_s11 }
 0x184   : > { %v794_v63 = vpop.permute.xlu0 %793  ;;  %v796_v0 = vpop.permute.xlu1 %795 }
 0x185   : > { %829 = vrot.lane.b32.xlu0 %v811_v61, %s4303_s11  ;;  %v814_v1 = vmul.f32 %v4524_v62, %v796_v0  ;;  %v813_v5 = vmul.f32 %v4528_v2, %v794_v63 }
 0x187   : > { %835 = vrot.lane.b32.xlu1 %v814_v1, %s4303_s11 }
 0x188   : > { %v798_v4 = vpop.permute.xlu0 %797 }
 0x189   : > { %v815_v6 = vmul.f32 %v4531_v3, %v798_v4  ;;  %v800_v7 = vpop.permute.xlu1 %799 }
 0x18a   : > { %v816_v9 = vmul.f32 %v4537_v8, %v800_v7 }
 0x18b   : > { %833 = vrot.lane.b32.xlu1 %v813_v5, %s4303_s11  ;;  %837 = vrot.lane.b32.xlu0 %v815_v6, %s4303_s11 }
 0x18c   : > { %v748_v10 = vpop.permute.xlu0 %747 }
 0x18d   : > { %v750_v13 = vpop.permute.xlu1 %749  ;;  %v770_v22 = vmul.f32 %v4509_v49, %v748_v10 }
 0x18e   : > { %v771_v31 = vmul.f32 %v4519_v59, %v750_v13 }
 0x18f   : > { %839 = vrot.lane.b32.xlu1 %v816_v9, %s4303_s11 }
 0x190   : > { %v746_v11 = vpop.permute.xlu0 %745 }
 0x191   : > { %v752_v18 = vpop.permute.xlu1 %751  ;;  %v769_v25 = vmul.f32 %v4513_v54, %v746_v11 }
 0x192   : > { %v772_v29 = vmul.f32 %v4516_v56, %v752_v18 }
 0x194   : > { %v758_v16 = vpop.permute.xlu0 %757 }
 0x195   : > { %v754_v21 = vpop.permute.xlu1 %753  ;;  %v775_v39 = vmul.f32 %v4531_v3, %v758_v16 }
 0x196   : > { %v773_v38 = vmul.f32 %v4528_v2, %v754_v21 }
 0x198   : > { %v760_v20 = vpop.permute.xlu0 %759 }
 0x199   : > { %v756_v26 = vpop.permute.xlu1 %755  ;;  %v776_v45 = vmul.f32 %v4537_v8, %v760_v20 }
 0x19a   : > { %v774_v35 = vmul.f32 %v4524_v62, %v756_v26 }
 0x1ef   : > { %v828_v23 = vpop.permute.xlu0 %827 }
 0x1f0   : > { %v4542_v24 = vadd.f32 %v828_v23, %v770_v22 }
 0x1f2   : > { %3787 = vtanh.f32 %v4542_v24 }
 0x1f3   : > { %v826_v27 = vpop.permute.xlu0 %825 }
 0x1f4   : > { %v4546_v28 = vadd.f32 %v826_v27, %v769_v25 }
 0x1f5   : > { %v832_v30 = vpop.permute.xlu1 %831 }
 0x1f6   : > { %3789 = vtanh.f32 %v4546_v28  ;;  %v4551_v32 = vadd.f32 %v832_v30, %v772_v29 }
 0x1f7   : > { %v830_v33 = vpop.permute.xlu0 %829 }
 0x1f8   : > { %3791 = vtanh.f32 %v4551_v32  ;;  %v4554_v34 = vadd.f32 %v830_v33, %v771_v31 }
 0x1f9   : > { %v836_v36 = vpop.permute.xlu1 %835 }
 0x1fa   : > { %v4557_v37 = vadd.f32 %v836_v36, %v774_v35  ;;  %3793 = vtanh.f32 %v4554_v34  ;;  %v906_v36 = vld [vmem:[#allocation2 + $0x9] sm:$0x1] }
 0x1fc   : > { %3795 = vtanh.f32 %v4557_v37 }
 0x1fd   : > { %v834_v40 = vpop.permute.xlu1 %833  ;;  %v838_v41 = vpop.permute.xlu0 %837 }
 0x1fe   : > { %v4562_v43 = vadd.f32 %v834_v40, %v773_v38  ;;  %v4565_v44 = vadd.f32 %v838_v41, %v775_v39  ;;  %v907_v38 = vld [vmem:[#allocation2 + $0x11] sm:$0x1] }
 0x1ff   : > { %v3788_v42 = vpop.eup %3787 }
 0x200   : > { %875 = vrot.lane.b32.xlu0 %v3788_v42, %s4302_s26  ;;  %3797 = vtanh.f32 %v4562_v43  ;;  %v908_v42 = vld [vmem:[#allocation2 + $0x19] sm:$0x1] }
 0x201   : > { %v840_v46 = vpop.permute.xlu1 %839  ;;  %3799 = vtanh.f32 %v4565_v44 }
 0x202   : > { %v4570_v48 = vadd.f32 %v840_v46, %v776_v45 }
 0x203   : > { %v3790_v47 = vpop.eup %3789 }
 0x204   : > { %873 = vrot.lane.b32.xlu0 %v3790_v47, %s4302_s26  ;;  %3801 = vtanh.f32 %v4570_v48 }
 0x205   : > { %v3792_v50 = vpop.eup %3791 }
 0x206   : > { %879 = vrot.lane.b32.xlu1 %v3792_v50, %s4302_s26  ;;  %v911_v50 = vld [vmem:[#allocation2 + $0x31] sm:$0x1] }
 0x207   : > { %v3794_v51 = vpop.eup %3793 }
 0x209   : > { %v3796_v52 = vpop.eup %3795 }
 0x20a   : > { %877 = vrot.lane.b32.xlu1 %v3794_v51, %s4302_s26 }
 0x20d   : > { %v3798_v53 = vpop.eup %3797 }
 0x20e   : > { %883 = vrot.lane.b32.xlu1 %v3796_v52, %s4302_s26  ;;  %881 = vrot.lane.b32.xlu0 %v3798_v53, %s4302_s26  ;;  %v3800_v55 = vpop.eup %3799  ;;  %v910_v52 = vld [vmem:[#allocation2 + $0x29] sm:$0x1] }
 0x211   : > { %v3802_v57 = vpop.eup %3801 }
 0x212   : > { %887 = vrot.lane.b32.xlu1 %v3802_v57, %s4302_s26  ;;  %885 = vrot.lane.b32.xlu0 %v3800_v55, %s4302_s26 }
 0x272   : > { %v876_v58 = vpop.permute.xlu0 %875 }
 0x273   : > { %v898_v63 = vmul.f32 %v4509_v49, %v876_v58  ;;  %v912_v58 = vld [vmem:[#allocation2 + $0x39] sm:$0x1] }
 0x275   : > { %v921_v5 = vrot.slane %v898_v63, 7 }
 0x276   : > { %v874_v61 = vpop.permute.xlu0 %873 }
 0x277   : > { %v897_v0 = vmul.f32 %v4513_v54, %v874_v61 }
 0x278   : > { %v880_v60 = vpop.permute.xlu1 %879 }
 0x279   : > { %v900_v6 = vmul.f32 %v4516_v56, %v880_v60  ;;  %v923_v9 = vsel %vm922_vm3, %v921_v5, %v897_v0 }
 0x27b   : > { %v927_v54 = vrot.slane %v900_v6, 5 }
 0x27c   : > { %v878_v1 = vpop.permute.xlu1 %877 }
 0x27d   : > { %v899_v4 = vmul.f32 %v4519_v59, %v878_v1 }
 0x27f   : > { %v924_v7 = vrot.slane %v899_v4, 6 }
 0x280   : > { %v884_v10 = vpop.permute.xlu1 %883  ;;  %v882_v11 = vpop.permute.xlu0 %881 }
 0x281   : > { %v926_v13 = vsel %vm925_vm4, %v924_v7, %v923_v9  ;;  %v902_v16 = vmul.f32 %v4524_v62, %v884_v10  ;;  %v901_v49 = vmul.f32 %v4528_v2, %v882_v11 }
 0x282   : > { %v929_v20 = vsel %vm928_vm5, %v927_v54, %v926_v13 }
 0x283   : > { %v930_v18 = vrot.slane %v901_v49, 4  ;;  %v933_v59 = vrot.slane %v902_v16, 3 }
 0x284   : > { %v888_v56 = vpop.permute.xlu1 %887  ;;  %v886_v21 = vpop.permute.xlu0 %885 }
 0x285   : > { %v932_v22 = vsel %vm931_vm6, %v930_v18, %v929_v20  ;;  %v904_v23 = vmul.f32 %v4537_v8, %v888_v56  ;;  %v903_v25 = vmul.f32 %v4531_v3, %v886_v21  ;;  %v905_v8 = vld [vmem:[#allocation2 + $0x1] sm:$0x1] }
 0x286   : > { %v935_v2 = vsel %vm934_vm7, %v933_v59, %v932_v22 }
 0x287   : > { %v939_v62 = vrot.slane %v904_v23, 1  ;;  %v936_v26 = vrot.slane %v903_v25, 2 }
 0x289   : > { %v938_v27 = vsel %vm937_vm8, %v936_v26, %v935_v2 }
 0x28a   : > { %v941_v29 = vsel %vm940_vm9, %v939_v62, %v938_v27 }
 0x28b   : > { %942 = vrot.lane.b32.xlu0 %v941_v29, %s4303_s11 }
 0x2fd   : > { %v943_v30 = vpop.permute.xlu0 %942 }
 0x2fe   : > { %3612 = vmatmul.mubr.msk.f32.vlgmr.msra.gmra.mxu1 %vm432_vm1, %v943_v30 }
 0x2ff   : > { %3626 = vmatpush3.msra.mxu1 %v4416_v14  ;;  %3633 = vmatprep.mubr.msk.f32.mxu1 %vm4301_vm2, %v4300_v12 }
 0x300   : > { %3627 = vmatprep.subr.mxu1 %v4300_v12 }
 0x301   : > { %3628 = vmatpush3.msra.mxu1 %v4421_v15 }
 0x302   : > { %3629 = vmatprep.subr.mxu1 %v4300_v12 }
 0x303   : > { %3630 = vmatpush3.msra.mxu1 %v4431_v17  ;;  %v909_v17 = vld [vmem:[#allocation2 + $0x21] sm:$0x1] }
 0x304   : > { %3631 = vmatprep.subr.mxu1 %v4300_v12 }
 0x305   : > { %3632 = vmatpush3.msra.mxu1 %v4439_v19 }
 0x306   : > { %3647 = vmatprep.subr.mxu1 %v4300_v12 }
 0x3be   : > { %v1012_v3 = vpop.f32.mrf.mxu1 }
 0x3bf   : > { %v1032_v14 = vadd.f32 %v1012_v3, %v905_v8  ;;  %v1017_v33 = vrot.slane %v1012_v3, 1  ;;  %v1018_v35 = vrot.slane %v1012_v3, 2  ;;  %v1020_v15 = vrot.slane %v1012_v3, 4 }
 0x3c0   : > { %v3613_v31 = vpop.f32.mrf.mxu1  ;;  %v1019_v40 = vrot.slane %v1012_v3, 3  ;;  %v1022_v45 = vrot.slane %v1012_v3, 6  ;;  %v1021_v19 = vrot.slane %v1012_v3, 5  ;;  %v1023_v55 = vrot.slane %v1012_v3, 7 }
 0x3c1   : > { %3803 = vtanh.f32 %v1032_v14  ;;  %v1033_v39 = vadd.f32 %v1017_v33, %v906_v36  ;;  %v1034_v41 = vadd.f32 %v1018_v35, %v907_v38  ;;  %v1036_v46 = vadd.f32 %v1020_v15, %v909_v17 }
 0x3c2   : > { %v1035_v47 = vadd.f32 %v1019_v40, %v908_v42  ;;  %v1038_v53 = vadd.f32 %v1022_v45, %v911_v50  ;;  %v1037_v57 = vadd.f32 %v1021_v19, %v910_v52  ;;  %v1039_v60 = vadd.f32 %v1023_v55, %v912_v58 }
 0x3c3   : > { %3805 = vtanh.f32 %v1033_v39  ;;  %v3445_v7 = vmul.f32 -1.442695, %v1032_v14  ;;  %v3446_v9 = vmul.f32 -1.442695, %v1033_v39  ;;  %v3447_v10 = vmul.f32 -1.442695, %v1034_v41 }
 0x3c4   : > { %3807 = vtanh.f32 %v1034_v41  ;;  %v3449_v11 = vmul.f32 -1.442695, %v1036_v46  ;;  %v3448_v13 = vmul.f32 -1.442695, %v1035_v47  ;;  %v3451_v49 = vmul.f32 -1.442695, %v1038_v53 }
 0x3c5   : > { %3809 = vtanh.f32 %v1036_v46  ;;  %v3450_v54 = vmul.f32 -1.442695, %v1037_v57  ;;  %v3452_v59 = vmul.f32 -1.442695, %v1039_v60 }
 0x3c6   : > { %3811 = vtanh.f32 %v1035_v47 }
 0x3c7   : > { %3813 = vtanh.f32 %v1038_v53 }
 0x3c8   : > { %3815 = vtanh.f32 %v1037_v57 }
 0x3c9   : > { %3817 = vtanh.f32 %v1039_v60 }
 0x3ca   : > { %3819 = vpow2.f32 %v3445_v7 }
 0x3cb   : > { %3821 = vpow2.f32 %v3446_v9 }
 0x3cc   : > { %3823 = vpow2.f32 %v3447_v10 }
 0x3cd   : > { %3825 = vpow2.f32 %v3449_v11 }
 0x3ce   : > { %v3804_v51 = vpop.eup %3803  ;;  %3827 = vpow2.f32 %v3448_v13 }
 0x3cf   : > { %1112 = vrot.lane.b32.xlu1 %v3804_v51, %s4302_s26  ;;  %3829 = vpow2.f32 %v3451_v49 }
 0x3d0   : > { %v3806_v61 = vpop.eup %3805  ;;  %3831 = vpow2.f32 %v3450_v54 }
 0x3d1   : > { %v3808_v63 = vpop.eup %3807 }
 0x3d2   : > { %1116 = vrot.lane.b32.xlu0 %v3808_v63, %s4302_s26  ;;  %v3810_v0 = vpop.eup %3809 }
 0x3d3   : > { %1114 = vrot.lane.b32.xlu1 %v3806_v61, %s4302_s26  ;;  %v3812_v1 = vpop.eup %3811 }
 0x3d4   : > { %v3814_v4 = vpop.eup %3813 }
 0x3d5   : > { %v3816_v5 = vpop.eup %3815 }
 0x3d6   : > { %1118 = vrot.lane.b32.xlu0 %v3812_v1, %s4302_s26  ;;  %v3818_v6 = vpop.eup %3817 }
 0x3d7   : > { %1120 = vrot.lane.b32.xlu1 %v3810_v0, %s4302_s26  ;;  %v3820_v16 = vpop.eup %3819 }
 0x3d8   : > { %v1064_v18 = vadd.f32 1.0, %v3820_v16  ;;  %v3822_v20 = vpop.eup %3821 }
 0x3d9   : > { %v3824_v56 = vpop.eup %3823  ;;  %v1065_v21 = vadd.f32 1.0, %v3822_v20 }
 0x3da   : > { %1122 = vrot.lane.b32.xlu0 %v3816_v5, %s4302_s26  ;;  %3833 = vrcp.f32 %v1064_v18  ;;  %v3826_v22 = vpop.eup %3825  ;;  %v1066_v23 = vadd.f32 1.0, %v3824_v56 }
 0x3db   : > { %1124 = vrot.lane.b32.xlu1 %v3814_v4, %s4302_s26  ;;  %3835 = vpow2.f32 %v3452_v59  ;;  %v3828_v25 = vpop.eup %3827  ;;  %v1068_v62 = vadd.f32 1.0, %v3826_v22 }
 0x3dc   : > { %3837 = vrcp.f32 %v1065_v21  ;;  %v3830_v26 = vpop.eup %3829  ;;  %v1067_v2 = vadd.f32 1.0, %v3828_v25 }
 0x3dd   : > { %3839 = vrcp.f32 %v1066_v23  ;;  %v3832_v27 = vpop.eup %3831  ;;  %v1070_v30 = vadd.f32 1.0, %v3830_v26 }
 0x3de   : > { %1126 = vrot.lane.b32.xlu0 %v3818_v6, %s4302_s26  ;;  %3841 = vrcp.f32 %v1068_v62  ;;  %v1069_v8 = vadd.f32 1.0, %v3832_v27 }
 0x3df   : > { %3843 = vrcp.f32 %v1067_v2 }
 0x3e0   : > { %3845 = vrcp.f32 %v1070_v30 }
 0x3e1   : > { %3847 = vrcp.f32 %v1069_v8 }
 0x3e7   : > { %v4616_v29 = vpop.eup %3833 }
 0x3e8   : > { %v3836_v31 = vpop.eup %3835  ;;  %v1096_v61 = vmul.f32 %v4616_v29, %v4546_v28 }
 0x3e9   : > { %v1071_v33 = vadd.f32 1.0, %v3836_v31  ;;  %v4620_v35 = vpop.eup %3837 }
 0x3ea   : > { %v4622_v38 = vpop.eup %3839  ;;  %v1097_v1 = vmul.f32 %v4620_v35, %v4542_v24 }
 0x3eb   : > { %3849 = vrcp.f32 %v1071_v33  ;;  %v4627_v41 = vpop.eup %3841  ;;  %v1098_v4 = vmul.f32 %v4622_v38, %v4554_v34 }
 0x3ec   : > { %v4630_v42 = vpop.eup %3843  ;;  %v1100_v28 = vmul.f32 %v4627_v41, %v4562_v43 }
 0x3ed   : > { %v4635_v47 = vpop.eup %3845  ;;  %v1099_v10 = vmul.f32 %v4630_v42, %v4551_v32 }
 0x3ee   : > { %v4638_v51 = vpop.eup %3847  ;;  %v1102_v49 = vmul.f32 %v4635_v47, %v4565_v44 }
 0x3ef   : > { %v1101_v43 = vmul.f32 %v4638_v51, %v4557_v37 }
 0x3f8   : > { %v4644_v57 = vpop.eup %3849 }
 0x3f9   : > { %v1103_v44 = vmul.f32 %v4644_v57, %v4570_v48 }
 0x441   : > { %v1113_v3 = vpop.permute.xlu1 %1112 }
 0x442   : > { %v1136_v14 = vmul.f32 %v4616_v29, %v1113_v3 }
 0x444   : > { %1152 = vrot.lane.b32.xlu1 %v1136_v14, %s4303_s11  ;;  %v1117_v15 = vpop.permute.xlu0 %1116 }
 0x445   : > { %v1115_v36 = vpop.permute.xlu1 %1114  ;;  %v1138_v40 = vmul.f32 %v4622_v38, %v1117_v15 }
 0x446   : > { %v1137_v39 = vmul.f32 %v4620_v35, %v1115_v36 }
 0x447   : > { %1156 = vrot.lane.b32.xlu0 %v1138_v40, %s4303_s11 }
 0x448   : > { %1154 = vrot.lane.b32.xlu1 %v1137_v39, %s4303_s11  ;;  %v1119_v45 = vpop.permute.xlu0 %1118 }
 0x449   : > { %v1121_v17 = vpop.permute.xlu1 %1120  ;;  %v1139_v19 = vmul.f32 %v4630_v42, %v1119_v45 }
 0x44a   : > { %v1140_v46 = vmul.f32 %v4627_v41, %v1121_v17 }
 0x44b   : > { %1158 = vrot.lane.b32.xlu0 %v1139_v19, %s4303_s11 }
 0x44c   : > { %1160 = vrot.lane.b32.xlu1 %v1140_v46, %s4303_s11  ;;  %v1123_v52 = vpop.permute.xlu0 %1122 }
 0x44d   : > { %v1125_v50 = vpop.permute.xlu1 %1124  ;;  %v1141_v55 = vmul.f32 %v4638_v51, %v1123_v52 }
 0x44e   : > { %v1142_v53 = vmul.f32 %v4635_v47, %v1125_v50 }
 0x44f   : > { %1162 = vrot.lane.b32.xlu0 %v1141_v55, %s4303_s11 }
 0x450   : > { %1164 = vrot.lane.b32.xlu1 %v1142_v53, %s4303_s11  ;;  %v1127_v58 = vpop.permute.xlu0 %1126 }
 0x451   : > { %v1143_v60 = vmul.f32 %v4644_v57, %v1127_v58 }
 0x453   : > { %1166 = vrot.lane.b32.xlu0 %v1143_v60, %s4303_s11 }
 0x4b6   : > { %v1153_v63 = vpop.permute.xlu1 %1152 }
 0x4b7   : > { %v4650_v0 = vadd.f32 %v1153_v63, %v1096_v61 }
 0x4b9   : > { %3851 = vtanh.f32 %v4650_v0  ;;  %v1157_v6 = vpop.permute.xlu0 %1156 }
 0x4ba   : > { %v1155_v5 = vpop.permute.xlu1 %1154  ;;  %v4659_v9 = vadd.f32 %v1157_v6, %v1098_v4  ;;  %v4739_v4 = vld [vmem:[%s5438_s2] sm:$0xff] }
 0x4bb   : > { %v4657_v7 = vadd.f32 %v1155_v5, %v1097_v1  ;;  %v4732_v1 = vld [vmem:[%s5438_s2 + $0x8] sm:$0xff]  ;;  %v1232_v6 = vld [vmem:[#allocation2 + $0x2] sm:$0x1] }
 0x4bd   : > { %3853 = vtanh.f32 %v4657_v7  ;;  %v1159_v11 = vpop.permute.xlu0 %1158 }
 0x4be   : > { %3855 = vtanh.f32 %v4659_v9  ;;  %v1161_v24 = vpop.permute.xlu1 %1160  ;;  %v4669_v34 = vadd.f32 %v1159_v11, %v1099_v10 }
 0x4bf   : > { %v4667_v13 = vadd.f32 %v1161_v24, %v1100_v28 }
 0x4c1   : > { %3857 = vtanh.f32 %v4667_v13  ;;  %v1163_v32 = vpop.permute.xlu0 %1162 }
 0x4c2   : > { %3859 = vtanh.f32 %v4669_v34  ;;  %v1165_v54 = vpop.permute.xlu1 %1164  ;;  %v4680_v59 = vadd.f32 %v1163_v32, %v1101_v43 }
 0x4c3   : > { %v4678_v18 = vadd.f32 %v1165_v54, %v1102_v49  ;;  %v1234_v49 = vld [vmem:[#allocation2 + $0x12] sm:$0x1] }
 0x4c5   : > { %3861 = vtanh.f32 %v4678_v18  ;;  %v1167_v20 = vpop.permute.xlu0 %1166 }
 0x4c6   : > { %v3852_v16 = vpop.eup %3851  ;;  %3863 = vtanh.f32 %v4680_v59  ;;  %v4686_v56 = vadd.f32 %v1167_v20, %v1103_v44  ;;  %v1236_v20 = vld [vmem:[#allocation2 + $0x22] sm:$0x1] }
 0x4c7   : > { %1200 = vrot.lane.b32.xlu1 %v3852_v16, %s4302_s26  ;;  %v1233_v16 = vld [vmem:[#allocation2 + $0xa] sm:$0x1] }
 0x4c8   : > { %3865 = vtanh.f32 %v4686_v56 }
 0x4ca   : > { %v3854_v21 = vpop.eup %3853 }
 0x4cb   : > { %v3856_v37 = vpop.eup %3855  ;;  %1202 = vrot.lane.b32.xlu1 %v3854_v21, %s4302_s26  ;;  %v1235_v21 = vld [vmem:[#allocation2 + $0x1a] sm:$0x1] }
 0x4cc   : > { %1204 = vrot.lane.b32.xlu0 %v3856_v37, %s4302_s26 }
 0x4ce   : > { %v3858_v22 = vpop.eup %3857 }
 0x4cf   : > { %v3860_v23 = vpop.eup %3859  ;;  %1208 = vrot.lane.b32.xlu1 %v3858_v22, %s4302_s26 }
 0x4d0   : > { %1206 = vrot.lane.b32.xlu0 %v3860_v23, %s4302_s26 }
 0x4d2   : > { %v3862_v25 = vpop.eup %3861 }
 0x4d3   : > { %v3864_v62 = vpop.eup %3863  ;;  %1212 = vrot.lane.b32.xlu1 %v3862_v25, %s4302_s26 }
 0x4d4   : > { %1210 = vrot.lane.b32.xlu0 %v3864_v62, %s4302_s26  ;;  %v1238_v62 = vld [vmem:[#allocation2 + $0x32] sm:$0x1] }
 0x4d5   : > { %v3866_v48 = vpop.eup %3865 }
 0x4d8   : > { %1214 = vrot.lane.b32.xlu0 %v3866_v48, %s4302_s26 }
 0x539   : > { %v1201_v26 = vpop.permute.xlu1 %1200 }
 0x53a   : > { %v1224_v8 = vmul.f32 %v4616_v29, %v1201_v26  ;;  %v1237_v26 = vld [vmem:[#allocation2 + $0x2a] sm:$0x1] }
 0x53d   : > { %v1203_v2 = vpop.permute.xlu1 %1202 }
 0x53e   : > { %v1205_v27 = vpop.permute.xlu0 %1204  ;;  %v1225_v30 = vmul.f32 %v4620_v35, %v1203_v2 }
 0x53f   : > { %v1226_v3 = vmul.f32 %v4622_v38, %v1205_v27 }
 0x540   : > { %v1248_v14 = vrot.slane %v1225_v30, 7 }
 0x541   : > { %v1209_v31 = vpop.permute.xlu1 %1208  ;;  %v1250_v33 = vrot.slane %v1226_v3, 6  ;;  %v1239_v3 = vld [vmem:[#allocation2 + $0x3a] sm:$0x1] }
 0x542   : > { %v1249_v36 = vsel %vm922_vm3, %v1248_v14, %v1224_v8  ;;  %v1207_v15 = vpop.permute.xlu0 %1206  ;;  %v1228_v39 = vmul.f32 %v4627_v41, %v1209_v31 }
 0x543   : > { %v1227_v40 = vmul.f32 %v4630_v42, %v1207_v15  ;;  %v1251_v17 = vsel %vm925_vm4, %v1250_v33, %v1249_v36 }
 0x544   : > { %v1254_v45 = vrot.slane %v1228_v39, 4 }
 0x545   : > { %v1252_v46 = vrot.slane %v1227_v40, 5  ;;  %v1213_v19 = vpop.permute.xlu1 %1212 }
 0x546   : > { %v1211_v35 = vpop.permute.xlu0 %1210  ;;  %v1230_v38 = vmul.f32 %v4635_v47, %v1213_v19 }
 0x547   : > { %v1253_v29 = vsel %vm928_vm5, %v1252_v46, %v1251_v17  ;;  %v1229_v50 = vmul.f32 %v4638_v51, %v1211_v35  ;;  %v4716_v51 = vld [vmem:[%s5438_s2 + $0x18] sm:$0xff] }
 0x548   : > { %v1255_v52 = vsel %vm931_vm6, %v1254_v45, %v1253_v29  ;;  %v1258_v53 = vrot.slane %v1230_v38, 2 }
 0x549   : > { %v1256_v55 = vrot.slane %v1229_v50, 3 }
 0x54a   : > { %v1215_v58 = vpop.permute.xlu0 %1214 }
 0x54b   : > { %v1231_v41 = vmul.f32 %v4644_v57, %v1215_v58  ;;  %v1257_v42 = vsel %vm934_vm7, %v1256_v55, %v1255_v52  ;;  %v4725_v57 = vld [vmem:[%s5438_s2 + $0x10] sm:$0xff] }
 0x54c   : > { %v1259_v60 = vsel %vm937_vm8, %v1258_v53, %v1257_v42 }
 0x54d   : > { %v1260_v61 = vrot.slane %v1231_v41, 1 }
 0x54f   : > { %v1261_v63 = vsel %vm940_vm9, %v1260_v61, %v1259_v60 }
 0x550   : > { %1262 = vrot.lane.b32.xlu1 %v1261_v63, %s4303_s11 }
 0x5c2   : > { %v1263_v47 = vpop.permute.xlu1 %1262 }
 0x5c3   : > { %3623 = vmatmul.mubr.msk.f32.vlgmr.msra.gmra.mxu0 %vm432_vm1, %v1263_v47 }
 0x5c4   : > { %3637 = vmatpush3.msra.mxu0 %v4716_v51  ;;  %3644 = vmatprep.mubr.msk.f32.mxu0 %vm4301_vm2, %v4300_v12 }
 0x5c5   : > { %3638 = vmatprep.subr.mxu0 %v4300_v12 }
 0x5c6   : > { %3639 = vmatpush3.msra.mxu0 %v4725_v57 }
 0x5c7   : > { %3640 = vmatprep.subr.mxu0 %v4300_v12 }
 0x5c8   : > { %3641 = vmatpush3.msra.mxu0 %v4732_v1 }
 0x5c9   : > { %3642 = vmatprep.subr.mxu0 %v4300_v12 }
 0x5ca   : > { %3643 = vmatpush3.msra.mxu0 %v4739_v4 }
 0x5cb   : > { %3658 = vmatprep.subr.mxu0 %v4300_v12 }
 0x683   : > { %v1332_v5 = vpop.f32.mrf.mxu0 }
 0x684   : > { %v1352_v28 = vadd.f32 %v1332_v5, %v1232_v6  ;;  %v1337_v24 = vrot.slane %v1332_v5, 1  ;;  %v1338_v11 = vrot.slane %v1332_v5, 2  ;;  %v1340_v43 = vrot.slane %v1332_v5, 4 }
 0x685   : > { %v3624_v10 = vpop.f32.mrf.mxu0  ;;  %v1339_v32 = vrot.slane %v1332_v5, 3  ;;  %v1342_v37 = vrot.slane %v1332_v5, 6  ;;  %v1341_v23 = vrot.slane %v1332_v5, 5  ;;  %v1343_v27 = vrot.slane %v1332_v5, 7 }
 0x686   : > { %3867 = vtanh.f32 %v1352_v28  ;;  %v1353_v54 = vadd.f32 %v1337_v24, %v1233_v16  ;;  %v1354_v44 = vadd.f32 %v1338_v11, %v1234_v49  ;;  %v1356_v22 = vadd.f32 %v1340_v43, %v1236_v20 }
 0x687   : > { %v1355_v25 = vadd.f32 %v1339_v32, %v1235_v21  ;;  %v1358_v2 = vadd.f32 %v1342_v37, %v1238_v62  ;;  %v1357_v30 = vadd.f32 %v1341_v23, %v1237_v26  ;;  %v1359_v8 = vadd.f32 %v1343_v27, %v1239_v3 }
 0x688   : > { %3869 = vtanh.f32 %v1353_v54  ;;  %v3454_v17 = vmul.f32 -1.442695, %v1352_v28  ;;  %v3455_v45 = vmul.f32 -1.442695, %v1353_v54  ;;  %v3456_v46 = vmul.f32 -1.442695, %v1354_v44 }
 0x689   : > { %3871 = vtanh.f32 %v1354_v44  ;;  %v3458_v19 = vmul.f32 -1.442695, %v1356_v22  ;;  %v3457_v35 = vmul.f32 -1.442695, %v1355_v25  ;;  %v3460_v29 = vmul.f32 -1.442695, %v1358_v2 }
 0x68a   : > { %3873 = vtanh.f32 %v1356_v22  ;;  %v3459_v50 = vmul.f32 -1.442695, %v1357_v30  ;;  %v3461_v53 = vmul.f32 -1.442695, %v1359_v8 }
 0x68b   : > { %3875 = vtanh.f32 %v1355_v25 }
 0x68c   : > { %3877 = vtanh.f32 %v1358_v2 }
 0x68d   : > { %3879 = vtanh.f32 %v1357_v30 }
 0x68e   : > { %3881 = vtanh.f32 %v1359_v8 }
 0x68f   : > { %3883 = vpow2.f32 %v3454_v17 }
 0x690   : > { %3885 = vpow2.f32 %v3455_v45 }
 0x691   : > { %3887 = vpow2.f32 %v3456_v46 }
 0x692   : > { %3889 = vpow2.f32 %v3458_v19 }
 0x693   : > { %v3868_v48 = vpop.eup %3867  ;;  %3891 = vpow2.f32 %v3457_v35 }
 0x694   : > { %1432 = vrot.lane.b32.xlu0 %v3868_v48, %s4302_s26  ;;  %3893 = vpow2.f32 %v3460_v29 }
 0x695   : > { %v3870_v14 = vpop.eup %3869  ;;  %3895 = vpow2.f32 %v3459_v50 }
 0x696   : > { %v3872_v31 = vpop.eup %3871 }
 0x697   : > { %1436 = vrot.lane.b32.xlu1 %v3872_v31, %s4302_s26  ;;  %v3874_v33 = vpop.eup %3873 }
 0x698   : > { %1434 = vrot.lane.b32.xlu0 %v3870_v14, %s4302_s26  ;;  %v3876_v36 = vpop.eup %3875 }
 0x699   : > { %v3878_v15 = vpop.eup %3877 }
 0x69a   : > { %v3880_v39 = vpop.eup %3879 }
 0x69b   : > { %1438 = vrot.lane.b32.xlu1 %v3876_v36, %s4302_s26  ;;  %v3882_v40 = vpop.eup %3881 }
 0x69c   : > { %1440 = vrot.lane.b32.xlu0 %v3874_v33, %s4302_s26  ;;  %v3884_v38 = vpop.eup %3883 }
 0x69d   : > { %v1384_v52 = vadd.f32 1.0, %v3884_v38  ;;  %v3886_v55 = vpop.eup %3885 }
 0x69e   : > { %v3888_v58 = vpop.eup %3887  ;;  %v1385_v41 = vadd.f32 1.0, %v3886_v55 }
 0x69f   : > { %1442 = vrot.lane.b32.xlu1 %v3880_v39, %s4302_s26  ;;  %3897 = vrcp.f32 %v1384_v52  ;;  %v3890_v42 = vpop.eup %3889  ;;  %v1386_v60 = vadd.f32 1.0, %v3888_v58 }
 0x6a0   : > { %1444 = vrot.lane.b32.xlu0 %v3878_v15, %s4302_s26  ;;  %3899 = vpow2.f32 %v3461_v53  ;;  %v3892_v61 = vpop.eup %3891  ;;  %v1388_v63 = vadd.f32 1.0, %v3890_v42 }
 0x6a1   : > { %3901 = vrcp.f32 %v1385_v41  ;;  %v3894_v47 = vpop.eup %3893  ;;  %v1387_v5 = vadd.f32 1.0, %v3892_v61 }
 0x6a2   : > { %3903 = vrcp.f32 %v1386_v60  ;;  %v3896_v6 = vpop.eup %3895  ;;  %v1390_v10 = vadd.f32 1.0, %v3894_v47 }
 0x6a3   : > { %1446 = vrot.lane.b32.xlu1 %v3882_v40, %s4302_s26  ;;  %3905 = vrcp.f32 %v1388_v63  ;;  %v1389_v11 = vadd.f32 1.0, %v3896_v6 }
 0x6a4   : > { %3907 = vrcp.f32 %v1387_v5 }
 0x6a5   : > { %3909 = vrcp.f32 %v1390_v10 }
 0x6a6   : > { %3911 = vrcp.f32 %v1389_v11 }
 0x6ac   : > { %v4751_v28 = vpop.eup %3897 }
 0x6ad   : > { %v3900_v49 = vpop.eup %3899  ;;  %v1416_v15 = vmul.f32 %v4751_v28, %v4650_v0 }
 0x6ae   : > { %v1391_v43 = vadd.f32 1.0, %v3900_v49  ;;  %v4755_v54 = vpop.eup %3901 }
 0x6af   : > { %v4757_v44 = vpop.eup %3903  ;;  %v1417_v17 = vmul.f32 %v4755_v54, %v4657_v7 }
 0x6b0   : > { %3913 = vrcp.f32 %v1391_v43  ;;  %v4762_v22 = vpop.eup %3905  ;;  %v1418_v45 = vmul.f32 %v4757_v44, %v4659_v9 }
 0x6b1   : > { %v4765_v25 = vpop.eup %3907  ;;  %v1420_v0 = vmul.f32 %v4762_v22, %v4667_v13 }
 0x6b2   : > { %v4770_v2 = vpop.eup %3909  ;;  %v1419_v29 = vmul.f32 %v4765_v25, %v4669_v34 }
 0x6b3   : > { %v4773_v30 = vpop.eup %3911  ;;  %v1422_v55 = vmul.f32 %v4770_v2, %v4678_v18 }
 0x6b4   : > { %v1421_v13 = vmul.f32 %v4773_v30, %v4680_v59 }
 0x6bd   : > { %v4779_v31 = vpop.eup %3913 }
 0x6be   : > { %v1423_v18 = vmul.f32 %v4779_v31, %v4686_v56 }
 0x706   : > { %v1433_v24 = vpop.permute.xlu0 %1432 }
 0x707   : > { %v1456_v16 = vmul.f32 %v4751_v28, %v1433_v24 }
 0x709   : > { %1472 = vrot.lane.b32.xlu0 %v1456_v16, %s4303_s11  ;;  %v1437_v20 = vpop.permute.xlu1 %1436 }
 0x70a   : > { %v1435_v32 = vpop.permute.xlu0 %1434  ;;  %v1458_v37 = vmul.f32 %v4757_v44, %v1437_v20 }
 0x70b   : > { %v1457_v21 = vmul.f32 %v4755_v54, %v1435_v32 }
 0x70c   : > { %1476 = vrot.lane.b32.xlu1 %v1458_v37, %s4303_s11 }
 0x70d   : > { %1474 = vrot.lane.b32.xlu0 %v1457_v21, %s4303_s11  ;;  %v1439_v62 = vpop.permute.xlu1 %1438 }
 0x70e   : > { %v1441_v23 = vpop.permute.xlu0 %1440  ;;  %v1459_v26 = vmul.f32 %v4765_v25, %v1439_v62 }
 0x70f   : > { %v1460_v48 = vmul.f32 %v4762_v22, %v1441_v23 }
 0x710   : > { %1478 = vrot.lane.b32.xlu1 %v1459_v26, %s4303_s11 }
 0x711   : > { %1480 = vrot.lane.b32.xlu0 %v1460_v48, %s4303_s11  ;;  %v1443_v3 = vpop.permute.xlu1 %1442 }
 0x712   : > { %v1445_v27 = vpop.permute.xlu0 %1444  ;;  %v1461_v14 = vmul.f32 %v4773_v30, %v1443_v3 }
 0x713   : > { %v1462_v8 = vmul.f32 %v4770_v2, %v1445_v27 }
 0x714   : > { %1482 = vrot.lane.b32.xlu1 %v1461_v14, %s4303_s11 }
 0x715   : > { %1484 = vrot.lane.b32.xlu0 %v1462_v8, %s4303_s11  ;;  %v1447_v33 = vpop.permute.xlu1 %1446 }
 0x716   : > { %v1463_v36 = vmul.f32 %v4779_v31, %v1447_v33 }
 0x718   : > { %1486 = vrot.lane.b32.xlu1 %v1463_v36, %s4303_s11 }
 0x77b   : > { %v1473_v39 = vpop.permute.xlu0 %1472 }
 0x77c   : > { %v4785_v40 = vadd.f32 %v1473_v39, %v1416_v15 }
 0x77e   : > { %3915 = vtanh.f32 %v4785_v40  ;;  %v1477_v19 = vpop.permute.xlu1 %1476 }
 0x77f   : > { %v1475_v46 = vpop.permute.xlu0 %1474  ;;  %v4794_v38 = vadd.f32 %v1477_v19, %v1418_v45 }
 0x780   : > { %v4792_v35 = vadd.f32 %v1475_v46, %v1417_v17 }
 0x782   : > { %3917 = vtanh.f32 %v4792_v35  ;;  %v1479_v50 = vpop.permute.xlu1 %1478 }
 0x783   : > { %3919 = vtanh.f32 %v4794_v38  ;;  %v1481_v7 = vpop.permute.xlu0 %1480  ;;  %v4804_v9 = vadd.f32 %v1479_v50, %v1419_v29 }
 0x784   : > { %v4802_v52 = vadd.f32 %v1481_v7, %v1420_v0 }
 0x786   : > { %3921 = vtanh.f32 %v4802_v52  ;;  %v1483_v34 = vpop.permute.xlu1 %1482 }
 0x787   : > { %3923 = vtanh.f32 %v4804_v9  ;;  %v1485_v58 = vpop.permute.xlu0 %1484  ;;  %v4815_v42 = vadd.f32 %v1483_v34, %v1421_v13 }
 0x788   : > { %v4813_v41 = vadd.f32 %v1485_v58, %v1422_v55  ;;  %v1554_v55 = vld [vmem:[#allocation2 + $0x13] sm:$0x1] }
 0x78a   : > { %3925 = vtanh.f32 %v4813_v41  ;;  %v1487_v60 = vpop.permute.xlu1 %1486 }
 0x78b   : > { %v3916_v53 = vpop.eup %3915  ;;  %3927 = vtanh.f32 %v4815_v42  ;;  %v4821_v61 = vadd.f32 %v1487_v60, %v1423_v18  ;;  %v1556_v60 = vld [vmem:[#allocation2 + $0x23] sm:$0x1] }
 0x78c   : > { %1520 = vrot.lane.b32.xlu0 %v3916_v53, %s4302_s26  ;;  %v1553_v53 = vld [vmem:[#allocation2 + $0xb] sm:$0x1] }
 0x78d   : > { %3929 = vtanh.f32 %v4821_v61 }
 0x78f   : > { %v3918_v63 = vpop.eup %3917 }
 0x790   : > { %v3920_v59 = vpop.eup %3919  ;;  %1522 = vrot.lane.b32.xlu0 %v3918_v63, %s4302_s26  ;;  %v1555_v63 = vld [vmem:[#allocation2 + $0x1b] sm:$0x1] }
 0x791   : > { %1524 = vrot.lane.b32.xlu1 %v3920_v59, %s4302_s26 }
 0x793   : > { %v3922_v47 = vpop.eup %3921 }
 0x794   : > { %v3924_v5 = vpop.eup %3923  ;;  %1528 = vrot.lane.b32.xlu0 %v3922_v47, %s4302_s26 }
 0x795   : > { %1526 = vrot.lane.b32.xlu1 %v3924_v5, %s4302_s26 }
 0x797   : > { %v3926_v6 = vpop.eup %3925 }
 0x798   : > { %v3928_v10 = vpop.eup %3927  ;;  %1532 = vrot.lane.b32.xlu0 %v3926_v6, %s4302_s26 }
 0x799   : > { %1530 = vrot.lane.b32.xlu1 %v3928_v10, %s4302_s26  ;;  %v1558_v10 = vld [vmem:[#allocation2 + $0x33] sm:$0x1] }
 0x79a   : > { %v3930_v56 = vpop.eup %3929 }
 0x79d   : > { %1534 = vrot.lane.b32.xlu1 %v3930_v56, %s4302_s26 }
 0x7fe   : > { %v1521_v24 = vpop.permute.xlu0 %1520 }
 0x7ff   : > { %v1544_v32 = vmul.f32 %v4751_v28, %v1521_v24  ;;  %v1557_v24 = vld [vmem:[#allocation2 + $0x2b] sm:$0x1] }
 0x802   : > { %v1523_v11 = vpop.permute.xlu0 %1522 }
 0x803   : > { %v1525_v16 = vpop.permute.xlu1 %1524  ;;  %v1545_v49 = vmul.f32 %v4755_v54, %v1523_v11 }
 0x804   : > { %v1546_v43 = vmul.f32 %v4757_v44, %v1525_v16 }
 0x805   : > { %v1568_v20 = vrot.slane %v1545_v49, 7 }
 0x806   : > { %v1529_v21 = vpop.permute.xlu0 %1528  ;;  %v1570_v37 = vrot.slane %v1546_v43, 6  ;;  %v1559_v43 = vld [vmem:[#allocation2 + $0x3b] sm:$0x1] }
 0x807   : > { %v1569_v23 = vsel %vm922_vm3, %v1568_v20, %v1544_v32  ;;  %v1527_v62 = vpop.permute.xlu1 %1526  ;;  %v1548_v48 = vmul.f32 %v4762_v22, %v1529_v21 }
 0x808   : > { %v1547_v26 = vmul.f32 %v4765_v25, %v1527_v62  ;;  %v1571_v27 = vsel %vm925_vm4, %v1570_v37, %v1569_v23 }
 0x809   : > { %v1574_v3 = vrot.slane %v1548_v48, 4 }
 0x80a   : > { %v1572_v8 = vrot.slane %v1547_v26, 5  ;;  %v1533_v14 = vpop.permute.xlu0 %1532 }
 0x80b   : > { %v1531_v54 = vpop.permute.xlu1 %1530  ;;  %v1550_v44 = vmul.f32 %v4770_v2, %v1533_v14 }
 0x80c   : > { %v1573_v28 = vsel %vm928_vm5, %v1572_v8, %v1571_v27  ;;  %v1549_v33 = vmul.f32 %v4773_v30, %v1531_v54 }
 0x80d   : > { %v1575_v36 = vsel %vm931_vm6, %v1574_v3, %v1573_v28  ;;  %v1578_v15 = vrot.slane %v1550_v44, 2 }
 0x80e   : > { %v1576_v39 = vrot.slane %v1549_v33, 3 }
 0x80f   : > { %v1535_v17 = vpop.permute.xlu1 %1534 }
 0x810   : > { %v1551_v22 = vmul.f32 %v4779_v31, %v1535_v17  ;;  %v1577_v25 = vsel %vm934_vm7, %v1576_v39, %v1575_v36  ;;  %v1552_v31 = vld [vmem:[#allocation2 + $0x3] sm:$0x1] }
 0x811   : > { %v1579_v45 = vsel %vm937_vm8, %v1578_v15, %v1577_v25 }
 0x812   : > { %v1580_v46 = vrot.slane %v1551_v22, 1 }
 0x814   : > { %v1581_v19 = vsel %vm940_vm9, %v1580_v46, %v1579_v45 }
 0x815   : > { %1582 = vrot.lane.b32.xlu0 %v1581_v19, %s4303_s11 }
 0x887   : > { %v1583_v2 = vpop.permute.xlu0 %1582 }
 0x888   : > { %3634 = vmatmul.mubr.msk.f32.vlgmr.msra.gmra.mxu1 %vm432_vm1, %v1583_v2 }
 0x889   : > { %3648 = vmatpush3.msra.mxu1 %v4716_v51  ;;  %3655 = vmatprep.mubr.msk.f32.mxu1 %vm4301_vm2, %v4300_v12 }
 0x88a   : > { %3649 = vmatprep.subr.mxu1 %v4300_v12 }
 0x88b   : > { %3650 = vmatpush3.msra.mxu1 %v4725_v57 }
 0x88c   : > { %3651 = vmatprep.subr.mxu1 %v4300_v12 }
 0x88d   : > { %3652 = vmatpush3.msra.mxu1 %v4732_v1 }
 0x88e   : > { %3653 = vmatprep.subr.mxu1 %v4300_v12 }
 0x88f   : > { %3654 = vmatpush3.msra.mxu1 %v4739_v4 }
 0x890   : > { %3669 = vmatprep.subr.mxu1 %v4300_v12 }
 0x948   : > { %v1652_v30 = vpop.f32.mrf.mxu1 }
 0x949   : > { %v1672_v0 = vadd.f32 %v1652_v30, %v1552_v31  ;;  %v1657_v7 = vrot.slane %v1652_v30, 1  ;;  %v1658_v50 = vrot.slane %v1652_v30, 2  ;;  %v1660_v13 = vrot.slane %v1652_v30, 4 }
 0x94a   : > { %v3635_v29 = vpop.f32.mrf.mxu1  ;;  %v1659_v34 = vrot.slane %v1652_v30, 3  ;;  %v1662_v59 = vrot.slane %v1652_v30, 6  ;;  %v1661_v5 = vrot.slane %v1652_v30, 5  ;;  %v1663_v16 = vrot.slane %v1652_v30, 7 }
 0x94b   : > { %3931 = vtanh.f32 %v1672_v0  ;;  %v1673_v58 = vadd.f32 %v1657_v7, %v1553_v53  ;;  %v1674_v18 = vadd.f32 %v1658_v50, %v1554_v55  ;;  %v1676_v47 = vadd.f32 %v1660_v13, %v1556_v60 }
 0x94c   : > { %v1675_v6 = vadd.f32 %v1659_v34, %v1555_v63  ;;  %v1678_v11 = vadd.f32 %v1662_v59, %v1558_v10  ;;  %v1677_v49 = vadd.f32 %v1661_v5, %v1557_v24  ;;  %v1679_v32 = vadd.f32 %v1663_v16, %v1559_v43 }
 0x94d   : > { %3933 = vtanh.f32 %v1673_v58  ;;  %v3463_v27 = vmul.f32 -1.442695, %v1672_v0  ;;  %v3464_v3 = vmul.f32 -1.442695, %v1673_v58  ;;  %v3465_v8 = vmul.f32 -1.442695, %v1674_v18 }
 0x94e   : > { %3935 = vtanh.f32 %v1674_v18  ;;  %v3467_v14 = vmul.f32 -1.442695, %v1676_v47  ;;  %v3466_v54 = vmul.f32 -1.442695, %v1675_v6  ;;  %v3469_v28 = vmul.f32 -1.442695, %v1678_v11 }
 0x94f   : > { %3937 = vtanh.f32 %v1676_v47  ;;  %v3468_v33 = vmul.f32 -1.442695, %v1677_v49  ;;  %v3470_v15 = vmul.f32 -1.442695, %v1679_v32 }
 0x950   : > { %3939 = vtanh.f32 %v1675_v6 }
 0x951   : > { %3941 = vtanh.f32 %v1678_v11 }
 0x952   : > { %3943 = vtanh.f32 %v1677_v49 }
 0x953   : > { %3945 = vtanh.f32 %v1679_v32 }
 0x954   : > { %3947 = vpow2.f32 %v3463_v27 }
 0x955   : > { %3949 = vpow2.f32 %v3464_v3 }
 0x956   : > { %3951 = vpow2.f32 %v3465_v8 }
 0x957   : > { %3953 = vpow2.f32 %v3467_v14 }
 0x958   : > { %v3932_v56 = vpop.eup %3931  ;;  %3955 = vpow2.f32 %v3466_v54 }
 0x959   : > { %1752 = vrot.lane.b32.xlu1 %v3932_v56, %s4302_s26  ;;  %3957 = vpow2.f32 %v3469_v28 }
 0x95a   : > { %v3934_v20 = vpop.eup %3933  ;;  %3959 = vpow2.f32 %v3468_v33 }
 0x95b   : > { %v3936_v21 = vpop.eup %3935 }
 0x95c   : > { %1756 = vrot.lane.b32.xlu0 %v3936_v21, %s4302_s26  ;;  %v3938_v37 = vpop.eup %3937 }
 0x95d   : > { %1754 = vrot.lane.b32.xlu1 %v3934_v20, %s4302_s26  ;;  %v3940_v23 = vpop.eup %3939 }
 0x95e   : > { %v3942_v62 = vpop.eup %3941 }
 0x95f   : > { %v3944_v48 = vpop.eup %3943 }
 0x960   : > { %1758 = vrot.lane.b32.xlu0 %v3940_v23, %s4302_s26  ;;  %v3946_v26 = vpop.eup %3945 }
 0x961   : > { %1760 = vrot.lane.b32.xlu1 %v3938_v37, %s4302_s26  ;;  %v3948_v44 = vpop.eup %3947 }
 0x962   : > { %v1704_v36 = vadd.f32 1.0, %v3948_v44  ;;  %v3950_v39 = vpop.eup %3949 }
 0x963   : > { %v3952_v17 = vpop.eup %3951  ;;  %v1705_v22 = vadd.f32 1.0, %v3950_v39 }
 0x964   : > { %1762 = vrot.lane.b32.xlu0 %v3944_v48, %s4302_s26  ;;  %3961 = vrcp.f32 %v1704_v36  ;;  %v3954_v25 = vpop.eup %3953  ;;  %v1706_v45 = vadd.f32 1.0, %v3952_v17 }
 0x965   : > { %1764 = vrot.lane.b32.xlu1 %v3942_v62, %s4302_s26  ;;  %3963 = vpow2.f32 %v3470_v15  ;;  %v3956_v46 = vpop.eup %3955  ;;  %v1708_v19 = vadd.f32 1.0, %v3954_v25 }
 0x966   : > { %3965 = vrcp.f32 %v1705_v22  ;;  %v3958_v2 = vpop.eup %3957  ;;  %v1707_v30 = vadd.f32 1.0, %v3956_v46 }
 0x967   : > { %3967 = vrcp.f32 %v1706_v45  ;;  %v3960_v31 = vpop.eup %3959  ;;  %v1710_v29 = vadd.f32 1.0, %v3958_v2 }
 0x968   : > { %1766 = vrot.lane.b32.xlu0 %v3946_v26, %s4302_s26  ;;  %3969 = vrcp.f32 %v1708_v19  ;;  %v1709_v50 = vadd.f32 1.0, %v3960_v31 }
 0x969   : > { %3971 = vrcp.f32 %v1707_v30 }
 0x96a   : > { %3973 = vrcp.f32 %v1710_v29 }
 0x96b   : > { %3975 = vrcp.f32 %v1709_v50 }
 0x971   : > { %v4866_v0 = vpop.eup %3961 }
 0x972   : > { %v3964_v55 = vpop.eup %3963  ;;  %v1736_v62 = vmul.f32 %v4866_v0, %v4785_v40 }
 0x973   : > { %v1711_v13 = vadd.f32 1.0, %v3964_v55  ;;  %v4870_v58 = vpop.eup %3965 }
 0x974   : > { %v4872_v18 = vpop.eup %3967  ;;  %v1737_v27 = vmul.f32 %v4870_v58, %v4792_v35 }
 0x975   : > { %3977 = vrcp.f32 %v1711_v13  ;;  %v4877_v47 = vpop.eup %3969  ;;  %v1738_v3 = vmul.f32 %v4872_v18, %v4794_v38 }
 0x976   : > { %v4880_v6 = vpop.eup %3971  ;;  %v1740_v40 = vmul.f32 %v4877_v47, %v4802_v52 }
 0x977   : > { %v4885_v11 = vpop.eup %3973  ;;  %v1739_v28 = vmul.f32 %v4880_v6, %v4804_v9 }
 0x978   : > { %v4888_v49 = vpop.eup %3975  ;;  %v1742_v39 = vmul.f32 %v4885_v11, %v4813_v41 }
 0x979   : > { %v1741_v52 = vmul.f32 %v4888_v49, %v4815_v42 }
 0x982   : > { %v4894_v21 = vpop.eup %3977 }
 0x983   : > { %v1743_v41 = vmul.f32 %v4894_v21, %v4821_v61 }
 0x9cb   : > { %v1753_v7 = vpop.permute.xlu1 %1752 }
 0x9cc   : > { %v1776_v53 = vmul.f32 %v4866_v0, %v1753_v7 }
 0x9ce   : > { %1792 = vrot.lane.b32.xlu1 %v1776_v53, %s4303_s11  ;;  %v1757_v60 = vpop.permute.xlu0 %1756 }
 0x9cf   : > { %v1755_v34 = vpop.permute.xlu1 %1754  ;;  %v1778_v59 = vmul.f32 %v4872_v18, %v1757_v60 }
 0x9d0   : > { %v1777_v63 = vmul.f32 %v4870_v58, %v1755_v34 }
 0x9d1   : > { %1796 = vrot.lane.b32.xlu0 %v1778_v59, %s4303_s11 }
 0x9d2   : > { %1794 = vrot.lane.b32.xlu1 %v1777_v63, %s4303_s11  ;;  %v1759_v10 = vpop.permute.xlu0 %1758 }
 0x9d3   : > { %v1761_v5 = vpop.permute.xlu1 %1760  ;;  %v1779_v24 = vmul.f32 %v4880_v6, %v1759_v10 }
 0x9d4   : > { %v1780_v56 = vmul.f32 %v4877_v47, %v1761_v5 }
 0x9d5   : > { %1798 = vrot.lane.b32.xlu0 %v1779_v24, %s4303_s11 }
 0x9d6   : > { %1800 = vrot.lane.b32.xlu1 %v1780_v56, %s4303_s11  ;;  %v1763_v43 = vpop.permute.xlu0 %1762 }
 0x9d7   : > { %v1765_v16 = vpop.permute.xlu1 %1764  ;;  %v1781_v20 = vmul.f32 %v4888_v49, %v1763_v43 }
 0x9d8   : > { %v1782_v32 = vmul.f32 %v4885_v11, %v1765_v16 }
 0x9d9   : > { %1802 = vrot.lane.b32.xlu0 %v1781_v20, %s4303_s11 }
 0x9da   : > { %1804 = vrot.lane.b32.xlu1 %v1782_v32, %s4303_s11  ;;  %v1767_v37 = vpop.permute.xlu0 %1766 }
 0x9db   : > { %v1783_v23 = vmul.f32 %v4894_v21, %v1767_v37 }
 0x9dd   : > { %1806 = vrot.lane.b32.xlu0 %v1783_v23, %s4303_s11 }
 0xa40   : > { %v1793_v48 = vpop.permute.xlu1 %1792 }
 0xa41   : > { %v4900_v26 = vadd.f32 %v1793_v48, %v1736_v62 }
 0xa43   : > { %3979 = vtanh.f32 %v4900_v26  ;;  %v1797_v14 = vpop.permute.xlu0 %1796 }
 0xa44   : > { %v1795_v8 = vpop.permute.xlu1 %1794  ;;  %v4909_v44 = vadd.f32 %v1797_v14, %v1738_v3 }
 0xa45   : > { %v4907_v54 = vadd.f32 %v1795_v8, %v1737_v27 }
 0xa47   : > { %3981 = vtanh.f32 %v4907_v54  ;;  %v1799_v33 = vpop.permute.xlu0 %1798 }
 0xa48   : > { %3983 = vtanh.f32 %v4909_v44  ;;  %v1801_v35 = vpop.permute.xlu1 %1800  ;;  %v4919_v38 = vadd.f32 %v1799_v33, %v1739_v28  ;;  %v1873_v33 = vld [vmem:[#allocation2 + $0xc] sm:$0x1] }
 0xa49   : > { %v4917_v36 = vadd.f32 %v1801_v35, %v1740_v40 }
 0xa4b   : > { %3985 = vtanh.f32 %v4917_v36  ;;  %v1803_v9 = vpop.permute.xlu0 %1802 }
 0xa4c   : > { %3987 = vtanh.f32 %v4919_v38  ;;  %v1805_v17 = vpop.permute.xlu1 %1804  ;;  %v4930_v25 = vadd.f32 %v1803_v9, %v1741_v52  ;;  %v1876_v9 = vld [vmem:[#allocation2 + $0x24] sm:$0x1] }
 0xa4d   : > { %v4928_v22 = vadd.f32 %v1805_v17, %v1742_v39 }
 0xa4f   : > { %3989 = vtanh.f32 %v4928_v22  ;;  %v1807_v45 = vpop.permute.xlu0 %1806 }
 0xa50   : > { %v3980_v15 = vpop.eup %3979  ;;  %3991 = vtanh.f32 %v4930_v25  ;;  %v4936_v46 = vadd.f32 %v1807_v45, %v1743_v41  ;;  %v1875_v41 = vld [vmem:[#allocation2 + $0x1c] sm:$0x1] }
 0xa51   : > { %1840 = vrot.lane.b32.xlu1 %v3980_v15, %s4302_s26  ;;  %v1874_v15 = vld [vmem:[#allocation2 + $0x14] sm:$0x1] }
 0xa52   : > { %3993 = vtanh.f32 %v4936_v46 }
 0xa54   : > { %v3982_v19 = vpop.eup %3981 }
 0xa55   : > { %v3984_v42 = vpop.eup %3983  ;;  %1842 = vrot.lane.b32.xlu1 %v3982_v19, %s4302_s26 }
 0xa56   : > { %1844 = vrot.lane.b32.xlu0 %v3984_v42, %s4302_s26  ;;  %v1878_v42 = vld [vmem:[#allocation2 + $0x34] sm:$0x1] }
 0xa58   : > { %v3986_v2 = vpop.eup %3985 }
 0xa59   : > { %v3988_v30 = vpop.eup %3987  ;;  %1848 = vrot.lane.b32.xlu1 %v3986_v2, %s4302_s26 }
 0xa5a   : > { %1846 = vrot.lane.b32.xlu0 %v3988_v30, %s4302_s26  ;;  %v1877_v30 = vld [vmem:[#allocation2 + $0x2c] sm:$0x1] }
 0xa5c   : > { %v3990_v31 = vpop.eup %3989 }
 0xa5d   : > { %v3992_v29 = vpop.eup %3991  ;;  %1852 = vrot.lane.b32.xlu1 %v3990_v31, %s4302_s26 }
 0xa5e   : > { %1850 = vrot.lane.b32.xlu0 %v3992_v29, %s4302_s26 }
 0xa5f   : > { %v3994_v61 = vpop.eup %3993 }
 0xa62   : > { %1854 = vrot.lane.b32.xlu0 %v3994_v61, %s4302_s26 }
 0xac3   : > { %v1841_v7 = vpop.permute.xlu1 %1840 }
 0xac4   : > { %v1864_v34 = vmul.f32 %v4866_v0, %v1841_v7  ;;  %v1879_v7 = vld [vmem:[#allocation2 + $0x3c] sm:$0x1] }
 0xac7   : > { %v1843_v50 = vpop.permute.xlu1 %1842 }
 0xac8   : > { %v1845_v53 = vpop.permute.xlu0 %1844  ;;  %v1865_v55 = vmul.f32 %v4870_v58, %v1843_v50 }
 0xac9   : > { %v1866_v13 = vmul.f32 %v4872_v18, %v1845_v53 }
 0xaca   : > { %v1888_v60 = vrot.slane %v1865_v55, 7 }
 0xacb   : > { %v1849_v63 = vpop.permute.xlu1 %1848  ;;  %v1890_v59 = vrot.slane %v1866_v13, 6 }
 0xacc   : > { %v1889_v5 = vsel %vm922_vm3, %v1888_v60, %v1864_v34  ;;  %v1847_v10 = vpop.permute.xlu0 %1846  ;;  %v1868_v56 = vmul.f32 %v4877_v47, %v1849_v63 }
 0xacd   : > { %v1867_v24 = vmul.f32 %v4880_v6, %v1847_v10  ;;  %v1891_v16 = vsel %vm925_vm4, %v1890_v59, %v1889_v5 }
 0xace   : > { %v1894_v43 = vrot.slane %v1868_v56, 4 }
 0xacf   : > { %v1892_v32 = vrot.slane %v1867_v24, 5  ;;  %v1853_v20 = vpop.permute.xlu1 %1852 }
 0xad0   : > { %v1851_v58 = vpop.permute.xlu0 %1850  ;;  %v1870_v18 = vmul.f32 %v4885_v11, %v1853_v20 }
 0xad1   : > { %v1893_v0 = vsel %vm928_vm5, %v1892_v32, %v1891_v16  ;;  %v1869_v37 = vmul.f32 %v4888_v49, %v1851_v58 }
 0xad2   : > { %v1895_v23 = vsel %vm931_vm6, %v1894_v43, %v1893_v0  ;;  %v1898_v62 = vrot.slane %v1870_v18, 2 }
 0xad3   : > { %v1896_v48 = vrot.slane %v1869_v37, 3 }
 0xad4   : > { %v1855_v27 = vpop.permute.xlu0 %1854 }
 0xad5   : > { %v1897_v47 = vsel %vm934_vm7, %v1896_v48, %v1895_v23  ;;  %v1871_v6 = vmul.f32 %v4894_v21, %v1855_v27  ;;  %v1872_v21 = vld [vmem:[#allocation2 + $0x4] sm:$0x1] }
 0xad6   : > { %v1899_v3 = vsel %vm937_vm8, %v1898_v62, %v1897_v47 }
 0xad7   : > { %v1900_v8 = vrot.slane %v1871_v6, 1 }
 0xad9   : > { %v1901_v14 = vsel %vm940_vm9, %v1900_v8, %v1899_v3 }
 0xada   : > { %1902 = vrot.lane.b32.xlu1 %v1901_v14, %s4303_s11 }
 0xb4c   : > { %v1903_v11 = vpop.permute.xlu1 %1902 }
 0xb4d   : > { %3645 = vmatmul.mubr.msk.f32.vlgmr.msra.gmra.mxu0 %vm432_vm1, %v1903_v11 }
 0xb4e   : > { %3659 = vmatpush3.msra.mxu0 %v4716_v51  ;;  %3666 = vmatprep.mubr.msk.f32.mxu0 %vm4301_vm2, %v4300_v12 }
 0xb4f   : > { %3660 = vmatprep.subr.mxu0 %v4300_v12 }
 0xb50   : > { %3661 = vmatpush3.msra.mxu0 %v4725_v57 }
 0xb51   : > { %3662 = vmatprep.subr.mxu0 %v4300_v12 }
 0xb52   : > { %3663 = vmatpush3.msra.mxu0 %v4732_v1 }
 0xb53   : > { %3664 = vmatprep.subr.mxu0 %v4300_v12 }
 0xb54   : > { %3665 = vmatpush3.msra.mxu0 %v4739_v4 }
 0xc0d   : > { %v1972_v49 = vpop.f32.mrf.mxu0 }
 0xc0e   : > { %v1992_v40 = vadd.f32 %v1972_v49, %v1872_v21  ;;  %v1977_v51 = vrot.slane %v1972_v49, 1  ;;  %v1978_v35 = vrot.slane %v1972_v49, 2  ;;  %v1980_v39 = vrot.slane %v1972_v49, 4 }
 0xc0f   : > { %v3646_v28 = vpop.f32.mrf.mxu0  ;;  %v1979_v57 = vrot.slane %v1972_v49, 3  ;;  %v1982_v1 = vrot.slane %v1972_v49, 6  ;;  %v1981_v19 = vrot.slane %v1972_v49, 5  ;;  %v1983_v29 = vrot.slane %v1972_v49, 7 }
 0xc10   : > { %3995 = vtanh.f32 %v1992_v40  ;;  %v1993_v52 = vadd.f32 %v1977_v51, %v1873_v33  ;;  %v1994_v17 = vadd.f32 %v1978_v35, %v1874_v15  ;;  %v1996_v45 = vadd.f32 %v1980_v39, %v1876_v9 }
 0xc11   : > { %v1995_v4 = vadd.f32 %v1979_v57, %v1875_v41  ;;  %v1998_v31 = vadd.f32 %v1982_v1, %v1878_v42  ;;  %v1997_v61 = vadd.f32 %v1981_v19, %v1877_v30  ;;  %v1999_v50 = vadd.f32 %v1983_v29, %v1879_v7 }
 0xc12   : > { %3997 = vtanh.f32 %v1993_v52  ;;  %v3472_v5 = vmul.f32 -1.442695, %v1992_v40  ;;  %v3473_v10 = vmul.f32 -1.442695, %v1993_v52  ;;  %v3474_v56 = vmul.f32 -1.442695, %v1994_v17 }
 0xc13   : > { %3999 = vtanh.f32 %v1994_v17  ;;  %v3476_v24 = vmul.f32 -1.442695, %v1996_v45  ;;  %v3475_v16 = vmul.f32 -1.442695, %v1995_v4  ;;  %v3478_v32 = vmul.f32 -1.442695, %v1998_v31 }
 0xc14   : > { %4001 = vtanh.f32 %v1996_v45  ;;  %v3477_v20 = vmul.f32 -1.442695, %v1997_v61  ;;  %v3479_v18 = vmul.f32 -1.442695, %v1999_v50 }
 0xc15   : > { %4003 = vtanh.f32 %v1995_v4 }
 0xc16   : > { %4005 = vtanh.f32 %v1998_v31 }
 0xc17   : > { %4007 = vtanh.f32 %v1997_v61 }
 0xc18   : > { %4009 = vtanh.f32 %v1999_v50 }
 0xc19   : > { %4011 = vpow2.f32 %v3472_v5 }
 0xc1a   : > { %4013 = vpow2.f32 %v3473_v10 }
 0xc1b   : > { %4015 = vpow2.f32 %v3474_v56 }
 0xc1c   : > { %4017 = vpow2.f32 %v3476_v24 }
 0xc1d   : > { %v3996_v2 = vpop.eup %3995  ;;  %4019 = vpow2.f32 %v3475_v16 }
 0xc1e   : > { %2072 = vrot.lane.b32.xlu0 %v3996_v2, %s4302_s26  ;;  %4021 = vpow2.f32 %v3478_v32 }
 0xc1f   : > { %v3998_v53 = vpop.eup %3997  ;;  %4023 = vpow2.f32 %v3477_v20 }
 0xc20   : > { %v4000_v55 = vpop.eup %3999 }
 0xc21   : > { %2076 = vrot.lane.b32.xlu1 %v4000_v55, %s4302_s26  ;;  %v4002_v13 = vpop.eup %4001 }
 0xc22   : > { %2074 = vrot.lane.b32.xlu0 %v3998_v53, %s4302_s26  ;;  %v4004_v34 = vpop.eup %4003 }
 0xc23   : > { %v4006_v60 = vpop.eup %4005 }
 0xc24   : > { %v4008_v63 = vpop.eup %4007 }
 0xc25   : > { %2078 = vrot.lane.b32.xlu1 %v4004_v34, %s4302_s26  ;;  %v4010_v59 = vpop.eup %4009 }
 0xc26   : > { %2080 = vrot.lane.b32.xlu0 %v4002_v13, %s4302_s26  ;;  %v4012_v43 = vpop.eup %4011 }
 0xc27   : > { %v2024_v58 = vadd.f32 1.0, %v4012_v43  ;;  %v4014_v0 = vpop.eup %4013 }
 0xc28   : > { %v4016_v37 = vpop.eup %4015  ;;  %v2025_v23 = vadd.f32 1.0, %v4014_v0 }
 0xc29   : > { %2082 = vrot.lane.b32.xlu1 %v4008_v63, %s4302_s26  ;;  %4025 = vrcp.f32 %v2024_v58  ;;  %v4018_v62 = vpop.eup %4017  ;;  %v2026_v48 = vadd.f32 1.0, %v4016_v37 }
 0xc2a   : > { %2084 = vrot.lane.b32.xlu0 %v4006_v60, %s4302_s26  ;;  %4027 = vpow2.f32 %v3479_v18  ;;  %v4020_v27 = vpop.eup %4019  ;;  %v2028_v47 = vadd.f32 1.0, %v4018_v62 }
 0xc2b   : > { %4029 = vrcp.f32 %v2025_v23  ;;  %v4022_v6 = vpop.eup %4021  ;;  %v2027_v3 = vadd.f32 1.0, %v4020_v27 }
 0xc2c   : > { %4031 = vrcp.f32 %v2026_v48  ;;  %v4024_v8 = vpop.eup %4023  ;;  %v2030_v11 = vadd.f32 1.0, %v4022_v6 }
 0xc2d   : > { %2086 = vrot.lane.b32.xlu1 %v4010_v59, %s4302_s26  ;;  %4033 = vrcp.f32 %v2028_v47  ;;  %v2029_v21 = vadd.f32 1.0, %v4024_v8 }
 0xc2e   : > { %4035 = vrcp.f32 %v2027_v3 }
 0xc2f   : > { %4037 = vrcp.f32 %v2030_v11 }
 0xc30   : > { %4039 = vrcp.f32 %v2029_v21 }
 0xc36   : > { %v4980_v14 = vpop.eup %4025 }
 0xc37   : > { %v4028_v28 = vpop.eup %4027  ;;  %v2056_v53 = vmul.f32 %v4980_v14, %v4900_v26 }
 0xc38   : > { %v2031_v51 = vadd.f32 1.0, %v4028_v28  ;;  %v4984_v35 = vpop.eup %4029 }
 0xc39   : > { %v4986_v15 = vpop.eup %4031  ;;  %v2057_v34 = vmul.f32 %v4984_v35, %v4907_v54 }
 0xc3a   : > { %4041 = vrcp.f32 %v2031_v51  ;;  %v4991_v17 = vpop.eup %4033  ;;  %v2058_v60 = vmul.f32 %v4986_v15, %v4909_v44 }
 0xc3b   : > { %v4994_v41 = vpop.eup %4035  ;;  %v2060_v26 = vmul.f32 %v4991_v17, %v4917_v36 }
 0xc3c   : > { %v4999_v4 = vpop.eup %4037  ;;  %v2059_v56 = vmul.f32 %v4994_v41, %v4919_v38 }
 0xc3d   : > { %v5002_v2 = vpop.eup %4039  ;;  %v2062_v32 = vmul.f32 %v4999_v4, %v4928_v22 }
 0xc3e   : > { %v2061_v36 = vmul.f32 %v5002_v2, %v4930_v25 }
 0xc47   : > { %v5008_v61 = vpop.eup %4041 }
 0xc48   : > { %v2063_v22 = vmul.f32 %v5008_v61, %v4936_v46 }
 0xc90   : > { %v2073_v49 = vpop.permute.xlu0 %2072 }
 0xc91   : > { %v2096_v40 = vmul.f32 %v4980_v14, %v2073_v49 }
 0xc93   : > { %2112 = vrot.lane.b32.xlu0 %v2096_v40, %s4303_s11  ;;  %v2077_v39 = vpop.permute.xlu1 %2076 }
 0xc94   : > { %v2075_v33 = vpop.permute.xlu0 %2074  ;;  %v2098_v57 = vmul.f32 %v4986_v15, %v2077_v39 }
 0xc95   : > { %v2097_v52 = vmul.f32 %v4984_v35, %v2075_v33 }
 0xc96   : > { %2116 = vrot.lane.b32.xlu1 %v2098_v57, %s4303_s11 }
 0xc97   : > { %2114 = vrot.lane.b32.xlu0 %v2097_v52, %s4303_s11  ;;  %v2079_v1 = vpop.permute.xlu1 %2078 }
 0xc98   : > { %v2081_v9 = vpop.permute.xlu0 %2080  ;;  %v2099_v19 = vmul.f32 %v4994_v41, %v2079_v1 }
 0xc99   : > { %v2100_v45 = vmul.f32 %v4991_v17, %v2081_v9 }
 0xc9a   : > { %2118 = vrot.lane.b32.xlu1 %v2099_v19, %s4303_s11 }
 0xc9b   : > { %2120 = vrot.lane.b32.xlu0 %v2100_v45, %s4303_s11  ;;  %v2083_v30 = vpop.permute.xlu1 %2082 }
 0xc9c   : > { %v2085_v42 = vpop.permute.xlu0 %2084  ;;  %v2101_v29 = vmul.f32 %v5002_v2, %v2083_v30 }
 0xc9d   : > { %v2102_v31 = vmul.f32 %v4999_v4, %v2085_v42 }
 0xc9e   : > { %2122 = vrot.lane.b32.xlu1 %v2101_v29, %s4303_s11 }
 0xc9f   : > { %2124 = vrot.lane.b32.xlu0 %v2102_v31, %s4303_s11  ;;  %v2087_v7 = vpop.permute.xlu1 %2086 }
 0xca0   : > { %v2103_v50 = vmul.f32 %v5008_v61, %v2087_v7 }
 0xca2   : > { %2126 = vrot.lane.b32.xlu1 %v2103_v50, %s4303_s11 }
 0xd05   : > { %v2113_v55 = vpop.permute.xlu0 %2112 }
 0xd06   : > { %v5014_v13 = vadd.f32 %v2113_v55, %v2056_v53 }
 0xd08   : > { %4043 = vtanh.f32 %v5014_v13  ;;  %v2117_v59 = vpop.permute.xlu1 %2116 }
 0xd09   : > { %v2115_v63 = vpop.permute.xlu0 %2114  ;;  %v5023_v10 = vadd.f32 %v2117_v59, %v2058_v60  ;;  %v4258_v60 = vld [vmem:[%s5438_s2] sm:$0xff] }
 0xd0a   : > { %v5021_v5 = vadd.f32 %v2115_v63, %v2057_v34  ;;  %v4257_v34 = vld [vmem:[%s5438_s2 + $0x8] sm:$0xff]  ;;  %v2192_v59 = vld [vmem:[#allocation2 + $0x5] sm:$0x1] }
 0xd0c   : > { %4045 = vtanh.f32 %v5021_v5  ;;  %v2119_v24 = vpop.permute.xlu1 %2118 }
 0xd0d   : > { %4047 = vtanh.f32 %v5023_v10  ;;  %v2121_v54 = vpop.permute.xlu0 %2120  ;;  %v5033_v44 = vadd.f32 %v2119_v24, %v2059_v56 }
 0xd0e   : > { %v5031_v16 = vadd.f32 %v2121_v54, %v2060_v26 }
 0xd10   : > { %4049 = vtanh.f32 %v5031_v16  ;;  %v2123_v38 = vpop.permute.xlu1 %2122 }
 0xd11   : > { %4051 = vtanh.f32 %v5033_v44  ;;  %v2125_v20 = vpop.permute.xlu0 %2124  ;;  %v5044_v18 = vadd.f32 %v2123_v38, %v2061_v36 }
 0xd12   : > { %v5042_v58 = vadd.f32 %v2125_v20, %v2062_v32  ;;  %v2194_v32 = vld [vmem:[#allocation2 + $0x15] sm:$0x1] }
 0xd14   : > { %4053 = vtanh.f32 %v5042_v58  ;;  %v2127_v0 = vpop.permute.xlu1 %2126 }
 0xd15   : > { %v4044_v43 = vpop.eup %4043  ;;  %4055 = vtanh.f32 %v5044_v18  ;;  %v5050_v37 = vadd.f32 %v2127_v0, %v2063_v22  ;;  %v2196_v0 = vld [vmem:[#allocation2 + $0x25] sm:$0x1] }
 0xd16   : > { %2160 = vrot.lane.b32.xlu0 %v4044_v43, %s4302_s26  ;;  %v2193_v43 = vld [vmem:[#allocation2 + $0xd] sm:$0x1] }
 0xd17   : > { %4057 = vtanh.f32 %v5050_v37 }
 0xd19   : > { %v4046_v23 = vpop.eup %4045 }
 0xd1a   : > { %v4048_v25 = vpop.eup %4047  ;;  %2162 = vrot.lane.b32.xlu0 %v4046_v23, %s4302_s26 }
 0xd1b   : > { %2164 = vrot.lane.b32.xlu1 %v4048_v25, %s4302_s26 }
 0xd1d   : > { %v4050_v62 = vpop.eup %4049 }
 0xd1e   : > { %v4052_v48 = vpop.eup %4051  ;;  %2168 = vrot.lane.b32.xlu0 %v4050_v62, %s4302_s26 }
 0xd1f   : > { %2166 = vrot.lane.b32.xlu1 %v4052_v48, %s4302_s26 }
 0xd21   : > { %v4054_v27 = vpop.eup %4053 }
 0xd22   : > { %v4056_v47 = vpop.eup %4055  ;;  %2172 = vrot.lane.b32.xlu0 %v4054_v27, %s4302_s26  ;;  %v2198_v27 = vld [vmem:[#allocation2 + $0x35] sm:$0x1] }
 0xd23   : > { %2170 = vrot.lane.b32.xlu1 %v4056_v47, %s4302_s26 }
 0xd24   : > { %v4058_v46 = vpop.eup %4057 }
 0xd27   : > { %2174 = vrot.lane.b32.xlu1 %v4058_v46, %s4302_s26  ;;  %v2197_v46 = vld [vmem:[#allocation2 + $0x2d] sm:$0x1] }
 0xd88   : > { %v2161_v6 = vpop.permute.xlu0 %2160 }
 0xd89   : > { %v2184_v21 = vmul.f32 %v4980_v14, %v2161_v6 }
 0xd8c   : > { %v2163_v3 = vpop.permute.xlu0 %2162 }
 0xd8d   : > { %v2165_v8 = vpop.permute.xlu1 %2164  ;;  %v2185_v11 = vmul.f32 %v4984_v35, %v2163_v3 }
 0xd8e   : > { %v2186_v49 = vmul.f32 %v4986_v15, %v2165_v8 }
 0xd8f   : > { %v2208_v40 = vrot.slane %v2185_v11, 7  ;;  %v2199_v11 = vld [vmem:[#allocation2 + $0x3d] sm:$0x1] }
 0xd90   : > { %v2169_v28 = vpop.permute.xlu0 %2168  ;;  %v2210_v51 = vrot.slane %v2186_v49, 6 }
 0xd91   : > { %v2209_v33 = vsel %vm922_vm3, %v2208_v40, %v2184_v21  ;;  %v2167_v39 = vpop.permute.xlu1 %2166  ;;  %v2188_v52 = vmul.f32 %v4991_v17, %v2169_v28 }
 0xd92   : > { %v2187_v57 = vmul.f32 %v4994_v41, %v2167_v39  ;;  %v2211_v9 = vsel %vm925_vm4, %v2210_v51, %v2209_v33 }
 0xd93   : > { %v2214_v1 = vrot.slane %v2188_v52, 4 }
 0xd94   : > { %v2212_v45 = vrot.slane %v2187_v57, 5  ;;  %v2173_v19 = vpop.permute.xlu0 %2172 }
 0xd95   : > { %v2171_v35 = vpop.permute.xlu1 %2170  ;;  %v2190_v15 = vmul.f32 %v4999_v4, %v2173_v19 }
 0xd96   : > { %v2213_v14 = vsel %vm928_vm5, %v2212_v45, %v2211_v9  ;;  %v2189_v42 = vmul.f32 %v5002_v2, %v2171_v35  ;;  %v4255_v2 = vld [vmem:[%s5438_s2 + $0x18] sm:$0xff] }
 0xd97   : > { %v2215_v30 = vsel %vm931_vm6, %v2214_v1, %v2213_v14  ;;  %v2218_v31 = vrot.slane %v2190_v15, 2 }
 0xd98   : > { %v2216_v29 = vrot.slane %v2189_v42, 3 }
 0xd99   : > { %v2175_v7 = vpop.permute.xlu1 %2174 }
 0xd9a   : > { %v2217_v17 = vsel %vm934_vm7, %v2216_v29, %v2215_v30  ;;  %v2191_v41 = vmul.f32 %v5008_v61, %v2175_v7  ;;  %v4256_v61 = vld [vmem:[%s5438_s2 + $0x10] sm:$0xff] }
 0xd9b   : > { %v2219_v50 = vsel %vm937_vm8, %v2218_v31, %v2217_v17 }
 0xd9c   : > { %v2220_v53 = vrot.slane %v2191_v41, 1 }
 0xd9e   : > { %v2221_v55 = vsel %vm940_vm9, %v2220_v53, %v2219_v50 }
 0xd9f   : > { %2222 = vrot.lane.b32.xlu0 %v2221_v55, %s4303_s11 }
 0xe11   : > { %v2223_v4 = vpop.permute.xlu0 %2222 }
 0xe12   : > { %3656 = vmatmul.mubr.msk.f32.vlgmr.msra.gmra.mxu1 %vm432_vm1, %v2223_v4 }
 0xe13   : > { %3670 = vmatpush3.msra.mxu1 %v4255_v2  ;;  %3677 = vmatprep.mubr.msk.f32.mxu1 %vm4301_vm2, %v4300_v12 }
 0xe14   : > { %3671 = vmatprep.subr.mxu1 %v4300_v12 }
 0xe15   : > { %3672 = vmatpush3.msra.mxu1 %v4256_v61 }
 0xe16   : > { %3673 = vmatprep.subr.mxu1 %v4300_v12 }
 0xe17   : > { %3674 = vmatpush3.msra.mxu1 %v4257_v34 }
 0xe18   : > { %3675 = vmatprep.subr.mxu1 %v4300_v12  ;;  %v2195_v12 = vld [vmem:[#allocation2 + $0x1d] sm:$0x1] }
 0xe19   : > { %3676 = vmatpush3.msra.mxu1 %v4258_v60 }
 0xed2   : > { %v2292_v63 = vpop.f32.mrf.mxu1 }
 0xed3   : > { %v2312_v26 = vadd.f32 %v2292_v63, %v2192_v59  ;;  %v2297_v54 = vrot.slane %v2292_v63, 1  ;;  %v2298_v24 = vrot.slane %v2292_v63, 2  ;;  %v2300_v36 = vrot.slane %v2292_v63, 4 }
 0xed4   : > { %v3657_v56 = vpop.f32.mrf.mxu1  ;;  %v2299_v38 = vrot.slane %v2292_v63, 3  ;;  %v2302_v23 = vrot.slane %v2292_v63, 6  ;;  %v2301_v62 = vrot.slane %v2292_v63, 5  ;;  %v2303_v3 = vrot.slane %v2292_v63, 7 }
 0xed5   : > { %4059 = vtanh.f32 %v2312_v26  ;;  %v2313_v20 = vadd.f32 %v2297_v54, %v2193_v43  ;;  %v2314_v22 = vadd.f32 %v2298_v24, %v2194_v32  ;;  %v2316_v25 = vadd.f32 %v2300_v36, %v2196_v0 }
 0xed6   : > { %v2315_v48 = vadd.f32 %v2299_v38, %v2195_v12  ;;  %v2318_v6 = vadd.f32 %v2302_v23, %v2198_v27  ;;  %v2317_v8 = vadd.f32 %v2301_v62, %v2197_v46  ;;  %v2319_v49 = vadd.f32 %v2303_v3, %v2199_v11 }
 0xed7   : > { %4061 = vtanh.f32 %v2313_v20  ;;  %v3481_v57 = vmul.f32 -1.442695, %v2312_v26  ;;  %v3482_v9 = vmul.f32 -1.442695, %v2313_v20  ;;  %v3483_v1 = vmul.f32 -1.442695, %v2314_v22 }
 0xed8   : > { %4063 = vtanh.f32 %v2314_v22  ;;  %v3485_v45 = vmul.f32 -1.442695, %v2316_v25  ;;  %v3484_v19 = vmul.f32 -1.442695, %v2315_v48  ;;  %v3487_v15 = vmul.f32 -1.442695, %v2318_v6 }
 0xed9   : > { %4065 = vtanh.f32 %v2316_v25  ;;  %v3486_v14 = vmul.f32 -1.442695, %v2317_v8  ;;  %v3488_v30 = vmul.f32 -1.442695, %v2319_v49 }
 0xeda   : > { %4067 = vtanh.f32 %v2315_v48 }
 0xedb   : > { %4069 = vtanh.f32 %v2318_v6 }
 0xedc   : > { %4071 = vtanh.f32 %v2317_v8 }
 0xedd   : > { %4073 = vtanh.f32 %v2319_v49 }
 0xede   : > { %4075 = vpow2.f32 %v3481_v57 }
 0xedf   : > { %4077 = vpow2.f32 %v3482_v9 }
 0xee0   : > { %4079 = vpow2.f32 %v3483_v1 }
 0xee1   : > { %4081 = vpow2.f32 %v3485_v45 }
 0xee2   : > { %v4060_v47 = vpop.eup %4059  ;;  %4083 = vpow2.f32 %v3484_v19 }
 0xee3   : > { %2392 = vrot.lane.b32.xlu1 %v4060_v47, %s4302_s26  ;;  %4085 = vpow2.f32 %v3487_v15 }
 0xee4   : > { %v4062_v21 = vpop.eup %4061  ;;  %4087 = vpow2.f32 %v3486_v14 }
 0xee5   : > { %v4064_v40 = vpop.eup %4063 }
 0xee6   : > { %2396 = vrot.lane.b32.xlu0 %v4064_v40, %s4302_s26  ;;  %v4066_v28 = vpop.eup %4065 }
 0xee7   : > { %2394 = vrot.lane.b32.xlu1 %v4062_v21, %s4302_s26  ;;  %v4068_v51 = vpop.eup %4067 }
 0xee8   : > { %v4070_v33 = vpop.eup %4069 }
 0xee9   : > { %v4072_v39 = vpop.eup %4071 }
 0xeea   : > { %2398 = vrot.lane.b32.xlu0 %v4068_v51, %s4302_s26  ;;  %v4074_v52 = vpop.eup %4073 }
 0xeeb   : > { %2400 = vrot.lane.b32.xlu1 %v4066_v28, %s4302_s26  ;;  %v4076_v35 = vpop.eup %4075 }
 0xeec   : > { %v2344_v42 = vadd.f32 1.0, %v4076_v35  ;;  %v4078_v31 = vpop.eup %4077 }
 0xeed   : > { %v4080_v29 = vpop.eup %4079  ;;  %v2345_v7 = vadd.f32 1.0, %v4078_v31 }
 0xeee   : > { %2402 = vrot.lane.b32.xlu0 %v4072_v39, %s4302_s26  ;;  %4089 = vrcp.f32 %v2344_v42  ;;  %v4082_v17 = vpop.eup %4081  ;;  %v2346_v41 = vadd.f32 1.0, %v4080_v29 }
 0xeef   : > { %2404 = vrot.lane.b32.xlu1 %v4070_v33, %s4302_s26  ;;  %4091 = vpow2.f32 %v3488_v30  ;;  %v4084_v50 = vpop.eup %4083  ;;  %v2348_v53 = vadd.f32 1.0, %v4082_v17 }
 0xef0   : > { %4093 = vrcp.f32 %v2345_v7  ;;  %v4086_v55 = vpop.eup %4085  ;;  %v2347_v4 = vadd.f32 1.0, %v4084_v50 }
 0xef1   : > { %4095 = vrcp.f32 %v2346_v41  ;;  %v4088_v2 = vpop.eup %4087  ;;  %v2350_v34 = vadd.f32 1.0, %v4086_v55 }
 0xef2   : > { %2406 = vrot.lane.b32.xlu0 %v4074_v52, %s4302_s26  ;;  %4097 = vrcp.f32 %v2348_v53  ;;  %v2349_v63 = vadd.f32 1.0, %v4088_v2 }
 0xef3   : > { %4099 = vrcp.f32 %v2347_v4 }
 0xef4   : > { %4101 = vrcp.f32 %v2350_v34 }
 0xef5   : > { %4103 = vrcp.f32 %v2349_v63 }
 0xefb   : > { %v5102_v61 = vpop.eup %4089 }
 0xefc   : > { %v4092_v26 = vpop.eup %4091  ;;  %v2376_v49 = vmul.f32 %v5102_v61, %v5014_v13 }
 0xefd   : > { %v2351_v56 = vadd.f32 1.0, %v4092_v26  ;;  %v5106_v54 = vpop.eup %4093 }
 0xefe   : > { %v5108_v43 = vpop.eup %4095  ;;  %v2377_v28 = vmul.f32 %v5106_v54, %v5021_v5 }
 0xeff   : > { %4105 = vrcp.f32 %v2351_v56  ;;  %v5113_v38 = vpop.eup %4097  ;;  %v2378_v51 = vmul.f32 %v5108_v43, %v5023_v10 }
 0xf00   : > { %v5116_v0 = vpop.eup %4099  ;;  %v2380_v13 = vmul.f32 %v5113_v38, %v5031_v16 }
 0xf01   : > { %v5121_v62 = vpop.eup %4101  ;;  %v2379_v9 = vmul.f32 %v5116_v0, %v5033_v44 }
 0xf02   : > { %v5124_v27 = vpop.eup %4103  ;;  %v2382_v35 = vmul.f32 %v5121_v62, %v5042_v58 }
 0xf03   : > { %v2381_v16 = vmul.f32 %v5124_v27, %v5044_v18 }
 0xf0c   : > { %v5130_v3 = vpop.eup %4105 }
 0xf0d   : > { %v2383_v58 = vmul.f32 %v5130_v3, %v5050_v37 }
 0xf55   : > { %v2393_v60 = vpop.permute.xlu1 %2392 }
 0xf56   : > { %v2416_v59 = vmul.f32 %v5102_v61, %v2393_v60 }
 0xf58   : > { %2432 = vrot.lane.b32.xlu1 %v2416_v59, %s4303_s11  ;;  %v2397_v32 = vpop.permute.xlu0 %2396 }
 0xf59   : > { %v2395_v24 = vpop.permute.xlu1 %2394  ;;  %v2418_v20 = vmul.f32 %v5108_v43, %v2397_v32 }
 0xf5a   : > { %v2417_v36 = vmul.f32 %v5106_v54, %v2395_v24 }
 0xf5b   : > { %2436 = vrot.lane.b32.xlu0 %v2418_v20, %s4303_s11 }
 0xf5c   : > { %2434 = vrot.lane.b32.xlu1 %v2417_v36, %s4303_s11  ;;  %v2399_v12 = vpop.permute.xlu0 %2398 }
 0xf5d   : > { %v2401_v22 = vpop.permute.xlu1 %2400  ;;  %v2419_v25 = vmul.f32 %v5116_v0, %v2399_v12 }
 0xf5e   : > { %v2420_v23 = vmul.f32 %v5113_v38, %v2401_v22 }
 0xf5f   : > { %2438 = vrot.lane.b32.xlu0 %v2419_v25, %s4303_s11 }
 0xf60   : > { %2440 = vrot.lane.b32.xlu1 %v2420_v23, %s4303_s11  ;;  %v2403_v47 = vpop.permute.xlu0 %2402 }
 0xf61   : > { %v2405_v48 = vpop.permute.xlu1 %2404  ;;  %v2421_v6 = vmul.f32 %v5124_v27, %v2403_v47 }
 0xf62   : > { %v2422_v46 = vmul.f32 %v5121_v62, %v2405_v48 }
 0xf63   : > { %2442 = vrot.lane.b32.xlu0 %v2421_v6, %s4303_s11 }
 0xf64   : > { %2444 = vrot.lane.b32.xlu1 %v2422_v46, %s4303_s11  ;;  %v2407_v8 = vpop.permute.xlu0 %2406 }
 0xf65   : > { %v2423_v11 = vmul.f32 %v5130_v3, %v2407_v8 }
 0xf67   : > { %2446 = vrot.lane.b32.xlu0 %v2423_v11, %s4303_s11 }
 0xfca   : > { %v2433_v21 = vpop.permute.xlu1 %2432 }
 0xfcb   : > { %v5136_v40 = vadd.f32 %v2433_v21, %v2376_v49  ;;  %v2512_v21 = vld [vmem:[#allocation2 + $0x6] sm:$0x1] }
 0xfcd   : > { %4107 = vtanh.f32 %v5136_v40  ;;  %v2437_v39 = vpop.permute.xlu0 %2436 }
 0xfce   : > { %v2435_v33 = vpop.permute.xlu1 %2434  ;;  %v5145_v57 = vadd.f32 %v2437_v39, %v2378_v51 }
 0xfcf   : > { %v5143_v52 = vadd.f32 %v2435_v33, %v2377_v28 }
 0xfd1   : > { %4109 = vtanh.f32 %v5143_v52  ;;  %v2439_v1 = vpop.permute.xlu0 %2438 }
 0xfd2   : > { %4111 = vtanh.f32 %v5145_v57  ;;  %v2441_v5 = vpop.permute.xlu1 %2440  ;;  %v5155_v10 = vadd.f32 %v2439_v1, %v2379_v9  ;;  %v2514_v9 = vld [vmem:[#allocation2 + $0x16] sm:$0x1] }
 0xfd3   : > { %v5153_v45 = vadd.f32 %v2441_v5, %v2380_v13  ;;  %v2513_v13 = vld [vmem:[#allocation2 + $0xe] sm:$0x1] }
 0xfd5   : > { %4113 = vtanh.f32 %v5153_v45  ;;  %v2443_v44 = vpop.permute.xlu0 %2442 }
 0xfd6   : > { %4115 = vtanh.f32 %v5155_v10  ;;  %v2445_v15 = vpop.permute.xlu1 %2444  ;;  %v5166_v42 = vadd.f32 %v2443_v44, %v2381_v16  ;;  %v2515_v16 = vld [vmem:[#allocation2 + $0x1e] sm:$0x1] }
 0xfd7   : > { %v5164_v14 = vadd.f32 %v2445_v15, %v2382_v35  ;;  %v2516_v35 = vld [vmem:[#allocation2 + $0x26] sm:$0x1] }
 0xfd9   : > { %4117 = vtanh.f32 %v5164_v14  ;;  %v2447_v30 = vpop.permute.xlu0 %2446 }
 0xfda   : > { %v4108_v19 = vpop.eup %4107  ;;  %4119 = vtanh.f32 %v5166_v42  ;;  %v5172_v31 = vadd.f32 %v2447_v30, %v2383_v58 }
 0xfdb   : > { %2480 = vrot.lane.b32.xlu1 %v4108_v19, %s4302_s26 }
 0xfdc   : > { %4121 = vtanh.f32 %v5172_v31 }
 0xfde   : > { %v4110_v29 = vpop.eup %4109 }
 0xfdf   : > { %v4112_v18 = vpop.eup %4111  ;;  %2482 = vrot.lane.b32.xlu1 %v4110_v29, %s4302_s26  ;;  %v2518_v29 = vld [vmem:[#allocation2 + $0x36] sm:$0x1] }
 0xfe0   : > { %2484 = vrot.lane.b32.xlu0 %v4112_v18, %s4302_s26 }
 0xfe2   : > { %v4114_v7 = vpop.eup %4113 }
 0xfe3   : > { %v4116_v17 = vpop.eup %4115  ;;  %2488 = vrot.lane.b32.xlu1 %v4114_v7, %s4302_s26  ;;  %v2517_v7 = vld [vmem:[#allocation2 + $0x2e] sm:$0x1] }
 0xfe4   : > { %2486 = vrot.lane.b32.xlu0 %v4116_v17, %s4302_s26 }
 0xfe6   : > { %v4118_v41 = vpop.eup %4117 }
 0xfe7   : > { %v4120_v50 = vpop.eup %4119  ;;  %2492 = vrot.lane.b32.xlu1 %v4118_v41, %s4302_s26 }
 0xfe8   : > { %2490 = vrot.lane.b32.xlu0 %v4120_v50, %s4302_s26 }
 0xfe9   : > { %v4122_v37 = vpop.eup %4121 }
 0xfec   : > { %2494 = vrot.lane.b32.xlu0 %v4122_v37, %s4302_s26  ;;  %v2519_v37 = vld [vmem:[#allocation2 + $0x3e] sm:$0x1] }
0x104d   : > { %v2481_v53 = vpop.permute.xlu1 %2480 }
0x104e   : > { %v2504_v60 = vmul.f32 %v5102_v61, %v2481_v53 }
0x1051   : > { %v2483_v55 = vpop.permute.xlu1 %2482 }
0x1052   : > { %v2485_v4 = vpop.permute.xlu0 %2484  ;;  %v2505_v2 = vmul.f32 %v5106_v54, %v2483_v55 }
0x1053   : > { %v2506_v34 = vmul.f32 %v5108_v43, %v2485_v4 }
0x1054   : > { %v2528_v63 = vrot.slane %v2505_v2, 7 }
0x1055   : > { %v2489_v59 = vpop.permute.xlu1 %2488  ;;  %v2530_v26 = vrot.slane %v2506_v34, 6 }
0x1056   : > { %v2529_v56 = vsel %vm922_vm3, %v2528_v63, %v2504_v60  ;;  %v2487_v24 = vpop.permute.xlu0 %2486  ;;  %v2508_v32 = vmul.f32 %v5113_v38, %v2489_v59 }
0x1057   : > { %v2507_v36 = vmul.f32 %v5116_v0, %v2487_v24  ;;  %v2531_v20 = vsel %vm925_vm4, %v2530_v26, %v2529_v56 }
0x1058   : > { %v2534_v22 = vrot.slane %v2508_v32, 4 }
0x1059   : > { %v2532_v12 = vrot.slane %v2507_v36, 5  ;;  %v2493_v23 = vpop.permute.xlu1 %2492 }
0x105a   : > { %v2491_v54 = vpop.permute.xlu0 %2490  ;;  %v2510_v43 = vmul.f32 %v5121_v62, %v2493_v23 }
0x105b   : > { %v2533_v61 = vsel %vm928_vm5, %v2532_v12, %v2531_v20  ;;  %v2509_v25 = vmul.f32 %v5124_v27, %v2491_v54 }
0x105c   : > { %v2535_v48 = vsel %vm931_vm6, %v2534_v22, %v2533_v61  ;;  %v2538_v47 = vrot.slane %v2510_v43, 2 }
0x105d   : > { %v2536_v46 = vrot.slane %v2509_v25, 3 }
0x105e   : > { %v2495_v6 = vpop.permute.xlu0 %2494 }
0x105f   : > { %v2537_v38 = vsel %vm934_vm7, %v2536_v46, %v2535_v48  ;;  %v2511_v0 = vmul.f32 %v5130_v3, %v2495_v6 }
0x1060   : > { %v2539_v8 = vsel %vm937_vm8, %v2538_v47, %v2537_v38 }
0x1061   : > { %v2540_v11 = vrot.slane %v2511_v0, 1 }
0x1063   : > { %v2541_v49 = vsel %vm940_vm9, %v2540_v11, %v2539_v8 }
0x1064   : > { %2542 = vrot.lane.b32.xlu1 %v2541_v49, %s4303_s11 }
0x10d6   : > { %v2543_v62 = vpop.permute.xlu1 %2542 }
0x10d7   : > { %3667 = vmatmul.mubr.msk.f32.vlgmr.msra.gmra.mxu0 %vm432_vm1, %v2543_v62 }
0x1197   : > { %v2612_v27 = vpop.f32.mrf.mxu0 }
0x1198   : > { %v2632_v28 = vadd.f32 %v2612_v27, %v2512_v21  ;;  %v2617_v33 = vrot.slane %v2612_v27, 1  ;;  %v2618_v39 = vrot.slane %v2612_v27, 2  ;;  %v2620_v3 = vrot.slane %v2612_v27, 4 }
0x1199   : > { %v3668_v51 = vpop.f32.mrf.mxu0  ;;  %v2619_v1 = vrot.slane %v2612_v27, 3  ;;  %v2622_v15 = vrot.slane %v2612_v27, 6  ;;  %v2621_v58 = vrot.slane %v2612_v27, 5  ;;  %v2623_v41 = vrot.slane %v2612_v27, 7 }
0x119a   : > { %4123 = vtanh.f32 %v2632_v28  ;;  %v2633_v5 = vadd.f32 %v2617_v33, %v2513_v13  ;;  %v2634_v19 = vadd.f32 %v2618_v39, %v2514_v9  ;;  %v2636_v44 = vadd.f32 %v2620_v3, %v2516_v35 }
0x119b   : > { %v2635_v30 = vadd.f32 %v2619_v1, %v2515_v16  ;;  %v2638_v17 = vadd.f32 %v2622_v15, %v2518_v29  ;;  %v2637_v50 = vadd.f32 %v2621_v58, %v2517_v7  ;;  %v2639_v53 = vadd.f32 %v2623_v41, %v2519_v37 }
0x119c   : > { %4125 = vtanh.f32 %v2633_v5  ;;  %v3490_v26 = vmul.f32 -1.442695, %v2632_v28  ;;  %v3491_v56 = vmul.f32 -1.442695, %v2633_v5  ;;  %v3492_v24 = vmul.f32 -1.442695, %v2634_v19 }
0x119d   : > { %4127 = vtanh.f32 %v2634_v19  ;;  %v3494_v32 = vmul.f32 -1.442695, %v2636_v44  ;;  %v3493_v36 = vmul.f32 -1.442695, %v2635_v30  ;;  %v3496_v22 = vmul.f32 -1.442695, %v2638_v17 }
0x119e   : > { %4129 = vtanh.f32 %v2636_v44  ;;  %v3495_v12 = vmul.f32 -1.442695, %v2637_v50  ;;  %v3497_v54 = vmul.f32 -1.442695, %v2639_v53 }
0x119f   : > { %4131 = vtanh.f32 %v2635_v30 }
0x11a0   : > { %4133 = vtanh.f32 %v2638_v17 }
0x11a1   : > { %4135 = vtanh.f32 %v2637_v50 }
0x11a2   : > { %4137 = vtanh.f32 %v2639_v53 }
0x11a3   : > { %4139 = vpow2.f32 %v3490_v26 }
0x11a4   : > { %4141 = vpow2.f32 %v3491_v56 }
0x11a5   : > { %4143 = vpow2.f32 %v3492_v24 }
0x11a6   : > { %4145 = vpow2.f32 %v3494_v32 }
0x11a7   : > { %v4124_v18 = vpop.eup %4123  ;;  %4147 = vpow2.f32 %v3493_v36 }
0x11a8   : > { %2712 = vrot.lane.b32.xlu0 %v4124_v18, %s4302_s26  ;;  %4149 = vpow2.f32 %v3496_v22 }
0x11a9   : > { %v4126_v55 = vpop.eup %4125  ;;  %4151 = vpow2.f32 %v3495_v12 }
0x11aa   : > { %v4128_v4 = vpop.eup %4127 }
0x11ab   : > { %2716 = vrot.lane.b32.xlu1 %v4128_v4, %s4302_s26  ;;  %v4130_v2 = vpop.eup %4129 }
0x11ac   : > { %2714 = vrot.lane.b32.xlu0 %v4126_v55, %s4302_s26  ;;  %v4132_v34 = vpop.eup %4131 }
0x11ad   : > { %v4134_v60 = vpop.eup %4133 }
0x11ae   : > { %v4136_v63 = vpop.eup %4135 }
0x11af   : > { %2718 = vrot.lane.b32.xlu1 %v4132_v34, %s4302_s26  ;;  %v4138_v59 = vpop.eup %4137 }
0x11b0   : > { %2720 = vrot.lane.b32.xlu0 %v4130_v2, %s4302_s26  ;;  %v4140_v20 = vpop.eup %4139 }
0x11b1   : > { %v2664_v23 = vadd.f32 1.0, %v4140_v20  ;;  %v4142_v43 = vpop.eup %4141 }
0x11b2   : > { %v4144_v61 = vpop.eup %4143  ;;  %v2665_v25 = vadd.f32 1.0, %v4142_v43 }
0x11b3   : > { %2722 = vrot.lane.b32.xlu1 %v4136_v63, %s4302_s26  ;;  %4153 = vrcp.f32 %v2664_v23  ;;  %v4146_v48 = vpop.eup %4145  ;;  %v2666_v47 = vadd.f32 1.0, %v4144_v61 }
0x11b4   : > { %2724 = vrot.lane.b32.xlu0 %v4134_v60, %s4302_s26  ;;  %4155 = vpow2.f32 %v3497_v54  ;;  %v4148_v46 = vpop.eup %4147  ;;  %v2668_v6 = vadd.f32 1.0, %v4146_v48 }
0x11b5   : > { %4157 = vrcp.f32 %v2665_v25  ;;  %v4150_v38 = vpop.eup %4149  ;;  %v2667_v0 = vadd.f32 1.0, %v4148_v46 }
0x11b6   : > { %4159 = vrcp.f32 %v2666_v47  ;;  %v4152_v8 = vpop.eup %4151  ;;  %v2670_v49 = vadd.f32 1.0, %v4150_v38 }
0x11b7   : > { %2726 = vrot.lane.b32.xlu1 %v4138_v59, %s4302_s26  ;;  %4161 = vrcp.f32 %v2668_v6  ;;  %v2669_v27 = vadd.f32 1.0, %v4152_v8 }
0x11b8   : > { %4163 = vrcp.f32 %v2667_v0 }
0x11b9   : > { %4165 = vrcp.f32 %v2670_v49 }
0x11ba   : > { %4167 = vrcp.f32 %v2669_v27 }
0x11c0   : > { %v5207_v11 = vpop.eup %4153 }
0x11c1   : > { %v4156_v28 = vpop.eup %4155  ;;  %v2696_v53 = vmul.f32 %v5207_v11, %v5136_v40 }
0x11c2   : > { %v2671_v51 = vadd.f32 1.0, %v4156_v28  ;;  %v5211_v33 = vpop.eup %4157 }
0x11c3   : > { %v5213_v13 = vpop.eup %4159  ;;  %v2697_v2 = vmul.f32 %v5211_v33, %v5143_v52 }
0x11c4   : > { %4169 = vrcp.f32 %v2671_v51  ;;  %v5218_v1 = vpop.eup %4161  ;;  %v2698_v34 = vmul.f32 %v5213_v13, %v5145_v57 }
0x11c5   : > { %v5221_v35 = vpop.eup %4163  ;;  %v2700_v40 = vmul.f32 %v5218_v1, %v5153_v45 }
0x11c6   : > { %v5226_v58 = vpop.eup %4165  ;;  %v2699_v56 = vmul.f32 %v5221_v35, %v5155_v10 }
0x11c7   : > { %v5229_v29 = vpop.eup %4167  ;;  %v2702_v20 = vmul.f32 %v5226_v58, %v5164_v14 }
0x11c8   : > { %v2701_v45 = vmul.f32 %v5229_v29, %v5166_v42 }
0x11d1   : > { %v5235_v41 = vpop.eup %4169 }
0x11d2   : > { %v2703_v14 = vmul.f32 %v5235_v41, %v5172_v31 }
0x121a   : > { %v2713_v62 = vpop.permute.xlu0 %2712 }
0x121b   : > { %v2736_v21 = vmul.f32 %v5207_v11, %v2713_v62 }
0x121d   : > { %2752 = vrot.lane.b32.xlu0 %v2736_v21, %s4303_s11  ;;  %v2717_v9 = vpop.permute.xlu1 %2716 }
0x121e   : > { %v2715_v39 = vpop.permute.xlu0 %2714  ;;  %v2738_v5 = vmul.f32 %v5213_v13, %v2717_v9 }
0x121f   : > { %v2737_v3 = vmul.f32 %v5211_v33, %v2715_v39 }
0x1220   : > { %2756 = vrot.lane.b32.xlu1 %v2738_v5, %s4303_s11 }
0x1221   : > { %2754 = vrot.lane.b32.xlu0 %v2737_v3, %s4303_s11  ;;  %v2719_v16 = vpop.permute.xlu1 %2718 }
0x1222   : > { %v2721_v19 = vpop.permute.xlu0 %2720  ;;  %v2739_v44 = vmul.f32 %v5221_v35, %v2719_v16 }
0x1223   : > { %v2740_v15 = vmul.f32 %v5218_v1, %v2721_v19 }
0x1224   : > { %2758 = vrot.lane.b32.xlu1 %v2739_v44, %s4303_s11 }
0x1225   : > { %2760 = vrot.lane.b32.xlu0 %v2740_v15, %s4303_s11  ;;  %v2723_v18 = vpop.permute.xlu1 %2722 }
0x1226   : > { %v2725_v30 = vpop.permute.xlu0 %2724  ;;  %v2741_v17 = vmul.f32 %v5229_v29, %v2723_v18 }
0x1227   : > { %v2742_v7 = vmul.f32 %v5226_v58, %v2725_v30 }
0x1228   : > { %2762 = vrot.lane.b32.xlu1 %v2741_v17, %s4303_s11 }
0x1229   : > { %2764 = vrot.lane.b32.xlu0 %v2742_v7, %s4303_s11  ;;  %v2727_v50 = vpop.permute.xlu1 %2726 }
0x122a   : > { %v2743_v37 = vmul.f32 %v5235_v41, %v2727_v50 }
0x122c   : > { %2766 = vrot.lane.b32.xlu1 %v2743_v37, %s4303_s11 }
0x128f   : > { %v2753_v55 = vpop.permute.xlu0 %2752 }
0x1290   : > { %v5241_v4 = vadd.f32 %v2753_v55, %v2696_v53  ;;  %v2832_v55 = vld [vmem:[#allocation2 + $0x7] sm:$0x1] }
0x1292   : > { %4171 = vtanh.f32 %v5241_v4  ;;  %v2757_v63 = vpop.permute.xlu1 %2756 }
0x1293   : > { %v2755_v60 = vpop.permute.xlu0 %2754  ;;  %v5250_v26 = vadd.f32 %v2757_v63, %v2698_v34 }
0x1294   : > { %v5248_v59 = vadd.f32 %v2755_v60, %v2697_v2 }
0x1296   : > { %4173 = vtanh.f32 %v5248_v59  ;;  %v2759_v24 = vpop.permute.xlu1 %2758 }
0x1297   : > { %4175 = vtanh.f32 %v5250_v26  ;;  %v2761_v52 = vpop.permute.xlu0 %2760  ;;  %v5260_v57 = vadd.f32 %v2759_v24, %v2699_v56  ;;  %v2834_v56 = vld [vmem:[#allocation2 + $0x17] sm:$0x1] }
0x1298   : > { %v5258_v32 = vadd.f32 %v2761_v52, %v2700_v40  ;;  %v2833_v40 = vld [vmem:[#allocation2 + $0xf] sm:$0x1] }
0x129a   : > { %4177 = vtanh.f32 %v5258_v32  ;;  %v2763_v10 = vpop.permute.xlu1 %2762 }
0x129b   : > { %4179 = vtanh.f32 %v5260_v57  ;;  %v2765_v22 = vpop.permute.xlu0 %2764  ;;  %v5271_v23 = vadd.f32 %v2763_v10, %v2701_v45  ;;  %v2835_v45 = vld [vmem:[#allocation2 + $0x1f] sm:$0x1] }
0x129c   : > { %v5269_v12 = vadd.f32 %v2765_v22, %v2702_v20  ;;  %v2836_v20 = vld [vmem:[#allocation2 + $0x27] sm:$0x1] }
0x129e   : > { %4181 = vtanh.f32 %v5269_v12  ;;  %v2767_v54 = vpop.permute.xlu1 %2766 }
0x129f   : > { %v4172_v36 = vpop.eup %4171  ;;  %4183 = vtanh.f32 %v5271_v23  ;;  %v5277_v43 = vadd.f32 %v2767_v54, %v2703_v14 }
0x12a0   : > { %2800 = vrot.lane.b32.xlu0 %v4172_v36, %s4302_s26 }
0x12a1   : > { %4185 = vtanh.f32 %v5277_v43 }
0x12a3   : > { %v4174_v61 = vpop.eup %4173 }
0x12a4   : > { %v4176_v42 = vpop.eup %4175  ;;  %2802 = vrot.lane.b32.xlu0 %v4174_v61, %s4302_s26  ;;  %v2838_v61 = vld [vmem:[#allocation2 + $0x37] sm:$0x1] }
0x12a5   : > { %2804 = vrot.lane.b32.xlu1 %v4176_v42, %s4302_s26 }
0x12a7   : > { %v4178_v25 = vpop.eup %4177 }
0x12a8   : > { %v4180_v48 = vpop.eup %4179  ;;  %2808 = vrot.lane.b32.xlu0 %v4178_v25, %s4302_s26  ;;  %v2837_v25 = vld [vmem:[#allocation2 + $0x2f] sm:$0x1] }
0x12a9   : > { %2806 = vrot.lane.b32.xlu1 %v4180_v48, %s4302_s26 }
0x12ab   : > { %v4182_v47 = vpop.eup %4181 }
0x12ac   : > { %v4184_v46 = vpop.eup %4183  ;;  %2812 = vrot.lane.b32.xlu0 %v4182_v47, %s4302_s26 }
0x12ad   : > { %2810 = vrot.lane.b32.xlu1 %v4184_v46, %s4302_s26 }
0x12ae   : > { %v4186_v31 = vpop.eup %4185 }
0x12b1   : > { %2814 = vrot.lane.b32.xlu1 %v4186_v31, %s4302_s26  ;;  %v2839_v31 = vld [vmem:[#allocation2 + $0x3f] sm:$0x1] }
0x1312   : > { %v2801_v6 = vpop.permute.xlu0 %2800 }
0x1313   : > { %v2824_v62 = vmul.f32 %v5207_v11, %v2801_v6 }
0x1316   : > { %v2803_v38 = vpop.permute.xlu0 %2802 }
0x1317   : > { %v2805_v0 = vpop.permute.xlu1 %2804  ;;  %v2825_v8 = vmul.f32 %v5211_v33, %v2803_v38 }
0x1318   : > { %v2826_v49 = vmul.f32 %v5213_v13, %v2805_v0 }
0x1319   : > { %v2848_v27 = vrot.slane %v2825_v8, 7 }
0x131a   : > { %v2809_v21 = vpop.permute.xlu0 %2808  ;;  %v2850_v28 = vrot.slane %v2826_v49, 6 }
0x131b   : > { %v2849_v51 = vsel %vm922_vm3, %v2848_v27, %v2824_v62  ;;  %v2807_v39 = vpop.permute.xlu1 %2806  ;;  %v2828_v9 = vmul.f32 %v5218_v1, %v2809_v21 }
0x131c   : > { %v2827_v3 = vmul.f32 %v5221_v35, %v2807_v39  ;;  %v2851_v5 = vsel %vm925_vm4, %v2850_v28, %v2849_v51 }
0x131d   : > { %v2854_v19 = vrot.slane %v2828_v9, 4 }
0x131e   : > { %v2852_v16 = vrot.slane %v2827_v3, 5  ;;  %v2813_v15 = vpop.permute.xlu0 %2812 }
0x131f   : > { %v2811_v33 = vpop.permute.xlu1 %2810  ;;  %v2830_v13 = vmul.f32 %v5226_v58, %v2813_v15 }
0x1320   : > { %v2853_v11 = vsel %vm928_vm5, %v2852_v16, %v2851_v5  ;;  %v2829_v44 = vmul.f32 %v5229_v29, %v2811_v33 }
0x1321   : > { %v2855_v30 = vsel %vm931_vm6, %v2854_v19, %v2853_v11  ;;  %v2858_v18 = vrot.slane %v2830_v13, 2 }
0x1322   : > { %v2856_v7 = vrot.slane %v2829_v44, 3 }
0x1323   : > { %v2815_v17 = vpop.permute.xlu1 %2814 }
0x1324   : > { %v2857_v1 = vsel %vm934_vm7, %v2856_v7, %v2855_v30  ;;  %v2831_v35 = vmul.f32 %v5235_v41, %v2815_v17 }
0x1325   : > { %v2859_v50 = vsel %vm937_vm8, %v2858_v18, %v2857_v1 }
0x1326   : > { %v2860_v37 = vrot.slane %v2831_v35, 1 }
0x1328   : > { %v2861_v53 = vsel %vm940_vm9, %v2860_v37, %v2859_v50 }
0x1329   : > { %2862 = vrot.lane.b32.xlu0 %v2861_v53, %s4303_s11 }
0x139b   : > { %v2863_v58 = vpop.permute.xlu0 %2862 }
0x139c   : > { %3678 = vmatmul.mubr.msk.f32.vlgmr.msra.gmra.mxu1 %vm432_vm1, %v2863_v58 }
0x145c   : > { %v2932_v29 = vpop.f32.mrf.mxu1 }
0x145d   : > { %v2952_v2 = vadd.f32 %v2932_v29, %v2832_v55  ;;  %v2937_v60 = vrot.slane %v2932_v29, 1  ;;  %v2938_v63 = vrot.slane %v2932_v29, 2  ;;  %v2940_v41 = vrot.slane %v2932_v29, 4 }
0x145e   : > { %v3679_v34 = vpop.f32.mrf.mxu1  ;;  %v2939_v24 = vrot.slane %v2932_v29, 3  ;;  %v2942_v22 = vrot.slane %v2932_v29, 6  ;;  %v2941_v14 = vrot.slane %v2932_v29, 5  ;;  %v2943_v47 = vrot.slane %v2932_v29, 7 }
0x145f   : > { %4187 = vtanh.f32 %v2952_v2  ;;  %v2953_v52 = vadd.f32 %v2937_v60, %v2833_v40  ;;  %v2954_v36 = vadd.f32 %v2938_v63, %v2834_v56  ;;  %v2956_v10 = vadd.f32 %v2940_v41, %v2836_v20 }
0x1460   : > { %v2955_v54 = vadd.f32 %v2939_v24, %v2835_v45  ;;  %v2958_v48 = vadd.f32 %v2942_v22, %v2838_v61  ;;  %v2957_v46 = vadd.f32 %v2941_v14, %v2837_v25  ;;  %v2959_v6 = vadd.f32 %v2943_v47, %v2839_v31 }
0x1461   : > { %4189 = vtanh.f32 %v2953_v52  ;;  %v3499_v28 = vmul.f32 -1.442695, %v2952_v2  ;;  %v3500_v51 = vmul.f32 -1.442695, %v2953_v52  ;;  %v3501_v39 = vmul.f32 -1.442695, %v2954_v36 }
0x1462   : > { %4191 = vtanh.f32 %v2954_v36  ;;  %v3503_v9 = vmul.f32 -1.442695, %v2956_v10  ;;  %v3502_v3 = vmul.f32 -1.442695, %v2955_v54  ;;  %v3505_v19 = vmul.f32 -1.442695, %v2958_v48 }
0x1463   : > { %4193 = vtanh.f32 %v2956_v10  ;;  %v3504_v16 = vmul.f32 -1.442695, %v2957_v46  ;;  %v3506_v33 = vmul.f32 -1.442695, %v2959_v6 }
0x1464   : > { %4195 = vtanh.f32 %v2955_v54 }
0x1465   : > { %4197 = vtanh.f32 %v2958_v48 }
0x1466   : > { %4199 = vtanh.f32 %v2957_v46 }
0x1467   : > { %4201 = vtanh.f32 %v2959_v6 }
0x1468   : > { %4203 = vpow2.f32 %v3499_v28 }
0x1469   : > { %4205 = vpow2.f32 %v3500_v51 }
0x146a   : > { %4207 = vpow2.f32 %v3501_v39 }
0x146b   : > { %4209 = vpow2.f32 %v3503_v9 }
0x146c   : > { %v4188_v42 = vpop.eup %4187  ;;  %4211 = vpow2.f32 %v3502_v3 }
0x146d   : > { %3032 = vrot.lane.b32.xlu1 %v4188_v42, %s4302_s26  ;;  %4213 = vpow2.f32 %v3505_v19 }
0x146e   : > { %v4190_v38 = vpop.eup %4189  ;;  %4215 = vpow2.f32 %v3504_v16 }
0x146f   : > { %v4192_v0 = vpop.eup %4191 }
0x1470   : > { %3036 = vrot.lane.b32.xlu0 %v4192_v0, %s4302_s26  ;;  %v4194_v8 = vpop.eup %4193 }
0x1471   : > { %3034 = vrot.lane.b32.xlu1 %v4190_v38, %s4302_s26  ;;  %v4196_v49 = vpop.eup %4195 }
0x1472   : > { %v4198_v62 = vpop.eup %4197 }
0x1473   : > { %v4200_v27 = vpop.eup %4199 }
0x1474   : > { %3038 = vrot.lane.b32.xlu0 %v4196_v49, %s4302_s26  ;;  %v4202_v21 = vpop.eup %4201 }
0x1475   : > { %3040 = vrot.lane.b32.xlu1 %v4194_v8, %s4302_s26  ;;  %v4204_v5 = vpop.eup %4203 }
0x1476   : > { %v2984_v15 = vadd.f32 1.0, %v4204_v5  ;;  %v4206_v13 = vpop.eup %4205 }
0x1477   : > { %v4208_v11 = vpop.eup %4207  ;;  %v2985_v44 = vadd.f32 1.0, %v4206_v13 }
0x1478   : > { %3042 = vrot.lane.b32.xlu0 %v4200_v27, %s4302_s26  ;;  %4217 = vrcp.f32 %v2984_v15  ;;  %v4210_v30 = vpop.eup %4209  ;;  %v2986_v18 = vadd.f32 1.0, %v4208_v11 }
0x1479   : > { %3044 = vrot.lane.b32.xlu1 %v4198_v62, %s4302_s26  ;;  %4219 = vpow2.f32 %v3506_v33  ;;  %v4212_v7 = vpop.eup %4211  ;;  %v2988_v17 = vadd.f32 1.0, %v4210_v30 }
0x147a   : > { %4221 = vrcp.f32 %v2985_v44  ;;  %v4214_v1 = vpop.eup %4213  ;;  %v2987_v35 = vadd.f32 1.0, %v4212_v7 }
0x147b   : > { %4223 = vrcp.f32 %v2986_v18  ;;  %v4216_v50 = vpop.eup %4215  ;;  %v2990_v53 = vadd.f32 1.0, %v4214_v1 }
0x147c   : > { %3046 = vrot.lane.b32.xlu0 %v4202_v21, %s4302_s26  ;;  %4225 = vrcp.f32 %v2988_v17  ;;  %v2989_v29 = vadd.f32 1.0, %v4216_v50 }
0x147d   : > { %4227 = vrcp.f32 %v2987_v35 }
0x147e   : > { %4229 = vrcp.f32 %v2990_v53 }
0x147f   : > { %4231 = vrcp.f32 %v2989_v29 }
0x1485   : > { %v5312_v37 = vpop.eup %4217 }
0x1486   : > { %v4220_v2 = vpop.eup %4219  ;;  %v3016_v6 = vmul.f32 %v5312_v37, %v5241_v4 }
0x1487   : > { %v2991_v34 = vadd.f32 1.0, %v4220_v2  ;;  %v5316_v60 = vpop.eup %4221 }
0x1488   : > { %v5318_v40 = vpop.eup %4223  ;;  %v3017_v8 = vmul.f32 %v5316_v60, %v5248_v59 }
0x1489   : > { %4233 = vrcp.f32 %v2991_v34  ;;  %v5323_v24 = vpop.eup %4225  ;;  %v3018_v49 = vmul.f32 %v5318_v40, %v5250_v26 }
0x148a   : > { %v5326_v20 = vpop.eup %4227  ;;  %v3020_v51 = vmul.f32 %v5323_v24, %v5258_v32 }
0x148b   : > { %v5331_v14 = vpop.eup %4229  ;;  %v3019_v4 = vmul.f32 %v5326_v20, %v5260_v57 }
0x148c   : > { %v5334_v61 = vpop.eup %4231  ;;  %v3022_v26 = vmul.f32 %v5331_v14, %v5269_v12 }
0x148d   : > { %v3021_v19 = vmul.f32 %v5334_v61, %v5271_v23 }
0x1496   : > { %v5340_v47 = vpop.eup %4233 }
0x1497   : > { %v3023_v13 = vmul.f32 %v5340_v47, %v5277_v43 }
0x14df   : > { %v3033_v58 = vpop.permute.xlu1 %3032 }
0x14e0   : > { %v3056_v55 = vmul.f32 %v5312_v37, %v3033_v58 }
0x14e2   : > { %3072 = vrot.lane.b32.xlu1 %v3056_v55, %s4303_s11  ;;  %v3037_v56 = vpop.permute.xlu0 %3036 }
0x14e3   : > { %v3035_v63 = vpop.permute.xlu1 %3034  ;;  %v3058_v52 = vmul.f32 %v5318_v40, %v3037_v56 }
0x14e4   : > { %v3057_v41 = vmul.f32 %v5316_v60, %v3035_v63 }
0x14e5   : > { %3076 = vrot.lane.b32.xlu0 %v3058_v52, %s4303_s11 }
0x14e6   : > { %3074 = vrot.lane.b32.xlu1 %v3057_v41, %s4303_s11  ;;  %v3039_v45 = vpop.permute.xlu0 %3038 }
0x14e7   : > { %v3041_v36 = vpop.permute.xlu1 %3040  ;;  %v3059_v10 = vmul.f32 %v5326_v20, %v3039_v45 }
0x14e8   : > { %v3060_v22 = vmul.f32 %v5323_v24, %v3041_v36 }
0x14e9   : > { %3078 = vrot.lane.b32.xlu0 %v3059_v10, %s4303_s11 }
0x14ea   : > { %3080 = vrot.lane.b32.xlu1 %v3060_v22, %s4303_s11  ;;  %v3043_v42 = vpop.permute.xlu0 %3042 }
0x14eb   : > { %v3045_v54 = vpop.permute.xlu1 %3044  ;;  %v3061_v48 = vmul.f32 %v5334_v61, %v3043_v42 }
0x14ec   : > { %v3062_v25 = vmul.f32 %v5331_v14, %v3045_v54 }
0x14ed   : > { %3082 = vrot.lane.b32.xlu0 %v3061_v48, %s4303_s11 }
0x14ee   : > { %3084 = vrot.lane.b32.xlu1 %v3062_v25, %s4303_s11  ;;  %v3047_v46 = vpop.permute.xlu0 %3046 }
0x14ef   : > { %v3063_v31 = vmul.f32 %v5340_v47, %v3047_v46 }
0x14f1   : > { %3086 = vrot.lane.b32.xlu0 %v3063_v31, %s4303_s11 }
0x1554   : > { %v3073_v38 = vpop.permute.xlu1 %3072 }
0x1555   : > { %v3096_v0 = vadd.f32 %v3073_v38, %v3016_v6 }
0x1557   : > { %4235 = vtanh.f32 %v3096_v0  ;;  %v3077_v27 = vpop.permute.xlu0 %3076 }
0x1558   : > { %v3075_v62 = vpop.permute.xlu1 %3074  ;;  %v3098_v28 = vadd.f32 %v3077_v27, %v3018_v49 }
0x1559   : > { %v3097_v21 = vadd.f32 %v3075_v62, %v3017_v8 }
0x155a   : > { %v3188_v18 = vrot.slane %v3098_v28, 6 }
0x155b   : > { %4237 = vtanh.f32 %v3097_v21  ;;  %v3079_v9 = vpop.permute.xlu0 %3078  ;;  %v3186_v57 = vrot.slane %v3097_v21, 7 }
0x155c   : > { %4239 = vtanh.f32 %v3098_v28  ;;  %v3081_v39 = vpop.permute.xlu1 %3080  ;;  %v3099_v5 = vadd.f32 %v3079_v9, %v3019_v4 }
0x155d   : > { %v3100_v3 = vadd.f32 %v3081_v39, %v3020_v51  ;;  %v3187_v12 = vsel %vm922_vm3, %v3186_v57, %v3096_v0 }
0x155e   : > { %v3190_v7 = vrot.slane %v3099_v5, 5  ;;  %v3189_v17 = vsel %vm925_vm4, %v3188_v18, %v3187_v12 }
0x155f   : > { %4241 = vtanh.f32 %v3100_v3  ;;  %v3083_v32 = vpop.permute.xlu0 %3082  ;;  %v3192_v35 = vrot.slane %v3100_v3, 4 }
0x1560   : > { %4243 = vtanh.f32 %v3099_v5  ;;  %v3085_v16 = vpop.permute.xlu1 %3084  ;;  %v3101_v33 = vadd.f32 %v3083_v32, %v3021_v19  ;;  %v3191_v43 = vsel %vm928_vm5, %v3190_v7, %v3189_v17 }
0x1561   : > { %v3102_v15 = vadd.f32 %v3085_v16, %v3022_v26  ;;  %v3193_v29 = vsel %vm931_vm6, %v3192_v35, %v3191_v43 }
0x1562   : > { %v3194_v53 = vrot.slane %v3101_v33, 3 }
0x1563   : > { %4245 = vtanh.f32 %v3102_v15  ;;  %v3087_v11 = vpop.permute.xlu0 %3086  ;;  %v3196_v2 = vrot.slane %v3102_v15, 2 }
0x1564   : > { %v4236_v59 = vpop.eup %4235  ;;  %4247 = vtanh.f32 %v3101_v33  ;;  %v3103_v44 = vadd.f32 %v3087_v11, %v3023_v13  ;;  %v3195_v34 = vsel %vm934_vm7, %v3194_v53, %v3193_v29 }
0x1565   : > { %3120 = vrot.lane.b32.xlu1 %v4236_v59, %s4302_s26  ;;  %v3197_v41 = vsel %vm937_vm8, %v3196_v2, %v3195_v34 }
0x1566   : > { %4249 = vtanh.f32 %v3103_v44  ;;  %v3198_v56 = vrot.slane %v3103_v44, 1 }
0x1568   : > { %v4238_v30 = vpop.eup %4237  ;;  %v3199_v52 = vsel %vm940_vm9, %v3198_v56, %v3197_v41 }
0x1569   : > { %v4240_v23 = vpop.eup %4239  ;;  %3122 = vrot.lane.b32.xlu1 %v4238_v30, %s4302_s26 }
0x156a   : > { %3124 = vrot.lane.b32.xlu0 %v4240_v23, %s4302_s26 }
0x156c   : > { %v4242_v1 = vpop.eup %4241 }
0x156d   : > { %v4244_v50 = vpop.eup %4243  ;;  %3128 = vrot.lane.b32.xlu1 %v4242_v1, %s4302_s26 }
0x156e   : > { %3126 = vrot.lane.b32.xlu0 %v4244_v50, %s4302_s26 }
0x1570   : > { %v4246_v58 = vpop.eup %4245 }
0x1571   : > { %v4248_v55 = vpop.eup %4247  ;;  %3132 = vrot.lane.b32.xlu1 %v4246_v58, %s4302_s26 }
0x1572   : > { %3130 = vrot.lane.b32.xlu0 %v4248_v55, %s4302_s26 }
0x1573   : > { %v4250_v63 = vpop.eup %4249 }
0x1576   : > { %3134 = vrot.lane.b32.xlu0 %v4250_v63, %s4302_s26 }
0x157a   : > { %3200 = vrot.lane.b32.xlu0 %v3199_v52, %s4304_s14 }
0x15d7   : > { %v3121_v36 = vpop.permute.xlu1 %3120 }
0x15d8   : > { %v3144_v42 = vmul.f32 %v5312_v37, %v3121_v36 }
0x15db   : > { %v3123_v45 = vpop.permute.xlu1 %3122 }
0x15dc   : > { %v3125_v22 = vpop.permute.xlu0 %3124  ;;  %v3145_v10 = vmul.f32 %v5316_v60, %v3123_v45 }
0x15dd   : > { %v3146_v54 = vmul.f32 %v5318_v40, %v3125_v22 }
0x15de   : > { %v3160_v25 = vrot.slane %v3145_v10, 7 }
0x15df   : > { %v3129_v48 = vpop.permute.xlu1 %3128  ;;  %v3162_v46 = vrot.slane %v3146_v54, 6 }
0x15e0   : > { %v3161_v31 = vsel %vm922_vm3, %v3160_v25, %v3144_v42  ;;  %v3127_v6 = vpop.permute.xlu0 %3126  ;;  %v3148_v38 = vmul.f32 %v5323_v24, %v3129_v48 }
0x15e1   : > { %v3147_v0 = vmul.f32 %v5326_v20, %v3127_v6  ;;  %v3163_v8 = vsel %vm925_vm4, %v3162_v46, %v3161_v31 }
0x15e2   : > { %v3166_v49 = vrot.slane %v3148_v38, 4 }
0x15e3   : > { %v3164_v62 = vrot.slane %v3147_v0, 5  ;;  %v3133_v27 = vpop.permute.xlu1 %3132 }
0x15e4   : > { %v3131_v60 = vpop.permute.xlu0 %3130  ;;  %v3150_v40 = vmul.f32 %v5331_v14, %v3133_v27 }
0x15e5   : > { %v3165_v37 = vsel %vm928_vm5, %v3164_v62, %v3163_v8  ;;  %v3149_v21 = vmul.f32 %v5334_v61, %v3131_v60 }
0x15e6   : > { %v3167_v28 = vsel %vm931_vm6, %v3166_v49, %v3165_v37  ;;  %v3170_v51 = vrot.slane %v3150_v40, 2 }
0x15e7   : > { %v3168_v4 = vrot.slane %v3149_v21, 3 }
0x15e8   : > { %v3135_v39 = vpop.permute.xlu0 %3134 }
0x15e9   : > { %v3169_v24 = vsel %vm934_vm7, %v3168_v4, %v3167_v28  ;;  %v3151_v20 = vmul.f32 %v5340_v47, %v3135_v39 }
0x15ea   : > { %v3171_v9 = vsel %vm937_vm8, %v3170_v51, %v3169_v24 }
0x15eb   : > { %v3172_v3 = vrot.slane %v3151_v20, 1 }
0x15ec   : > { %v3201_v5 = vpop.permute.xlu0 %3200 }
0x15ed   : > { %3203 = vst.msk [vmem:[#allocation4] sm:$0xff] %vm432_vm1, %v3201_v5  ;;  %v3173_v14 = vsel %vm940_vm9, %v3172_v3, %v3171_v9 }
0x15ee   : > { %3174 = vrot.lane.b32.xlu1 %v3173_v14, %s4303_s11 }
0x165d   : > { %3207 = sbr.rel (%p3507_p10) target bundleno = 5935 (0x172f), region = 90 }
0x1660   : > { %v3175_v61 = vpop.permute.xlu1 %3174 }
0x1661   : > { %3177 = vst.msk [vmem:[#allocation3] sm:$0xff] %vm432_vm1, %v3175_v61 }
0x1662   : > { %3208 = vst.msk [vmem:[%s5443_s7] sm:$0xff] %vm432_vm1, %v3175_v61  ;;  %3209 = vst.msk [vmem:[%s5444_s8] sm:$0xff] %vm432_vm1, %v3201_v5  ;;  %v3213_v47 = vld [vmem:[%s5440_s4 + $0x18] sm:$0xff]  ;;  %v4305_v59 = vmov 0.0   ;;  %v3212_v26 = vld [vmem:[%s5440_s4 + $0x10] sm:$0xff]  ;;  %vm4306_vm10 = vmmov 0  }
0x1663   : > { %3680 = vmatprep.subr.mxu0 %v4305_v59  ;;  %3688 = vmatprep.mubr.msk.f32.mxu0 %vm4306_vm10, %v4305_v59  ;;  %v3211_v19 = vld [vmem:[%s5440_s4 + $0x8] sm:$0xff]  ;;  %v3210_v16 = vld [vmem:[%s5440_s4] sm:$0xff]  ;;  %vm3293_vm11 = vcmask 80896  }
0x1664   : > { %3681 = vmatpush3.msra.mxu0 %v3213_v47  ;;  %v3508_v32 = vld [vmem:[%s5441_s5] ss:$0 sm:$0xff] }
0x1665   : > { %3682 = vmatprep.subr.mxu0 %v4305_v59 }
0x1666   : > { %3683 = vmatpush3.msra.mxu0 %v3212_v26 }
0x1667   : > { %3684 = vmatprep.subr.mxu0 %v4305_v59 }
0x1668   : > { %3685 = vmatpush3.msra.mxu0 %v3211_v19 }
0x1669   : > { %3686 = vmatprep.subr.mxu0 %v4305_v59 }
0x166a   : > { %3687 = vmatpush3.msra.mxu0 %v3210_v16 }
0x166b   : > { %3689 = vmatmul.mubr.msk.f32.vlgmr.msra.gmra.mxu0 %vm432_vm1, %v3175_v61 }
0x172b   : > { %v3289_v15 = vpop.f32.mrf.mxu0 }
0x172c   : > { %v3290_v33 = vadd.f32 %v3508_v32, %v3289_v15 }
0x172d   : > { %v3690_v57 = vpop.f32.mrf.mxu0 }
0x172e   : > { %3294 = vst.msk [vmem:[%s5442_s6] sm:$0xff] %vm3293_vm11, %v3290_v33 }
0x172f PF: > { %s19_s9 = sadd.s32 1, %s4297_s9   ;;  %s5445_s27 = smov %s4285_s28 }
0x1730   : > { %p16_p11 = scmp.ge.s32.totalorder %s19_s9, 4   ;;  %s5446_s28 = smov %s4387_s13 }
0x1731   : > { %s5447_s29 = smov %s4293_s30  ;;  %s5448_s30 = smov %s5450_s10 }
0x1732   :  { %18 = sbr.rel (!%p16_p11) target bundleno = 3 (0x3), region = 149 }

// kernel: rnnp_forward.2
= control target key start
LH: loop header
LB: loop body
LE: loop exit
PB: predicated region body
PF: predicated region fallthrough
CT: control target
= control target key end

     0   :  { %s4544_s21 = smov 0   ;;  %s4546_s22 = smov 0   ;;  %s5951_s0 = inlined_call_operand.vmem [shape: f32[8,16,16], index: 0, kind: input, shape index: {}]   ;;  %s5952_s1 = inlined_call_operand.vmem [shape: f32[16,128], index: 1, kind: input, shape index: {}]   ;;  %s5953_s2 = inlined_call_operand.vmem [shape: f32[32,128], index: 2, kind: input, shape index: {}]   ;;  %s5954_s3 = inlined_call_operand.vmem [shape: f32[1,128], index: 3, kind: input, shape index: {}]   ;;  %s5955_s4 = inlined_call_operand.vmem [shape: f32[8,16,32], index: 4, kind: output, shape index: {0}]   ;;  %s5956_s5 = inlined_call_operand.vmem [shape: f32[8,32], index: 5, kind: output, shape index: {1}]   ;;  %s5957_s6 = inlined_call_operand.vmem [shape: f32[8,32], index: 6, kind: output, shape index: {2}]  }
   0x1   :  { %s4548_s23 = smov 0   ;;  %s4550_s24 = smov 0  }
   0x2   :  { %s4552_s25 = smov 0  }
   0x3 LB: > { %s26_s26 = sadd.s32 1, %s4497_s24  ;;  %s3653_s27 = sadd.s32 4294967295, %s4501_s25   ;;  %s4501_s25 = sphi %s4552_s25, %s17_s25   ;;  %s4497_s24 = sphi %s4550_s24, %s6028_s24   ;;  %s4493_s23 = sphi %s4548_s23, %s6027_s23   ;;  %s4489_s22 = sphi %s4546_s22, %s6026_s22   ;;  %s4485_s21 = sphi %s4544_s21, %s6025_s21  }
   0x4   : > { %p27_p0 = scmp.ge.s32.totalorder %s26_s26, 2  ;;  %p45_p1 = scmp.ne.s32.totalorder %s4489_s22, %s4485_s21 }
   0x5   : > { %p46_p2 = scmp.eq.s32.totalorder %s4501_s25, 0  ;;  %p140_p4 = scmp.eq.s32.totalorder %s3653_s27, 1 }
   0x6   : > { %s6030_s26 = smov (%p27_p0, %s26_s26), 0  ;;  %s38_s29 = sadd.s32 1, %s4489_s22 }
   0x7   : > { %p47_p3 = por %p46_p2, %p45_p1  ;;  %s34_s28 = ssub.s32 %s4497_s24, %s6030_s26 }
   0x8   : > { %p36_p5 = scmp.eq.s32.totalorder %s34_s28, 0  ;;  %p4579_p6 = por %p140_p4, %p45_p1 }
   0x9   : > { %p3656_p7 = scmp.ge.s32.totalorder %s4501_s25, 2 }
   0xa   : > { %s4584_s7 = scalar_select %p36_p5, %s4489_s22, %s38_s29  }
   0xb   : > { %223 = sbr.rel (%p3656_p7) target bundleno = 24 (0x18), region = 28 }
  0x10   : > { %226 = sbr.rel (!%p47_p3) target bundleno = 24 (0x18), region = 32  ;;  %s228_s8 = sand.u32 (%p47_p3), 1, %s4489_s22  }
  0x11   : > { %s3658_s9 = sshll.u32 (%p47_p3), %s4497_s24, 3  ;;  %s3657_s10 = sshll.u32 (%p47_p3), %s228_s8, 6 }
  0x12   : > { %s235_s13 = scalar_lea.vmem (%p47_p3), %s5951_s0, %s3658_s9  ;;  %s230_s14 = scalar_lea.vmem (%p47_p3), [#allocation6], %s3657_s10 }
  0x13   : > { %v278_v0 = vld [vmem:[%s235_s13] sm:$0xff] (%p47_p3)  ;;  %v280_v1 = vld [vmem:[%s235_s13 + $0x10] sm:$0xff] (%p47_p3) }
  0x14   : > { %v282_v2 = vld [vmem:[%s235_s13 + $0x20] sm:$0xff] (%p47_p3)  ;;  %279 = vst [vmem:[%s230_s14] sm:$0xff] (%p47_p3), %v278_v0  ;;  %281 = vst [vmem:[%s230_s14 + $0x8] sm:$0xff] (%p47_p3), %v280_v1  ;;  %v284_v3 = vld [vmem:[%s235_s13 + $0x30] sm:$0xff] (%p47_p3) }
  0x15   : > { %283 = vst [vmem:[%s230_s14 + $0x10] sm:$0xff] %v282_v2  ;;  %v286_v4 = vld [vmem:[%s235_s13 + $0x40] sm:$0xff]  ;;  %v288_v5 = vld [vmem:[%s235_s13 + $0x50] sm:$0xff]  ;;  %285 = vst [vmem:[%s230_s14 + $0x18] sm:$0xff] %v284_v3 }
  0x16   : > { %287 = vst [vmem:[%s230_s14 + $0x20] sm:$0xff] %v286_v4  ;;  %289 = vst [vmem:[%s230_s14 + $0x28] sm:$0xff] %v288_v5  ;;  %v290_v6 = vld [vmem:[%s235_s13 + $0x60] sm:$0xff]  ;;  %v292_v7 = vld [vmem:[%s235_s13 + $0x70] sm:$0xff] }
  0x17   : > { %291 = vst [vmem:[%s230_s14 + $0x30] sm:$0xff] %v290_v6  ;;  %293 = vst [vmem:[%s230_s14 + $0x38] sm:$0xff] %v292_v7 }
  0x18 PF: > { %p3659_p8 = scmp.ge.s32.totalorder %s4501_s25, 1  ;;  %p298_p9 = scmp.lt.s32.totalorder %s4501_s25, 3 }
  0x1a   : > { %p299_p10 = pnand %p3659_p8, %p298_p9 }
  0x1c   : > { %302 = sbr.rel (%p299_p10) target bundleno = 5745 (0x1671), region = 70 }
  0x21   : > { %s305_s15 = sand.u32 1, %s4485_s21   ;;  %p3662_p11 = scmp.ne.s32.totalorder %s4493_s23, 0 }
  0x22   : > { %s3660_s16 = sshll.u32 %s305_s15, 6 }
  0x23   : > { %s4595_s17 = scalar_lea.vmem [#allocation6], %s3660_s16  ;;  %s4597_s18 = scalar_lea.vmem [#allocation7], %s3660_s16 }
  0x24   : > { %354 = sbr.rel (%p3662_p11) target bundleno = 43 (0x2b), region = 78 }
  0x29   : > { %vm355_vm0 = vcmask 261120   ;;  %v4503_v8 = vmov 0.0  }
  0x2a   : > { %356 = vst.msk [vmem:[#allocation4] sm:$0xff] %vm355_vm0, %v4503_v8  ;;  %357 = vst.msk [vmem:[#allocation5] sm:$0xff] %vm355_vm0, %v4503_v8 }
  0x2b PF: > { %v367_v9 = vld [vmem:[%s5952_s1 + $0x8] sm:$0xff]  ;;  %v366_v10 = vld [vmem:[%s5952_s1] sm:$0xff]  ;;  %v358_v11 = vld [vmem:[%s4595_s17] sm:$0xff]  ;;  %vm375_vm1 = vcmask 130048   ;;  %v5960_v14 = vmov 0.0   ;;  %vm4505_vm2 = vmmov 0  }
  0x2c   : > { %3801 = vmatprep.subr.mxu0 %v367_v9  ;;  %3805 = vmatprep.mubr.msk.f32.mxu0 %vm375_vm1, %v358_v11  ;;  %v526_v12 = vld [vmem:[%s5953_s2 + $0x18] sm:$0xff]  ;;  %v525_v15 = vld [vmem:[%s5953_s2 + $0x10] sm:$0xff]  ;;  %v360_v16 = vld [vmem:[%s4595_s17 + $0x10] sm:$0xff]  ;;  %vm527_vm3 = vcmask 261120   ;;  %s4506_s16 = smov 64   ;;  %vm903_vm4 = vcmask 1041409  }
  0x2d   : > { %3802 = vmatpush3.msra.mxu0 %v367_v9  ;;  %v359_v13 = vld [vmem:[%s4595_s17 + $0x8] sm:$0xff]  ;;  %3817 = vmatprep.subr.mxu1 %v5960_v14  ;;  %v524_v17 = vld [vmem:[%s5953_s2 + $0x8] sm:$0xff]  ;;  %v523_v19 = vld [vmem:[%s5953_s2] sm:$0xff]  ;;  %vm906_vm5 = vcmask 1042434   ;;  %vm909_vm6 = vcmask 1043459   ;;  %vm912_vm7 = vcmask 1044484  }
  0x2e   : > { %3803 = vmatprep.subr.mxu0 %v366_v10  ;;  %3818 = vmatpush3.msra.mxu1 %v526_v12  ;;  %v361_v18 = vld [vmem:[%s4595_s17 + $0x18] sm:$0xff]  ;;  %v362_v20 = vld [vmem:[%s4595_s17 + $0x20] sm:$0xff]  ;;  %v363_v22 = vld [vmem:[%s4595_s17 + $0x28] sm:$0xff]  ;;  %vm915_vm8 = vcmask 1045509   ;;  %vm918_vm9 = vcmask 1046534   ;;  %vm921_vm10 = vcmask 1047559  }
  0x2f   : > { %3804 = vmatpush3.msra.mxu0 %v366_v10  ;;  %3819 = vmatprep.subr.mxu1 %v5960_v14  ;;  %v364_v23 = vld [vmem:[%s4595_s17 + $0x30] sm:$0xff]  ;;  %v365_v24 = vld [vmem:[%s4595_s17 + $0x38] sm:$0xff]  ;;  %s4507_s17 = smov 32   ;;  %vm881_vm11 = vcmask 253952   ;;  %p3744_p12 = scmp.ne.s32.totalorder %s4493_s23, 1 }
  0x30   : > { %3806 = vmatmul.mubr.msk.f32.vlgmr.msra.gmra.mxu0 %vm375_vm1, %v359_v13  ;;  %3820 = vmatpush3.msra.mxu1 %v525_v15  ;;  %v3663_v25 = vld [vmem:[%s5954_s3] ss:$0 sm:$0xff] }
  0x31   : > { %3808 = vmatprep.mubr.msk.f32.mxu0 %vm375_vm1, %v360_v16  ;;  %3821 = vmatprep.subr.mxu1 %v5960_v14  ;;  %v513_v21 = vld [vmem:[#allocation4] sm:$0xff]  ;;  %v514_v9 = vld [vmem:[#allocation5] sm:$0xff] }
  0x32   : > { %3822 = vmatpush3.msra.mxu1 %v524_v17  ;;  %3825 = vmatprep.mubr.msk.f32.mxu1 %vm4505_vm2, %v5960_v14  ;;  %v683_v13 = vrot.slane %v514_v9, 2  ;;  %v687_v16 = vrot.slane %v514_v9, 6 }
  0x33   : > { %3823 = vmatprep.subr.mxu1 %v5960_v14  ;;  %3839 = vmatprep.subr.mxu0 %v5960_v14 }
  0x34   : > { %3809 = vmatmul.mubr.msk.f32.gmra.mxu0 %vm375_vm1, %v361_v18  ;;  %3824 = vmatpush3.msra.mxu1 %v523_v19  ;;  %v688_v18 = vrot.slane %v514_v9, 7 }
  0x35   : > { %3811 = vmatprep.mubr.msk.f32.mxu0 %vm375_vm1, %v362_v20  ;;  %3826 = vmatmul.mubr.msk.f32.vlgmr.msra.gmra.mxu1 %vm527_vm3, %v513_v21 }
  0x36   : > { %3828 = vmatprep.subr.mxu1 %v5960_v14  ;;  %3836 = vmatprep.mubr.msk.f32.mxu1 %vm4505_vm2, %v5960_v14 }
  0x37   : > { %3829 = vmatpush3.msra.mxu1 %v526_v12  ;;  %3840 = vmatpush3.msra.mxu0 %v526_v12  ;;  %v682_v12 = vrot.slane %v514_v9, 1 }
  0x38   : > { %3812 = vmatmul.mubr.msk.f32.gmra.mxu0 %vm375_vm1, %v363_v22  ;;  %3830 = vmatprep.subr.mxu1 %v5960_v14 }
  0x39   : > { %3814 = vmatprep.mubr.msk.f32.mxu0 %vm375_vm1, %v364_v23  ;;  %3831 = vmatpush3.msra.mxu1 %v525_v15 }
  0x3a   : > { %3832 = vmatprep.subr.mxu1 %v5960_v14  ;;  %3841 = vmatprep.subr.mxu0 %v5960_v14 }
  0x3b   : > { %3833 = vmatpush3.msra.mxu1 %v524_v17  ;;  %3842 = vmatpush3.msra.mxu0 %v525_v15  ;;  %v684_v15 = vrot.slane %v514_v9, 3 }
  0x3c   : > { %3815 = vmatmul.mubr.msk.f32.gmra.mxu0 %vm375_vm1, %v365_v24  ;;  %3834 = vmatprep.subr.mxu1 %v5960_v14 }
  0x3d   : > { %3835 = vmatpush3.msra.mxu1 %v523_v19  ;;  %3843 = vmatprep.subr.mxu0 %v5960_v14 }
  0x3e   : > { %3844 = vmatpush3.msra.mxu0 %v524_v17  ;;  %3847 = vmatprep.mubr.msk.f32.mxu0 %vm4505_vm2, %v5960_v14  ;;  %v685_v17 = vrot.slane %v514_v9, 4 }
  0x3f   : > { %3845 = vmatprep.subr.mxu0 %v5960_v14  ;;  %3850 = vmatprep.subr.mxu1 %v5960_v14 }
  0x40   : > { %3846 = vmatpush3.msra.mxu0 %v523_v19  ;;  %v686_v19 = vrot.slane %v514_v9, 5 }
  0x41   : > { %3861 = vmatprep.subr.mxu0 %v5960_v14 }
  0xf0   : > { %v3807_v26 = vpop.f32.mrf.mxu0 }
  0xf1   : > { %v472_v27 = vadd.f32 %v3807_v26, %v3663_v25 }
  0xf2   : > { %v466_v28 = vpop.f32.mrf.mxu0 }
  0xf3   : > { %506 = vst [vmem:[#allocation2 + $0x8] sm:$0xff] %v472_v27  ;;  %v467_v29 = vadd.f32 %v3663_v25, %v466_v28 }
  0xf4   : > { %v3810_v30 = vpop.f32.mrf.mxu0 }
  0xf5   : > { %505 = vst [vmem:[#allocation2] sm:$0xff] %v467_v29  ;;  %v482_v31 = vadd.f32 %v3810_v30, %v3663_v25  ;;  %v597_v32 = vpop.f32.mrf.mxu1 }
  0xf6   : > { %v476_v33 = vpop.f32.mrf.mxu0  ;;  %v602_v36 = vrot.slane %v597_v32, 1  ;;  %v604_v41 = vrot.slane %v597_v32, 3  ;;  %v603_v50 = vrot.slane %v597_v32, 2  ;;  %v606_v54 = vrot.slane %v597_v32, 5 }
  0xf7   : > { %508 = vst [vmem:[#allocation2 + $0x18] sm:$0xff] %v482_v31  ;;  %v477_v34 = vadd.f32 %v3663_v25, %v476_v33  ;;  %v3827_v35 = vpop.f32.mrf.mxu1  ;;  %v605_v57 = vrot.slane %v597_v32, 4  ;;  %v608_v61 = vrot.slane %v597_v32, 7  ;;  %v607_v63 = vrot.slane %v597_v32, 6 }
  0xf8   : > { %v3813_v37 = vpop.f32.mrf.mxu0 }
  0xf9   : > { %507 = vst [vmem:[#allocation2 + $0x10] sm:$0xff] %v477_v34  ;;  %v492_v38 = vadd.f32 %v3813_v37, %v3663_v25 }
  0xfa   : > { %v486_v39 = vpop.f32.mrf.mxu0  ;;  %v516_v40 = vld [vmem:[#allocation2 + $0x8] sm:$0x1] }
  0xfb   : > { %510 = vst [vmem:[#allocation2 + $0x28] sm:$0xff] %v492_v38  ;;  %v487_v42 = vadd.f32 %v3663_v25, %v486_v39  ;;  %v4658_v43 = vadd.f32 %v602_v36, %v516_v40 }
  0xfc   : > { %v3816_v44 = vpop.f32.mrf.mxu0  ;;  %v515_v45 = vld [vmem:[#allocation2] sm:$0x1] }
  0xfd   : > { %509 = vst [vmem:[#allocation2 + $0x20] sm:$0xff] %v487_v42  ;;  %v502_v46 = vadd.f32 %v3816_v44, %v3663_v25  ;;  %3951 = vtanh.f32 %v4658_v43  ;;  %v4661_v47 = vadd.f32 %v597_v32, %v515_v45  ;;  %v3674_v20 = vmul.f32 -1.442695, %v4658_v43 }
  0xfe   : > { %v518_v48 = vld [vmem:[#allocation2 + $0x18] sm:$0x1]  ;;  %v496_v49 = vpop.f32.mrf.mxu0 }
  0xff   : > { %v620_v51 = vadd.f32 %v604_v41, %v518_v48  ;;  %512 = vst [vmem:[#allocation2 + $0x38] sm:$0xff] %v502_v46  ;;  %v497_v52 = vadd.f32 %v3663_v25, %v496_v49  ;;  %3953 = vtanh.f32 %v4661_v47  ;;  %v3673_v21 = vmul.f32 -1.442695, %v4661_v47 }
 0x100   : > { %v517_v53 = vld [vmem:[#allocation2 + $0x10] sm:$0x1] }
 0x101   : > { %v619_v55 = vadd.f32 %v603_v50, %v517_v53  ;;  %511 = vst [vmem:[#allocation2 + $0x30] sm:$0xff] %v497_v52  ;;  %3955 = vtanh.f32 %v620_v51  ;;  %v3676_v22 = vmul.f32 -1.442695, %v620_v51 }
 0x102   : > { %v520_v56 = vld [vmem:[#allocation2 + $0x28] sm:$0x1] }
 0x103   : > { %v622_v58 = vadd.f32 %v606_v54, %v520_v56  ;;  %3957 = vtanh.f32 %v619_v55  ;;  %v3675_v23 = vmul.f32 -1.442695, %v619_v55 }
 0x104   : > { %v519_v59 = vld [vmem:[#allocation2 + $0x20] sm:$0x1] }
 0x105   : > { %v621_v60 = vadd.f32 %v605_v57, %v519_v59  ;;  %3959 = vtanh.f32 %v622_v58  ;;  %v3678_v24 = vmul.f32 -1.442695, %v622_v58 }
 0x106   : > { %v522_v62 = vld [vmem:[#allocation2 + $0x38] sm:$0x1] }
 0x107   : > { %3961 = vtanh.f32 %v621_v60  ;;  %v624_v1 = vadd.f32 %v608_v61, %v522_v62  ;;  %v3677_v25 = vmul.f32 -1.442695, %v621_v60 }
 0x108   : > { %v521_v0 = vld [vmem:[#allocation2 + $0x30] sm:$0x1] }
 0x109   : > { %v623_v2 = vadd.f32 %v607_v63, %v521_v0  ;;  %v3680_v28 = vmul.f32 -1.442695, %v624_v1 }
 0x10a   : > { %v3952_v3 = vpop.eup %3951 }
 0x10b   : > { %731 = vrot.lane.b32.xlu0 %v3952_v3, %s4506_s16  ;;  %3963 = vtanh.f32 %v623_v2  ;;  %v3679_v26 = vmul.f32 -1.442695, %v623_v2 }
 0x10c   : > { %3965 = vtanh.f32 %v624_v1  ;;  %v3954_v4 = vpop.eup %3953 }
 0x10d   : > { %729 = vrot.lane.b32.xlu1 %v3954_v4, %s4506_s16  ;;  %3967 = vpow2.f32 %v3674_v20 }
 0x10e   : > { %v3956_v5 = vpop.eup %3955  ;;  %3969 = vpow2.f32 %v3673_v21 }
 0x10f   : > { %3971 = vpow2.f32 %v3676_v22 }
 0x110   : > { %v3958_v6 = vpop.eup %3957  ;;  %3973 = vpow2.f32 %v3675_v23 }
 0x111   : > { %733 = vrot.lane.b32.xlu0 %v3958_v6, %s4506_s16  ;;  %735 = vrot.lane.b32.xlu1 %v3956_v5, %s4506_s16  ;;  %3975 = vpow2.f32 %v3678_v24 }
 0x112   : > { %v3960_v7 = vpop.eup %3959  ;;  %3977 = vpow2.f32 %v3677_v25 }
 0x113   : > { %3979 = vpow2.f32 %v3679_v26 }
 0x114   : > { %v3962_v8 = vpop.eup %3961  ;;  %3981 = vpow2.f32 %v3680_v28 }
 0x115   : > { %737 = vrot.lane.b32.xlu0 %v3962_v8, %s4506_s16  ;;  %739 = vrot.lane.b32.xlu1 %v3960_v7, %s4506_s16 }
 0x118   : > { %v3964_v10 = vpop.eup %3963 }
 0x119   : > { %v3966_v11 = vpop.eup %3965  ;;  %741 = vrot.lane.b32.xlu0 %v3964_v10, %s4506_s16 }
 0x11a   : > { %743 = vrot.lane.b32.xlu1 %v3966_v11, %s4506_s16  ;;  %v3968_v27 = vpop.eup %3967 }
 0x11b   : > { %v650_v29 = vadd.f32 1.0, %v3968_v27  ;;  %v3970_v30 = vpop.eup %3969 }
 0x11c   : > { %v3972_v31 = vpop.eup %3971  ;;  %v649_v32 = vadd.f32 1.0, %v3970_v30 }
 0x11d   : > { %691 = vrot.lane.b32.xlu0 %v682_v12, %s4507_s17  ;;  %3983 = vrcp.f32 %v650_v29  ;;  %v3974_v33 = vpop.eup %3973  ;;  %v652_v34 = vadd.f32 1.0, %v3972_v31 }
 0x11e   : > { %693 = vrot.lane.b32.xlu1 %v683_v13, %s4507_s17  ;;  %v3976_v35 = vpop.eup %3975  ;;  %v651_v36 = vadd.f32 1.0, %v3974_v33  ;;  %3985 = vrcp.f32 %v649_v32 }
 0x11f   : > { %v3978_v37 = vpop.eup %3977  ;;  %v654_v38 = vadd.f32 1.0, %v3976_v35  ;;  %3987 = vrcp.f32 %v652_v34 }
 0x120   : > { %v3980_v39 = vpop.eup %3979  ;;  %3989 = vrcp.f32 %v651_v36  ;;  %v653_v40 = vadd.f32 1.0, %v3978_v37 }
 0x121   : > { %689 = vrot.lane.b32.xlu0 %v514_v9, %s4507_s17  ;;  %3991 = vrcp.f32 %v654_v38  ;;  %v655_v41 = vadd.f32 1.0, %v3980_v39  ;;  %v3982_v42 = vpop.eup %3981 }
 0x122   : > { %695 = vrot.lane.b32.xlu1 %v684_v15, %s4507_s17  ;;  %3993 = vrcp.f32 %v653_v40  ;;  %v656_v46 = vadd.f32 1.0, %v3982_v42 }
 0x123   : > { %3995 = vrcp.f32 %v655_v41 }
 0x124   : > { %3997 = vrcp.f32 %v656_v46 }
 0x125   : > { %701 = vrot.lane.b32.xlu0 %v687_v16, %s4507_s17 }
 0x126   : > { %697 = vrot.lane.b32.xlu1 %v685_v17, %s4507_s17 }
 0x129   : > { %703 = vrot.lane.b32.xlu0 %v688_v18, %s4507_s17 }
 0x12a   : > { %699 = vrot.lane.b32.xlu1 %v686_v19, %s4507_s17  ;;  %v4682_v43 = vpop.eup %3983 }
 0x12b   : > { %v4686_v48 = vpop.eup %3985 }
 0x12c   : > { %v4689_v50 = vpop.eup %3987 }
 0x12d   : > { %v4692_v53 = vpop.eup %3989 }
 0x12e   : > { %v4697_v56 = vpop.eup %3991 }
 0x12f   : > { %v4701_v60 = vpop.eup %3993 }
 0x130   : > { %v4704_v61 = vpop.eup %3995 }
 0x131   : > { %v4710_v2 = vpop.eup %3997 }
 0x17d   : > { %v732_v44 = vpop.permute.xlu0 %731 }
 0x17e   : > { %v754_v45 = vmul.f32 %v4682_v43, %v732_v44 }
 0x17f   : > { %v730_v47 = vpop.permute.xlu1 %729 }
 0x180   : > { %771 = vrot.lane.b32.xlu0 %v754_v45, %s4507_s17  ;;  %v753_v49 = vmul.f32 %v4686_v48, %v730_v47 }
 0x183   : > { %v734_v51 = vpop.permute.xlu0 %733  ;;  %v736_v52 = vpop.permute.xlu1 %735 }
 0x184   : > { %769 = vrot.lane.b32.xlu0 %v753_v49, %s4507_s17  ;;  %v756_v54 = vmul.f32 %v4689_v50, %v736_v52  ;;  %v755_v55 = vmul.f32 %v4692_v53, %v734_v51 }
 0x186   : > { %775 = vrot.lane.b32.xlu1 %v756_v54, %s4507_s17 }
 0x187   : > { %v738_v57 = vpop.permute.xlu0 %737  ;;  %v740_v58 = vpop.permute.xlu1 %739 }
 0x188   : > { %773 = vrot.lane.b32.xlu0 %v755_v55, %s4507_s17  ;;  %v758_v59 = vmul.f32 %v4697_v56, %v740_v58  ;;  %v757_v63 = vmul.f32 %v4701_v60, %v738_v57 }
 0x18a   : > { %779 = vrot.lane.b32.xlu1 %v758_v59, %s4507_s17 }
 0x18b   : > { %v742_v62 = vpop.permute.xlu0 %741 }
 0x18c   : > { %v759_v0 = vmul.f32 %v4704_v61, %v742_v62  ;;  %v744_v1 = vpop.permute.xlu1 %743 }
 0x18d   : > { %v760_v3 = vmul.f32 %v4710_v2, %v744_v1 }
 0x18e   : > { %777 = vrot.lane.b32.xlu1 %v757_v63, %s4507_s17  ;;  %781 = vrot.lane.b32.xlu0 %v759_v0, %s4507_s17 }
 0x18f   : > { %v692_v4 = vpop.permute.xlu0 %691 }
 0x190   : > { %v694_v6 = vpop.permute.xlu1 %693  ;;  %v714_v11 = vmul.f32 %v4682_v43, %v692_v4 }
 0x191   : > { %v715_v21 = vmul.f32 %v4692_v53, %v694_v6 }
 0x192   : > { %783 = vrot.lane.b32.xlu1 %v760_v3, %s4507_s17 }
 0x193   : > { %v690_v5 = vpop.permute.xlu0 %689 }
 0x194   : > { %v696_v8 = vpop.permute.xlu1 %695  ;;  %v713_v15 = vmul.f32 %v4686_v48, %v690_v5 }
 0x195   : > { %v716_v19 = vmul.f32 %v4689_v50, %v696_v8 }
 0x197   : > { %v702_v7 = vpop.permute.xlu0 %701 }
 0x198   : > { %v698_v10 = vpop.permute.xlu1 %697  ;;  %v719_v29 = vmul.f32 %v4704_v61, %v702_v7 }
 0x199   : > { %v717_v28 = vmul.f32 %v4701_v60, %v698_v10 }
 0x19b   : > { %v704_v9 = vpop.permute.xlu0 %703 }
 0x19c   : > { %v700_v16 = vpop.permute.xlu1 %699  ;;  %v720_v35 = vmul.f32 %v4710_v2, %v704_v9 }
 0x19d   : > { %v718_v25 = vmul.f32 %v4697_v56, %v700_v16 }
 0x1f2   : > { %v772_v12 = vpop.permute.xlu0 %771 }
 0x1f3   : > { %v4715_v13 = vadd.f32 %v772_v12, %v714_v11 }
 0x1f5   : > { %3999 = vtanh.f32 %v4715_v13 }
 0x1f6   : > { %v770_v17 = vpop.permute.xlu0 %769 }
 0x1f7   : > { %v4719_v18 = vadd.f32 %v770_v17, %v713_v15  ;;  %v890_v15 = vld [vmem:[#allocation2 + $0x1] sm:$0x1] }
 0x1f8   : > { %v776_v20 = vpop.permute.xlu1 %775 }
 0x1f9   : > { %4001 = vtanh.f32 %v4719_v18  ;;  %v4724_v22 = vadd.f32 %v776_v20, %v716_v19 }
 0x1fa   : > { %v774_v23 = vpop.permute.xlu0 %773 }
 0x1fb   : > { %4003 = vtanh.f32 %v4724_v22  ;;  %v4727_v24 = vadd.f32 %v774_v23, %v715_v21  ;;  %v891_v21 = vld [vmem:[#allocation2 + $0x9] sm:$0x1]  ;;  %v892_v23 = vld [vmem:[#allocation2 + $0x11] sm:$0x1] }
 0x1fc   : > { %v780_v26 = vpop.permute.xlu1 %779 }
 0x1fd   : > { %v4730_v27 = vadd.f32 %v780_v26, %v718_v25  ;;  %4005 = vtanh.f32 %v4727_v24 }
 0x1ff   : > { %4007 = vtanh.f32 %v4730_v27 }
 0x200   : > { %v778_v30 = vpop.permute.xlu1 %777  ;;  %v782_v31 = vpop.permute.xlu0 %781 }
 0x201   : > { %v4735_v33 = vadd.f32 %v778_v30, %v717_v28  ;;  %v4738_v34 = vadd.f32 %v782_v31, %v719_v29  ;;  %v894_v30 = vld [vmem:[#allocation2 + $0x21] sm:$0x1]  ;;  %v893_v31 = vld [vmem:[#allocation2 + $0x19] sm:$0x1] }
 0x202   : > { %v4000_v32 = vpop.eup %3999 }
 0x203   : > { %819 = vrot.lane.b32.xlu0 %v4000_v32, %s4506_s16  ;;  %4009 = vtanh.f32 %v4735_v33 }
 0x204   : > { %v784_v36 = vpop.permute.xlu1 %783  ;;  %4011 = vtanh.f32 %v4738_v34 }
 0x205   : > { %v4743_v38 = vadd.f32 %v784_v36, %v720_v35 }
 0x206   : > { %v4002_v37 = vpop.eup %4001 }
 0x207   : > { %817 = vrot.lane.b32.xlu0 %v4002_v37, %s4506_s16  ;;  %4013 = vtanh.f32 %v4743_v38 }
 0x208   : > { %v4004_v39 = vpop.eup %4003 }
 0x209   : > { %823 = vrot.lane.b32.xlu1 %v4004_v39, %s4506_s16  ;;  %v896_v39 = vld [vmem:[#allocation2 + $0x31] sm:$0x1] }
 0x20a   : > { %v4006_v40 = vpop.eup %4005 }
 0x20c   : > { %v4008_v41 = vpop.eup %4007 }
 0x20d   : > { %821 = vrot.lane.b32.xlu1 %v4006_v40, %s4506_s16 }
 0x210   : > { %v4010_v42 = vpop.eup %4009 }
 0x211   : > { %827 = vrot.lane.b32.xlu1 %v4008_v41, %s4506_s16  ;;  %825 = vrot.lane.b32.xlu0 %v4010_v42, %s4506_s16  ;;  %v4012_v44 = vpop.eup %4011  ;;  %v895_v41 = vld [vmem:[#allocation2 + $0x29] sm:$0x1] }
 0x214   : > { %v4014_v45 = vpop.eup %4013 }
 0x215   : > { %831 = vrot.lane.b32.xlu1 %v4014_v45, %s4506_s16  ;;  %829 = vrot.lane.b32.xlu0 %v4012_v44, %s4506_s16 }
 0x275   : > { %v820_v46 = vpop.permute.xlu0 %819 }
 0x276   : > { %v4755_v51 = vmul.f32 %v4682_v43, %v820_v46  ;;  %v897_v46 = vld [vmem:[#allocation2 + $0x39] sm:$0x1] }
 0x278   : > { %v902_v57 = vrot.slane %v4755_v51, 7 }
 0x279   : > { %v818_v49 = vpop.permute.xlu0 %817 }
 0x27a   : > { %v4758_v52 = vmul.f32 %v4686_v48, %v818_v49 }
 0x27b   : > { %v824_v47 = vpop.permute.xlu1 %823 }
 0x27c   : > { %v4765_v58 = vmul.f32 %v4689_v50, %v824_v47  ;;  %v904_v43 = vsel %vm903_vm4, %v902_v57, %v4758_v52 }
 0x27e   : > { %v908_v50 = vrot.slane %v4765_v58, 5 }
 0x27f   : > { %v822_v54 = vpop.permute.xlu1 %821 }
 0x280   : > { %v4761_v55 = vmul.f32 %v4692_v53, %v822_v54 }
 0x282   : > { %v905_v59 = vrot.slane %v4761_v55, 6 }
 0x283   : > { %v828_v62 = vpop.permute.xlu1 %827  ;;  %v826_v63 = vpop.permute.xlu0 %825 }
 0x284   : > { %v907_v48 = vsel %vm906_vm5, %v905_v59, %v904_v43  ;;  %v4772_v0 = vmul.f32 %v4697_v56, %v828_v62  ;;  %v4775_v53 = vmul.f32 %v4701_v60, %v826_v63 }
 0x285   : > { %v910_v4 = vsel %vm909_vm6, %v908_v50, %v907_v48 }
 0x286   : > { %v911_v1 = vrot.slane %v4775_v53, 4  ;;  %v914_v3 = vrot.slane %v4772_v0, 3 }
 0x287   : > { %v832_v5 = vpop.permute.xlu1 %831  ;;  %v830_v6 = vpop.permute.xlu0 %829 }
 0x288   : > { %v913_v7 = vsel %vm912_vm7, %v911_v1, %v910_v4  ;;  %v4783_v56 = vmul.f32 %v4710_v2, %v832_v5  ;;  %v4786_v8 = vmul.f32 %v4704_v61, %v830_v6 }
 0x289   : > { %v916_v10 = vsel %vm915_vm8, %v914_v3, %v913_v7 }
 0x28a   : > { %v920_v60 = vrot.slane %v4783_v56, 1  ;;  %v917_v9 = vrot.slane %v4786_v8, 2 }
 0x28c   : > { %v919_v11 = vsel %vm918_vm9, %v917_v9, %v916_v10 }
 0x28d   : > { %v922_v12 = vsel %vm921_vm10, %v920_v60, %v919_v11 }
 0x28e   : > { %923 = vrot.lane.b32.xlu0 %v922_v12, %s4507_s17 }
 0x300   : > { %v924_v2 = vpop.permute.xlu0 %923 }
 0x301   : > { %3837 = vmatmul.mubr.msk.f32.vlgmr.msra.gmra.mxu1 %vm527_vm3, %v924_v2 }
 0x302   : > { %3858 = vmatprep.mubr.msk.f32.mxu1 %vm4505_vm2, %v5960_v14 }
 0x3c1   : > { %v993_v61 = vpop.f32.mrf.mxu1 }
 0x3c2   : > { %v1013_v16 = vadd.f32 %v993_v61, %v890_v15  ;;  %v998_v19 = vrot.slane %v993_v61, 1  ;;  %v999_v20 = vrot.slane %v993_v61, 2  ;;  %v1001_v25 = vrot.slane %v993_v61, 4 }
 0x3c3   : > { %v3838_v17 = vpop.f32.mrf.mxu1  ;;  %v1000_v28 = vrot.slane %v993_v61, 3  ;;  %v1003_v32 = vrot.slane %v993_v61, 6  ;;  %v1002_v36 = vrot.slane %v993_v61, 5  ;;  %v1004_v44 = vrot.slane %v993_v61, 7 }
 0x3c4   : > { %4015 = vtanh.f32 %v1013_v16  ;;  %v1014_v26 = vadd.f32 %v998_v19, %v891_v21  ;;  %v1015_v29 = vadd.f32 %v999_v20, %v892_v23  ;;  %v1017_v35 = vadd.f32 %v1001_v25, %v894_v30 }
 0x3c5   : > { %v1016_v37 = vadd.f32 %v1000_v28, %v893_v31  ;;  %v1019_v42 = vadd.f32 %v1003_v32, %v896_v39  ;;  %v1018_v45 = vadd.f32 %v1002_v36, %v895_v41  ;;  %v1020_v47 = vadd.f32 %v1004_v44, %v897_v46 }
 0x3c6   : > { %4017 = vtanh.f32 %v1014_v26  ;;  %v3682_v48 = vmul.f32 -1.442695, %v1013_v16  ;;  %v3683_v50 = vmul.f32 -1.442695, %v1014_v26  ;;  %v3684_v1 = vmul.f32 -1.442695, %v1015_v29 }
 0x3c7   : > { %4019 = vtanh.f32 %v1015_v29  ;;  %v3686_v3 = vmul.f32 -1.442695, %v1017_v35  ;;  %v3685_v4 = vmul.f32 -1.442695, %v1016_v37  ;;  %v3688_v6 = vmul.f32 -1.442695, %v1019_v42 }
 0x3c8   : > { %4021 = vtanh.f32 %v1017_v35  ;;  %v3687_v7 = vmul.f32 -1.442695, %v1018_v45  ;;  %v3689_v9 = vmul.f32 -1.442695, %v1020_v47 }
 0x3c9   : > { %4023 = vtanh.f32 %v1016_v37 }
 0x3ca   : > { %4025 = vtanh.f32 %v1019_v42 }
 0x3cb   : > { %4027 = vtanh.f32 %v1018_v45 }
 0x3cc   : > { %4029 = vtanh.f32 %v1020_v47 }
 0x3cd   : > { %4031 = vpow2.f32 %v3682_v48 }
 0x3ce   : > { %4033 = vpow2.f32 %v3683_v50 }
 0x3cf   : > { %4035 = vpow2.f32 %v3684_v1 }
 0x3d0   : > { %4037 = vpow2.f32 %v3686_v3 }
 0x3d1   : > { %v4016_v40 = vpop.eup %4015  ;;  %4039 = vpow2.f32 %v3685_v4 }
 0x3d2   : > { %1093 = vrot.lane.b32.xlu1 %v4016_v40, %s4506_s16  ;;  %4041 = vpow2.f32 %v3688_v6 }
 0x3d3   : > { %v4018_v49 = vpop.eup %4017  ;;  %4043 = vpow2.f32 %v3687_v7 }
 0x3d4   : > { %v4020_v54 = vpop.eup %4019 }
 0x3d5   : > { %1097 = vrot.lane.b32.xlu0 %v4020_v54, %s4506_s16  ;;  %v4022_v57 = vpop.eup %4021 }
 0x3d6   : > { %1095 = vrot.lane.b32.xlu1 %v4018_v49, %s4506_s16  ;;  %v4024_v59 = vpop.eup %4023 }
 0x3d7   : > { %v4026_v43 = vpop.eup %4025 }
 0x3d8   : > { %v4028_v62 = vpop.eup %4027 }
 0x3d9   : > { %1099 = vrot.lane.b32.xlu0 %v4024_v59, %s4506_s16  ;;  %v4030_v63 = vpop.eup %4029 }
 0x3da   : > { %1101 = vrot.lane.b32.xlu1 %v4022_v57, %s4506_s16  ;;  %v4032_v5 = vpop.eup %4031 }
 0x3db   : > { %v1045_v60 = vadd.f32 1.0, %v4032_v5  ;;  %v4034_v10 = vpop.eup %4033 }
 0x3dc   : > { %v4036_v11 = vpop.eup %4035  ;;  %v1046_v12 = vadd.f32 1.0, %v4034_v10 }
 0x3dd   : > { %1103 = vrot.lane.b32.xlu0 %v4028_v62, %s4506_s16  ;;  %4045 = vrcp.f32 %v1045_v60  ;;  %v4038_v2 = vpop.eup %4037  ;;  %v1047_v61 = vadd.f32 1.0, %v4036_v11 }
 0x3de   : > { %1105 = vrot.lane.b32.xlu1 %v4026_v43, %s4506_s16  ;;  %4047 = vpow2.f32 %v3689_v9  ;;  %v4040_v15 = vpop.eup %4039  ;;  %v1049_v16 = vadd.f32 1.0, %v4038_v2 }
 0x3df   : > { %4049 = vrcp.f32 %v1046_v12  ;;  %v4042_v17 = vpop.eup %4041  ;;  %v1048_v19 = vadd.f32 1.0, %v4040_v15 }
 0x3e0   : > { %4051 = vrcp.f32 %v1047_v61  ;;  %v4044_v20 = vpop.eup %4043  ;;  %v1051_v23 = vadd.f32 1.0, %v4042_v17 }
 0x3e1   : > { %1107 = vrot.lane.b32.xlu0 %v4030_v63, %s4506_s16  ;;  %4053 = vrcp.f32 %v1049_v16  ;;  %v1050_v26 = vadd.f32 1.0, %v4044_v20 }
 0x3e2   : > { %4055 = vrcp.f32 %v1048_v19 }
 0x3e3   : > { %4057 = vrcp.f32 %v1051_v23 }
 0x3e4   : > { %4059 = vrcp.f32 %v1050_v26 }
 0x3ea   : > { %v4805_v21 = vpop.eup %4045 }
 0x3eb   : > { %v4048_v29 = vpop.eup %4047  ;;  %v1077_v50 = vmul.f32 %v4805_v21, %v4719_v18 }
 0x3ec   : > { %v1052_v30 = vadd.f32 1.0, %v4048_v29  ;;  %v4809_v31 = vpop.eup %4049 }
 0x3ed   : > { %v4811_v35 = vpop.eup %4051  ;;  %v1078_v4 = vmul.f32 %v4809_v31, %v4715_v13 }
 0x3ee   : > { %4061 = vrcp.f32 %v1052_v30  ;;  %v4816_v40 = vpop.eup %4053  ;;  %v1079_v5 = vmul.f32 %v4811_v35, %v4727_v24 }
 0x3ef   : > { %v4819_v42 = vpop.eup %4055  ;;  %v1081_v18 = vmul.f32 %v4816_v40, %v4735_v33 }
 0x3f0   : > { %v4824_v47 = vpop.eup %4057  ;;  %v1080_v10 = vmul.f32 %v4819_v42, %v4724_v22 }
 0x3f1   : > { %v4827_v54 = vpop.eup %4059  ;;  %v1083_v61 = vmul.f32 %v4824_v47, %v4738_v34 }
 0x3f2   : > { %v1082_v33 = vmul.f32 %v4827_v54, %v4730_v27 }
 0x3fb   : > { %v4833_v62 = vpop.eup %4061 }
 0x3fc   : > { %v1084_v34 = vmul.f32 %v4833_v62, %v4743_v38 }
 0x444   : > { %v1094_v25 = vpop.permute.xlu1 %1093 }
 0x445   : > { %v1117_v28 = vmul.f32 %v4805_v21, %v1094_v25 }
 0x447   : > { %1133 = vrot.lane.b32.xlu1 %v1117_v28, %s4507_s17  ;;  %v1098_v36 = vpop.permute.xlu0 %1097 }
 0x448   : > { %v1096_v32 = vpop.permute.xlu1 %1095  ;;  %v1119_v39 = vmul.f32 %v4811_v35, %v1098_v36 }
 0x449   : > { %v1118_v37 = vmul.f32 %v4809_v31, %v1096_v32 }
 0x44a   : > { %1137 = vrot.lane.b32.xlu0 %v1119_v39, %s4507_s17 }
 0x44b   : > { %1135 = vrot.lane.b32.xlu1 %v1118_v37, %s4507_s17  ;;  %v1100_v44 = vpop.permute.xlu0 %1099 }
 0x44c   : > { %v1102_v41 = vpop.permute.xlu1 %1101  ;;  %v1120_v46 = vmul.f32 %v4819_v42, %v1100_v44 }
 0x44d   : > { %v1121_v45 = vmul.f32 %v4816_v40, %v1102_v41 }
 0x44e   : > { %1139 = vrot.lane.b32.xlu0 %v1120_v46, %s4507_s17 }
 0x44f   : > { %1141 = vrot.lane.b32.xlu1 %v1121_v45, %s4507_s17  ;;  %v1104_v57 = vpop.permute.xlu0 %1103 }
 0x450   : > { %v1106_v49 = vpop.permute.xlu1 %1105  ;;  %v1122_v43 = vmul.f32 %v4827_v54, %v1104_v57 }
 0x451   : > { %v1123_v59 = vmul.f32 %v4824_v47, %v1106_v49 }
 0x452   : > { %1143 = vrot.lane.b32.xlu0 %v1122_v43, %s4507_s17 }
 0x453   : > { %1145 = vrot.lane.b32.xlu1 %v1123_v59, %s4507_s17  ;;  %v1108_v63 = vpop.permute.xlu0 %1107 }
 0x454   : > { %v1124_v48 = vmul.f32 %v4833_v62, %v1108_v63 }
 0x456   : > { %1147 = vrot.lane.b32.xlu0 %v1124_v48, %s4507_s17 }
 0x4b9   : > { %v1134_v1 = vpop.permute.xlu1 %1133 }
 0x4ba   : > { %v4839_v3 = vadd.f32 %v1134_v1, %v1077_v50 }
 0x4bc   : > { %4063 = vtanh.f32 %v4839_v3  ;;  %v1138_v7 = vpop.permute.xlu0 %1137 }
 0x4bd   : > { %v1136_v6 = vpop.permute.xlu1 %1135  ;;  %v4848_v9 = vadd.f32 %v1138_v7, %v1079_v5 }
 0x4be   : > { %v4846_v60 = vadd.f32 %v1136_v6, %v1078_v4 }
 0x4c0   : > { %4065 = vtanh.f32 %v4846_v60  ;;  %v1140_v11 = vpop.permute.xlu0 %1139 }
 0x4c1   : > { %4067 = vtanh.f32 %v4848_v9  ;;  %v1142_v13 = vpop.permute.xlu1 %1141  ;;  %v4858_v24 = vadd.f32 %v1140_v11, %v1080_v10 }
 0x4c2   : > { %v4856_v12 = vadd.f32 %v1142_v13, %v1081_v18 }
 0x4c4   : > { %4069 = vtanh.f32 %v4856_v12  ;;  %v1144_v22 = vpop.permute.xlu0 %1143 }
 0x4c5   : > { %4071 = vtanh.f32 %v4858_v24  ;;  %v1146_v15 = vpop.permute.xlu1 %1145  ;;  %v4869_v17 = vadd.f32 %v1144_v22, %v1082_v33  ;;  %v1254_v22 = vld [vmem:[#allocation2 + $0xa] sm:$0x1] }
 0x4c6   : > { %v4867_v16 = vadd.f32 %v1146_v15, %v1083_v61 }
 0x4c8   : > { %4073 = vtanh.f32 %v4867_v16  ;;  %v1148_v19 = vpop.permute.xlu0 %1147 }
 0x4c9   : > { %v4064_v2 = vpop.eup %4063  ;;  %4075 = vtanh.f32 %v4869_v17  ;;  %v4875_v20 = vadd.f32 %v1148_v19, %v1084_v34  ;;  %v1255_v34 = vld [vmem:[#allocation2 + $0x12] sm:$0x1] }
 0x4ca   : > { %1181 = vrot.lane.b32.xlu1 %v4064_v2, %s4506_s16  ;;  %v1253_v2 = vld [vmem:[#allocation2 + $0x2] sm:$0x1] }
 0x4cb   : > { %4077 = vtanh.f32 %v4875_v20 }
 0x4cd   : > { %v4066_v23 = vpop.eup %4065 }
 0x4ce   : > { %v4068_v27 = vpop.eup %4067  ;;  %1183 = vrot.lane.b32.xlu1 %v4066_v23, %s4506_s16 }
 0x4cf   : > { %1185 = vrot.lane.b32.xlu0 %v4068_v27, %s4506_s16 }
 0x4d1   : > { %v4070_v25 = vpop.eup %4069 }
 0x4d2   : > { %v4072_v26 = vpop.eup %4071  ;;  %1189 = vrot.lane.b32.xlu1 %v4070_v25, %s4506_s16 }
 0x4d3   : > { %1187 = vrot.lane.b32.xlu0 %v4072_v26, %s4506_s16  ;;  %v1257_v26 = vld [vmem:[#allocation2 + $0x22] sm:$0x1] }
 0x4d5   : > { %v4074_v28 = vpop.eup %4073 }
 0x4d6   : > { %v4076_v29 = vpop.eup %4075  ;;  %1193 = vrot.lane.b32.xlu1 %v4074_v28, %s4506_s16  ;;  %v1256_v28 = vld [vmem:[#allocation2 + $0x1a] sm:$0x1] }
 0x4d7   : > { %1191 = vrot.lane.b32.xlu0 %v4076_v29, %s4506_s16 }
 0x4d8   : > { %v4078_v38 = vpop.eup %4077 }
 0x4db   : > { %1195 = vrot.lane.b32.xlu0 %v4078_v38, %s4506_s16 }
 0x53c   : > { %v1182_v30 = vpop.permute.xlu1 %1181 }
 0x53d   : > { %v4892_v41 = vmul.f32 %v4805_v21, %v1182_v30 }
 0x540   : > { %v1184_v32 = vpop.permute.xlu1 %1183 }
 0x541   : > { %v1186_v36 = vpop.permute.xlu0 %1185  ;;  %v4886_v37 = vmul.f32 %v4809_v31, %v1184_v32 }
 0x542   : > { %v4889_v39 = vmul.f32 %v4811_v35, %v1186_v36  ;;  %v1259_v36 = vld [vmem:[#allocation2 + $0x32] sm:$0x1] }
 0x543   : > { %v1265_v44 = vrot.slane %v4886_v37, 7 }
 0x544   : > { %v1190_v45 = vpop.permute.xlu1 %1189  ;;  %v1267_v46 = vrot.slane %v4889_v39, 6 }
 0x545   : > { %v1266_v49 = vsel %vm903_vm4, %v1265_v44, %v4892_v41  ;;  %v1188_v57 = vpop.permute.xlu0 %1187  ;;  %v4899_v59 = vmul.f32 %v4816_v40, %v1190_v45  ;;  %v1258_v45 = vld [vmem:[#allocation2 + $0x2a] sm:$0x1] }
 0x546   : > { %v4902_v31 = vmul.f32 %v4819_v42, %v1188_v57  ;;  %v1268_v35 = vsel %vm906_vm5, %v1267_v46, %v1266_v49 }
 0x547   : > { %v1271_v21 = vrot.slane %v4899_v59, 4 }
 0x548   : > { %v1269_v43 = vrot.slane %v4902_v31, 5  ;;  %v1194_v63 = vpop.permute.xlu1 %1193 }
 0x549   : > { %v1192_v48 = vpop.permute.xlu0 %1191  ;;  %v4908_v50 = vmul.f32 %v4824_v47, %v1194_v63 }
 0x54a   : > { %v1270_v1 = vsel %vm909_vm6, %v1269_v43, %v1268_v35  ;;  %v4912_v4 = vmul.f32 %v4827_v54, %v1192_v48  ;;  %v1260_v35 = vld [vmem:[#allocation2 + $0x3a] sm:$0x1] }
 0x54b   : > { %v1272_v40 = vsel %vm912_vm7, %v1271_v21, %v1270_v1  ;;  %v1275_v42 = vrot.slane %v4908_v50, 2 }
 0x54c   : > { %v1273_v5 = vrot.slane %v4912_v4, 3 }
 0x54d   : > { %v1196_v6 = vpop.permute.xlu0 %1195 }
 0x54e   : > { %v4918_v7 = vmul.f32 %v4833_v62, %v1196_v6  ;;  %v1274_v18 = vsel %vm915_vm8, %v1273_v5, %v1272_v40 }
 0x54f   : > { %v1276_v47 = vsel %vm918_vm9, %v1275_v42, %v1274_v18 }
 0x550   : > { %v1277_v10 = vrot.slane %v4918_v7, 1 }
 0x552   : > { %v1278_v13 = vsel %vm921_vm10, %v1277_v10, %v1276_v47 }
 0x553   : > { %1279 = vrot.lane.b32.xlu1 %v1278_v13, %s4507_s17 }
 0x5c5   : > { %v1280_v54 = vpop.permute.xlu1 %1279 }
 0x5c6   : > { %3848 = vmatmul.mubr.msk.f32.vlgmr.msra.gmra.mxu0 %vm527_vm3, %v1280_v54 }
 0x5c7   : > { %3869 = vmatprep.mubr.msk.f32.mxu0 %vm4505_vm2, %v5960_v14 }
 0x686   : > { %v1349_v11 = vpop.f32.mrf.mxu0 }
 0x687   : > { %v1369_v62 = vadd.f32 %v1349_v11, %v1253_v2  ;;  %v1354_v33 = vrot.slane %v1349_v11, 1  ;;  %v1355_v15 = vrot.slane %v1349_v11, 2  ;;  %v1357_v19 = vrot.slane %v1349_v11, 4 }
 0x688   : > { %v3849_v61 = vpop.f32.mrf.mxu0  ;;  %v1356_v27 = vrot.slane %v1349_v11, 3  ;;  %v1359_v29 = vrot.slane %v1349_v11, 6  ;;  %v1358_v30 = vrot.slane %v1349_v11, 5  ;;  %v1360_v49 = vrot.slane %v1349_v11, 7 }
 0x689   : > { %4079 = vtanh.f32 %v1369_v62  ;;  %v1370_v23 = vadd.f32 %v1354_v33, %v1254_v22  ;;  %v1371_v25 = vadd.f32 %v1355_v15, %v1255_v34  ;;  %v1373_v38 = vadd.f32 %v1357_v19, %v1257_v26 }
 0x68a   : > { %v1372_v32 = vadd.f32 %v1356_v27, %v1256_v28  ;;  %v1375_v46 = vadd.f32 %v1359_v29, %v1259_v36  ;;  %v1374_v57 = vadd.f32 %v1358_v30, %v1258_v45  ;;  %v1376_v21 = vadd.f32 %v1360_v49, %v1260_v35 }
 0x68b   : > { %4081 = vtanh.f32 %v1370_v23  ;;  %v3691_v6 = vmul.f32 -1.442695, %v1369_v62  ;;  %v3692_v18 = vmul.f32 -1.442695, %v1370_v23  ;;  %v3693_v47 = vmul.f32 -1.442695, %v1371_v25 }
 0x68c   : > { %4083 = vtanh.f32 %v1371_v25  ;;  %v3695_v10 = vmul.f32 -1.442695, %v1373_v38  ;;  %v3694_v13 = vmul.f32 -1.442695, %v1372_v32  ;;  %v3697_v11 = vmul.f32 -1.442695, %v1375_v46 }
 0x68d   : > { %4085 = vtanh.f32 %v1373_v38  ;;  %v3696_v2 = vmul.f32 -1.442695, %v1374_v57  ;;  %v3698_v33 = vmul.f32 -1.442695, %v1376_v21 }
 0x68e   : > { %4087 = vtanh.f32 %v1372_v32 }
 0x68f   : > { %4089 = vtanh.f32 %v1375_v46 }
 0x690   : > { %4091 = vtanh.f32 %v1374_v57 }
 0x691   : > { %4093 = vtanh.f32 %v1376_v21 }
 0x692   : > { %4095 = vpow2.f32 %v3691_v6 }
 0x693   : > { %4097 = vpow2.f32 %v3692_v18 }
 0x694   : > { %4099 = vpow2.f32 %v3693_v47 }
 0x695   : > { %4101 = vpow2.f32 %v3695_v10 }
 0x696   : > { %v4080_v44 = vpop.eup %4079  ;;  %4103 = vpow2.f32 %v3694_v13 }
 0x697   : > { %1449 = vrot.lane.b32.xlu0 %v4080_v44, %s4506_s16  ;;  %4105 = vpow2.f32 %v3697_v11 }
 0x698   : > { %v4082_v43 = vpop.eup %4081  ;;  %4107 = vpow2.f32 %v3696_v2 }
 0x699   : > { %v4084_v63 = vpop.eup %4083 }
 0x69a   : > { %1453 = vrot.lane.b32.xlu1 %v4084_v63, %s4506_s16  ;;  %v4086_v48 = vpop.eup %4085 }
 0x69b   : > { %1451 = vrot.lane.b32.xlu0 %v4082_v43, %s4506_s16  ;;  %v4088_v1 = vpop.eup %4087 }
 0x69c   : > { %v4090_v40 = vpop.eup %4089 }
 0x69d   : > { %v4092_v42 = vpop.eup %4091 }
 0x69e   : > { %1455 = vrot.lane.b32.xlu1 %v4088_v1, %s4506_s16  ;;  %v4094_v5 = vpop.eup %4093 }
 0x69f   : > { %1457 = vrot.lane.b32.xlu0 %v4086_v48, %s4506_s16  ;;  %v4096_v54 = vpop.eup %4095 }
 0x6a0   : > { %v1401_v61 = vadd.f32 1.0, %v4096_v54  ;;  %v4098_v15 = vpop.eup %4097 }
 0x6a1   : > { %v4100_v62 = vpop.eup %4099  ;;  %v1402_v22 = vadd.f32 1.0, %v4098_v15 }
 0x6a2   : > { %1459 = vrot.lane.b32.xlu1 %v4092_v42, %s4506_s16  ;;  %4109 = vrcp.f32 %v1401_v61  ;;  %v4102_v34 = vpop.eup %4101  ;;  %v1403_v19 = vadd.f32 1.0, %v4100_v62 }
 0x6a3   : > { %1461 = vrot.lane.b32.xlu0 %v4090_v40, %s4506_s16  ;;  %4111 = vpow2.f32 %v3698_v33  ;;  %v4104_v23 = vpop.eup %4103  ;;  %v1405_v27 = vadd.f32 1.0, %v4102_v34 }
 0x6a4   : > { %4113 = vrcp.f32 %v1402_v22  ;;  %v4106_v25 = vpop.eup %4105  ;;  %v1404_v26 = vadd.f32 1.0, %v4104_v23 }
 0x6a5   : > { %4115 = vrcp.f32 %v1403_v19  ;;  %v4108_v28 = vpop.eup %4107  ;;  %v1407_v38 = vadd.f32 1.0, %v4106_v25 }
 0x6a6   : > { %1463 = vrot.lane.b32.xlu1 %v4094_v5, %s4506_s16  ;;  %4117 = vrcp.f32 %v1405_v27  ;;  %v1406_v32 = vadd.f32 1.0, %v4108_v28 }
 0x6a7   : > { %4119 = vrcp.f32 %v1404_v26 }
 0x6a8   : > { %4121 = vrcp.f32 %v1407_v38 }
 0x6a9   : > { %4123 = vrcp.f32 %v1406_v32 }
 0x6af   : > { %v4936_v29 = vpop.eup %4109 }
 0x6b0   : > { %v4112_v44 = vpop.eup %4111  ;;  %v1433_v33 = vmul.f32 %v4936_v29, %v4839_v3 }
 0x6b1   : > { %v1408_v45 = vadd.f32 1.0, %v4112_v44  ;;  %v4940_v46 = vpop.eup %4113 }
 0x6b2   : > { %v4942_v57 = vpop.eup %4115  ;;  %v1434_v22 = vmul.f32 %v4940_v46, %v4846_v60 }
 0x6b3   : > { %4125 = vrcp.f32 %v1408_v45  ;;  %v4947_v63 = vpop.eup %4117  ;;  %v1435_v34 = vmul.f32 %v4942_v57, %v4848_v9 }
 0x6b4   : > { %v4950_v1 = vpop.eup %4119  ;;  %v1437_v3 = vmul.f32 %v4947_v63, %v4856_v12 }
 0x6b5   : > { %v4955_v6 = vpop.eup %4121  ;;  %v1436_v26 = vmul.f32 %v4950_v1, %v4858_v24 }
 0x6b6   : > { %v4958_v47 = vpop.eup %4123  ;;  %v1439_v32 = vmul.f32 %v4955_v6, %v4867_v16 }
 0x6b7   : > { %v1438_v12 = vmul.f32 %v4958_v47, %v4869_v17 }
 0x6c0   : > { %v4964_v11 = vpop.eup %4125 }
 0x6c1   : > { %v1440_v16 = vmul.f32 %v4964_v11, %v4875_v20  ;;  %v1620_v20 = vld [vmem:[%s5953_s2 + $0x18] sm:$0xff] }
 0x6c2   : > { %3851 = vmatpush3.msra.mxu1 %v1620_v20  ;;  %3862 = vmatpush3.msra.mxu0 %v1620_v20 }
 0x6c3   : > { %3852 = vmatprep.subr.mxu1 %v5960_v14  ;;  %3863 = vmatprep.subr.mxu0 %v5960_v14 }
 0x709   : > { %v1450_v30 = vpop.permute.xlu0 %1449 }
 0x70a   : > { %v1473_v36 = vmul.f32 %v4936_v29, %v1450_v30 }
 0x70c   : > { %1489 = vrot.lane.b32.xlu0 %v1473_v36, %s4507_s17  ;;  %v1454_v35 = vpop.permute.xlu1 %1453 }
 0x70d   : > { %v1452_v49 = vpop.permute.xlu0 %1451  ;;  %v1475_v43 = vmul.f32 %v4942_v57, %v1454_v35 }
 0x70e   : > { %v1474_v21 = vmul.f32 %v4940_v46, %v1452_v49 }
 0x70f   : > { %1493 = vrot.lane.b32.xlu1 %v1475_v43, %s4507_s17 }
 0x710   : > { %1491 = vrot.lane.b32.xlu0 %v1474_v21, %s4507_s17  ;;  %v1456_v40 = vpop.permute.xlu1 %1455 }
 0x711   : > { %v1458_v48 = vpop.permute.xlu0 %1457  ;;  %v1476_v5 = vmul.f32 %v4950_v1, %v1456_v40  ;;  %v1619_v40 = vld [vmem:[%s5953_s2 + $0x10] sm:$0xff] }
 0x712   : > { %v1477_v42 = vmul.f32 %v4947_v63, %v1458_v48  ;;  %3853 = vmatpush3.msra.mxu1 %v1619_v40  ;;  %3864 = vmatpush3.msra.mxu0 %v1619_v40 }
 0x713   : > { %1495 = vrot.lane.b32.xlu1 %v1476_v5, %s4507_s17  ;;  %v1618_v5 = vld [vmem:[%s5953_s2 + $0x8] sm:$0xff]  ;;  %3854 = vmatprep.subr.mxu1 %v5960_v14 }
 0x714   : > { %1497 = vrot.lane.b32.xlu0 %v1477_v42, %s4507_s17  ;;  %v1460_v10 = vpop.permute.xlu1 %1459  ;;  %3855 = vmatpush3.msra.mxu1 %v1618_v5 }
 0x715   : > { %v1462_v18 = vpop.permute.xlu0 %1461  ;;  %v1478_v54 = vmul.f32 %v4958_v47, %v1460_v10  ;;  %v1617_v10 = vld [vmem:[%s5953_s2] sm:$0xff]  ;;  %3856 = vmatprep.subr.mxu1 %v5960_v14  ;;  %3865 = vmatprep.subr.mxu0 %v5960_v14 }
 0x716   : > { %v1479_v13 = vmul.f32 %v4955_v6, %v1462_v18  ;;  %3857 = vmatpush3.msra.mxu1 %v1617_v10  ;;  %3866 = vmatpush3.msra.mxu0 %v1618_v5 }
 0x717   : > { %1499 = vrot.lane.b32.xlu1 %v1478_v54, %s4507_s17  ;;  %3867 = vmatprep.subr.mxu0 %v5960_v14 }
 0x718   : > { %1501 = vrot.lane.b32.xlu0 %v1479_v13, %s4507_s17  ;;  %v1464_v2 = vpop.permute.xlu1 %1463  ;;  %3868 = vmatpush3.msra.mxu0 %v1617_v10 }
 0x719   : > { %v1480_v61 = vmul.f32 %v4964_v11, %v1464_v2  ;;  %3872 = vmatprep.subr.mxu1 %v5960_v14  ;;  %3883 = vmatprep.subr.mxu0 %v5960_v14 }
 0x71b   : > { %1503 = vrot.lane.b32.xlu1 %v1480_v61, %s4507_s17 }
 0x77e   : > { %v1490_v15 = vpop.permute.xlu0 %1489 }
 0x77f   : > { %v4970_v62 = vadd.f32 %v1490_v15, %v1433_v33 }
 0x781   : > { %4127 = vtanh.f32 %v4970_v62  ;;  %v1494_v23 = vpop.permute.xlu1 %1493 }
 0x782   : > { %v1492_v19 = vpop.permute.xlu0 %1491  ;;  %v4979_v25 = vadd.f32 %v1494_v23, %v1435_v34 }
 0x783   : > { %v4977_v27 = vadd.f32 %v1492_v19, %v1434_v22 }
 0x785   : > { %4129 = vtanh.f32 %v4977_v27  ;;  %v1496_v28 = vpop.permute.xlu1 %1495 }
 0x786   : > { %4131 = vtanh.f32 %v4979_v25  ;;  %v1498_v60 = vpop.permute.xlu0 %1497  ;;  %v4989_v9 = vadd.f32 %v1496_v28, %v1436_v26 }
 0x787   : > { %v4987_v38 = vadd.f32 %v1498_v60, %v1437_v3 }
 0x789   : > { %4133 = vtanh.f32 %v4987_v38  ;;  %v1500_v24 = vpop.permute.xlu1 %1499 }
 0x78a   : > { %4135 = vtanh.f32 %v4989_v9  ;;  %v1502_v36 = vpop.permute.xlu0 %1501  ;;  %v5000_v45 = vadd.f32 %v1500_v24, %v1438_v12 }
 0x78b   : > { %v4998_v44 = vadd.f32 %v1502_v36, %v1439_v32 }
 0x78d   : > { %4137 = vtanh.f32 %v4998_v44  ;;  %v1504_v49 = vpop.permute.xlu1 %1503 }
 0x78e   : > { %v4128_v30 = vpop.eup %4127  ;;  %4139 = vtanh.f32 %v5000_v45  ;;  %v5006_v35 = vadd.f32 %v1504_v49, %v1440_v16 }
 0x78f   : > { %1537 = vrot.lane.b32.xlu0 %v4128_v30, %s4506_s16 }
 0x790   : > { %4141 = vtanh.f32 %v5006_v35 }
 0x792   : > { %v4130_v21 = vpop.eup %4129 }
 0x793   : > { %v4132_v17 = vpop.eup %4131  ;;  %1539 = vrot.lane.b32.xlu0 %v4130_v21, %s4506_s16 }
 0x794   : > { %1541 = vrot.lane.b32.xlu1 %v4132_v17, %s4506_s16 }
 0x796   : > { %v4134_v43 = vpop.eup %4133 }
 0x797   : > { %v4136_v48 = vpop.eup %4135  ;;  %1545 = vrot.lane.b32.xlu0 %v4134_v43, %s4506_s16 }
 0x798   : > { %1543 = vrot.lane.b32.xlu1 %v4136_v48, %s4506_s16 }
 0x79a   : > { %v4138_v42 = vpop.eup %4137 }
 0x79b   : > { %v4140_v18 = vpop.eup %4139  ;;  %1549 = vrot.lane.b32.xlu0 %v4138_v42, %s4506_s16  ;;  %v1609_v42 = vld [vmem:[#allocation2 + $0x3] sm:$0x1] }
 0x79c   : > { %1547 = vrot.lane.b32.xlu1 %v4140_v18, %s4506_s16 }
 0x79d   : > { %v4142_v13 = vpop.eup %4141 }
 0x7a0   : > { %1551 = vrot.lane.b32.xlu1 %v4142_v13, %s4506_s16 }
 0x801   : > { %v1538_v54 = vpop.permute.xlu0 %1537 }
 0x802   : > { %v5043_v22 = vmul.f32 %v4936_v29, %v1538_v54 }
 0x805   : > { %v1540_v2 = vpop.permute.xlu0 %1539 }
 0x806   : > { %v1542_v61 = vpop.permute.xlu1 %1541  ;;  %v5037_v33 = vmul.f32 %v4940_v46, %v1540_v2  ;;  %v1610_v2 = vld [vmem:[#allocation2 + $0xb] sm:$0x1] }
 0x807   : > { %v5040_v15 = vmul.f32 %v4942_v57, %v1542_v61  ;;  %v1611_v61 = vld [vmem:[#allocation2 + $0x13] sm:$0x1] }
 0x808   : > { %v1621_v34 = vrot.slane %v5037_v33, 7 }
 0x809   : > { %v1546_v19 = vpop.permute.xlu0 %1545  ;;  %v1623_v23 = vrot.slane %v5040_v15, 6 }
 0x80a   : > { %v1622_v3 = vsel %vm903_vm4, %v1621_v34, %v5043_v22  ;;  %v1544_v26 = vpop.permute.xlu1 %1543  ;;  %v5050_v60 = vmul.f32 %v4947_v63, %v1546_v19 }
 0x80b   : > { %v5053_v46 = vmul.f32 %v4950_v1, %v1544_v26  ;;  %v1624_v57 = vsel %vm906_vm5, %v1623_v23, %v1622_v3  ;;  %v1613_v3 = vld [vmem:[#allocation2 + $0x23] sm:$0x1] }
 0x80c   : > { %v1627_v29 = vrot.slane %v5050_v60, 4 }
 0x80d   : > { %v1625_v28 = vrot.slane %v5053_v46, 5  ;;  %v1550_v30 = vpop.permute.xlu0 %1549 }
 0x80e   : > { %v1548_v32 = vpop.permute.xlu1 %1547  ;;  %v5059_v12 = vmul.f32 %v4955_v6, %v1550_v30 }
 0x80f   : > { %v1626_v36 = vsel %vm909_vm6, %v1625_v28, %v1624_v57  ;;  %v5063_v24 = vmul.f32 %v4958_v47, %v1548_v32  ;;  %v1615_v28 = vld [vmem:[#allocation2 + $0x33] sm:$0x1]  ;;  %v1614_v32 = vld [vmem:[#allocation2 + $0x2b] sm:$0x1] }
 0x810   : > { %v1628_v63 = vsel %vm912_vm7, %v1627_v29, %v1626_v36  ;;  %v1631_v1 = vrot.slane %v5059_v12, 2 }
 0x811   : > { %v1629_v16 = vrot.slane %v5063_v24, 3 }
 0x812   : > { %v1552_v49 = vpop.permute.xlu1 %1551 }
 0x813   : > { %v5069_v21 = vmul.f32 %v4964_v11, %v1552_v49  ;;  %v1630_v17 = vsel %vm915_vm8, %v1629_v16, %v1628_v63  ;;  %v1616_v16 = vld [vmem:[#allocation2 + $0x3b] sm:$0x1] }
 0x814   : > { %v1632_v6 = vsel %vm918_vm9, %v1631_v1, %v1630_v17 }
 0x815   : > { %v1633_v43 = vrot.slane %v5069_v21, 1 }
 0x817   : > { %v1634_v48 = vsel %vm921_vm10, %v1633_v43, %v1632_v6 }
 0x818   : > { %1635 = vrot.lane.b32.xlu0 %v1634_v48, %s4507_s17 }
 0x88a   : > { %v1636_v47 = vpop.permute.xlu0 %1635 }
 0x88b   : > { %3859 = vmatmul.mubr.msk.f32.vlgmr.msra.gmra.mxu1 %vm527_vm3, %v1636_v47 }
 0x88c   : > { %3873 = vmatpush3.msra.mxu1 %v1620_v20  ;;  %3880 = vmatprep.mubr.msk.f32.mxu1 %vm4505_vm2, %v5960_v14 }
 0x88d   : > { %3874 = vmatprep.subr.mxu1 %v5960_v14 }
 0x88e   : > { %3875 = vmatpush3.msra.mxu1 %v1619_v40 }
 0x88f   : > { %3876 = vmatprep.subr.mxu1 %v5960_v14 }
 0x890   : > { %3877 = vmatpush3.msra.mxu1 %v1618_v5  ;;  %v1612_v5 = vld [vmem:[#allocation2 + $0x1b] sm:$0x1] }
 0x891   : > { %3878 = vmatprep.subr.mxu1 %v5960_v14 }
 0x892   : > { %3879 = vmatpush3.msra.mxu1 %v1617_v10 }
 0x893   : > { %3894 = vmatprep.subr.mxu1 %v5960_v14 }
 0x94b   : > { %v1705_v11 = vpop.f32.mrf.mxu1 }
 0x94c   : > { %v1725_v18 = vadd.f32 %v1705_v11, %v1609_v42  ;;  %v1710_v20 = vrot.slane %v1705_v11, 1  ;;  %v1711_v54 = vrot.slane %v1705_v11, 2  ;;  %v1713_v34 = vrot.slane %v1705_v11, 4 }
 0x94d   : > { %v3860_v13 = vpop.f32.mrf.mxu1  ;;  %v1712_v40 = vrot.slane %v1705_v11, 3  ;;  %v1715_v26 = vrot.slane %v1705_v11, 6  ;;  %v1714_v10 = vrot.slane %v1705_v11, 5  ;;  %v1716_v63 = vrot.slane %v1705_v11, 7 }
 0x94e   : > { %4143 = vtanh.f32 %v1725_v18  ;;  %v1726_v19 = vadd.f32 %v1710_v20, %v1610_v2  ;;  %v1727_v23 = vadd.f32 %v1711_v54, %v1611_v61  ;;  %v1729_v57 = vadd.f32 %v1713_v34, %v1613_v3 }
 0x94f   : > { %v1728_v29 = vadd.f32 %v1712_v40, %v1612_v5  ;;  %v1731_v36 = vadd.f32 %v1715_v26, %v1615_v28  ;;  %v1730_v1 = vadd.f32 %v1714_v10, %v1614_v32  ;;  %v1732_v49 = vadd.f32 %v1716_v63, %v1616_v16 }
 0x950   : > { %4145 = vtanh.f32 %v1726_v19  ;;  %v3700_v13 = vmul.f32 -1.442695, %v1725_v18  ;;  %v3701_v20 = vmul.f32 -1.442695, %v1726_v19  ;;  %v3702_v54 = vmul.f32 -1.442695, %v1727_v23 }
 0x951   : > { %4147 = vtanh.f32 %v1727_v23  ;;  %v3704_v2 = vmul.f32 -1.442695, %v1729_v57  ;;  %v3703_v61 = vmul.f32 -1.442695, %v1728_v29  ;;  %v3706_v40 = vmul.f32 -1.442695, %v1731_v36 }
 0x952   : > { %4149 = vtanh.f32 %v1729_v57  ;;  %v3705_v3 = vmul.f32 -1.442695, %v1730_v1  ;;  %v3707_v26 = vmul.f32 -1.442695, %v1732_v49 }
 0x953   : > { %4151 = vtanh.f32 %v1728_v29 }
 0x954   : > { %4153 = vtanh.f32 %v1731_v36 }
 0x955   : > { %4155 = vtanh.f32 %v1730_v1 }
 0x956   : > { %4157 = vtanh.f32 %v1732_v49 }
 0x957   : > { %4159 = vpow2.f32 %v3700_v13 }
 0x958   : > { %4161 = vpow2.f32 %v3701_v20 }
 0x959   : > { %4163 = vpow2.f32 %v3702_v54 }
 0x95a   : > { %4165 = vpow2.f32 %v3704_v2 }
 0x95b   : > { %v4144_v30 = vpop.eup %4143  ;;  %4167 = vpow2.f32 %v3703_v61 }
 0x95c   : > { %1805 = vrot.lane.b32.xlu1 %v4144_v30, %s4506_s16  ;;  %4169 = vpow2.f32 %v3706_v40 }
 0x95d   : > { %v4146_v17 = vpop.eup %4145  ;;  %4171 = vpow2.f32 %v3705_v3 }
 0x95e   : > { %v4148_v6 = vpop.eup %4147 }
 0x95f   : > { %1809 = vrot.lane.b32.xlu0 %v4148_v6, %s4506_s16  ;;  %v4150_v43 = vpop.eup %4149 }
 0x960   : > { %1807 = vrot.lane.b32.xlu1 %v4146_v17, %s4506_s16  ;;  %v4152_v48 = vpop.eup %4151 }
 0x961   : > { %v4154_v47 = vpop.eup %4153 }
 0x962   : > { %v4156_v11 = vpop.eup %4155 }
 0x963   : > { %1811 = vrot.lane.b32.xlu0 %v4152_v48, %s4506_s16  ;;  %v4158_v42 = vpop.eup %4157 }
 0x964   : > { %1813 = vrot.lane.b32.xlu1 %v4150_v43, %s4506_s16  ;;  %v4160_v34 = vpop.eup %4159 }
 0x965   : > { %v1757_v5 = vadd.f32 1.0, %v4160_v34  ;;  %v4162_v10 = vpop.eup %4161 }
 0x966   : > { %v4164_v18 = vpop.eup %4163  ;;  %v1758_v28 = vadd.f32 1.0, %v4162_v10 }
 0x967   : > { %1815 = vrot.lane.b32.xlu0 %v4156_v11, %s4506_s16  ;;  %4173 = vrcp.f32 %v1757_v5  ;;  %v4166_v19 = vpop.eup %4165  ;;  %v1759_v23 = vadd.f32 1.0, %v4164_v18 }
 0x968   : > { %1817 = vrot.lane.b32.xlu1 %v4154_v47, %s4506_s16  ;;  %4175 = vpow2.f32 %v3707_v26  ;;  %v4168_v30 = vpop.eup %4167  ;;  %v1761_v57 = vadd.f32 1.0, %v4166_v19 }
 0x969   : > { %4177 = vrcp.f32 %v1758_v28  ;;  %v4170_v29 = vpop.eup %4169  ;;  %v1760_v32 = vadd.f32 1.0, %v4168_v30 }
 0x96a   : > { %4179 = vrcp.f32 %v1759_v23  ;;  %v4172_v36 = vpop.eup %4171  ;;  %v1763_v1 = vadd.f32 1.0, %v4170_v29 }
 0x96b   : > { %1819 = vrot.lane.b32.xlu0 %v4158_v42, %s4506_s16  ;;  %4181 = vrcp.f32 %v1761_v57  ;;  %v1762_v49 = vadd.f32 1.0, %v4172_v36 }
 0x96c   : > { %4183 = vrcp.f32 %v1760_v32 }
 0x96d   : > { %4185 = vrcp.f32 %v1763_v1 }
 0x96e   : > { %4187 = vrcp.f32 %v1762_v49 }
 0x974   : > { %v5091_v63 = vpop.eup %4173 }
 0x975   : > { %v4176_v6 = vpop.eup %4175  ;;  %v1789_v29 = vmul.f32 %v5091_v63, %v4970_v62 }
 0x976   : > { %v1764_v43 = vadd.f32 1.0, %v4176_v6  ;;  %v5095_v48 = vpop.eup %4177 }
 0x977   : > { %v5097_v11 = vpop.eup %4179  ;;  %v1790_v1 = vmul.f32 %v5095_v48, %v4977_v27 }
 0x978   : > { %4189 = vrcp.f32 %v1764_v43  ;;  %v5102_v54 = vpop.eup %4181 }
 0x979   : > { %v5105_v61 = vpop.eup %4183  ;;  %v1793_v62 = vmul.f32 %v5102_v54, %v4987_v38 }
 0x97a   : > { %v5110_v5 = vpop.eup %4185 }
 0x97b   : > { %v5113_v10 = vpop.eup %4187 }
 0x97c   : > { %v1794_v38 = vmul.f32 %v5113_v10, %v5000_v45 }
 0x985   : > { %v5119_v23 = vpop.eup %4189 }
 0x9ce   : > { %v1806_v16 = vpop.permute.xlu1 %1805 }
 0x9cf   : > { %v1829_v17 = vmul.f32 %v5091_v63, %v1806_v16  ;;  %v1791_v16 = vmul.f32 %v5097_v11, %v4979_v25 }
 0x9d1   : > { %1845 = vrot.lane.b32.xlu1 %v1829_v17, %s4507_s17  ;;  %v1810_v42 = vpop.permute.xlu0 %1809 }
 0x9d2   : > { %v1808_v47 = vpop.permute.xlu1 %1807  ;;  %v1831_v20 = vmul.f32 %v5097_v11, %v1810_v42 }
 0x9d3   : > { %v1830_v13 = vmul.f32 %v5095_v48, %v1808_v47  ;;  %v1792_v47 = vmul.f32 %v5105_v61, %v4989_v9 }
 0x9d4   : > { %1849 = vrot.lane.b32.xlu0 %v1831_v20, %s4507_s17 }
 0x9d5   : > { %1847 = vrot.lane.b32.xlu1 %v1830_v13, %s4507_s17  ;;  %v1812_v34 = vpop.permute.xlu0 %1811 }
 0x9d6   : > { %v1814_v2 = vpop.permute.xlu1 %1813  ;;  %v1832_v3 = vmul.f32 %v5105_v61, %v1812_v34 }
 0x9d7   : > { %v1833_v40 = vmul.f32 %v5102_v54, %v1814_v2  ;;  %v1795_v2 = vmul.f32 %v5110_v5, %v4998_v44  ;;  %v1796_v44 = vmul.f32 %v5119_v23, %v5006_v35 }
 0x9d8   : > { %1851 = vrot.lane.b32.xlu0 %v1832_v3, %s4507_s17 }
 0x9d9   : > { %1853 = vrot.lane.b32.xlu1 %v1833_v40, %s4507_s17  ;;  %v1816_v18 = vpop.permute.xlu0 %1815 }
 0x9da   : > { %v1818_v26 = vpop.permute.xlu1 %1817  ;;  %v1834_v19 = vmul.f32 %v5113_v10, %v1816_v18 }
 0x9db   : > { %v1835_v28 = vmul.f32 %v5110_v5, %v1818_v26 }
 0x9dc   : > { %1855 = vrot.lane.b32.xlu0 %v1834_v19, %s4507_s17 }
 0x9dd   : > { %1857 = vrot.lane.b32.xlu1 %v1835_v28, %s4507_s17  ;;  %v1820_v30 = vpop.permute.xlu0 %1819 }
 0x9de   : > { %v1836_v57 = vmul.f32 %v5119_v23, %v1820_v30 }
 0x9e0   : > { %1859 = vrot.lane.b32.xlu0 %v1836_v57, %s4507_s17 }
 0xa43   : > { %v1846_v32 = vpop.permute.xlu1 %1845 }
 0xa44   : > { %v5125_v36 = vadd.f32 %v1846_v32, %v1789_v29 }
 0xa46   : > { %4191 = vtanh.f32 %v5125_v36  ;;  %v1850_v17 = vpop.permute.xlu0 %1849 }
 0xa47   : > { %v1848_v49 = vpop.permute.xlu1 %1847  ;;  %v5134_v43 = vadd.f32 %v1850_v17, %v1791_v16 }
 0xa48   : > { %v5132_v6 = vadd.f32 %v1848_v49, %v1790_v1 }
 0xa4a   : > { %4193 = vtanh.f32 %v5132_v6  ;;  %v1852_v42 = vpop.permute.xlu0 %1851 }
 0xa4b   : > { %4195 = vtanh.f32 %v5134_v43  ;;  %v1854_v27 = vpop.permute.xlu1 %1853  ;;  %v5144_v25 = vadd.f32 %v1852_v42, %v1792_v47 }
 0xa4c   : > { %v5142_v13 = vadd.f32 %v1854_v27, %v1793_v62 }
 0xa4e   : > { %4197 = vtanh.f32 %v5142_v13  ;;  %v1856_v9 = vpop.permute.xlu0 %1855 }
 0xa4f   : > { %4199 = vtanh.f32 %v5144_v25  ;;  %v1858_v34 = vpop.permute.xlu1 %1857  ;;  %v5155_v3 = vadd.f32 %v1856_v9, %v1794_v38 }
 0xa50   : > { %v5153_v40 = vadd.f32 %v1858_v34, %v1795_v2 }
 0xa52   : > { %4201 = vtanh.f32 %v5153_v40  ;;  %v1860_v26 = vpop.permute.xlu0 %1859 }
 0xa53   : > { %v4192_v20 = vpop.eup %4191  ;;  %4203 = vtanh.f32 %v5155_v3  ;;  %v5161_v18 = vadd.f32 %v1860_v26, %v1796_v44 }
 0xa54   : > { %1893 = vrot.lane.b32.xlu1 %v4192_v20, %s4506_s16 }
 0xa55   : > { %4205 = vtanh.f32 %v5161_v18 }
 0xa57   : > { %v4194_v28 = vpop.eup %4193 }
 0xa58   : > { %v4196_v45 = vpop.eup %4195  ;;  %1895 = vrot.lane.b32.xlu1 %v4194_v28, %s4506_s16 }
 0xa59   : > { %1897 = vrot.lane.b32.xlu0 %v4196_v45, %s4506_s16 }
 0xa5b   : > { %v4198_v19 = vpop.eup %4197 }
 0xa5c   : > { %v4200_v30 = vpop.eup %4199  ;;  %1901 = vrot.lane.b32.xlu1 %v4198_v19, %s4506_s16 }
 0xa5d   : > { %1899 = vrot.lane.b32.xlu0 %v4200_v30, %s4506_s16 }
 0xa5f   : > { %v4202_v57 = vpop.eup %4201 }
 0xa60   : > { %v4204_v29 = vpop.eup %4203  ;;  %1905 = vrot.lane.b32.xlu1 %v4202_v57, %s4506_s16 }
 0xa61   : > { %1903 = vrot.lane.b32.xlu0 %v4204_v29, %s4506_s16 }
 0xa62   : > { %v4206_v35 = vpop.eup %4205 }
 0xa65   : > { %1907 = vrot.lane.b32.xlu0 %v4206_v35, %s4506_s16 }
 0xac6   : > { %v1894_v32 = vpop.permute.xlu1 %1893 }
 0xac7   : > { %v5178_v62 = vmul.f32 %v5091_v63, %v1894_v32 }
 0xaca   : > { %v1896_v1 = vpop.permute.xlu1 %1895 }
 0xacb   : > { %v1898_v16 = vpop.permute.xlu0 %1897  ;;  %v5172_v49 = vmul.f32 %v5095_v48, %v1896_v1 }
 0xacc   : > { %v5175_v17 = vmul.f32 %v5097_v11, %v1898_v16  ;;  %v1965_v16 = vld [vmem:[#allocation2 + $0x4] sm:$0x1] }
 0xacd   : > { %v1977_v47 = vrot.slane %v5172_v49, 7 }
 0xace   : > { %v1902_v27 = vpop.permute.xlu1 %1901  ;;  %v1979_v42 = vrot.slane %v5175_v17, 6 }
 0xacf   : > { %v1978_v20 = vsel %vm903_vm4, %v1977_v47, %v5178_v62  ;;  %v1900_v2 = vpop.permute.xlu0 %1899  ;;  %v5185_v38 = vmul.f32 %v5102_v54, %v1902_v27 }
 0xad0   : > { %v5188_v48 = vmul.f32 %v5105_v61, %v1900_v2  ;;  %v1980_v11 = vsel %vm906_vm5, %v1979_v42, %v1978_v20  ;;  %v1966_v20 = vld [vmem:[#allocation2 + $0xc] sm:$0x1]  ;;  %v1967_v2 = vld [vmem:[#allocation2 + $0x14] sm:$0x1] }
 0xad1   : > { %v1983_v63 = vrot.slane %v5185_v38, 4 }
 0xad2   : > { %v1981_v34 = vrot.slane %v5188_v48, 5  ;;  %v1906_v9 = vpop.permute.xlu1 %1905 }
 0xad3   : > { %v1904_v44 = vpop.permute.xlu0 %1903  ;;  %v5194_v26 = vmul.f32 %v5110_v5, %v1906_v9 }
 0xad4   : > { %v1982_v28 = vsel %vm909_vm6, %v1981_v34, %v1980_v11  ;;  %v5198_v45 = vmul.f32 %v5113_v10, %v1904_v44  ;;  %v1969_v44 = vld [vmem:[#allocation2 + $0x24] sm:$0x1] }
 0xad5   : > { %v1984_v54 = vsel %vm912_vm7, %v1983_v63, %v1982_v28  ;;  %v1987_v61 = vrot.slane %v5194_v26, 2  ;;  %v1968_v28 = vld [vmem:[#allocation2 + $0x1c] sm:$0x1] }
 0xad6   : > { %v1985_v19 = vrot.slane %v5198_v45, 3 }
 0xad7   : > { %v1908_v30 = vpop.permute.xlu0 %1907 }
 0xad8   : > { %v5204_v57 = vmul.f32 %v5119_v23, %v1908_v30  ;;  %v1986_v29 = vsel %vm915_vm8, %v1985_v19, %v1984_v54 }
 0xad9   : > { %v1988_v5 = vsel %vm918_vm9, %v1987_v61, %v1986_v29  ;;  %v1971_v29 = vld [vmem:[#allocation2 + $0x34] sm:$0x1] }
 0xada   : > { %v1989_v35 = vrot.slane %v5204_v57, 1 }
 0xadc   : > { %v1990_v32 = vsel %vm921_vm10, %v1989_v35, %v1988_v5  ;;  %v1970_v35 = vld [vmem:[#allocation2 + $0x2c] sm:$0x1] }
 0xadd   : > { %1991 = vrot.lane.b32.xlu1 %v1990_v32, %s4507_s17 }
 0xb4f   : > { %v1992_v10 = vpop.permute.xlu1 %1991 }
 0xb50   : > { %3870 = vmatmul.mubr.msk.f32.vlgmr.msra.gmra.mxu0 %vm527_vm3, %v1992_v10 }
 0xb51   : > { %3891 = vmatprep.mubr.msk.f32.mxu0 %vm4505_vm2, %v5960_v14 }
 0xc10   : > { %v2061_v1 = vpop.f32.mrf.mxu0 }
 0xc11   : > { %v2081_v23 = vadd.f32 %v2061_v1, %v1965_v16  ;;  %v2066_v27 = vrot.slane %v2061_v1, 1  ;;  %v2067_v42 = vrot.slane %v2061_v1, 2  ;;  %v2069_v11 = vrot.slane %v2061_v1, 4 }
 0xc12   : > { %v3871_v47 = vpop.f32.mrf.mxu0  ;;  %v2068_v34 = vrot.slane %v2061_v1, 3  ;;  %v2071_v54 = vrot.slane %v2061_v1, 6  ;;  %v2070_v19 = vrot.slane %v2061_v1, 5  ;;  %v2072_v10 = vrot.slane %v2061_v1, 7 }
 0xc13   : > { %4207 = vtanh.f32 %v2081_v23  ;;  %v2082_v63 = vadd.f32 %v2066_v27, %v1966_v20  ;;  %v2083_v9 = vadd.f32 %v2067_v42, %v1967_v2  ;;  %v2085_v61 = vadd.f32 %v2069_v11, %v1969_v44  ;;  %v1972_v47 = vld [vmem:[#allocation2 + $0x3c] sm:$0x1] }
 0xc14   : > { %v2084_v30 = vadd.f32 %v2068_v34, %v1968_v28  ;;  %v2087_v32 = vadd.f32 %v2071_v54, %v1971_v29  ;;  %v2086_v16 = vadd.f32 %v2070_v19, %v1970_v35  ;;  %v2088_v27 = vadd.f32 %v2072_v10, %v1972_v47 }
 0xc15   : > { %4209 = vtanh.f32 %v2082_v63  ;;  %v3709_v28 = vmul.f32 -1.442695, %v2081_v23  ;;  %v3710_v54 = vmul.f32 -1.442695, %v2082_v63  ;;  %v3711_v19 = vmul.f32 -1.442695, %v2083_v9 }
 0xc16   : > { %4211 = vtanh.f32 %v2083_v9  ;;  %v3713_v29 = vmul.f32 -1.442695, %v2085_v61  ;;  %v3715_v10 = vmul.f32 -1.442695, %v2087_v32  ;;  %v3714_v47 = vmul.f32 -1.442695, %v2086_v16 }
 0xc17   : > { %4213 = vtanh.f32 %v2085_v61 }
 0xc18   : > { %4215 = vtanh.f32 %v2084_v30 }
 0xc19   : > { %4217 = vtanh.f32 %v2087_v32 }
 0xc1a   : > { %4219 = vtanh.f32 %v2086_v16 }
 0xc1b   : > { %4221 = vtanh.f32 %v2088_v27 }
 0xc1c   : > { %4223 = vpow2.f32 %v3709_v28 }
 0xc1d   : > { %4225 = vpow2.f32 %v3710_v54 }
 0xc1e   : > { %4227 = vpow2.f32 %v3711_v19 }
 0xc1f   : > { %4229 = vpow2.f32 %v3713_v29 }
 0xc20   : > { %v4208_v5 = vpop.eup %4207 }
 0xc21   : > { %2161 = vrot.lane.b32.xlu0 %v4208_v5, %s4506_s16  ;;  %v3712_v5 = vmul.f32 -1.442695, %v2084_v30 }
 0xc22   : > { %v4210_v42 = vpop.eup %4209 }
 0xc23   : > { %v4212_v20 = vpop.eup %4211  ;;  %4231 = vpow2.f32 %v3712_v5 }
 0xc24   : > { %2165 = vrot.lane.b32.xlu1 %v4212_v20, %s4506_s16  ;;  %v4214_v2 = vpop.eup %4213  ;;  %4233 = vpow2.f32 %v3715_v10  ;;  %v3716_v20 = vmul.f32 -1.442695, %v2088_v27 }
 0xc25   : > { %2163 = vrot.lane.b32.xlu0 %v4210_v42, %s4506_s16  ;;  %v4216_v11 = vpop.eup %4215  ;;  %4235 = vpow2.f32 %v3714_v47 }
 0xc26   : > { %v4218_v1 = vpop.eup %4217 }
 0xc27   : > { %v4220_v34 = vpop.eup %4219 }
 0xc28   : > { %2167 = vrot.lane.b32.xlu1 %v4216_v11, %s4506_s16  ;;  %v4222_v44 = vpop.eup %4221 }
 0xc29   : > { %2169 = vrot.lane.b32.xlu0 %v4214_v2, %s4506_s16  ;;  %v4224_v35 = vpop.eup %4223 }
 0xc2a   : > { %v2113_v42 = vadd.f32 1.0, %v4224_v35  ;;  %v4226_v2 = vpop.eup %4225 }
 0xc2b   : > { %v4228_v23 = vpop.eup %4227  ;;  %v2114_v11 = vadd.f32 1.0, %v4226_v2 }
 0xc2c   : > { %2171 = vrot.lane.b32.xlu1 %v4220_v34, %s4506_s16  ;;  %4237 = vrcp.f32 %v2113_v42  ;;  %v4230_v63 = vpop.eup %4229  ;;  %v2115_v9 = vadd.f32 1.0, %v4228_v23 }
 0xc2d   : > { %2173 = vrot.lane.b32.xlu0 %v4218_v1, %s4506_s16  ;;  %4239 = vpow2.f32 %v3716_v20  ;;  %v2117_v61 = vadd.f32 1.0, %v4230_v63 }
 0xc2e   : > { %4241 = vrcp.f32 %v2114_v11 }
 0xc2f   : > { %4243 = vrcp.f32 %v2115_v9 }
 0xc30   : > { %2175 = vrot.lane.b32.xlu1 %v4222_v44, %s4506_s16  ;;  %v4232_v1 = vpop.eup %4231  ;;  %4245 = vrcp.f32 %v2117_v61 }
 0xc31   : > { %v4234_v30 = vpop.eup %4233  ;;  %v2116_v34 = vadd.f32 1.0, %v4232_v1 }
 0xc32   : > { %v4236_v32 = vpop.eup %4235  ;;  %v2119_v16 = vadd.f32 1.0, %v4234_v30 }
 0xc33   : > { %v2118_v27 = vadd.f32 1.0, %v4236_v32  ;;  %4247 = vrcp.f32 %v2116_v34 }
 0xc34   : > { %4249 = vrcp.f32 %v2119_v16 }
 0xc35   : > { %4251 = vrcp.f32 %v2118_v27 }
 0xc39   : > { %v5222_v44 = vpop.eup %4237 }
 0xc3a   : > { %v4240_v19 = vpop.eup %4239 }
 0xc3b   : > { %v2120_v29 = vadd.f32 1.0, %v4240_v19  ;;  %v5226_v5 = vpop.eup %4241 }
 0xc3c   : > { %v5228_v10 = vpop.eup %4243 }
 0xc3d   : > { %4253 = vrcp.f32 %v2120_v29  ;;  %v5233_v2 = vpop.eup %4245  ;;  %v2145_v29 = vmul.f32 %v5222_v44, %v5125_v36 }
 0xc3e   : > { %v2149_v36 = vmul.f32 %v5233_v2, %v5142_v13 }
 0xc40   : > { %v5236_v11 = vpop.eup %4247 }
 0xc41   : > { %v5241_v61 = vpop.eup %4249 }
 0xc42   : > { %v5244_v34 = vpop.eup %4251 }
 0xc43   : > { %v2150_v13 = vmul.f32 %v5244_v34, %v5155_v3 }
 0xc4a   : > { %v5250_v27 = vpop.eup %4253 }
 0xc93   : > { %v2162_v28 = vpop.permute.xlu0 %2161 }
 0xc94   : > { %v2185_v54 = vmul.f32 %v5222_v44, %v2162_v28 }
 0xc96   : > { %2201 = vrot.lane.b32.xlu0 %v2185_v54, %s4507_s17  ;;  %v2166_v47 = vpop.permute.xlu1 %2165 }
 0xc97   : > { %v2164_v35 = vpop.permute.xlu0 %2163  ;;  %v2187_v20 = vmul.f32 %v5228_v10, %v2166_v47 }
 0xc98   : > { %v2186_v42 = vmul.f32 %v5226_v5, %v2164_v35 }
 0xc99   : > { %2205 = vrot.lane.b32.xlu1 %v2187_v20, %s4507_s17  ;;  %v2147_v20 = vmul.f32 %v5228_v10, %v5134_v43 }
 0xc9a   : > { %2203 = vrot.lane.b32.xlu0 %v2186_v42, %s4507_s17  ;;  %v2168_v63 = vpop.permute.xlu1 %2167  ;;  %v2146_v42 = vmul.f32 %v5226_v5, %v5132_v6 }
 0xc9b   : > { %v2170_v23 = vpop.permute.xlu0 %2169  ;;  %v2188_v1 = vmul.f32 %v5236_v11, %v2168_v63 }
 0xc9c   : > { %v2189_v9 = vmul.f32 %v5233_v2, %v2170_v23 }
 0xc9d   : > { %2207 = vrot.lane.b32.xlu1 %v2188_v1, %s4507_s17 }
 0xc9e   : > { %2209 = vrot.lane.b32.xlu0 %v2189_v9, %s4507_s17  ;;  %v2172_v32 = vpop.permute.xlu1 %2171 }
 0xc9f   : > { %v2174_v30 = vpop.permute.xlu0 %2173  ;;  %v2190_v28 = vmul.f32 %v5244_v34, %v2172_v32 }
 0xca0   : > { %v2191_v16 = vmul.f32 %v5241_v61, %v2174_v30  ;;  %v2148_v30 = vmul.f32 %v5236_v11, %v5144_v25 }
 0xca1   : > { %2211 = vrot.lane.b32.xlu1 %v2190_v28, %s4507_s17 }
 0xca2   : > { %2213 = vrot.lane.b32.xlu0 %v2191_v16, %s4507_s17  ;;  %v2176_v54 = vpop.permute.xlu1 %2175 }
 0xca3   : > { %v2192_v19 = vmul.f32 %v5250_v27, %v2176_v54  ;;  %v2151_v54 = vmul.f32 %v5241_v61, %v5153_v40  ;;  %v2152_v40 = vmul.f32 %v5250_v27, %v5161_v18 }
 0xca5   : > { %2215 = vrot.lane.b32.xlu1 %v2192_v19, %s4507_s17 }
 0xd08   : > { %v2202_v35 = vpop.permute.xlu0 %2201 }
 0xd09   : > { %v5256_v47 = vadd.f32 %v2202_v35, %v2145_v29 }
 0xd0b   : > { %4255 = vtanh.f32 %v5256_v47  ;;  %v2206_v63 = vpop.permute.xlu1 %2205 }
 0xd0c   : > { %v2204_v23 = vpop.permute.xlu0 %2203  ;;  %v5265_v1 = vadd.f32 %v2206_v63, %v2147_v20 }
 0xd0d   : > { %v5263_v9 = vadd.f32 %v2204_v23, %v2146_v42 }
 0xd0f   : > { %4257 = vtanh.f32 %v5263_v9  ;;  %v2208_v32 = vpop.permute.xlu1 %2207 }
 0xd10   : > { %4259 = vtanh.f32 %v5265_v1  ;;  %v2210_v6 = vpop.permute.xlu0 %2209  ;;  %v5275_v43 = vadd.f32 %v2208_v32, %v2148_v30 }
 0xd11   : > { %v5273_v16 = vadd.f32 %v2210_v6, %v2149_v36 }
 0xd13   : > { %4261 = vtanh.f32 %v5273_v16  ;;  %v2212_v25 = vpop.permute.xlu1 %2211 }
 0xd14   : > { %4263 = vtanh.f32 %v5275_v43  ;;  %v2214_v19 = vpop.permute.xlu0 %2213  ;;  %v5286_v35 = vadd.f32 %v2212_v25, %v2150_v13 }
 0xd15   : > { %v5284_v29 = vadd.f32 %v2214_v19, %v2151_v54 }
 0xd17   : > { %4265 = vtanh.f32 %v5284_v29  ;;  %v2216_v42 = vpop.permute.xlu1 %2215 }
 0xd18   : > { %v4256_v28 = vpop.eup %4255  ;;  %4267 = vtanh.f32 %v5286_v35  ;;  %v5292_v20 = vadd.f32 %v2216_v42, %v2152_v40 }
 0xd19   : > { %2249 = vrot.lane.b32.xlu0 %v4256_v28, %s4506_s16 }
 0xd1a   : > { %4269 = vtanh.f32 %v5292_v20 }
 0xd1c   : > { %v4258_v23 = vpop.eup %4257 }
 0xd1d   : > { %v4260_v3 = vpop.eup %4259  ;;  %2251 = vrot.lane.b32.xlu0 %v4258_v23, %s4506_s16 }
 0xd1e   : > { %2253 = vrot.lane.b32.xlu1 %v4260_v3, %s4506_s16 }
 0xd20   : > { %v4262_v63 = vpop.eup %4261 }
 0xd21   : > { %v4264_v36 = vpop.eup %4263  ;;  %2257 = vrot.lane.b32.xlu0 %v4262_v63, %s4506_s16 }
 0xd22   : > { %2255 = vrot.lane.b32.xlu1 %v4264_v36, %s4506_s16 }
 0xd24   : > { %v4266_v30 = vpop.eup %4265 }
 0xd25   : > { %v4268_v6 = vpop.eup %4267  ;;  %2261 = vrot.lane.b32.xlu0 %v4266_v30, %s4506_s16 }
 0xd26   : > { %2259 = vrot.lane.b32.xlu1 %v4268_v6, %s4506_s16 }
 0xd27   : > { %v4270_v18 = vpop.eup %4269 }
 0xd2a   : > { %2263 = vrot.lane.b32.xlu1 %v4270_v18, %s4506_s16 }
 0xd8b   : > { %v2250_v32 = vpop.permute.xlu0 %2249 }
 0xd8c   : > { %v5309_v25 = vmul.f32 %v5222_v44, %v2250_v32 }
 0xd8f   : > { %v2252_v28 = vpop.permute.xlu0 %2251 }
 0xd90   : > { %v2254_v54 = vpop.permute.xlu1 %2253  ;;  %v5303_v13 = vmul.f32 %v5226_v5, %v2252_v28 }
 0xd91   : > { %v5306_v19 = vmul.f32 %v5228_v10, %v2254_v54 }
 0xd92   : > { %v2333_v40 = vrot.slane %v5303_v13, 7 }
 0xd93   : > { %5982 = vst [vmem:[#allocation8_spill] sm:$0xff] %v5306_v19  ;;  %v2258_v42 = vpop.permute.xlu0 %2257  ;;  %v2335_v23 = vrot.slane %v5306_v19, 6 }
 0xd94   : > { %v2334_v3 = vsel %vm903_vm4, %v2333_v40, %v5309_v25  ;;  %v2256_v63 = vpop.permute.xlu1 %2255  ;;  %v5316_v36 = vmul.f32 %v5233_v2, %v2258_v42 }
 0xd95   : > { %v5319_v5 = vmul.f32 %v5236_v11, %v2256_v63  ;;  %v2336_v10 = vsel %vm906_vm5, %v2335_v23, %v2334_v3 }
 0xd96   : > { %5983 = vst [vmem:[#allocation9_spill] sm:$0xff] %v5316_v36  ;;  %v2339_v44 = vrot.slane %v5316_v36, 4 }
 0xd97   : > { %5984 = vst [vmem:[#allocation10_spill] sm:$0xff] %v5319_v5  ;;  %v2337_v30 = vrot.slane %v5319_v5, 5  ;;  %v2262_v6 = vpop.permute.xlu0 %2261 }
 0xd98   : > { %v2260_v18 = vpop.permute.xlu1 %2259  ;;  %v5325_v32 = vmul.f32 %v5241_v61, %v2262_v6 }
 0xd99   : > { %v2338_v28 = vsel %vm909_vm6, %v2337_v30, %v2336_v10  ;;  %v5329_v54 = vmul.f32 %v5244_v34, %v2260_v18  ;;  %v2321_v30 = vld [vmem:[#allocation2 + $0x5] sm:$0x1] }
 0xd9a   : > { %5985 = vst [vmem:[#allocation11_spill] sm:$0xff] %v5325_v32  ;;  %v2340_v2 = vsel %vm912_vm7, %v2339_v44, %v2338_v28  ;;  %v2343_v11 = vrot.slane %v5325_v32, 2 }
 0xd9b   : > { %5986 = vst [vmem:[#allocation12_spill] sm:$0xff] %v5329_v54  ;;  %v2341_v40 = vrot.slane %v5329_v54, 3  ;;  %v2327_v54 = vld [vmem:[#allocation2 + $0x35] sm:$0x1] }
 0xd9c   : > { %v2264_v42 = vpop.permute.xlu1 %2263 }
 0xd9d   : > { %v5335_v23 = vmul.f32 %v5250_v27, %v2264_v42  ;;  %v2342_v3 = vsel %vm915_vm8, %v2341_v40, %v2340_v2  ;;  %v2322_v2 = vld [vmem:[#allocation2 + $0xd] sm:$0x1] }
 0xd9e   : > { %v2344_v61 = vsel %vm918_vm9, %v2343_v11, %v2342_v3  ;;  %v2323_v11 = vld [vmem:[#allocation2 + $0x15] sm:$0x1] }
 0xd9f   : > { %5987 = vst [vmem:[#allocation13_spill] sm:$0xff] %v5335_v23  ;;  %v2345_v63 = vrot.slane %v5335_v23, 1 }
 0xda1   : > { %v2346_v10 = vsel %vm921_vm10, %v2345_v63, %v2344_v61  ;;  %v2325_v63 = vld [vmem:[#allocation2 + $0x25] sm:$0x1] }
 0xda2   : > { %2347 = vrot.lane.b32.xlu0 %v2346_v10, %s4507_s17  ;;  %v2324_v10 = vld [vmem:[#allocation2 + $0x1d] sm:$0x1] }
 0xe14   : > { %v2348_v34 = vpop.permute.xlu0 %2347 }
 0xe15   : > { %3881 = vmatmul.mubr.msk.f32.vlgmr.msra.gmra.mxu1 %vm527_vm3, %v2348_v34 }
 0xe16   : > { %3902 = vmatprep.mubr.msk.f32.mxu1 %vm4505_vm2, %v5960_v14 }
 0xed5   : > { %v2417_v44 = vpop.f32.mrf.mxu1 }
 0xed6   : > { %v2437_v27 = vadd.f32 %v2417_v44, %v2321_v30  ;;  %v2422_v18 = vrot.slane %v2417_v44, 1  ;;  %v2423_v28 = vrot.slane %v2417_v44, 2  ;;  %v2425_v40 = vrot.slane %v2417_v44, 4 }
 0xed7   : > { %v3882_v6 = vpop.f32.mrf.mxu1  ;;  %v2424_v3 = vrot.slane %v2417_v44, 3  ;;  %v2427_v23 = vrot.slane %v2417_v44, 6  ;;  %v2426_v32 = vrot.slane %v2417_v44, 5  ;;  %v2428_v5 = vrot.slane %v2417_v44, 7 }
 0xed8   : > { %4271 = vtanh.f32 %v2437_v27  ;;  %v2438_v42 = vadd.f32 %v2422_v18, %v2322_v2  ;;  %v2439_v61 = vadd.f32 %v2423_v28, %v2323_v11  ;;  %v2441_v34 = vadd.f32 %v2425_v40, %v2325_v63  ;;  %v2326_v6 = vld [vmem:[#allocation2 + $0x2d] sm:$0x1]  ;;  %v2328_v18 = vld [vmem:[#allocation2 + $0x3d] sm:$0x1] }
 0xed9   : > { %v2440_v14 = vadd.f32 %v2424_v3, %v2324_v10  ;;  %v2443_v36 = vadd.f32 %v2427_v23, %v2327_v54  ;;  %v2442_v19 = vadd.f32 %v2426_v32, %v2326_v6  ;;  %v2444_v28 = vadd.f32 %v2428_v5, %v2328_v18 }
 0xeda   : > { %4273 = vtanh.f32 %v2438_v42  ;;  %v3718_v23 = vmul.f32 -1.442695, %v2437_v27  ;;  %v3719_v44 = vmul.f32 -1.442695, %v2438_v42  ;;  %v3720_v63 = vmul.f32 -1.442695, %v2439_v61 }
 0xedb   : > { %4275 = vtanh.f32 %v2439_v61  ;;  %v3722_v10 = vmul.f32 -1.442695, %v2441_v34  ;;  %v3724_v18 = vmul.f32 -1.442695, %v2443_v36 }
 0xedc   : > { %4277 = vtanh.f32 %v2441_v34 }
 0xedd   : > { %4279 = vtanh.f32 %v2440_v14 }
 0xede   : > { %4281 = vtanh.f32 %v2443_v36 }
 0xedf   : > { %4283 = vtanh.f32 %v2442_v19 }
 0xee0   : > { %4285 = vtanh.f32 %v2444_v28 }
 0xee1   : > { %4287 = vpow2.f32 %v3718_v23 }
 0xee2   : > { %4289 = vpow2.f32 %v3719_v44 }
 0xee3   : > { %4291 = vpow2.f32 %v3720_v63 }
 0xee4   : > { %4293 = vpow2.f32 %v3722_v10 }
 0xee5   : > { %v4272_v30 = vpop.eup %4271 }
 0xee6   : > { %2517 = vrot.lane.b32.xlu1 %v4272_v30, %s4506_s16  ;;  %v3721_v30 = vmul.f32 -1.442695, %v2440_v14 }
 0xee7   : > { %v4274_v2 = vpop.eup %4273 }
 0xee8   : > { %v4276_v11 = vpop.eup %4275  ;;  %4295 = vpow2.f32 %v3721_v30 }
 0xee9   : > { %2521 = vrot.lane.b32.xlu0 %v4276_v11, %s4506_s16  ;;  %v4278_v40 = vpop.eup %4277  ;;  %4297 = vpow2.f32 %v3724_v18 }
 0xeea   : > { %2519 = vrot.lane.b32.xlu1 %v4274_v2, %s4506_s16  ;;  %v4280_v3 = vpop.eup %4279  ;;  %v3723_v2 = vmul.f32 -1.442695, %v2442_v19 }
 0xeeb   : > { %v4282_v32 = vpop.eup %4281 }
 0xeec   : > { %v4284_v54 = vpop.eup %4283  ;;  %4299 = vpow2.f32 %v3723_v2 }
 0xeed   : > { %2523 = vrot.lane.b32.xlu0 %v4280_v3, %s4506_s16  ;;  %v4286_v5 = vpop.eup %4285 }
 0xeee   : > { %2525 = vrot.lane.b32.xlu1 %v4278_v40, %s4506_s16  ;;  %v4288_v6 = vpop.eup %4287  ;;  %v3725_v40 = vmul.f32 -1.442695, %v2444_v28 }
 0xeef   : > { %v2469_v11 = vadd.f32 1.0, %v4288_v6  ;;  %v4290_v3 = vpop.eup %4289 }
 0xef0   : > { %v4292_v27 = vpop.eup %4291 }
 0xef1   : > { %2527 = vrot.lane.b32.xlu0 %v4284_v54, %s4506_s16  ;;  %4301 = vrcp.f32 %v2469_v11  ;;  %v4294_v42 = vpop.eup %4293  ;;  %v2471_v61 = vadd.f32 1.0, %v4292_v27 }
 0xef2   : > { %2529 = vrot.lane.b32.xlu1 %v4282_v32, %s4506_s16  ;;  %4303 = vpow2.f32 %v3725_v40  ;;  %v2470_v32 = vadd.f32 1.0, %v4290_v3  ;;  %v2473_v34 = vadd.f32 1.0, %v4294_v42 }
 0xef4   : > { %4305 = vrcp.f32 %v2470_v32 }
 0xef5   : > { %2531 = vrot.lane.b32.xlu0 %v4286_v5, %s4506_s16  ;;  %v4296_v54 = vpop.eup %4295  ;;  %4307 = vrcp.f32 %v2471_v61 }
 0xef6   : > { %v4298_v14 = vpop.eup %4297  ;;  %v2472_v5 = vadd.f32 1.0, %v4296_v54  ;;  %4309 = vrcp.f32 %v2473_v34 }
 0xef7   : > { %v2475_v19 = vadd.f32 1.0, %v4298_v14 }
 0xef8   : > { %4311 = vrcp.f32 %v2472_v5 }
 0xef9   : > { %v4300_v36 = vpop.eup %4299  ;;  %4313 = vrcp.f32 %v2475_v19 }
 0xefa   : > { %v2474_v28 = vadd.f32 1.0, %v4300_v36 }
 0xefc   : > { %4315 = vrcp.f32 %v2474_v28 }
 0xefe   : > { %v5353_v23 = vpop.eup %4301 }
 0xeff   : > { %v4304_v10 = vpop.eup %4303 }
 0xf00   : > { %v2476_v30 = vadd.f32 1.0, %v4304_v10 }
 0xf01   : > { %v5357_v6 = vpop.eup %4305 }
 0xf02   : > { %4317 = vrcp.f32 %v2476_v30  ;;  %v5359_v2 = vpop.eup %4307 }
 0xf03   : > { %v5364_v27 = vpop.eup %4309 }
 0xf05   : > { %v5367_v42 = vpop.eup %4311 }
 0xf06   : > { %v5372_v14 = vpop.eup %4313 }
 0xf09   : > { %v5375_v36 = vpop.eup %4315 }
 0xf58   : > { %v2518_v44 = vpop.permute.xlu1 %2517 }
 0xf59   : > { %v2541_v63 = vmul.f32 %v5353_v23, %v2518_v44 }
 0xf5b   : > { %2557 = vrot.lane.b32.xlu1 %v2541_v63, %s4507_s17  ;;  %v2522_v11 = vpop.permute.xlu0 %2521  ;;  %v5381_v63 = vpop.eup %4317 }
 0xf5c   : > { %v2520_v18 = vpop.permute.xlu1 %2519  ;;  %v2543_v3 = vmul.f32 %v5359_v2, %v2522_v11 }
 0xf5d   : > { %v2542_v40 = vmul.f32 %v5357_v6, %v2520_v18  ;;  %v2501_v18 = vmul.f32 %v5353_v23, %v5256_v47  ;;  %v2505_v47 = vmul.f32 %v5364_v27, %v5273_v16  ;;  %v2506_v16 = vmul.f32 %v5375_v36, %v5286_v35 }
 0xf5e   : > { %2561 = vrot.lane.b32.xlu0 %v2543_v3, %s4507_s17  ;;  %v2502_v3 = vmul.f32 %v5357_v6, %v5263_v9 }
 0xf5f   : > { %2559 = vrot.lane.b32.xlu1 %v2542_v40, %s4507_s17  ;;  %v2524_v61 = vpop.permute.xlu0 %2523 }
 0xf60   : > { %v2526_v32 = vpop.permute.xlu1 %2525  ;;  %v2544_v34 = vmul.f32 %v5367_v42, %v2524_v61 }
 0xf61   : > { %v2545_v54 = vmul.f32 %v5364_v27, %v2526_v32  ;;  %v2503_v32 = vmul.f32 %v5359_v2, %v5265_v1 }
 0xf62   : > { %2563 = vrot.lane.b32.xlu0 %v2544_v34, %s4507_s17 }
 0xf63   : > { %2565 = vrot.lane.b32.xlu1 %v2545_v54, %s4507_s17  ;;  %v2528_v19 = vpop.permute.xlu0 %2527 }
 0xf64   : > { %v2530_v5 = vpop.permute.xlu1 %2529  ;;  %v2546_v28 = vmul.f32 %v5375_v36, %v2528_v19  ;;  %v2504_v19 = vmul.f32 %v5367_v42, %v5275_v43 }
 0xf65   : > { %v2547_v44 = vmul.f32 %v5372_v14, %v2530_v5 }
 0xf66   : > { %2567 = vrot.lane.b32.xlu0 %v2546_v28, %s4507_s17 }
 0xf67   : > { %2569 = vrot.lane.b32.xlu1 %v2547_v44, %s4507_s17  ;;  %v2532_v10 = vpop.permute.xlu0 %2531 }
 0xf68   : > { %v2548_v30 = vmul.f32 %v5381_v63, %v2532_v10 }
 0xf6a   : > { %2571 = vrot.lane.b32.xlu0 %v2548_v30, %s4507_s17  ;;  %v2507_v30 = vmul.f32 %v5372_v14, %v5284_v29  ;;  %v2508_v29 = vmul.f32 %v5381_v63, %v5292_v20  ;;  %v2688_v20 = vld [vmem:[%s5953_s2 + $0x18] sm:$0xff] }
 0xf6b   : > { %3884 = vmatpush3.msra.mxu0 %v2688_v20  ;;  %3895 = vmatpush3.msra.mxu1 %v2688_v20 }
 0xfcd   : > { %v2558_v11 = vpop.permute.xlu1 %2557 }
 0xfce   : > { %v5387_v40 = vadd.f32 %v2558_v11, %v2501_v18 }
 0xfd0   : > { %4319 = vtanh.f32 %v5387_v40  ;;  %v2562_v54 = vpop.permute.xlu0 %2561 }
 0xfd1   : > { %v2560_v61 = vpop.permute.xlu1 %2559  ;;  %v5396_v5 = vadd.f32 %v2562_v54, %v2503_v32 }
 0xfd2   : > { %v5394_v34 = vadd.f32 %v2560_v61, %v2502_v3 }
 0xfd4   : > { %4321 = vtanh.f32 %v5394_v34  ;;  %v2564_v44 = vpop.permute.xlu0 %2563 }
 0xfd5   : > { %4323 = vtanh.f32 %v5396_v5  ;;  %v2566_v9 = vpop.permute.xlu1 %2565  ;;  %v5406_v1 = vadd.f32 %v2564_v44, %v2504_v19 }
 0xfd6   : > { %v5404_v28 = vadd.f32 %v2566_v9, %v2505_v47  ;;  %v2687_v9 = vld [vmem:[%s5953_s2 + $0x10] sm:$0xff] }
 0xfd8   : > { %4325 = vtanh.f32 %v5404_v28  ;;  %v2568_v43 = vpop.permute.xlu0 %2567 }
 0xfd9   : > { %4327 = vtanh.f32 %v5406_v1  ;;  %v2570_v18 = vpop.permute.xlu1 %2569  ;;  %v5417_v3 = vadd.f32 %v2568_v43, %v2506_v16 }
 0xfda   : > { %v5415_v11 = vadd.f32 %v2570_v18, %v2507_v30  ;;  %v2686_v30 = vld [vmem:[%s5953_s2 + $0x8] sm:$0xff]  ;;  %v2685_v18 = vld [vmem:[%s5953_s2] sm:$0xff] }
 0xfdc   : > { %4329 = vtanh.f32 %v5415_v11  ;;  %v2572_v32 = vpop.permute.xlu0 %2571 }
 0xfdd   : > { %v4320_v10 = vpop.eup %4319  ;;  %4331 = vtanh.f32 %v5417_v3  ;;  %v5423_v61 = vadd.f32 %v2572_v32, %v2508_v29 }
 0xfde   : > { %2605 = vrot.lane.b32.xlu1 %v4320_v10, %s4506_s16  ;;  %v5988_v10 = vmov 0.0  }
 0xfdf   : > { %4333 = vtanh.f32 %v5423_v61  ;;  %3885 = vmatprep.subr.mxu0 %v5988_v10  ;;  %3896 = vmatprep.subr.mxu1 %v5988_v10 }
 0xfe0   : > { %3886 = vmatpush3.msra.mxu0 %v2687_v9  ;;  %3897 = vmatpush3.msra.mxu1 %v2687_v9 }
 0xfe1   : > { %v4322_v54 = vpop.eup %4321  ;;  %3887 = vmatprep.subr.mxu0 %v5988_v10  ;;  %3898 = vmatprep.subr.mxu1 %v5988_v10 }
 0xfe2   : > { %v4324_v35 = vpop.eup %4323  ;;  %2607 = vrot.lane.b32.xlu1 %v4322_v54, %s4506_s16  ;;  %3888 = vmatpush3.msra.mxu0 %v2686_v30 }
 0xfe3   : > { %2609 = vrot.lane.b32.xlu0 %v4324_v35, %s4506_s16  ;;  %3889 = vmatprep.subr.mxu0 %v5988_v10 }
 0xfe4   : > { %3890 = vmatpush3.msra.mxu0 %v2685_v18  ;;  %3899 = vmatpush3.msra.mxu1 %v2686_v30 }
 0xfe5   : > { %v4326_v47 = vpop.eup %4325  ;;  %3900 = vmatprep.subr.mxu1 %v5988_v10 }
 0xfe6   : > { %v4328_v19 = vpop.eup %4327  ;;  %2613 = vrot.lane.b32.xlu1 %v4326_v47, %s4506_s16  ;;  %3901 = vmatpush3.msra.mxu1 %v2685_v18 }
 0xfe7   : > { %2611 = vrot.lane.b32.xlu0 %v4328_v19, %s4506_s16 }
 0xfe9   : > { %v4330_v44 = vpop.eup %4329 }
 0xfea   : > { %v4332_v16 = vpop.eup %4331  ;;  %2617 = vrot.lane.b32.xlu1 %v4330_v44, %s4506_s16 }
 0xfeb   : > { %2615 = vrot.lane.b32.xlu0 %v4332_v16, %s4506_s16 }
 0xfec   : > { %v4334_v43 = vpop.eup %4333 }
 0xfef   : > { %2619 = vrot.lane.b32.xlu0 %v4334_v43, %s4506_s16 }
0x1050   : > { %v2606_v29 = vpop.permute.xlu1 %2605 }
0x1051   : > { %v5458_v19 = vmul.f32 %v5353_v23, %v2606_v29 }
0x1053   : > { %5991 = vst [vmem:[#allocation16_spill] sm:$0xff] %v5458_v19 }
0x1054   : > { %v2608_v32 = vpop.permute.xlu1 %2607 }
0x1055   : > { %v2610_v54 = vpop.permute.xlu0 %2609  ;;  %v5452_v35 = vmul.f32 %v5357_v6, %v2608_v32 }
0x1056   : > { %v5455_v47 = vmul.f32 %v5359_v2, %v2610_v54 }
0x1057   : > { %5989 = vst [vmem:[#allocation14_spill] sm:$0xff] %v5452_v35  ;;  %v2689_v20 = vrot.slane %v5452_v35, 7 }
0x1058   : > { %5990 = vst [vmem:[#allocation15_spill] sm:$0xff] %v5455_v47  ;;  %v2614_v9 = vpop.permute.xlu1 %2613  ;;  %v2691_v44 = vrot.slane %v5455_v47, 6 }
0x1059   : > { %v2690_v10 = vsel %vm903_vm4, %v2689_v20, %v5458_v19  ;;  %v2612_v30 = vpop.permute.xlu0 %2611  ;;  %v5465_v16 = vmul.f32 %v5364_v27, %v2614_v9 }
0x105a   : > { %v5468_v6 = vmul.f32 %v5367_v42, %v2612_v30  ;;  %v2692_v2 = vsel %vm906_vm5, %v2691_v44, %v2690_v10 }
0x105b   : > { %5992 = vst [vmem:[#allocation17_spill] sm:$0xff] %v5465_v16  ;;  %v2695_v23 = vrot.slane %v5465_v16, 4 }
0x105c   : > { %5993 = vst [vmem:[#allocation18_spill] sm:$0xff] %v5468_v6  ;;  %v2693_v18 = vrot.slane %v5468_v6, 5  ;;  %v2618_v43 = vpop.permute.xlu1 %2617  ;;  %v2683_v6 = vld [vmem:[#allocation2 + $0x36] sm:$0x1] }
0x105d   : > { %v2616_v29 = vpop.permute.xlu0 %2615  ;;  %v5474_v32 = vmul.f32 %v5372_v14, %v2618_v43 }
0x105e   : > { %v2694_v54 = vsel %vm909_vm6, %v2693_v18, %v2692_v2  ;;  %v5478_v20 = vmul.f32 %v5375_v36, %v2616_v29  ;;  %v2677_v18 = vld [vmem:[#allocation2 + $0x6] sm:$0x1] }
0x105f   : > { %5994 = vst [vmem:[#allocation19_spill] sm:$0xff] %v5474_v32  ;;  %v2696_v27 = vsel %vm912_vm7, %v2695_v23, %v2694_v54  ;;  %v2699_v42 = vrot.slane %v5474_v32, 2  ;;  %v2678_v32 = vld [vmem:[#allocation2 + $0xe] sm:$0x1] }
0x1060   : > { %5995 = vst [vmem:[#allocation20_spill] sm:$0xff] %v5478_v20  ;;  %v2697_v9 = vrot.slane %v5478_v20, 3  ;;  %v2681_v20 = vld [vmem:[#allocation2 + $0x26] sm:$0x1] }
0x1061   : > { %v2620_v44 = vpop.permute.xlu0 %2619 }
0x1062   : > { %v5484_v10 = vmul.f32 %v5381_v63, %v2620_v44  ;;  %v2698_v30 = vsel %vm915_vm8, %v2697_v9, %v2696_v27  ;;  %v2679_v27 = vld [vmem:[#allocation2 + $0x16] sm:$0x1] }
0x1063   : > { %v2700_v14 = vsel %vm918_vm9, %v2699_v42, %v2698_v30 }
0x1064   : > { %5996 = vst [vmem:[#allocation21_spill] sm:$0xff] %v5484_v10  ;;  %v2701_v43 = vrot.slane %v5484_v10, 1 }
0x1066   : > { %v2702_v2 = vsel %vm921_vm10, %v2701_v43, %v2700_v14  ;;  %v2680_v14 = vld [vmem:[#allocation2 + $0x1e] sm:$0x1] }
0x1067   : > { %2703 = vrot.lane.b32.xlu1 %v2702_v2, %s4507_s17 }
0x10d9   : > { %v2704_v36 = vpop.permute.xlu1 %2703 }
0x10da   : > { %3892 = vmatmul.mubr.msk.f32.vlgmr.msra.gmra.mxu0 %vm527_vm3, %v2704_v36 }
0x119a   : > { %v2773_v23 = vpop.f32.mrf.mxu0 }
0x119b   : > { %v2793_v29 = vadd.f32 %v2773_v23, %v2677_v18  ;;  %v2778_v63 = vrot.slane %v2773_v23, 1  ;;  %v2779_v44 = vrot.slane %v2773_v23, 2  ;;  %v2781_v9 = vrot.slane %v2773_v23, 4 }
0x119c   : > { %v3893_v54 = vpop.f32.mrf.mxu0  ;;  %v2780_v30 = vrot.slane %v2773_v23, 3  ;;  %v2783_v43 = vrot.slane %v2773_v23, 6  ;;  %v2782_v16 = vrot.slane %v2773_v23, 5  ;;  %v2784_v35 = vrot.slane %v2773_v23, 7 }
0x119d   : > { %4335 = vtanh.f32 %v2793_v29  ;;  %v2794_v42 = vadd.f32 %v2778_v63, %v2678_v32  ;;  %v2795_v10 = vadd.f32 %v2779_v44, %v2679_v27  ;;  %v2797_v2 = vadd.f32 %v2781_v9, %v2681_v20  ;;  %v2682_v54 = vld [vmem:[#allocation2 + $0x2e] sm:$0x1]  ;;  %v2684_v32 = vld [vmem:[#allocation2 + $0x3e] sm:$0x1] }
0x119e   : > { %v2796_v36 = vadd.f32 %v2780_v30, %v2680_v14  ;;  %v2799_v47 = vadd.f32 %v2783_v43, %v2683_v6  ;;  %v2798_v19 = vadd.f32 %v2782_v16, %v2682_v54  ;;  %v2800_v63 = vadd.f32 %v2784_v35, %v2684_v32 }
0x119f   : > { %4337 = vtanh.f32 %v2794_v42  ;;  %v3727_v23 = vmul.f32 -1.442695, %v2793_v29  ;;  %v3728_v30 = vmul.f32 -1.442695, %v2794_v42  ;;  %v3729_v14 = vmul.f32 -1.442695, %v2795_v10 }
0x11a0   : > { %4339 = vtanh.f32 %v2795_v10  ;;  %v3731_v43 = vmul.f32 -1.442695, %v2797_v2  ;;  %v3733_v32 = vmul.f32 -1.442695, %v2799_v47 }
0x11a1   : > { %4341 = vtanh.f32 %v2797_v2 }
0x11a2   : > { %4343 = vtanh.f32 %v2796_v36 }
0x11a3   : > { %4345 = vtanh.f32 %v2799_v47 }
0x11a4   : > { %4347 = vtanh.f32 %v2798_v19 }
0x11a5   : > { %4349 = vtanh.f32 %v2800_v63 }
0x11a6   : > { %4351 = vpow2.f32 %v3727_v23 }
0x11a7   : > { %4353 = vpow2.f32 %v3728_v30 }
0x11a8   : > { %4355 = vpow2.f32 %v3729_v14 }
0x11a9   : > { %4357 = vpow2.f32 %v3731_v43 }
0x11aa   : > { %v4336_v18 = vpop.eup %4335 }
0x11ab   : > { %2873 = vrot.lane.b32.xlu0 %v4336_v18, %s4506_s16  ;;  %v3730_v18 = vmul.f32 -1.442695, %v2796_v36 }
0x11ac   : > { %v4338_v44 = vpop.eup %4337 }
0x11ad   : > { %v4340_v20 = vpop.eup %4339  ;;  %4359 = vpow2.f32 %v3730_v18 }
0x11ae   : > { %2877 = vrot.lane.b32.xlu1 %v4340_v20, %s4506_s16  ;;  %v4342_v27 = vpop.eup %4341  ;;  %4361 = vpow2.f32 %v3733_v32 }
0x11af   : > { %2875 = vrot.lane.b32.xlu0 %v4338_v44, %s4506_s16  ;;  %v4344_v9 = vpop.eup %4343  ;;  %v3732_v44 = vmul.f32 -1.442695, %v2798_v19 }
0x11b0   : > { %v4346_v16 = vpop.eup %4345 }
0x11b1   : > { %v4348_v6 = vpop.eup %4347  ;;  %4363 = vpow2.f32 %v3732_v44 }
0x11b2   : > { %2879 = vrot.lane.b32.xlu1 %v4344_v9, %s4506_s16  ;;  %v4350_v35 = vpop.eup %4349 }
0x11b3   : > { %2881 = vrot.lane.b32.xlu0 %v4342_v27, %s4506_s16  ;;  %v4352_v54 = vpop.eup %4351  ;;  %v3734_v27 = vmul.f32 -1.442695, %v2800_v63 }
0x11b4   : > { %v2825_v20 = vadd.f32 1.0, %v4352_v54  ;;  %v4354_v9 = vpop.eup %4353 }
0x11b5   : > { %v4356_v29 = vpop.eup %4355 }
0x11b6   : > { %2883 = vrot.lane.b32.xlu1 %v4348_v6, %s4506_s16  ;;  %4365 = vrcp.f32 %v2825_v20  ;;  %v4358_v42 = vpop.eup %4357  ;;  %v2827_v10 = vadd.f32 1.0, %v4356_v29 }
0x11b7   : > { %2885 = vrot.lane.b32.xlu0 %v4346_v16, %s4506_s16  ;;  %4367 = vpow2.f32 %v3734_v27  ;;  %v2826_v16 = vadd.f32 1.0, %v4354_v9  ;;  %v2829_v2 = vadd.f32 1.0, %v4358_v42 }
0x11b9   : > { %4369 = vrcp.f32 %v2826_v16 }
0x11ba   : > { %2887 = vrot.lane.b32.xlu1 %v4350_v35, %s4506_s16  ;;  %v4360_v6 = vpop.eup %4359  ;;  %4371 = vrcp.f32 %v2827_v10 }
0x11bb   : > { %v4362_v36 = vpop.eup %4361  ;;  %v2828_v35 = vadd.f32 1.0, %v4360_v6  ;;  %4373 = vrcp.f32 %v2829_v2 }
0x11bc   : > { %v2831_v19 = vadd.f32 1.0, %v4362_v36 }
0x11bd   : > { %4375 = vrcp.f32 %v2828_v35 }
0x11be   : > { %v4364_v47 = vpop.eup %4363  ;;  %4377 = vrcp.f32 %v2831_v19 }
0x11bf   : > { %v2830_v63 = vadd.f32 1.0, %v4364_v47 }
0x11c1   : > { %4379 = vrcp.f32 %v2830_v63 }
0x11c3   : > { %v5500_v23 = vpop.eup %4365 }
0x11c4   : > { %v4368_v43 = vpop.eup %4367 }
0x11c5   : > { %v2832_v18 = vadd.f32 1.0, %v4368_v43 }
0x11c6   : > { %v5504_v54 = vpop.eup %4369 }
0x11c7   : > { %4381 = vrcp.f32 %v2832_v18  ;;  %v5506_v44 = vpop.eup %4371 }
0x11c8   : > { %v5511_v29 = vpop.eup %4373 }
0x11ca   : > { %v5514_v42 = vpop.eup %4375 }
0x11cb   : > { %v5519_v36 = vpop.eup %4377 }
0x11ce   : > { %v5522_v47 = vpop.eup %4379 }
0x121d   : > { %v2874_v30 = vpop.permute.xlu0 %2873 }
0x121e   : > { %v2897_v14 = vmul.f32 %v5500_v23, %v2874_v30 }
0x1220   : > { %2913 = vrot.lane.b32.xlu0 %v2897_v14, %s4507_s17  ;;  %v2878_v20 = vpop.permute.xlu1 %2877  ;;  %v5528_v14 = vpop.eup %4381 }
0x1221   : > { %v2876_v32 = vpop.permute.xlu0 %2875  ;;  %v2899_v9 = vmul.f32 %v5506_v44, %v2878_v20 }
0x1222   : > { %v2898_v27 = vmul.f32 %v5504_v54, %v2876_v32  ;;  %v2857_v32 = vmul.f32 %v5500_v23, %v5387_v40  ;;  %v2861_v40 = vmul.f32 %v5511_v29, %v5404_v28  ;;  %v2862_v28 = vmul.f32 %v5522_v47, %v5417_v3 }
0x1223   : > { %2917 = vrot.lane.b32.xlu1 %v2899_v9, %s4507_s17  ;;  %v2858_v9 = vmul.f32 %v5504_v54, %v5394_v34 }
0x1224   : > { %2915 = vrot.lane.b32.xlu0 %v2898_v27, %s4507_s17  ;;  %v2880_v10 = vpop.permute.xlu1 %2879 }
0x1225   : > { %v2882_v16 = vpop.permute.xlu0 %2881  ;;  %v2900_v2 = vmul.f32 %v5514_v42, %v2880_v10 }
0x1226   : > { %v2901_v6 = vmul.f32 %v5511_v29, %v2882_v16  ;;  %v2859_v16 = vmul.f32 %v5506_v44, %v5396_v5 }
0x1227   : > { %2919 = vrot.lane.b32.xlu1 %v2900_v2, %s4507_s17 }
0x1228   : > { %2921 = vrot.lane.b32.xlu0 %v2901_v6, %s4507_s17  ;;  %v2884_v19 = vpop.permute.xlu1 %2883 }
0x1229   : > { %v2886_v35 = vpop.permute.xlu0 %2885  ;;  %v2902_v63 = vmul.f32 %v5522_v47, %v2884_v19  ;;  %v2860_v19 = vmul.f32 %v5514_v42, %v5406_v1 }
0x122a   : > { %v2903_v30 = vmul.f32 %v5519_v36, %v2886_v35 }
0x122b   : > { %2923 = vrot.lane.b32.xlu1 %v2902_v63, %s4507_s17 }
0x122c   : > { %2925 = vrot.lane.b32.xlu0 %v2903_v30, %s4507_s17  ;;  %v2888_v43 = vpop.permute.xlu1 %2887 }
0x122d   : > { %v2904_v18 = vmul.f32 %v5528_v14, %v2888_v43 }
0x122f   : > { %2927 = vrot.lane.b32.xlu1 %v2904_v18, %s4507_s17  ;;  %v2863_v18 = vmul.f32 %v5519_v36, %v5415_v11  ;;  %v2864_v11 = vmul.f32 %v5528_v14, %v5423_v61 }
0x1292   : > { %v2914_v20 = vpop.permute.xlu0 %2913 }
0x1293   : > { %v5534_v27 = vadd.f32 %v2914_v20, %v2857_v32 }
0x1295   : > { %4383 = vtanh.f32 %v5534_v27  ;;  %v2918_v6 = vpop.permute.xlu1 %2917 }
0x1296   : > { %v2916_v10 = vpop.permute.xlu0 %2915  ;;  %v5543_v35 = vadd.f32 %v2918_v6, %v2859_v16 }
0x1297   : > { %v5541_v2 = vadd.f32 %v2916_v10, %v2858_v9 }
0x1299   : > { %4385 = vtanh.f32 %v5541_v2  ;;  %v2920_v30 = vpop.permute.xlu1 %2919 }
0x129a   : > { %4387 = vtanh.f32 %v5543_v35  ;;  %v2922_v34 = vpop.permute.xlu0 %2921  ;;  %v5553_v5 = vadd.f32 %v2920_v30, %v2860_v19 }
0x129b   : > { %v5551_v63 = vadd.f32 %v2922_v34, %v2861_v40 }
0x129d   : > { %4389 = vtanh.f32 %v5551_v63  ;;  %v2924_v1 = vpop.permute.xlu1 %2923 }
0x129e   : > { %4391 = vtanh.f32 %v5553_v5  ;;  %v2926_v32 = vpop.permute.xlu0 %2925  ;;  %v5564_v9 = vadd.f32 %v2924_v1, %v2862_v28 }
0x129f   : > { %v5562_v20 = vadd.f32 %v2926_v32, %v2863_v18 }
0x12a1   : > { %4393 = vtanh.f32 %v5562_v20  ;;  %v2928_v16 = vpop.permute.xlu1 %2927 }
0x12a2   : > { %v4384_v43 = vpop.eup %4383  ;;  %4395 = vtanh.f32 %v5564_v9  ;;  %v5570_v10 = vadd.f32 %v2928_v16, %v2864_v11 }
0x12a3   : > { %2961 = vrot.lane.b32.xlu0 %v4384_v43, %s4506_s16 }
0x12a4   : > { %4397 = vtanh.f32 %v5570_v10 }
0x12a6   : > { %v4386_v6 = vpop.eup %4385 }
0x12a7   : > { %v4388_v3 = vpop.eup %4387  ;;  %2963 = vrot.lane.b32.xlu0 %v4386_v6, %s4506_s16 }
0x12a8   : > { %2965 = vrot.lane.b32.xlu1 %v4388_v3, %s4506_s16 }
0x12aa   : > { %v4390_v40 = vpop.eup %4389 }
0x12ab   : > { %v4392_v19 = vpop.eup %4391  ;;  %2969 = vrot.lane.b32.xlu0 %v4390_v40, %s4506_s16 }
0x12ac   : > { %2967 = vrot.lane.b32.xlu1 %v4392_v19, %s4506_s16 }
0x12ae   : > { %v4394_v34 = vpop.eup %4393 }
0x12af   : > { %v4396_v30 = vpop.eup %4395  ;;  %2973 = vrot.lane.b32.xlu0 %v4394_v34, %s4506_s16 }
0x12b0   : > { %2971 = vrot.lane.b32.xlu1 %v4396_v30, %s4506_s16 }
0x12b1   : > { %v4398_v61 = vpop.eup %4397 }
0x12b4   : > { %2975 = vrot.lane.b32.xlu1 %v4398_v61, %s4506_s16 }
0x1315   : > { %v2962_v43 = vpop.permute.xlu0 %2961 }
0x1316   : > { %v5587_v11 = vmul.f32 %v5500_v23, %v2962_v43 }
0x1319   : > { %v2964_v18 = vpop.permute.xlu0 %2963 }
0x131a   : > { %v2966_v28 = vpop.permute.xlu1 %2965  ;;  %v5581_v32 = vmul.f32 %v5504_v54, %v2964_v18 }
0x131b   : > { %v5584_v1 = vmul.f32 %v5506_v44, %v2966_v28 }
0x131c   : > { %5997 = vst [vmem:[#allocation22_spill] sm:$0xff] %v5581_v32  ;;  %v3045_v16 = vrot.slane %v5581_v32, 7  ;;  %v3040_v32 = vld [vmem:[#allocation2 + $0x3f] sm:$0x1] }
0x131d   : > { %5998 = vst [vmem:[#allocation23_spill] sm:$0xff] %v5584_v1  ;;  %v2970_v6 = vpop.permute.xlu0 %2969  ;;  %v3047_v3 = vrot.slane %v5584_v1, 6 }
0x131e   : > { %v3046_v40 = vsel %vm903_vm4, %v3045_v16, %v5587_v11  ;;  %v2968_v19 = vpop.permute.xlu1 %2967  ;;  %v5594_v34 = vmul.f32 %v5511_v29, %v2970_v6 }
0x131f   : > { %v5597_v54 = vmul.f32 %v5514_v42, %v2968_v19  ;;  %v3048_v44 = vsel %vm906_vm5, %v3047_v3, %v3046_v40 }
0x1320   : > { %5999 = vst [vmem:[#allocation24_spill] sm:$0xff] %v5594_v34  ;;  %v3051_v23 = vrot.slane %v5594_v34, 4 }
0x1321   : > { %6000 = vst [vmem:[#allocation25_spill] sm:$0xff] %v5597_v54  ;;  %v3049_v30 = vrot.slane %v5597_v54, 5  ;;  %v2974_v61 = vpop.permute.xlu0 %2973  ;;  %v3037_v54 = vld [vmem:[#allocation2 + $0x27] sm:$0x1] }
0x1322   : > { %v2972_v43 = vpop.permute.xlu1 %2971  ;;  %v5603_v18 = vmul.f32 %v5519_v36, %v2974_v61 }
0x1323   : > { %v3050_v28 = vsel %vm909_vm6, %v3049_v30, %v3048_v44  ;;  %v5607_v16 = vmul.f32 %v5522_v47, %v2972_v43  ;;  %v3033_v30 = vld [vmem:[#allocation2 + $0x7] sm:$0x1] }
0x1324   : > { %6001 = vst [vmem:[#allocation26_spill] sm:$0xff] %v5603_v18  ;;  %v3052_v29 = vsel %vm912_vm7, %v3051_v23, %v3050_v28  ;;  %v3055_v42 = vrot.slane %v5603_v18, 2 }
0x1325   : > { %6002 = vst [vmem:[#allocation27_spill] sm:$0xff] %v5607_v16  ;;  %v3053_v6 = vrot.slane %v5607_v16, 3  ;;  %v3035_v16 = vld [vmem:[#allocation2 + $0x17] sm:$0x1] }
0x1326   : > { %v2976_v3 = vpop.permute.xlu1 %2975 }
0x1327   : > { %v3054_v40 = vsel %vm915_vm8, %v3053_v6, %v3052_v29  ;;  %v5614_v19 = vmul.f32 %v5528_v14, %v2976_v3  ;;  %v3034_v14 = vld [vmem:[#allocation2 + $0xf] sm:$0x1] }
0x1328   : > { %v3056_v36 = vsel %vm918_vm9, %v3055_v42, %v3054_v40  ;;  %v3036_v42 = vld [vmem:[#allocation2 + $0x1f] sm:$0x1] }
0x1329   : > { %6003 = vst [vmem:[#allocation28_spill] sm:$0xff] %v5614_v19  ;;  %v3057_v61 = vrot.slane %v5614_v19, 1 }
0x132b   : > { %v3058_v44 = vsel %vm921_vm10, %v3057_v61, %v3056_v36 }
0x132c   : > { %3059 = vrot.lane.b32.xlu0 %v3058_v44, %s4507_s17  ;;  %v3038_v44 = vld [vmem:[#allocation2 + $0x2f] sm:$0x1] }
0x139e   : > { %v3060_v47 = vpop.permute.xlu0 %3059 }
0x139f   : > { %3903 = vmatmul.mubr.msk.f32.vlgmr.msra.gmra.mxu1 %vm527_vm3, %v3060_v47 }
0x145f   : > { %v3129_v23 = vpop.f32.mrf.mxu1 }
0x1460   : > { %v3149_v43 = vadd.f32 %v3129_v23, %v3033_v30  ;;  %v3134_v29 = vrot.slane %v3129_v23, 1  ;;  %v3136_v6 = vrot.slane %v3129_v23, 3  ;;  %v3135_v3 = vrot.slane %v3129_v23, 2 }
0x1461   : > { %v3904_v28 = vpop.f32.mrf.mxu1  ;;  %v3138_v40 = vrot.slane %v3129_v23, 5  ;;  %v3137_v36 = vrot.slane %v3129_v23, 4  ;;  %v3140_v34 = vrot.slane %v3129_v23, 7 }
0x1462   : > { %4399 = vtanh.f32 %v3149_v43  ;;  %v3150_v18 = vadd.f32 %v3134_v29, %v3034_v14  ;;  %v3152_v19 = vadd.f32 %v3136_v6, %v3036_v42  ;;  %v3151_v61 = vadd.f32 %v3135_v3, %v3035_v16  ;;  %v3039_v14 = vld [vmem:[#allocation2 + $0x37] sm:$0x1] }
0x1463   : > { %v3154_v47 = vadd.f32 %v3138_v40, %v3038_v44  ;;  %v3139_v28 = vrot.slane %v3129_v23, 6  ;;  %v3153_v1 = vadd.f32 %v3137_v36, %v3037_v54  ;;  %v3156_v29 = vadd.f32 %v3140_v34, %v3040_v32 }
0x1464   : > { %4401 = vtanh.f32 %v3150_v18  ;;  %v3736_v40 = vmul.f32 -1.442695, %v3149_v43  ;;  %v3737_v36 = vmul.f32 -1.442695, %v3150_v18  ;;  %v3739_v44 = vmul.f32 -1.442695, %v3152_v19 }
0x1465   : > { %4403 = vtanh.f32 %v3152_v19  ;;  %v3155_v6 = vadd.f32 %v3139_v28, %v3039_v14  ;;  %v3741_v28 = vmul.f32 -1.442695, %v3154_v47 }
0x1466   : > { %4405 = vtanh.f32 %v3151_v61 }
0x1467   : > { %4407 = vtanh.f32 %v3154_v47 }
0x1468   : > { %4409 = vtanh.f32 %v3153_v1 }
0x1469   : > { %4411 = vtanh.f32 %v3156_v29 }
0x146a   : > { %4413 = vtanh.f32 %v3155_v6 }
0x146b   : > { %4415 = vpow2.f32 %v3736_v40 }
0x146c   : > { %4417 = vpow2.f32 %v3737_v36 }
0x146d   : > { %4419 = vpow2.f32 %v3739_v44 }
0x146f   : > { %v4400_v30 = vpop.eup %4399 }
0x1470   : > { %3229 = vrot.lane.b32.xlu0 %v4400_v30, %s4506_s16  ;;  %v3738_v30 = vmul.f32 -1.442695, %v3151_v61 }
0x1471   : > { %v4402_v16 = vpop.eup %4401 }
0x1472   : > { %3231 = vrot.lane.b32.xlu1 %v4402_v16, %s4506_s16  ;;  %v4404_v3 = vpop.eup %4403  ;;  %4421 = vpow2.f32 %v3738_v30  ;;  %v3743_v16 = vmul.f32 -1.442695, %v3156_v29 }
0x1473   : > { %v4406_v42 = vpop.eup %4405  ;;  %4423 = vpow2.f32 %v3741_v28 }
0x1474   : > { %3235 = vrot.lane.b32.xlu0 %v4404_v3, %s4506_s16  ;;  %v4408_v54 = vpop.eup %4407  ;;  %v3742_v3 = vmul.f32 -1.442695, %v3155_v6 }
0x1475   : > { %v4410_v23 = vpop.eup %4409 }
0x1476   : > { %3233 = vrot.lane.b32.xlu1 %v4406_v42, %s4506_s16  ;;  %v4412_v32 = vpop.eup %4411 }
0x1477   : > { %v4414_v34 = vpop.eup %4413 }
0x1478   : > { %3239 = vrot.lane.b32.xlu0 %v4408_v54, %s4506_s16  ;;  %v4416_v14 = vpop.eup %4415 }
0x147a   : > { %3237 = vrot.lane.b32.xlu1 %v4410_v23, %s4506_s16 }
0x147c   : > { %3243 = vrot.lane.b32.xlu0 %v4412_v32, %s4506_s16 }
0x147e   : > { %3241 = vrot.lane.b32.xlu1 %v4414_v34, %s4506_s16 }
0x1480   : > { %859 = vrot.lane.b32.xlu0 %v4755_v51, %s4507_s17  ;;  %v3740_v51 = vmul.f32 -1.442695, %v3153_v1 }
0x1482   : > { %857 = vrot.lane.b32.xlu1 %v4758_v52, %s4507_s17  ;;  %v3181_v52 = vadd.f32 1.0, %v4416_v14  ;;  %4425 = vpow2.f32 %v3740_v51 }
0x1483   : > { %4427 = vpow2.f32 %v3743_v16 }
0x1484   : > { %863 = vrot.lane.b32.xlu0 %v4765_v58, %s4507_s17  ;;  %4429 = vrcp.f32 %v3181_v52 }
0x1485   : > { %4431 = vpow2.f32 %v3742_v3 }
0x1486   : > { %861 = vrot.lane.b32.xlu1 %v4761_v55, %s4507_s17  ;;  %v4418_v55 = vpop.eup %4417 }
0x1487   : > { %v4420_v58 = vpop.eup %4419  ;;  %v3182_v43 = vadd.f32 1.0, %v4418_v55 }
0x1488   : > { %v4422_v18 = vpop.eup %4421  ;;  %v3184_v19 = vadd.f32 1.0, %v4420_v58 }
0x1489   : > { %v4424_v42 = vpop.eup %4423  ;;  %v3183_v61 = vadd.f32 1.0, %v4422_v18  ;;  %4433 = vrcp.f32 %v3182_v43 }
0x148a   : > { %v3186_v54 = vadd.f32 1.0, %v4424_v42  ;;  %4435 = vrcp.f32 %v3184_v19 }
0x148b   : > { %4437 = vrcp.f32 %v3183_v61 }
0x148c   : > { %4439 = vrcp.f32 %v3186_v54 }
0x148f   : > { %v4426_v47 = vpop.eup %4425 }
0x1490   : > { %v4428_v1 = vpop.eup %4427  ;;  %v3185_v29 = vadd.f32 1.0, %v4426_v47 }
0x1491   : > { %v5637_v23 = vpop.eup %4429  ;;  %v3188_v40 = vadd.f32 1.0, %v4428_v1 }
0x1492   : > { %v4432_v32 = vpop.eup %4431  ;;  %4441 = vrcp.f32 %v3185_v29 }
0x1493   : > { %v3187_v36 = vadd.f32 1.0, %v4432_v32  ;;  %4443 = vrcp.f32 %v3188_v40 }
0x1495   : > { %4445 = vrcp.f32 %v3187_v36 }
0x1496   : > { %v5641_v44 = vpop.eup %4433 }
0x1497   : > { %v5644_v14 = vpop.eup %4435 }
0x1498   : > { %v5648_v52 = vpop.eup %4437 }
0x1499   : > { %v5652_v58 = vpop.eup %4439 }
0x149f   : > { %v5656_v19 = vpop.eup %4441 }
0x14a0   : > { %v5660_v47 = vpop.eup %4443 }
0x14a2   : > { %v5664_v29 = vpop.eup %4445 }
0x14e2   : > { %v3230_v6 = vpop.permute.xlu0 %3229 }
0x14e3   : > { %v3253_v34 = vmul.f32 %v5637_v23, %v3230_v6 }
0x14e4   : > { %v3232_v30 = vpop.permute.xlu1 %3231 }
0x14e5   : > { %3269 = vrot.lane.b32.xlu0 %v3253_v34, %s4507_s17  ;;  %v3254_v28 = vmul.f32 %v5641_v44, %v3232_v30 }
0x14e6   : > { %v3236_v51 = vpop.permute.xlu0 %3235 }
0x14e7   : > { %v3256_v16 = vmul.f32 %v5644_v14, %v3236_v51  ;;  %3271 = vrot.lane.b32.xlu1 %v3254_v28, %s4507_s17 }
0x14e8   : > { %v3234_v3 = vpop.permute.xlu1 %3233 }
0x14e9   : > { %v3255_v55 = vmul.f32 %v5648_v52, %v3234_v3  ;;  %3275 = vrot.lane.b32.xlu0 %v3256_v16, %s4507_s17 }
0x14ea   : > { %v3240_v43 = vpop.permute.xlu0 %3239 }
0x14eb   : > { %v3258_v18 = vmul.f32 %v5652_v58, %v3240_v43  ;;  %3273 = vrot.lane.b32.xlu1 %v3255_v55, %s4507_s17 }
0x14ec   : > { %v3238_v42 = vpop.permute.xlu1 %3237 }
0x14ed   : > { %v3257_v61 = vmul.f32 %v5656_v19, %v3238_v42  ;;  %3279 = vrot.lane.b32.xlu0 %v3258_v18, %s4507_s17 }
0x14ee   : > { %v3244_v54 = vpop.permute.xlu0 %3243 }
0x14ef   : > { %v3260_v1 = vmul.f32 %v5660_v47, %v3244_v54  ;;  %3277 = vrot.lane.b32.xlu1 %v3257_v61, %s4507_s17 }
0x14f0   : > { %v3242_v6 = vpop.permute.xlu1 %3241 }
0x14f1   : > { %v3259_v32 = vmul.f32 %v5664_v29, %v3242_v6  ;;  %3283 = vrot.lane.b32.xlu0 %v3260_v1, %s4507_s17 }
0x14f2   : > { %v860_v34 = vpop.permute.xlu0 %859 }
0x14f3   : > { %883 = vst.msk [vmem:[#allocation3 + $0x8] sm:$0x1] %vm881_vm11, %v860_v34  ;;  %3281 = vrot.lane.b32.xlu1 %v3259_v32, %s4507_s17 }
0x14f4   : > { %v858_v40 = vpop.permute.xlu1 %857 }
0x14f5   : > { %882 = vst.msk [vmem:[#allocation3] sm:$0x1] %vm881_vm11, %v858_v40  ;;  %867 = vrot.lane.b32.xlu0 %v4772_v0, %s4507_s17  ;;  %v3213_v0 = vmul.f32 %v5637_v23, %v5534_v27 }
0x14f6   : > { %v864_v36 = vpop.permute.xlu0 %863 }
0x14f7   : > { %885 = vst.msk [vmem:[#allocation3 + $0x18] sm:$0x1] %vm881_vm11, %v864_v36  ;;  %865 = vrot.lane.b32.xlu1 %v4775_v53, %s4507_s17 }
0x14f8   : > { %v862_v30 = vpop.permute.xlu1 %861 }
0x14f9   : > { %884 = vst.msk [vmem:[#allocation3 + $0x10] sm:$0x1] %vm881_vm11, %v862_v30  ;;  %871 = vrot.lane.b32.xlu0 %v4783_v56, %s4507_s17 }
0x14fb   : > { %869 = vrot.lane.b32.xlu1 %v4786_v8, %s4507_s17  ;;  %v3214_v8 = vmul.f32 %v5641_v44, %v5541_v2 }
0x14fd   : > { %1223 = vrot.lane.b32.xlu0 %v4886_v37, %s4507_s17 }
0x14ff   : > { %1221 = vrot.lane.b32.xlu1 %v4892_v41, %s4507_s17  ;;  %v3216_v41 = vmul.f32 %v5644_v14, %v5553_v5 }
0x1501   : > { %1227 = vrot.lane.b32.xlu0 %v4902_v31, %s4507_s17 }
0x1503   : > { %1225 = vrot.lane.b32.xlu1 %v4889_v39, %s4507_s17 }
0x1505   : > { %1231 = vrot.lane.b32.xlu0 %v4912_v4, %s4507_s17  ;;  %v3215_v4 = vmul.f32 %v5648_v52, %v5543_v35 }
0x1507   : > { %1229 = vrot.lane.b32.xlu1 %v4899_v59, %s4507_s17 }
0x1509   : > { %1235 = vrot.lane.b32.xlu0 %v4918_v7, %s4507_s17 }
0x150b   : > { %1233 = vrot.lane.b32.xlu1 %v4908_v50, %s4507_s17 }
0x150d   : > { %1579 = vrot.lane.b32.xlu0 %v5037_v33, %s4507_s17 }
0x150f   : > { %1577 = vrot.lane.b32.xlu1 %v5043_v22, %s4507_s17  ;;  %v3218_v22 = vmul.f32 %v5652_v58, %v5564_v9 }
0x1511   : > { %1583 = vrot.lane.b32.xlu0 %v5053_v46, %s4507_s17 }
0x1513   : > { %1581 = vrot.lane.b32.xlu1 %v5040_v15, %s4507_s17 }
0x1515   : > { %1587 = vrot.lane.b32.xlu0 %v5063_v24, %s4507_s17 }
0x1517   : > { %1585 = vrot.lane.b32.xlu1 %v5050_v60, %s4507_s17 }
0x1519   : > { %1591 = vrot.lane.b32.xlu0 %v5069_v21, %s4507_s17  ;;  %v3217_v21 = vmul.f32 %v5656_v19, %v5551_v63 }
0x151b   : > { %1589 = vrot.lane.b32.xlu1 %v5059_v12, %s4507_s17 }
0x151d   : > { %1935 = vrot.lane.b32.xlu0 %v5172_v49, %s4507_s17 }
0x151f   : > { %1933 = vrot.lane.b32.xlu1 %v5178_v62, %s4507_s17 }
0x1521   : > { %1939 = vrot.lane.b32.xlu0 %v5188_v48, %s4507_s17  ;;  %v3220_v48 = vmul.f32 %v5660_v47, %v5570_v10 }
0x1523   : > { %1937 = vrot.lane.b32.xlu1 %v5175_v17, %s4507_s17 }
0x1525   : > { %1943 = vrot.lane.b32.xlu0 %v5198_v45, %s4507_s17 }
0x1527   : > { %1941 = vrot.lane.b32.xlu1 %v5185_v38, %s4507_s17 }
0x1529   : > { %1947 = vrot.lane.b32.xlu0 %v5204_v57, %s4507_s17 }
0x152b   : > { %1945 = vrot.lane.b32.xlu1 %v5194_v26, %s4507_s17 }
0x152d   : > { %2291 = vrot.lane.b32.xlu0 %v5303_v13, %s4507_s17 }
0x152f   : > { %2289 = vrot.lane.b32.xlu1 %v5309_v25, %s4507_s17  ;;  %v3219_v25 = vmul.f32 %v5664_v29, %v5562_v20 }
0x1557   : > { %v3270_v53 = vpop.permute.xlu0 %3269 }
0x1558   : > { %v3293_v56 = vadd.f32 %v3270_v53, %v3213_v0  ;;  %v6004_v0 = vld [vmem:[#allocation8_spill] sm:$0xff] }
0x1559   : > { %v3272_v37 = vpop.permute.xlu1 %3271 }
0x155a   : > { %4447 = vtanh.f32 %v3293_v56  ;;  %v3294_v39 = vadd.f32 %v3272_v37, %v3214_v8  ;;  %v6006_v37 = vld [vmem:[#allocation9_spill] sm:$0xff] }
0x155b   : > { %v3276_v59 = vpop.permute.xlu0 %3275 }
0x155c   : > { %4449 = vtanh.f32 %v3294_v39  ;;  %v3415_v31 = vrot.slane %v3294_v39, 7  ;;  %v3296_v50 = vadd.f32 %v3276_v59, %v3216_v41  ;;  %v6007_v41 = vld [vmem:[#allocation12_spill] sm:$0xff] }
0x155d   : > { %v3274_v7 = vpop.permute.xlu1 %3273 }
0x155e   : > { %v3416_v33 = vsel %vm903_vm4, %v3415_v31, %v3293_v56  ;;  %4451 = vtanh.f32 %v3296_v50  ;;  %v3295_v15 = vadd.f32 %v3274_v7, %v3215_v4  ;;  %v3419_v49 = vrot.slane %v3296_v50, 5  ;;  %v6005_v56 = vld [vmem:[#allocation10_spill] sm:$0xff]  ;;  %v6008_v31 = vld [vmem:[#allocation11_spill] sm:$0xff]  ;;  %v6009_v4 = vld [vmem:[#allocation13_spill] sm:$0xff] }
0x155f   : > { %v3280_v60 = vpop.permute.xlu0 %3279 }
0x1560   : > { %4453 = vtanh.f32 %v3295_v15  ;;  %v3417_v12 = vrot.slane %v3295_v15, 6  ;;  %v3298_v24 = vadd.f32 %v3280_v60, %v3218_v22  ;;  %v6011_v22 = vld [vmem:[#allocation14_spill] sm:$0xff] }
0x1561   : > { %v3278_v17 = vpop.permute.xlu1 %3277 }
0x1562   : > { %v3418_v62 = vsel %vm906_vm5, %v3417_v12, %v3416_v33  ;;  %4455 = vtanh.f32 %v3298_v24  ;;  %v3297_v38 = vadd.f32 %v3278_v17, %v3217_v21  ;;  %v3423_v27 = vrot.slane %v3298_v24, 3  ;;  %v6010_v33 = vld [vmem:[#allocation16_spill] sm:$0xff]  ;;  %v6013_v24 = vld [vmem:[#allocation18_spill] sm:$0xff] }
0x1563   : > { %v3420_v26 = vsel %vm909_vm6, %v3419_v49, %v3418_v62  ;;  %v3284_v45 = vpop.permute.xlu0 %3283  ;;  %v6014_v49 = vld [vmem:[#allocation17_spill] sm:$0xff]  ;;  %v6015_v62 = vld [vmem:[#allocation20_spill] sm:$0xff] }
0x1564   : > { %4457 = vtanh.f32 %v3297_v38  ;;  %v3421_v57 = vrot.slane %v3297_v38, 4  ;;  %v3300_v13 = vadd.f32 %v3284_v45, %v3220_v48  ;;  %v6016_v48 = vld [vmem:[#allocation19_spill] sm:$0xff]  ;;  %v6017_v45 = vld [vmem:[#allocation21_spill] sm:$0xff] }
0x1565   : > { %v3282_v2 = vpop.permute.xlu1 %3281 }
0x1566   : > { %v3422_v35 = vsel %vm912_vm7, %v3421_v57, %v3420_v26  ;;  %4459 = vtanh.f32 %v3300_v13  ;;  %v3299_v63 = vadd.f32 %v3282_v2, %v3219_v25  ;;  %v3427_v51 = vrot.slane %v3300_v13, 1  ;;  %v6018_v25 = vld [vmem:[#allocation22_spill] sm:$0xff]  ;;  %v6019_v2 = vld [vmem:[#allocation23_spill] sm:$0xff] }
0x1567   : > { %v4448_v46 = vpop.eup %4447  ;;  %v868_v5 = vpop.permute.xlu0 %867  ;;  %v3424_v9 = vsel %vm915_vm8, %v3423_v27, %v3422_v35 }
0x1568   : > { %3317 = vrot.lane.b32.xlu1 %v4448_v46, %s4506_s16  ;;  %4461 = vtanh.f32 %v3299_v63  ;;  %v3425_v10 = vrot.slane %v3299_v63, 2  ;;  %887 = vst.msk [vmem:[#allocation3 + $0x28] sm:$0x1] %vm881_vm11, %v868_v5  ;;  %v6012_v46 = vld [vmem:[#allocation15_spill] sm:$0xff]  ;;  %v6020_v63 = vld [vmem:[#allocation25_spill] sm:$0xff] }
0x1569   : > { %v4450_v28 = vpop.eup %4449  ;;  %v866_v16 = vpop.permute.xlu1 %865 }
0x156a   : > { %886 = vst.msk [vmem:[#allocation3 + $0x20] sm:$0x1] %vm881_vm11, %v866_v16  ;;  %3319 = vrot.lane.b32.xlu0 %v4450_v28, %s4506_s16  ;;  %v3426_v20 = vsel %vm918_vm9, %v3425_v10, %v3424_v9  ;;  %v6022_v10 = vld [vmem:[#allocation27_spill] sm:$0xff] }
0x156b   : > { %v4452_v3 = vpop.eup %4451  ;;  %v872_v55 = vpop.permute.xlu0 %871  ;;  %v5760_v43 = vsel %vm921_vm10, %v3427_v51, %v3426_v20  ;;  %v6023_v51 = vld [vmem:[#allocation26_spill] sm:$0xff]  ;;  %v6024_v20 = vld [vmem:[#allocation28_spill] sm:$0xff] }
0x156c   : > { %889 = vst.msk [vmem:[#allocation3 + $0x38] sm:$0x1] %vm881_vm11, %v872_v55  ;;  %3323 = vrot.lane.b32.xlu1 %v4452_v3, %s4506_s16 }
0x156d   : > { %v4454_v18 = vpop.eup %4453  ;;  %v870_v42 = vpop.permute.xlu1 %869 }
0x156e   : > { %888 = vst.msk [vmem:[#allocation3 + $0x30] sm:$0x1] %vm881_vm11, %v870_v42  ;;  %3321 = vrot.lane.b32.xlu0 %v4454_v18, %s4506_s16 }
0x156f   : > { %v4456_v61 = vpop.eup %4455  ;;  %v1224_v54 = vpop.permute.xlu0 %1223 }
0x1570   : > { %1246 = vst.msk [vmem:[#allocation3 + $0x9] sm:$0x1] %vm881_vm11, %v1224_v54  ;;  %3327 = vrot.lane.b32.xlu1 %v4456_v61, %s4506_s16 }
0x1571   : > { %v4458_v1 = vpop.eup %4457  ;;  %v1222_v6 = vpop.permute.xlu1 %1221 }
0x1572   : > { %1245 = vst.msk [vmem:[#allocation3 + $0x1] sm:$0x1] %vm881_vm11, %v1222_v6  ;;  %3325 = vrot.lane.b32.xlu0 %v4458_v1, %s4506_s16 }
0x1573   : > { %v4460_v32 = vpop.eup %4459  ;;  %v1228_v34 = vpop.permute.xlu0 %1227 }
0x1574   : > { %1248 = vst.msk [vmem:[#allocation3 + $0x19] sm:$0x1] %vm881_vm11, %v1228_v34  ;;  %3331 = vrot.lane.b32.xlu1 %v4460_v32, %s4506_s16 }
0x1575   : > { %v4462_v40 = vpop.eup %4461  ;;  %v1226_v36 = vpop.permute.xlu1 %1225 }
0x1576   : > { %1247 = vst.msk [vmem:[#allocation3 + $0x11] sm:$0x1] %vm881_vm11, %v1226_v36  ;;  %3329 = vrot.lane.b32.xlu0 %v4462_v40, %s4506_s16  ;;  %s4508_s16 = smov 96  }
0x1577   : > { %v1232_v30 = vpop.permute.xlu0 %1231 }
0x1578   : > { %1250 = vst.msk [vmem:[#allocation3 + $0x29] sm:$0x1] %vm881_vm11, %v1232_v30  ;;  %2293 = vrot.lane.b32.xlu1 %v6004_v0, %s4507_s17 }
0x1579   : > { %v1230_v53 = vpop.permute.xlu1 %1229 }
0x157a   : > { %1249 = vst.msk [vmem:[#allocation3 + $0x21] sm:$0x1] %vm881_vm11, %v1230_v53  ;;  %2295 = vrot.lane.b32.xlu0 %v6005_v56, %s4507_s17 }
0x157b   : > { %v1236_v8 = vpop.permute.xlu0 %1235 }
0x157c   : > { %1252 = vst.msk [vmem:[#allocation3 + $0x39] sm:$0x1] %vm881_vm11, %v1236_v8  ;;  %2297 = vrot.lane.b32.xlu1 %v6006_v37, %s4507_s17 }
0x157d   : > { %v1234_v39 = vpop.permute.xlu1 %1233 }
0x157e   : > { %1251 = vst.msk [vmem:[#allocation3 + $0x31] sm:$0x1] %vm881_vm11, %v1234_v39  ;;  %2299 = vrot.lane.b32.xlu0 %v6007_v41, %s4507_s17 }
0x157f   : > { %v1580_v59 = vpop.permute.xlu0 %1579 }
0x1580   : > { %1602 = vst.msk [vmem:[#allocation3 + $0xa] sm:$0x1] %vm881_vm11, %v1580_v59  ;;  %2301 = vrot.lane.b32.xlu1 %v6008_v31, %s4507_s17 }
0x1581   : > { %v1578_v50 = vpop.permute.xlu1 %1577 }
0x1582   : > { %1601 = vst.msk [vmem:[#allocation3 + $0x2] sm:$0x1] %vm881_vm11, %v1578_v50  ;;  %2303 = vrot.lane.b32.xlu0 %v6009_v4, %s4507_s17 }
0x1583   : > { %v1584_v7 = vpop.permute.xlu0 %1583 }
0x1584   : > { %1604 = vst.msk [vmem:[#allocation3 + $0x1a] sm:$0x1] %vm881_vm11, %v1584_v7  ;;  %2645 = vrot.lane.b32.xlu1 %v6010_v33, %s4507_s17 }
0x1585   : > { %v1582_v15 = vpop.permute.xlu1 %1581 }
0x1586   : > { %1603 = vst.msk [vmem:[#allocation3 + $0x12] sm:$0x1] %vm881_vm11, %v1582_v15  ;;  %2647 = vrot.lane.b32.xlu0 %v6011_v22, %s4507_s17 }
0x1587   : > { %v1588_v60 = vpop.permute.xlu0 %1587 }
0x1588   : > { %1606 = vst.msk [vmem:[#allocation3 + $0x2a] sm:$0x1] %vm881_vm11, %v1588_v60  ;;  %2649 = vrot.lane.b32.xlu1 %v6012_v46, %s4507_s17 }
0x1589   : > { %v1586_v12 = vpop.permute.xlu1 %1585 }
0x158a   : > { %1605 = vst.msk [vmem:[#allocation3 + $0x22] sm:$0x1] %vm881_vm11, %v1586_v12  ;;  %2651 = vrot.lane.b32.xlu0 %v6013_v24, %s4507_s17 }
0x158b   : > { %v1592_v21 = vpop.permute.xlu0 %1591 }
0x158c   : > { %1608 = vst.msk [vmem:[#allocation3 + $0x3a] sm:$0x1] %vm881_vm11, %v1592_v21  ;;  %2653 = vrot.lane.b32.xlu1 %v6014_v49, %s4507_s17 }
0x158d   : > { %v1590_v17 = vpop.permute.xlu1 %1589 }
0x158e   : > { %1607 = vst.msk [vmem:[#allocation3 + $0x32] sm:$0x1] %vm881_vm11, %v1590_v17  ;;  %2655 = vrot.lane.b32.xlu0 %v6015_v62, %s4507_s17 }
0x158f   : > { %v1936_v38 = vpop.permute.xlu0 %1935 }
0x1590   : > { %1958 = vst.msk [vmem:[#allocation3 + $0xb] sm:$0x1] %vm881_vm11, %v1936_v38  ;;  %2657 = vrot.lane.b32.xlu1 %v6016_v48, %s4507_s17 }
0x1591   : > { %v1934_v26 = vpop.permute.xlu1 %1933 }
0x1592   : > { %1957 = vst.msk [vmem:[#allocation3 + $0x3] sm:$0x1] %vm881_vm11, %v1934_v26  ;;  %2659 = vrot.lane.b32.xlu0 %v6017_v45, %s4507_s17 }
0x1593   : > { %v1940_v57 = vpop.permute.xlu0 %1939 }
0x1594   : > { %1960 = vst.msk [vmem:[#allocation3 + $0x1b] sm:$0x1] %vm881_vm11, %v1940_v57  ;;  %3001 = vrot.lane.b32.xlu1 %v5587_v11, %s4507_s17  ;;  %v6021_v11 = vld [vmem:[#allocation24_spill] sm:$0xff] }
0x1595   : > { %v1938_v13 = vpop.permute.xlu1 %1937 }
0x1596   : > { %1959 = vst.msk [vmem:[#allocation3 + $0x13] sm:$0x1] %vm881_vm11, %v1938_v13  ;;  %3003 = vrot.lane.b32.xlu0 %v6018_v25, %s4507_s17 }
0x1597   : > { %v1944_v27 = vpop.permute.xlu0 %1943 }
0x1598   : > { %1962 = vst.msk [vmem:[#allocation3 + $0x2b] sm:$0x1] %vm881_vm11, %v1944_v27  ;;  %3005 = vrot.lane.b32.xlu1 %v6019_v2, %s4507_s17 }
0x1599   : > { %v1942_v35 = vpop.permute.xlu1 %1941 }
0x159a   : > { %1961 = vst.msk [vmem:[#allocation3 + $0x23] sm:$0x1] %vm881_vm11, %v1942_v35  ;;  %3007 = vrot.lane.b32.xlu0 %v6020_v63, %s4507_s17 }
0x159b   : > { %v1948_v5 = vpop.permute.xlu0 %1947 }
0x159c   : > { %1964 = vst.msk [vmem:[#allocation3 + $0x3b] sm:$0x1] %vm881_vm11, %v1948_v5  ;;  %3009 = vrot.lane.b32.xlu1 %v6021_v11, %s4507_s17 }
0x159d   : > { %v1946_v9 = vpop.permute.xlu1 %1945 }
0x159e   : > { %1963 = vst.msk [vmem:[#allocation3 + $0x33] sm:$0x1] %vm881_vm11, %v1946_v9  ;;  %3011 = vrot.lane.b32.xlu0 %v6022_v10, %s4507_s17 }
0x159f   : > { %v2292_v28 = vpop.permute.xlu0 %2291 }
0x15a0   : > { %2314 = vst.msk [vmem:[#allocation3 + $0xc] sm:$0x1] %vm881_vm11, %v2292_v28  ;;  %3013 = vrot.lane.b32.xlu1 %v6023_v51, %s4507_s17 }
0x15a1   : > { %v2290_v16 = vpop.permute.xlu1 %2289 }
0x15a2   : > { %2313 = vst.msk [vmem:[#allocation3 + $0x4] sm:$0x1] %vm881_vm11, %v2290_v16  ;;  %3015 = vrot.lane.b32.xlu0 %v6024_v20, %s4507_s17 }
0x15da   : > { %v3318_v3 = vpop.permute.xlu1 %3317 }
0x15db   : > { %v3341_v55 = vmul.f32 %v5637_v23, %v3318_v3 }
0x15dc   : > { %v3320_v18 = vpop.permute.xlu0 %3319 }
0x15dd   : > { %3357 = vrot.lane.b32.xlu1 %v3341_v55, %s4507_s17  ;;  %v3342_v42 = vmul.f32 %v5641_v44, %v3320_v18 }
0x15de   : > { %v3324_v61 = vpop.permute.xlu1 %3323 }
0x15df   : > { %3359 = vrot.lane.b32.xlu0 %v3342_v42, %s4507_s17  ;;  %v3389_v54 = vrot.slane %v3342_v42, 7  ;;  %v3344_v6 = vmul.f32 %v5644_v14, %v3324_v61 }
0x15e0   : > { %v3322_v1 = vpop.permute.xlu0 %3321 }
0x15e1   : > { %v3343_v32 = vmul.f32 %v5648_v52, %v3322_v1  ;;  %v3390_v23 = vsel %vm903_vm4, %v3389_v54, %v3341_v55  ;;  %v3393_v53 = vrot.slane %v3344_v6, 5 }
0x15e2   : > { %v3328_v34 = vpop.permute.xlu1 %3327 }
0x15e3   : > { %v3391_v40 = vrot.slane %v3343_v32, 6  ;;  %3363 = vrot.lane.b32.xlu0 %v3344_v6, %s4507_s17  ;;  %3361 = vrot.lane.b32.xlu1 %v3343_v32, %s4507_s17  ;;  %v3346_v30 = vmul.f32 %v5652_v58, %v3328_v34 }
0x15e4   : > { %v3326_v36 = vpop.permute.xlu0 %3325 }
0x15e5   : > { %v3392_v44 = vsel %vm906_vm5, %v3391_v40, %v3390_v23  ;;  %v3345_v0 = vmul.f32 %v5656_v19, %v3326_v36  ;;  %v3397_v59 = vrot.slane %v3346_v30, 3 }
0x15e6   : > { %v3332_v56 = vpop.permute.xlu1 %3331  ;;  %v3394_v52 = vsel %vm909_vm6, %v3393_v53, %v3392_v44 }
0x15e7   : > { %v3395_v14 = vrot.slane %v3345_v0, 4  ;;  %3367 = vrot.lane.b32.xlu0 %v3346_v30, %s4507_s17  ;;  %3365 = vrot.lane.b32.xlu1 %v3345_v0, %s4507_s17  ;;  %v3348_v8 = vmul.f32 %v5660_v47, %v3332_v56 }
0x15e8   : > { %v3330_v37 = vpop.permute.xlu0 %3329 }
0x15e9   : > { %v3396_v39 = vsel %vm912_vm7, %v3395_v14, %v3394_v52  ;;  %v3347_v41 = vmul.f32 %v5664_v29, %v3330_v37  ;;  %v3401_v19 = vrot.slane %v3348_v8, 1 }
0x15ea   : > { %v2294_v58 = vpop.permute.xlu1 %2293  ;;  %v3398_v4 = vsel %vm915_vm8, %v3397_v59, %v3396_v39 }
0x15eb   : > { %v3399_v31 = vrot.slane %v3347_v41, 2  ;;  %2315 = vst.msk [vmem:[#allocation3 + $0x14] sm:$0x1] %vm881_vm11, %v2294_v58  ;;  %3371 = vrot.lane.b32.xlu0 %v3348_v8, %s4507_s17  ;;  %3369 = vrot.lane.b32.xlu1 %v3347_v41, %s4507_s17 }
0x15ec   : > { %v2296_v50 = vpop.permute.xlu0 %2295 }
0x15ed   : > { %2316 = vst.msk [vmem:[#allocation3 + $0x1c] sm:$0x1] %vm881_vm11, %v2296_v50  ;;  %v3400_v47 = vsel %vm918_vm9, %v3399_v31, %v3398_v4 }
0x15ee   : > { %v2298_v7 = vpop.permute.xlu1 %2297  ;;  %v3402_v29 = vsel %vm921_vm10, %v3401_v19, %v3400_v47 }
0x15ef   : > { %2317 = vst.msk [vmem:[#allocation3 + $0x24] sm:$0x1] %vm881_vm11, %v2298_v7  ;;  %3429 = vrot.lane.b32.xlu0 %v5760_v43, %s4508_s16  ;;  %3403 = vrot.lane.b32.xlu1 %v3402_v29, %s4507_s17 }
0x15f0   : > { %v2300_v33 = vpop.permute.xlu0 %2299 }
0x15f1   : > { %2318 = vst.msk [vmem:[#allocation3 + $0x2c] sm:$0x1] %vm881_vm11, %v2300_v33 }
0x15f2   : > { %v2302_v15 = vpop.permute.xlu1 %2301 }
0x15f3   : > { %2319 = vst.msk [vmem:[#allocation3 + $0x34] sm:$0x1] %vm881_vm11, %v2302_v15 }
0x15f4   : > { %v2304_v22 = vpop.permute.xlu0 %2303 }
0x15f5   : > { %2320 = vst.msk [vmem:[#allocation3 + $0x3c] sm:$0x1] %vm881_vm11, %v2304_v22 }
0x15f6   : > { %v2646_v60 = vpop.permute.xlu1 %2645 }
0x15f7   : > { %2669 = vst.msk [vmem:[#allocation3 + $0x5] sm:$0x1] %vm881_vm11, %v2646_v60 }
0x15f8   : > { %v2648_v46 = vpop.permute.xlu0 %2647 }
0x15f9   : > { %2670 = vst.msk [vmem:[#allocation3 + $0xd] sm:$0x1] %vm881_vm11, %v2648_v46 }
0x15fa   : > { %v2650_v12 = vpop.permute.xlu1 %2649 }
0x15fb   : > { %2671 = vst.msk [vmem:[#allocation3 + $0x15] sm:$0x1] %vm881_vm11, %v2650_v12 }
0x15fc   : > { %v2652_v43 = vpop.permute.xlu0 %2651 }
0x15fd   : > { %2672 = vst.msk [vmem:[#allocation3 + $0x1d] sm:$0x1] %vm881_vm11, %v2652_v43 }
0x15fe   : > { %v2654_v24 = vpop.permute.xlu1 %2653 }
0x15ff   : > { %2673 = vst.msk [vmem:[#allocation3 + $0x25] sm:$0x1] %vm881_vm11, %v2654_v24 }
0x1600   : > { %v2656_v21 = vpop.permute.xlu0 %2655 }
0x1601   : > { %2674 = vst.msk [vmem:[#allocation3 + $0x2d] sm:$0x1] %vm881_vm11, %v2656_v21 }
0x1602   : > { %v2658_v49 = vpop.permute.xlu1 %2657 }
0x1603   : > { %2675 = vst.msk [vmem:[#allocation3 + $0x35] sm:$0x1] %vm881_vm11, %v2658_v49 }
0x1604   : > { %v2660_v17 = vpop.permute.xlu0 %2659 }
0x1605   : > { %2676 = vst.msk [vmem:[#allocation3 + $0x3d] sm:$0x1] %vm881_vm11, %v2660_v17 }
0x1606   : > { %v3002_v62 = vpop.permute.xlu1 %3001 }
0x1607   : > { %3025 = vst.msk [vmem:[#allocation3 + $0x6] sm:$0x1] %vm881_vm11, %v3002_v62 }
0x1608   : > { %v3004_v38 = vpop.permute.xlu0 %3003 }
0x1609   : > { %3026 = vst.msk [vmem:[#allocation3 + $0xe] sm:$0x1] %vm881_vm11, %v3004_v38 }
0x160a   : > { %v3006_v48 = vpop.permute.xlu1 %3005 }
0x160b   : > { %3027 = vst.msk [vmem:[#allocation3 + $0x16] sm:$0x1] %vm881_vm11, %v3006_v48 }
0x160c   : > { %v3008_v26 = vpop.permute.xlu0 %3007 }
0x160d   : > { %3028 = vst.msk [vmem:[#allocation3 + $0x1e] sm:$0x1] %vm881_vm11, %v3008_v26 }
0x160e   : > { %v3010_v45 = vpop.permute.xlu1 %3009 }
0x160f   : > { %3029 = vst.msk [vmem:[#allocation3 + $0x26] sm:$0x1] %vm881_vm11, %v3010_v45 }
0x1610   : > { %v3012_v57 = vpop.permute.xlu0 %3011 }
0x1611   : > { %3030 = vst.msk [vmem:[#allocation3 + $0x2e] sm:$0x1] %vm881_vm11, %v3012_v57 }
0x1612   : > { %v3014_v13 = vpop.permute.xlu1 %3013 }
0x1613   : > { %3031 = vst.msk [vmem:[#allocation3 + $0x36] sm:$0x1] %vm881_vm11, %v3014_v13 }
0x1614   : > { %v3016_v25 = vpop.permute.xlu0 %3015 }
0x1615   : > { %3032 = vst.msk [vmem:[#allocation3 + $0x3e] sm:$0x1] %vm881_vm11, %v3016_v25 }
0x164f   : > { %v3358_v27 = vpop.permute.xlu1 %3357 }
0x1650   : > { %3381 = vst.msk [vmem:[#allocation3 + $0x7] sm:$0x1] %vm881_vm11, %v3358_v27 }
0x1651   : > { %v3360_v35 = vpop.permute.xlu0 %3359 }
0x1652   : > { %3382 = vst.msk [vmem:[#allocation3 + $0xf] sm:$0x1] %vm881_vm11, %v3360_v35 }
0x1655   : > { %v3362_v63 = vpop.permute.xlu1 %3361  ;;  %v3364_v5 = vpop.permute.xlu0 %3363 }
0x1656   : > { %3383 = vst.msk [vmem:[#allocation3 + $0x17] sm:$0x1] %vm881_vm11, %v3362_v63  ;;  %3384 = vst.msk [vmem:[#allocation3 + $0x1f] sm:$0x1] %vm881_vm11, %v3364_v5 }
0x1657   : > { %v3433_v2 = vld [vmem:[#allocation3] sm:$0xff] }
0x1658   : > { %3441 = vst.msk [vmem:[%s4597_s18] sm:$0xff] %vm527_vm3, %v3433_v2 }
0x1659   : > { %v3434_v11 = vld [vmem:[#allocation3 + $0x8] sm:$0xff]  ;;  %v3366_v9 = vpop.permute.xlu1 %3365  ;;  %v3368_v10 = vpop.permute.xlu0 %3367 }
0x165a   : > { %3442 = vst.msk [vmem:[%s4597_s18 + $0x8] sm:$0xff] %vm527_vm3, %v3434_v11 }
0x165b   : > { %3385 = vst.msk [vmem:[#allocation3 + $0x27] sm:$0x1] %vm881_vm11, %v3366_v9  ;;  %3386 = vst.msk [vmem:[#allocation3 + $0x2f] sm:$0x1] %vm881_vm11, %v3368_v10 }
0x165d   : > { %v3435_v28 = vld [vmem:[#allocation3 + $0x10] sm:$0xff]  ;;  %v3436_v51 = vld [vmem:[#allocation3 + $0x18] sm:$0xff]  ;;  %v3370_v16 = vpop.permute.xlu1 %3369  ;;  %v3372_v20 = vpop.permute.xlu0 %3371 }
0x165e   : > { %3443 = vst.msk [vmem:[%s4597_s18 + $0x10] sm:$0xff] %vm527_vm3, %v3435_v28  ;;  %3444 = vst.msk [vmem:[%s4597_s18 + $0x18] sm:$0xff] %vm527_vm3, %v3436_v51 }
0x165f   : > { %3387 = vst.msk [vmem:[#allocation3 + $0x37] sm:$0x1] %vm881_vm11, %v3370_v16  ;;  %3388 = vst.msk [vmem:[#allocation3 + $0x3f] sm:$0x1] %vm881_vm11, %v3372_v20 }
0x1661   : > { %v3404_v18 = vpop.permute.xlu1 %3403  ;;  %v3430_v42 = vpop.permute.xlu0 %3429 }
0x1662   : > { %v3437_v3 = vld [vmem:[#allocation3 + $0x20] sm:$0xff]  ;;  %v3438_v55 = vld [vmem:[#allocation3 + $0x28] sm:$0xff]  ;;  %3406 = vst.msk [vmem:[#allocation4] sm:$0xff] %vm527_vm3, %v3404_v18  ;;  %3432 = vst.msk [vmem:[#allocation5] sm:$0xff] %vm527_vm3, %v3430_v42 }
0x1663   : > { %3445 = vst.msk [vmem:[%s4597_s18 + $0x20] sm:$0xff] %vm527_vm3, %v3437_v3  ;;  %3446 = vst.msk [vmem:[%s4597_s18 + $0x28] sm:$0xff] %vm527_vm3, %v3438_v55  ;;  %3452 = sbr.rel (%p3744_p12) target bundleno = 5737 (0x1669), region = 82 }
0x1666   : > { %v3439_v61 = vld [vmem:[#allocation3 + $0x30] sm:$0xff]  ;;  %v3440_v54 = vld [vmem:[#allocation3 + $0x38] sm:$0xff] }
0x1667   : > { %3447 = vst.msk [vmem:[%s4597_s18 + $0x30] sm:$0xff] %vm527_vm3, %v3439_v61  ;;  %3448 = vst.msk [vmem:[%s4597_s18 + $0x38] sm:$0xff] %vm527_vm3, %v3440_v54 }
0x1668   : > { %3453 = vst.msk [vmem:[%s5956_s5] sm:$0xff] %vm527_vm3, %v3404_v18  ;;  %3454 = vst.msk [vmem:[%s5957_s6] sm:$0xff] %vm527_vm3, %v3430_v42 }
0x1669 PF: > { %3469 = sbr.rel (!%p4579_p6) target bundleno = 5745 (0x1671), region = 86  ;;  %s3746_s29 = sshll.u32 (%p4579_p6), %s4493_s23, 3  ;;  %v3517_v1 = vld [vmem:[%s4597_s18] sm:$0xff] (%p4579_p6)  ;;  %v3519_v6 = vld [vmem:[%s4597_s18 + $0x8] sm:$0xff] (%p4579_p6)  ;;  %v3521_v32 = vld [vmem:[%s4597_s18 + $0x10] sm:$0xff] (%p4579_p6) }
0x166a   : > { %s3474_s10 = scalar_lea.vmem (%p4579_p6), %s5955_s4, %s3746_s29  ;;  %v3523_v34 = vld [vmem:[%s4597_s18 + $0x18] sm:$0xff] (%p4579_p6) }
0x166b   : > { %v3525_v40 = vld [vmem:[%s4597_s18 + $0x20] sm:$0xff] (%p4579_p6)  ;;  %v3527_v23 = vld [vmem:[%s4597_s18 + $0x28] sm:$0xff] (%p4579_p6)  ;;  %3518 = vst [vmem:[%s3474_s10] sm:$0xff] (%p4579_p6), %v3517_v1  ;;  %3520 = vst [vmem:[%s3474_s10 + $0x10] sm:$0xff] (%p4579_p6), %v3519_v6 }
0x166c   : > { %3522 = vst [vmem:[%s3474_s10 + $0x20] sm:$0xff] (%p4579_p6), %v3521_v32  ;;  %3524 = vst [vmem:[%s3474_s10 + $0x30] sm:$0xff] (%p4579_p6), %v3523_v34 }
0x166d   : > { %3526 = vst [vmem:[%s3474_s10 + $0x40] sm:$0xff] (%p4579_p6), %v3525_v40  ;;  %3528 = vst [vmem:[%s3474_s10 + $0x50] sm:$0xff] (%p4579_p6), %v3527_v23 }
0x166f   : > { %v3529_v36 = vld [vmem:[%s4597_s18 + $0x30] sm:$0xff]  ;;  %v3531_v44 = vld [vmem:[%s4597_s18 + $0x38] sm:$0xff] }
0x1670   : > { %3530 = vst [vmem:[%s3474_s10 + $0x60] sm:$0xff] %v3529_v36  ;;  %3532 = vst [vmem:[%s3474_s10 + $0x70] sm:$0xff] %v3531_v44 }
0x1671 PF: > { %s17_s25 = sadd.s32 1, %s4501_s25   ;;  %s6025_s21 = smov %s4489_s22 }
0x1672   : > { %p14_p13 = scmp.ge.s32.totalorder %s17_s25, 4   ;;  %s6026_s22 = smov %s4584_s7 }
0x1673   : > { %s6027_s23 = smov %s4497_s24  ;;  %s6028_s24 = smov %s6030_s26 }
0x1674   :  { %16 = sbr.rel (!%p14_p13) target bundleno = 3 (0x3), region = 179 }

</bundles_post_ra>
